<compile_context>
chip_gen: v6e
topology: v6e:2x2x1
jax: 0.10.0
libtpu: 0.0.40
codegen_flags: <defaults>
</compile_context>

<pallas_src>
import functools

import jax
import jax.numpy as jnp
from jax.experimental import pallas as pl
from jax.experimental.pallas import tpu as pltpu


def encoder_kernel(x_ref, w1_ref, b1_ref, w2_ref, b2_ref, w3_ref, b3_ref,
                   o_ref, *, tile_h):
    tile_m = x_ref.shape[0]
    H = w2_ref.shape[1]
    n_chunks = H // tile_h
    n_fold = tile_h // 128

    # Layer 1: Linear(D, D) + ReLU   (bf16 MXU inputs, f32 accumulation).
    h1 = jnp.dot(x_ref[...], w1_ref[...], preferred_element_type=jnp.float32)
    h1 = jnp.maximum(h1 + b1_ref[...], 0.0)            # (tile_m, D) f32
    h1_bf = h1.astype(jnp.bfloat16)                     # layer-2 MXU operand

    # Layers 2+3 fused over H chunks: never materialize (tile_m, H) h2.
    # Lane-parallel partial sums live in a (tile_m, 128) f32 accumulator
    # (32 vregs at tile_m=256); folding the (tile_m, tile_h) chunk down to
    # 128 lanes uses only lane-block-aligned slices + VPU adds.
    acc = jnp.zeros((tile_m, 128), jnp.float32)
    for c in range(n_chunks):
        lo = c * tile_h
        hi = lo + tile_h
        h2_c = jnp.dot(h1_bf, w2_ref[:, lo:hi],
                       preferred_element_type=jnp.float32)
        h2_c = jnp.maximum(h2_c + b2_ref[:, lo:hi], 0.0)   # (tile_m, tile_h)
        p = h2_c * w3_ref[:, lo:hi]                        # layer-3 VPU mul
        folded = p[:, 0:128]
        for f in range(1, n_fold):
            folded = folded + p[:, f * 128:(f + 1) * 128]
        acc = acc + folded

    # Single small cross-lane reduce, bias, sigmoid (EUP), plain store.
    logits = jnp.sum(acc, axis=-1, keepdims=True) + b3_ref[0]
    o_ref[...] = jax.nn.sigmoid(logits).astype(o_ref.dtype)


def prepare_params(params):
    """One-time conversion of f32 (in,out)-layout params to kernel dtypes.

    Call once and reuse; avoids re-casting w1/w2 to bf16 on every forward.
    """
    return {
        "w1": params["w1"].astype(jnp.bfloat16),                  # (D, D)
        "b1": params["b1"].reshape(1, -1).astype(jnp.float32),    # (1, D)
        "w2": params["w2"].astype(jnp.bfloat16),                  # (D, H)
        "b2": params["b2"].reshape(1, -1).astype(jnp.float32),    # (1, H)
        "w3": params["w3"].reshape(1, -1).astype(jnp.float32),    # (1, H) row
        "b3": params["b3"].reshape(1).astype(jnp.float32),        # (1,) SMEM
    }


def encoder_forward(x, prepped, *, tile_m=256, tile_h=512):
    """x: (B, D) float32.  prepped: output of prepare_params()."""
    B, D = x.shape
    H = prepped["w2"].shape[1]
    assert tile_m % 128 == 0, "tile_m must be a multiple of 128"
    assert tile_h % 128 == 0 and H % tile_h == 0, "tile_h must tile H by 128s"

    # Pad the batch to a multiple of tile_m (zeros; sliced off afterwards).
    G = pl.cdiv(B, tile_m)
    B_pad = G * tile_m
    x_bf = x.astype(jnp.bfloat16)
    if B_pad != B:
        x_bf = jnp.pad(x_bf, ((0, B_pad - B), (0, 0)))

    in_specs = [
        pl.BlockSpec((tile_m, D), lambda i: (i, 0)),            # x tile (bf16)
        pl.BlockSpec((D, D),      lambda i: (0, 0)),            # w1 (resident)
        pl.BlockSpec((1, D),      lambda i: (0, 0)),            # b1
        pl.BlockSpec((D, H),      lambda i: (0, 0)),            # w2 (resident)
        pl.BlockSpec((1, H),      lambda i: (0, 0)),            # b2
        pl.BlockSpec((1, H),      lambda i: (0, 0)),            # w3 row
        pl.BlockSpec(memory_space=pltpu.MemorySpace.SMEM),      # b3 scalar
    ]
    out_specs = pl.BlockSpec((tile_m, 1), lambda i: (i, 0))     # plain column

    out = pl.pallas_call(
        functools.partial(encoder_kernel, tile_h=tile_h),
        out_shape=jax.ShapeDtypeStruct((B_pad, 1), jnp.float32),
        grid_spec=pltpu.PrefetchScalarGridSpec(
            num_scalar_prefetch=0,
            grid=(G,),
            in_specs=in_specs,
            out_specs=out_specs,
        ),
        compiler_params=pltpu.CompilerParams(
            dimension_semantics=("parallel",),   # batch grid shards across TCs
        ),
    )(x_bf, prepped["w1"], prepped["b1"], prepped["w2"], prepped["b2"],
      prepped["w3"], prepped["b3"])

    return out[:B]


def init_params(key, D, H):
    """Deterministic init mimicking nn.Linear's U(-1/sqrt(fan_in), 1/sqrt(fan_in))."""
    ks = jax.random.split(key, 6)

    def lin(kw, kb, fan_in, fan_out):
        bound = 1.0 / jnp.sqrt(jnp.float32(fan_in))
        w = jax.random.uniform(kw, (fan_in, fan_out), jnp.float32, -bound, bound)
        b = jax.random.uniform(kb, (fan_out,), jnp.float32, -bound, bound)
        return w, b

    w1, b1 = lin(ks[0], ks[1], D, D)   # Linear(X_tr.shape[1], layers[0]=D)
    w2, b2 = lin(ks[2], ks[3], D, H)   # Linear(layers[0], layers[1]=4096)
    w3, b3 = lin(ks[4], ks[5], H, 1)   # Linear(layers[1], layers[2]=1)
    return {"w1": w1, "b1": b1, "w2": w2, "b2": b2, "w3": w3, "b3": b3}


def reference_forward(x, p):
    h1 = jnp.maximum(x @ p["w1"] + p["b1"], 0.0)
    h2 = jnp.maximum(h1 @ p["w2"] + p["b2"], 0.0)
    return jax.nn.sigmoid(h2 @ p["w3"] + p["b3"])


if __name__ == "__main__":
    # Module-consistent shapes: input features D=128, hidden layers[1]=4096,
    # output layers[2]=1.  B=512 with tile_m=256 -> 2 grid steps (both v7x TCs).
    B, D, H = 512, 128, 4096

    key = jax.random.PRNGKey(0)
    kx, kp = jax.random.split(key)
    x = jax.random.normal(kx, (B, D), dtype=jnp.float32)
    params = init_params(kp, D, H)

    prepped = prepare_params(params)          # one-time dtype conversion
    out = encoder_forward(x, prepped, tile_m=256, tile_h=512)
    out = jax.block_until_ready(out)

    ref = jax.block_until_ready(reference_forward(x, params))
    assert out.shape == (B, 1)
    # Looser tolerance: kernel uses bf16 matmul inputs with f32 accumulation.
    assert jnp.allclose(out, ref, atol=2e-2, rtol=2e-2), "mismatch vs JAX reference"

    print("KERNEL_OK")
</pallas_src>

<mosaic_0001>
module attributes {stable_mosaic.version = 11 : i64} {
  func.func @encoder_kernel(%arg0: i32, %arg1: memref<256x128xbf16, #tpu.memory_space<vmem>>, %arg2: memref<128x128xbf16, #tpu.memory_space<vmem>>, %arg3: memref<1x128xf32, #tpu.memory_space<vmem>>, %arg4: memref<128x4096xbf16, #tpu.memory_space<vmem>>, %arg5: memref<1x4096xf32, #tpu.memory_space<vmem>>, %arg6: memref<1x4096xf32, #tpu.memory_space<vmem>>, %arg7: memref<1xf32, #tpu.memory_space<smem>>, %arg8: memref<256x1xf32, #tpu.memory_space<vmem>>) attributes {dimension_semantics = [#tpu.dimension_semantics<parallel>], iteration_bounds = array<i64: 2>, scalar_prefetch = 0 : i64, scratch_operands = 0 : i64, tpu.core_type = #tpu.core_type<tc>, window_params = [{transform_indices = @transform_0, window_bounds = array<i64: 256, 128>}, {pipeline_mode = #tpu.pipeline_mode<synchronous>, transform_indices = @transform_1, window_bounds = array<i64: 128, 128>}, {pipeline_mode = #tpu.pipeline_mode<synchronous>, transform_indices = @transform_2, window_bounds = array<i64: 1, 128>}, {pipeline_mode = #tpu.pipeline_mode<synchronous>, transform_indices = @transform_3, window_bounds = array<i64: 128, 4096>}, {pipeline_mode = #tpu.pipeline_mode<synchronous>, transform_indices = @transform_4, window_bounds = array<i64: 1, 4096>}, {pipeline_mode = #tpu.pipeline_mode<synchronous>, transform_indices = @transform_5, window_bounds = array<i64: 1, 4096>}, {transform_indices = @transform_6, window_bounds = array<i64: 1>}, {transform_indices = @transform_7, window_bounds = array<i64: 256, 1>}]} {
    %c0 = arith.constant 0 : index
    %c0_0 = arith.constant 0 : index
    %0 = vector.load %arg1[%c0, %c0_0] : memref<256x128xbf16, #tpu.memory_space<vmem>>, vector<256x128xbf16>
    %c0_1 = arith.constant 0 : index
    %c0_2 = arith.constant 0 : index
    %1 = vector.load %arg2[%c0_1, %c0_2] : memref<128x128xbf16, #tpu.memory_space<vmem>>, vector<128x128xbf16>
    %cst = arith.constant dense<0.000000e+00> : vector<256x128xf32>
    %2 = tpu.matmul %0, %1, %cst {dimension_numbers = #tpu.dot_dimension_numbers<[1], [0], [0], [1], [0, 0, 1, 1], [], []>} : vector<256x128xbf16>, vector<128x128xbf16>, vector<256x128xf32> -> vector<256x128xf32>
    %c0_3 = arith.constant 0 : index
    %c0_4 = arith.constant 0 : index
    %3 = vector.load %arg3[%c0_3, %c0_4] : memref<1x128xf32, #tpu.memory_space<vmem>>, vector<1x128xf32>
    %4 = vector.broadcast %3 : vector<1x128xf32> to vector<256x128xf32>
    %5 = arith.addf %2, %4 : vector<256x128xf32>
    %cst_5 = arith.constant 0.000000e+00 : f32
    %6 = vector.broadcast %cst_5 : f32 to vector<256x128xf32>
    %7 = arith.maximumf %5, %6 : vector<256x128xf32>
    %8 = arith.truncf %7 : vector<256x128xf32> to vector<256x128xbf16>
    %cst_6 = arith.constant 0.000000e+00 : f32
    %9 = vector.broadcast %cst_6 : f32 to vector<256x128xf32>
    %c0_7 = arith.constant 0 : index
    %c0_8 = arith.constant 0 : index
    %10 = vector.load %arg4[%c0_7, %c0_8] : memref<128x4096xbf16, #tpu.memory_space<vmem>>, vector<128x512xbf16>
    %cst_9 = arith.constant dense<0.000000e+00> : vector<256x512xf32>
    %11 = tpu.matmul %8, %10, %cst_9 {dimension_numbers = #tpu.dot_dimension_numbers<[1], [0], [0], [1], [0, 0, 1, 1], [], []>} : vector<256x128xbf16>, vector<128x512xbf16>, vector<256x512xf32> -> vector<256x512xf32>
    %c0_10 = arith.constant 0 : index
    %c0_11 = arith.constant 0 : index
    %12 = vector.load %arg5[%c0_10, %c0_11] : memref<1x4096xf32, #tpu.memory_space<vmem>>, vector<1x512xf32>
    %13 = vector.broadcast %12 : vector<1x512xf32> to vector<256x512xf32>
    %14 = arith.addf %11, %13 : vector<256x512xf32>
    %cst_12 = arith.constant 0.000000e+00 : f32
    %15 = vector.broadcast %cst_12 : f32 to vector<256x512xf32>
    %16 = arith.maximumf %14, %15 : vector<256x512xf32>
    %c0_13 = arith.constant 0 : index
    %c0_14 = arith.constant 0 : index
    %17 = vector.load %arg6[%c0_13, %c0_14] : memref<1x4096xf32, #tpu.memory_space<vmem>>, vector<1x512xf32>
    %18 = vector.broadcast %17 : vector<1x512xf32> to vector<256x512xf32>
    %19 = arith.mulf %16, %18 : vector<256x512xf32>
    %20 = vector.extract_strided_slice %19 {offsets = [0, 0], sizes = [256, 128], strides = [1, 1]} : vector<256x512xf32> to vector<256x128xf32>
    %21 = vector.extract_strided_slice %19 {offsets = [0, 128], sizes = [256, 128], strides = [1, 1]} : vector<256x512xf32> to vector<256x128xf32>
    %22 = arith.addf %20, %21 : vector<256x128xf32>
    %23 = vector.extract_strided_slice %19 {offsets = [0, 256], sizes = [256, 128], strides = [1, 1]} : vector<256x512xf32> to vector<256x128xf32>
    %24 = arith.addf %22, %23 : vector<256x128xf32>
    %25 = vector.extract_strided_slice %19 {offsets = [0, 384], sizes = [256, 128], strides = [1, 1]} : vector<256x512xf32> to vector<256x128xf32>
    %26 = arith.addf %24, %25 : vector<256x128xf32>
    %27 = arith.addf %9, %26 : vector<256x128xf32>
    %c0_15 = arith.constant 0 : index
    %c512 = arith.constant 512 : index
    %28 = vector.load %arg4[%c0_15, %c512] : memref<128x4096xbf16, #tpu.memory_space<vmem>>, vector<128x512xbf16>
    %cst_16 = arith.constant dense<0.000000e+00> : vector<256x512xf32>
    %29 = tpu.matmul %8, %28, %cst_16 {dimension_numbers = #tpu.dot_dimension_numbers<[1], [0], [0], [1], [0, 0, 1, 1], [], []>} : vector<256x128xbf16>, vector<128x512xbf16>, vector<256x512xf32> -> vector<256x512xf32>
    %c0_17 = arith.constant 0 : index
    %c512_18 = arith.constant 512 : index
    %30 = vector.load %arg5[%c0_17, %c512_18] : memref<1x4096xf32, #tpu.memory_space<vmem>>, vector<1x512xf32>
    %31 = vector.broadcast %30 : vector<1x512xf32> to vector<256x512xf32>
    %32 = arith.addf %29, %31 : vector<256x512xf32>
    %cst_19 = arith.constant 0.000000e+00 : f32
    %33 = vector.broadcast %cst_19 : f32 to vector<256x512xf32>
    %34 = arith.maximumf %32, %33 : vector<256x512xf32>
    %c0_20 = arith.constant 0 : index
    %c512_21 = arith.constant 512 : index
    %35 = vector.load %arg6[%c0_20, %c512_21] : memref<1x4096xf32, #tpu.memory_space<vmem>>, vector<1x512xf32>
    %36 = vector.broadcast %35 : vector<1x512xf32> to vector<256x512xf32>
    %37 = arith.mulf %34, %36 : vector<256x512xf32>
    %38 = vector.extract_strided_slice %37 {offsets = [0, 0], sizes = [256, 128], strides = [1, 1]} : vector<256x512xf32> to vector<256x128xf32>
    %39 = vector.extract_strided_slice %37 {offsets = [0, 128], sizes = [256, 128], strides = [1, 1]} : vector<256x512xf32> to vector<256x128xf32>
    %40 = arith.addf %38, %39 : vector<256x128xf32>
    %41 = vector.extract_strided_slice %37 {offsets = [0, 256], sizes = [256, 128], strides = [1, 1]} : vector<256x512xf32> to vector<256x128xf32>
    %42 = arith.addf %40, %41 : vector<256x128xf32>
    %43 = vector.extract_strided_slice %37 {offsets = [0, 384], sizes = [256, 128], strides = [1, 1]} : vector<256x512xf32> to vector<256x128xf32>
    %44 = arith.addf %42, %43 : vector<256x128xf32>
    %45 = arith.addf %27, %44 : vector<256x128xf32>
    %c0_22 = arith.constant 0 : index
    %c1024 = arith.constant 1024 : index
    %46 = vector.load %arg4[%c0_22, %c1024] : memref<128x4096xbf16, #tpu.memory_space<vmem>>, vector<128x512xbf16>
    %cst_23 = arith.constant dense<0.000000e+00> : vector<256x512xf32>
    %47 = tpu.matmul %8, %46, %cst_23 {dimension_numbers = #tpu.dot_dimension_numbers<[1], [0], [0], [1], [0, 0, 1, 1], [], []>} : vector<256x128xbf16>, vector<128x512xbf16>, vector<256x512xf32> -> vector<256x512xf32>
    %c0_24 = arith.constant 0 : index
    %c1024_25 = arith.constant 1024 : index
    %48 = vector.load %arg5[%c0_24, %c1024_25] : memref<1x4096xf32, #tpu.memory_space<vmem>>, vector<1x512xf32>
    %49 = vector.broadcast %48 : vector<1x512xf32> to vector<256x512xf32>
    %50 = arith.addf %47, %49 : vector<256x512xf32>
    %cst_26 = arith.constant 0.000000e+00 : f32
    %51 = vector.broadcast %cst_26 : f32 to vector<256x512xf32>
    %52 = arith.maximumf %50, %51 : vector<256x512xf32>
    %c0_27 = arith.constant 0 : index
    %c1024_28 = arith.constant 1024 : index
    %53 = vector.load %arg6[%c0_27, %c1024_28] : memref<1x4096xf32, #tpu.memory_space<vmem>>, vector<1x512xf32>
    %54 = vector.broadcast %53 : vector<1x512xf32> to vector<256x512xf32>
    %55 = arith.mulf %52, %54 : vector<256x512xf32>
    %56 = vector.extract_strided_slice %55 {offsets = [0, 0], sizes = [256, 128], strides = [1, 1]} : vector<256x512xf32> to vector<256x128xf32>
    %57 = vector.extract_strided_slice %55 {offsets = [0, 128], sizes = [256, 128], strides = [1, 1]} : vector<256x512xf32> to vector<256x128xf32>
    %58 = arith.addf %56, %57 : vector<256x128xf32>
    %59 = vector.extract_strided_slice %55 {offsets = [0, 256], sizes = [256, 128], strides = [1, 1]} : vector<256x512xf32> to vector<256x128xf32>
    %60 = arith.addf %58, %59 : vector<256x128xf32>
    %61 = vector.extract_strided_slice %55 {offsets = [0, 384], sizes = [256, 128], strides = [1, 1]} : vector<256x512xf32> to vector<256x128xf32>
    %62 = arith.addf %60, %61 : vector<256x128xf32>
    %63 = arith.addf %45, %62 : vector<256x128xf32>
    %c0_29 = arith.constant 0 : index
    %c1536 = arith.constant 1536 : index
    %64 = vector.load %arg4[%c0_29, %c1536] : memref<128x4096xbf16, #tpu.memory_space<vmem>>, vector<128x512xbf16>
    %cst_30 = arith.constant dense<0.000000e+00> : vector<256x512xf32>
    %65 = tpu.matmul %8, %64, %cst_30 {dimension_numbers = #tpu.dot_dimension_numbers<[1], [0], [0], [1], [0, 0, 1, 1], [], []>} : vector<256x128xbf16>, vector<128x512xbf16>, vector<256x512xf32> -> vector<256x512xf32>
    %c0_31 = arith.constant 0 : index
    %c1536_32 = arith.constant 1536 : index
    %66 = vector.load %arg5[%c0_31, %c1536_32] : memref<1x4096xf32, #tpu.memory_space<vmem>>, vector<1x512xf32>
    %67 = vector.broadcast %66 : vector<1x512xf32> to vector<256x512xf32>
    %68 = arith.addf %65, %67 : vector<256x512xf32>
    %cst_33 = arith.constant 0.000000e+00 : f32
    %69 = vector.broadcast %cst_33 : f32 to vector<256x512xf32>
    %70 = arith.maximumf %68, %69 : vector<256x512xf32>
    %c0_34 = arith.constant 0 : index
    %c1536_35 = arith.constant 1536 : index
    %71 = vector.load %arg6[%c0_34, %c1536_35] : memref<1x4096xf32, #tpu.memory_space<vmem>>, vector<1x512xf32>
    %72 = vector.broadcast %71 : vector<1x512xf32> to vector<256x512xf32>
    %73 = arith.mulf %70, %72 : vector<256x512xf32>
    %74 = vector.extract_strided_slice %73 {offsets = [0, 0], sizes = [256, 128], strides = [1, 1]} : vector<256x512xf32> to vector<256x128xf32>
    %75 = vector.extract_strided_slice %73 {offsets = [0, 128], sizes = [256, 128], strides = [1, 1]} : vector<256x512xf32> to vector<256x128xf32>
    %76 = arith.addf %74, %75 : vector<256x128xf32>
    %77 = vector.extract_strided_slice %73 {offsets = [0, 256], sizes = [256, 128], strides = [1, 1]} : vector<256x512xf32> to vector<256x128xf32>
    %78 = arith.addf %76, %77 : vector<256x128xf32>
    %79 = vector.extract_strided_slice %73 {offsets = [0, 384], sizes = [256, 128], strides = [1, 1]} : vector<256x512xf32> to vector<256x128xf32>
    %80 = arith.addf %78, %79 : vector<256x128xf32>
    %81 = arith.addf %63, %80 : vector<256x128xf32>
    %c0_36 = arith.constant 0 : index
    %c2048 = arith.constant 2048 : index
    %82 = vector.load %arg4[%c0_36, %c2048] : memref<128x4096xbf16, #tpu.memory_space<vmem>>, vector<128x512xbf16>
    %cst_37 = arith.constant dense<0.000000e+00> : vector<256x512xf32>
    %83 = tpu.matmul %8, %82, %cst_37 {dimension_numbers = #tpu.dot_dimension_numbers<[1], [0], [0], [1], [0, 0, 1, 1], [], []>} : vector<256x128xbf16>, vector<128x512xbf16>, vector<256x512xf32> -> vector<256x512xf32>
    %c0_38 = arith.constant 0 : index
    %c2048_39 = arith.constant 2048 : index
    %84 = vector.load %arg5[%c0_38, %c2048_39] : memref<1x4096xf32, #tpu.memory_space<vmem>>, vector<1x512xf32>
    %85 = vector.broadcast %84 : vector<1x512xf32> to vector<256x512xf32>
    %86 = arith.addf %83, %85 : vector<256x512xf32>
    %cst_40 = arith.constant 0.000000e+00 : f32
    %87 = vector.broadcast %cst_40 : f32 to vector<256x512xf32>
    %88 = arith.maximumf %86, %87 : vector<256x512xf32>
    %c0_41 = arith.constant 0 : index
    %c2048_42 = arith.constant 2048 : index
    %89 = vector.load %arg6[%c0_41, %c2048_42] : memref<1x4096xf32, #tpu.memory_space<vmem>>, vector<1x512xf32>
    %90 = vector.broadcast %89 : vector<1x512xf32> to vector<256x512xf32>
    %91 = arith.mulf %88, %90 : vector<256x512xf32>
    %92 = vector.extract_strided_slice %91 {offsets = [0, 0], sizes = [256, 128], strides = [1, 1]} : vector<256x512xf32> to vector<256x128xf32>
    %93 = vector.extract_strided_slice %91 {offsets = [0, 128], sizes = [256, 128], strides = [1, 1]} : vector<256x512xf32> to vector<256x128xf32>
    %94 = arith.addf %92, %93 : vector<256x128xf32>
    %95 = vector.extract_strided_slice %91 {offsets = [0, 256], sizes = [256, 128], strides = [1, 1]} : vector<256x512xf32> to vector<256x128xf32>
    %96 = arith.addf %94, %95 : vector<256x128xf32>
    %97 = vector.extract_strided_slice %91 {offsets = [0, 384], sizes = [256, 128], strides = [1, 1]} : vector<256x512xf32> to vector<256x128xf32>
    %98 = arith.addf %96, %97 : vector<256x128xf32>
    %99 = arith.addf %81, %98 : vector<256x128xf32>
    %c0_43 = arith.constant 0 : index
    %c2560 = arith.constant 2560 : index
    %100 = vector.load %arg4[%c0_43, %c2560] : memref<128x4096xbf16, #tpu.memory_space<vmem>>, vector<128x512xbf16>
    %cst_44 = arith.constant dense<0.000000e+00> : vector<256x512xf32>
    %101 = tpu.matmul %8, %100, %cst_44 {dimension_numbers = #tpu.dot_dimension_numbers<[1], [0], [0], [1], [0, 0, 1, 1], [], []>} : vector<256x128xbf16>, vector<128x512xbf16>, vector<256x512xf32> -> vector<256x512xf32>
    %c0_45 = arith.constant 0 : index
    %c2560_46 = arith.constant 2560 : index
    %102 = vector.load %arg5[%c0_45, %c2560_46] : memref<1x4096xf32, #tpu.memory_space<vmem>>, vector<1x512xf32>
    %103 = vector.broadcast %102 : vector<1x512xf32> to vector<256x512xf32>
    %104 = arith.addf %101, %103 : vector<256x512xf32>
    %cst_47 = arith.constant 0.000000e+00 : f32
    %105 = vector.broadcast %cst_47 : f32 to vector<256x512xf32>
    %106 = arith.maximumf %104, %105 : vector<256x512xf32>
    %c0_48 = arith.constant 0 : index
    %c2560_49 = arith.constant 2560 : index
    %107 = vector.load %arg6[%c0_48, %c2560_49] : memref<1x4096xf32, #tpu.memory_space<vmem>>, vector<1x512xf32>
    %108 = vector.broadcast %107 : vector<1x512xf32> to vector<256x512xf32>
    %109 = arith.mulf %106, %108 : vector<256x512xf32>
    %110 = vector.extract_strided_slice %109 {offsets = [0, 0], sizes = [256, 128], strides = [1, 1]} : vector<256x512xf32> to vector<256x128xf32>
    %111 = vector.extract_strided_slice %109 {offsets = [0, 128], sizes = [256, 128], strides = [1, 1]} : vector<256x512xf32> to vector<256x128xf32>
    %112 = arith.addf %110, %111 : vector<256x128xf32>
    %113 = vector.extract_strided_slice %109 {offsets = [0, 256], sizes = [256, 128], strides = [1, 1]} : vector<256x512xf32> to vector<256x128xf32>
    %114 = arith.addf %112, %113 : vector<256x128xf32>
    %115 = vector.extract_strided_slice %109 {offsets = [0, 384], sizes = [256, 128], strides = [1, 1]} : vector<256x512xf32> to vector<256x128xf32>
    %116 = arith.addf %114, %115 : vector<256x128xf32>
    %117 = arith.addf %99, %116 : vector<256x128xf32>
    %c0_50 = arith.constant 0 : index
    %c3072 = arith.constant 3072 : index
    %118 = vector.load %arg4[%c0_50, %c3072] : memref<128x4096xbf16, #tpu.memory_space<vmem>>, vector<128x512xbf16>
    %cst_51 = arith.constant dense<0.000000e+00> : vector<256x512xf32>
    %119 = tpu.matmul %8, %118, %cst_51 {dimension_numbers = #tpu.dot_dimension_numbers<[1], [0], [0], [1], [0, 0, 1, 1], [], []>} : vector<256x128xbf16>, vector<128x512xbf16>, vector<256x512xf32> -> vector<256x512xf32>
    %c0_52 = arith.constant 0 : index
    %c3072_53 = arith.constant 3072 : index
    %120 = vector.load %arg5[%c0_52, %c3072_53] : memref<1x4096xf32, #tpu.memory_space<vmem>>, vector<1x512xf32>
    %121 = vector.broadcast %120 : vector<1x512xf32> to vector<256x512xf32>
    %122 = arith.addf %119, %121 : vector<256x512xf32>
    %cst_54 = arith.constant 0.000000e+00 : f32
    %123 = vector.broadcast %cst_54 : f32 to vector<256x512xf32>
    %124 = arith.maximumf %122, %123 : vector<256x512xf32>
    %c0_55 = arith.constant 0 : index
    %c3072_56 = arith.constant 3072 : index
    %125 = vector.load %arg6[%c0_55, %c3072_56] : memref<1x4096xf32, #tpu.memory_space<vmem>>, vector<1x512xf32>
    %126 = vector.broadcast %125 : vector<1x512xf32> to vector<256x512xf32>
    %127 = arith.mulf %124, %126 : vector<256x512xf32>
    %128 = vector.extract_strided_slice %127 {offsets = [0, 0], sizes = [256, 128], strides = [1, 1]} : vector<256x512xf32> to vector<256x128xf32>
    %129 = vector.extract_strided_slice %127 {offsets = [0, 128], sizes = [256, 128], strides = [1, 1]} : vector<256x512xf32> to vector<256x128xf32>
    %130 = arith.addf %128, %129 : vector<256x128xf32>
    %131 = vector.extract_strided_slice %127 {offsets = [0, 256], sizes = [256, 128], strides = [1, 1]} : vector<256x512xf32> to vector<256x128xf32>
    %132 = arith.addf %130, %131 : vector<256x128xf32>
    %133 = vector.extract_strided_slice %127 {offsets = [0, 384], sizes = [256, 128], strides = [1, 1]} : vector<256x512xf32> to vector<256x128xf32>
    %134 = arith.addf %132, %133 : vector<256x128xf32>
    %135 = arith.addf %117, %134 : vector<256x128xf32>
    %c0_57 = arith.constant 0 : index
    %c3584 = arith.constant 3584 : index
    %136 = vector.load %arg4[%c0_57, %c3584] : memref<128x4096xbf16, #tpu.memory_space<vmem>>, vector<128x512xbf16>
    %cst_58 = arith.constant dense<0.000000e+00> : vector<256x512xf32>
    %137 = tpu.matmul %8, %136, %cst_58 {dimension_numbers = #tpu.dot_dimension_numbers<[1], [0], [0], [1], [0, 0, 1, 1], [], []>} : vector<256x128xbf16>, vector<128x512xbf16>, vector<256x512xf32> -> vector<256x512xf32>
    %c0_59 = arith.constant 0 : index
    %c3584_60 = arith.constant 3584 : index
    %138 = vector.load %arg5[%c0_59, %c3584_60] : memref<1x4096xf32, #tpu.memory_space<vmem>>, vector<1x512xf32>
    %139 = vector.broadcast %138 : vector<1x512xf32> to vector<256x512xf32>
    %140 = arith.addf %137, %139 : vector<256x512xf32>
    %cst_61 = arith.constant 0.000000e+00 : f32
    %141 = vector.broadcast %cst_61 : f32 to vector<256x512xf32>
    %142 = arith.maximumf %140, %141 : vector<256x512xf32>
    %c0_62 = arith.constant 0 : index
    %c3584_63 = arith.constant 3584 : index
    %143 = vector.load %arg6[%c0_62, %c3584_63] : memref<1x4096xf32, #tpu.memory_space<vmem>>, vector<1x512xf32>
    %144 = vector.broadcast %143 : vector<1x512xf32> to vector<256x512xf32>
    %145 = arith.mulf %142, %144 : vector<256x512xf32>
    %146 = vector.extract_strided_slice %145 {offsets = [0, 0], sizes = [256, 128], strides = [1, 1]} : vector<256x512xf32> to vector<256x128xf32>
    %147 = vector.extract_strided_slice %145 {offsets = [0, 128], sizes = [256, 128], strides = [1, 1]} : vector<256x512xf32> to vector<256x128xf32>
    %148 = arith.addf %146, %147 : vector<256x128xf32>
    %149 = vector.extract_strided_slice %145 {offsets = [0, 256], sizes = [256, 128], strides = [1, 1]} : vector<256x512xf32> to vector<256x128xf32>
    %150 = arith.addf %148, %149 : vector<256x128xf32>
    %151 = vector.extract_strided_slice %145 {offsets = [0, 384], sizes = [256, 128], strides = [1, 1]} : vector<256x512xf32> to vector<256x128xf32>
    %152 = arith.addf %150, %151 : vector<256x128xf32>
    %153 = arith.addf %135, %152 : vector<256x128xf32>
    %cst_64 = arith.constant dense<0.000000e+00> : vector<256xf32>
    %154 = vector.multi_reduction <add>, %153, %cst_64 [1] : vector<256x128xf32> to vector<256xf32>
    %155 = vector.shape_cast %154 : vector<256xf32> to vector<256x1xf32>
    %c0_65 = arith.constant 0 : index
    %156 = memref.load %arg7[%c0_65] : memref<1xf32, #tpu.memory_space<smem>>
    %157 = vector.broadcast %156 : f32 to vector<256x1xf32>
    %158 = arith.addf %155, %157 : vector<256x1xf32>
    %159 = arith.negf %158 : vector<256x1xf32>
    %160 = math.exp %159 : vector<256x1xf32>
    %cst_66 = arith.constant 1.000000e+00 : f32
    %161 = vector.broadcast %cst_66 : f32 to vector<256x1xf32>
    %162 = arith.addf %161, %160 : vector<256x1xf32>
    %163 = arith.divf %161, %162 : vector<256x1xf32>
    %c0_67 = arith.constant 0 : index
    %c0_68 = arith.constant 0 : index
    %164 = vector.load %arg8[%c0_67, %c0_68] : memref<256x1xf32, #tpu.memory_space<vmem>>, vector<256x1xf32>
    tpu.vector_store %arg8[%c0_67, %c0_68], %163 {strides = array<i32>} : memref<256x1xf32, #tpu.memory_space<vmem>>, vector<256x1xf32>,
    return
  }
  func.func @transform_0(%arg0: i32) -> (i32, i32) {
    %c0_i32 = arith.constant 0 : i32
    %c0_i32_0 = arith.constant 0 : i32
    return %arg0, %c0_i32 : i32, i32
  }
  func.func @transform_1(%arg0: i32) -> (i32, i32) {
    %c0_i32 = arith.constant 0 : i32
    %c0_i32_0 = arith.constant 0 : i32
    %c0_i32_1 = arith.constant 0 : i32
    return %c0_i32, %c0_i32_0 : i32, i32
  }
  func.func @transform_2(%arg0: i32) -> (i32, i32) {
    %c0_i32 = arith.constant 0 : i32
    %c0_i32_0 = arith.constant 0 : i32
    %c0_i32_1 = arith.constant 0 : i32
    return %c0_i32, %c0_i32_0 : i32, i32
  }
  func.func @transform_3(%arg0: i32) -> (i32, i32) {
    %c0_i32 = arith.constant 0 : i32
    %c0_i32_0 = arith.constant 0 : i32
    %c0_i32_1 = arith.constant 0 : i32
    return %c0_i32, %c0_i32_0 : i32, i32
  }
  func.func @transform_4(%arg0: i32) -> (i32, i32) {
    %c0_i32 = arith.constant 0 : i32
    %c0_i32_0 = arith.constant 0 : i32
    %c0_i32_1 = arith.constant 0 : i32
    return %c0_i32, %c0_i32_0 : i32, i32
  }
  func.func @transform_5(%arg0: i32) -> (i32, i32) {
    %c0_i32 = arith.constant 0 : i32
    %c0_i32_0 = arith.constant 0 : i32
    %c0_i32_1 = arith.constant 0 : i32
    return %c0_i32, %c0_i32_0 : i32, i32
  }
  func.func @transform_6(%arg0: i32) -> i32 {
    %c0_i32 = arith.constant 0 : i32
    %c0_i32_0 = arith.constant 0 : i32
    return %c0_i32 : i32
  }
  func.func @transform_7(%arg0: i32) -> (i32, i32) {
    %c0_i32 = arith.constant 0 : i32
    %c0_i32_0 = arith.constant 0 : i32
    return %arg0, %c0_i32 : i32, i32
  }
}

</mosaic_0001>

<bundles_post_ra>
// kernel: tpu_custom_call.1
= control target key start
LH: loop header
LB: loop body
LE: loop exit
PB: predicated region body
PF: predicated region fallthrough
CT: control target
= control target key end

     0   :  { %s15607_s0 = inlined_call_operand.hbm [shape: bf16[512,128], index: 0, kind: input, shape index: {}]   ;;  %s15608_s1 = inlined_call_operand.hbm [shape: bf16[128,128], index: 1, kind: input, shape index: {}]   ;;  %s15609_s2 = inlined_call_operand.vmem [shape: f32[1,128], index: 2, kind: input, shape index: {}]   ;;  %s15610_s3 = inlined_call_operand.hbm [shape: bf16[128,4096], index: 3, kind: input, shape index: {}]   ;;  %s15611_s4 = inlined_call_operand.hbm [shape: f32[1,4096], index: 4, kind: input, shape index: {}]   ;;  %s15612_s5 = inlined_call_operand.hbm [shape: f32[1,4096], index: 5, kind: input, shape index: {}]   ;;  %s15613_s6 = inlined_call_operand.<no memory space> [shape: f32[1], index: 6, kind: input, shape index: {}]   ;;  %s15614_s7 = inlined_call_operand.vmem [shape: f32[512,1], index: 7, kind: output, shape index: {}]  }
   0x1   :  { %12 = sst [smem:[#allocation2]] %s15613_s6 }
   0x2   :  { %13 = vsyncpa [#allocation4], 0 }
   0x3   :  { %15 = vsyncpa [#allocation4 + $0x1], 0 }
   0x4   :  { %16 = vsyncpa [#allocation6], 0 }
   0x5   :  { %17 = vsyncpa [#allocation9], 0  ;;  %s10130_s26 = smov 0   ;;  %s10132_s27 = smov 0  }
   0x6   :  { %s10134_s28 = smov 0   ;;  %s10136_s29 = smov 0  }
   0x7 LB: > { %s9241_s6 = sadd.s32 4294967295, %s10075_s29   ;;  %p43_p0 = scmp.ne.s32.totalorder %s10067_s27, %s10063_s26  ;;  %s10075_s29 = sphi %s10136_s29, %s16254_s29   ;;  %s10071_s28 = sphi %s10134_s28, %s16253_s28   ;;  %s10067_s27 = sphi %s10132_s27, %s16252_s27   ;;  %s10063_s26 = sphi %s10130_s26, %s16251_s26  }
   0x8   : > { %p10152_p1 = scmp.eq.s32.totalorder %s9241_s6, 0  ;;  %p9243_p2 = scmp.ge.s32.totalorder %s10075_s29, 1 }
   0x9   : > { %p206_p3 = scmp.lt.s32.totalorder %s10075_s29, 3  ;;  %s10077_s10 = smov [#allocation5]  }
   0xa   : > { %s15727_s30 = scalar_select %p10152_p1, 1, 0 }
   0xb   : > { %p10160_p4 = por %p10152_p1, %p43_p0  ;;  %p10164_p5 = pnand %p9243_p2, %p206_p3 }
   0xc   : > { %s218_s11 = sshll.u32 %s10077_s10, 4  ;;  %s10078_s13 = smov [#allocation8]   ;;  %s219_s11 = int_to_ptr.vmem [resolvable:$true] %s218_s11 }
   0xd   : > { %s15728_s8 = scalar_select %p10160_p4, 1, 0 }
   0xe   : > { %s15729_s9 = scalar_select %p10164_p5, 1, 0 }
   0xf   : > { %p9682_p6 = pneg %p10164_p5  ;;  %s248_s14 = sshll.u32 %s10078_s13, 4  ;;  %s249_s14 = int_to_ptr.vmem [resolvable:$true] %s248_s14 }
  0x10   : > { %s10079_s15 = smov [#allocation7]   ;;  %s9912_s17 = scalar_lea.vmem %s219_s11, 1024 }
  0x11   : > { %p10172_p7 = pnand %p9682_p6, %p10152_p1  ;;  %s234_s16 = sshll.u32 %s10079_s15, 4  ;;  %s235_s16 = int_to_ptr.vmem [resolvable:$true] %s234_s16 }
  0x12   : > { %p9913_p9 = scmp.ne.s32.totalorder %s219_s11, %s9912_s17  ;;  %p9920_p12 = scmp.lt.s32.totalorder %s219_s11, %s219_s11 }
  0x13   : > { %p9903_p8 = pneg %p10172_p7  ;;  %p9921_p13 = scmp.lt.s32.totalorder %s9912_s17, %s9912_s17 }
  0x15   : > { %p9915_p10 = pnand %p9913_p9, %p9903_p8  ;;  %p9922_p0 = por %p9921_p13, %p9920_p12 }
  0x17   : > { %p9916_p11 = pneg %p9915_p10 }
  0x19   : > { %p9923_p2 = pnand %p9922_p0, %p9916_p11 }
  0x1b   : > { %9926 = shalt.err (!%p9923_p2)
}
  0x1c   : > { %s10080_s18 = smov 64   ;;  %s10081_s19 = smov 4  }
  0x1d   : > { %9685 = dma.hbm_to_vmem [thread:$0]  (!%p10172_p7), %s15608_s1, 1024, %s219_s11, [#allocation6], %s10080_s18, %s10080_s18, %s10081_s19  }
  0x1e   : > { %s9938_s22 = scalar_lea.vmem %s249_s14, 512  ;;  %p9946_p10 = scmp.lt.s32.totalorder %s249_s14, %s249_s14 }
  0x1f   : > { %p9939_p3 = scmp.ne.s32.totalorder %s249_s14, %s9938_s22  ;;  %p9947_p11 = scmp.lt.s32.totalorder %s9938_s22, %s9938_s22 }
  0x21   : > { %p9941_p6 = pnand %p9939_p3, %p9903_p8  ;;  %p9948_p12 = por %p9947_p11, %p9946_p10 }
  0x23   : > { %p9942_p9 = pneg %p9941_p6 }
  0x25   : > { %p9949_p13 = pnand %p9948_p12, %p9942_p9 }
  0x27   : > { %9952 = shalt.err (!%p9949_p13)
}
  0x28   : > { %9691 = dma.hbm_to_vmem [thread:$0]  (!%p10172_p7), %s15611_s4, 512, %s249_s14, [#allocation9]  }
  0x29   : > { %s9964_s25 = scalar_lea.vmem %s235_s16, 32768  ;;  %p9972_p6 = scmp.lt.s32.totalorder %s235_s16, %s235_s16 }
  0x2a   : > { %p9965_p0 = scmp.ne.s32.totalorder %s235_s16, %s9964_s25  ;;  %p9973_p1 = scmp.lt.s32.totalorder %s9964_s25, %s9964_s25 }
  0x2c   : > { %p9967_p2 = pnand %p9965_p0, %p9903_p8  ;;  %p9974_p4 = por %p9973_p1, %p9972_p6 }
  0x2e   : > { %p9968_p3 = pneg %p9967_p2 }
  0x30   : > { %p9975_p10 = pnand %p9974_p4, %p9968_p3 }
  0x32   : > { %9978 = shalt.err (!%p9975_p10)
}
  0x33   : > { %s10082_s26 = smov 2048   ;;  %s10083_s10 = smov 128  }
  0x34   : > { %9688 = dma.hbm_to_vmem [thread:$0]  (!%p10172_p7), %s15610_s3, 32768, %s235_s16, [#allocation6], %s10082_s26, %s10082_s26, %s10083_s10  }
  0x35   : > { %s10084_s14 = smov [#allocation10]  }
  0x36   : > { %s259_s15 = sshll.u32 %s10084_s14, 4  ;;  %s260_s15 = int_to_ptr.vmem [resolvable:$true] %s259_s15 }
  0x37   : > { %s9990_s17 = scalar_lea.vmem %s260_s15, 512  ;;  %p9998_p4 = scmp.lt.s32.totalorder %s260_s15, %s260_s15 }
  0x38   : > { %p9991_p9 = scmp.ne.s32.totalorder %s260_s15, %s9990_s17  ;;  %p9999_p12 = scmp.lt.s32.totalorder %s9990_s17, %s9990_s17 }
  0x3a   : > { %p9993_p11 = pnand %p9991_p9, %p9903_p8  ;;  %p10000_p13 = por %p9999_p12, %p9998_p4 }
  0x3c   : > { %p9994_p1 = pneg %p9993_p11 }
  0x3e   : > { %p10001_p0 = pnand %p10000_p13, %p9994_p1 }
  0x40   : > { %10004 = shalt.err (!%p10001_p0)
}
  0x41   : > { %9694 = dma.hbm_to_vmem [thread:$0]  (!%p10172_p7), %s15612_s5, 512, %s260_s15, [#allocation9]  }
  0x42   : > { %s10214_s16 = sadd.s32 1, %s10075_s29   ;;  %s30_s22 = sadd.s32 1, %s10071_s28 }
  0x43   : > { %s27_s23 = ssub.s32 %s10075_s29, %s10214_s16  ;;  %p37_p8 = scmp.ne.s32.totalorder %s10071_s28, %s10067_s27 }
  0x44   : > { %p28_p2 = scmp.eq.s32.totalorder %s27_s23, 0  ;;  %p38_p3 = scmp.eq.s32.totalorder %s10075_s29, 0 }
  0x45   : > { %p9703_p6 = scmp.lt.s32.totalorder %s10075_s29, 2  ;;  %s273_s12 = sand.u32 1, %s10071_s28  }
  0x46   : > { %s10225_s24 = scalar_select %p28_p2, %s10071_s28, %s30_s22  }
  0x47   : > { %p39_p10 = por %p38_p3, %p37_p8  ;;  %s9249_s25 = sshll.u32 %s273_s12, 7 }
  0x48   : > { %s9575_s26 = sshll.u32 %s10075_s29, 11  ;;  %s277_s14 = scalar_lea.vmem [#allocation3], %s9249_s25 }
  0x49   : > { %s10231_s13 = scalar_lea.hbm %s15607_s0, %s9575_s26  ;;  %s284_s15 = sshll.u32 %s277_s14, 4  ;;  %s10237_s15 = int_to_ptr.vmem [resolvable:$true] %s284_s15 }
  0x4a   : > { %p10233_p7 = pnand %p9703_p6, %p39_p10  ;;  %s10239_s20 = scalar_lea.sflag [#allocation4], %s273_s12 }
  0x4b   : > { %s10005_s21 = scalar_lea.hbm %s10231_s13, 2048  ;;  %s10010_s25 = scalar_lea.hbm %s15607_s0, 4096 }
  0x4c   : > { %p10006_p9 = scmp.ne.s32.totalorder %s10231_s13, %s10005_s21  ;;  %p10007_p11 = pneg %p10233_p7 }
  0x4d   : > { %p10011_p12 = scmp.lt.s32.totalorder %s10231_s13, %s15607_s0  ;;  %p10012_p13 = scmp.lt.s32.totalorder %s10010_s25, %s10005_s21 }
  0x4e   : > { %p10008_p1 = pnand %p10007_p11, %p10006_p9 }
  0x4f   : > { %p10013_p0 = por %p10012_p13, %p10011_p12 }
  0x50   : > { %p10009_p4 = pneg %p10008_p1 }
  0x52   : > { %p10014_p8 = pnand %p10013_p0, %p10009_p4 }
  0x54   : > { %10017 = shalt.err (!%p10014_p8)
}
  0x55   : > { %s10018_s12 = scalar_lea.vmem %s10237_s15, 2048  ;;  %s10085_s11 = smov [#allocation3]  }
  0x56   : > { %p10019_p2 = scmp.ne.s32.totalorder %s10237_s15, %s10018_s12  ;;  %s10023_s14 = sshll.u32 %s10085_s11, 4  ;;  %s10024_s14 = int_to_ptr.vmem [resolvable:$false] %s10023_s14 }
  0x57   : > { %s10025_s22 = scalar_lea.vmem %s10024_s14, 4096  ;;  %p10026_p10 = scmp.lt.s32.totalorder %s10237_s15, %s10024_s14 }
  0x58   : > { %p10021_p3 = pnand %p10019_p2, %p10007_p11  ;;  %p10027_p9 = scmp.lt.s32.totalorder %s10025_s22, %s10018_s12 }
  0x5a   : > { %p10022_p6 = pneg %p10021_p3  ;;  %p10028_p1 = por %p10027_p9, %p10026_p10 }
  0x5c   : > { %p10029_p5 = pnand %p10028_p1, %p10022_p6 }
  0x5e   : > { %10032 = shalt.err (!%p10029_p5)
}
  0x5f   : > { %9698 = dma.hbm_to_vmem [thread:$0]  (!%p10233_p7), %s10231_s13, 2048, %s10237_s15, %s10239_s20, %s10080_s18, %s10080_s18, %s10081_s19  }
  0x60   : > { %p15732_p11 = scmp.ne.s32.totalorder %s15729_s9, 0 }
  0x62   : > { %296 = sbr.rel (%p15732_p11) target bundleno = 1806 (0x70e), region = 48 }
  0x67   : > { %s298_s21 = sand.u32 1, %s10067_s27   ;;  %p15733_p5 = scmp.ne.s32.totalorder %s15728_s8, 0 }
  0x68   : > { %s9253_s23 = sshll.u32 %s298_s21, 7  ;;  %s299_s25 = scalar_lea.sflag [#allocation4], %s298_s21 }
  0x69   : > { %s10266_s26 = scalar_lea.vmem [#allocation3], %s9253_s23 }
  0x6a   : > { %10050 = dma.done.wait (%p15733_p5), %s299_s25, 2048  }
  0x6b   : > { %10052 = vsyncadd (%p15733_p5), %s299_s25, 4294965248  ;;  %p15734_p4 = scmp.ne.s32.totalorder %s15727_s30, 0 }
  0x6d   : > { %10054 = dma.done.wait (%p15734_p4), [#allocation6], 33792  }
  0x6e   : > { %10056 = vsyncadd (%p15734_p4), [#allocation6], 4294933504 }
  0x6f   : > { %10058 = dma.done.wait (%p15734_p4), [#allocation9], 1024  }
  0x70   : > { %10060 = vsyncadd (%p15734_p4), [#allocation9], 4294966272  ;;  %v9749_v0 = vld [vmem:[#allocation5 + $0x38] sm:$0xff]   ;;  %v9750_v1 = vld [vmem:[#allocation5 + $0x30] sm:$0xff]   ;;  %s8877_s9 = sld [smem:[#allocation2]]  ;;  %s9258_s18 = sshll.u32 %s9241_s6, 5 }
  0x71   : > { %9600 = vmatprep.subr.bf16.mxu0 %v9749_v0  ;;  %9648 = vmatprep.subr.bf16.mxu1 %v9749_v0  ;;  %v9751_v2 = vld [vmem:[#allocation5 + $0x28] sm:$0xff]   ;;  %v9752_v3 = vld [vmem:[#allocation5 + $0x20] sm:$0xff]   ;;  %v9753_v5 = vld [vmem:[#allocation5 + $0x18] sm:$0xff]   ;;  %p351_p7 = scmp.lt.s32.totalorder %s9258_s18, 63  ;;  %vm9103_vm0 = vcmask 7168  }
  0x72   : > { %9601 = vmatpush3.bf16.msra.mxu0 %v9749_v0  ;;  %9656 = vmatpush3.bf16.msra.mxu1 %v9749_v0  ;;  %v9757_v4 = vld [vmem:[%s10266_s26] sm:$0xff]   ;;  %v9754_v6 = vld [vmem:[#allocation5 + $0x10] sm:$0xff]   ;;  %v9755_v8 = vld [vmem:[#allocation5 + $0x8] sm:$0xff]  }
  0x73   : > { %9602 = vmatprep.subr.bf16.mxu0 %v9750_v1  ;;  %9649 = vmatprep.subr.bf16.mxu1 %v9750_v1  ;;  %v9765_v7 = vld [vmem:[%s10266_s26 + $0x40] sm:$0xff]   ;;  %v794_v12 = vld [vmem:[#allocation7 + $0x708] sm:$0xff]  ;;  %v9759_v22 = vld [vmem:[%s10266_s26 + $0x10] sm:$0xff]   ;;  %s16256_s18 = smov (!%p351_p7, %s9258_s18), 63 }
  0x74   : > { %9616 = vmatprep.mubr.bf16.mxu0 %v9757_v4  ;;  %9632 = vmatprep.mubr.bf16.mxu1 %v9765_v7  ;;  %v9756_v9 = vld [vmem:[#allocation5] sm:$0xff]   ;;  %v796_v13 = vld [vmem:[#allocation7 + $0x788] sm:$0xff]  ;;  %v9767_v23 = vld [vmem:[%s10266_s26 + $0x50] sm:$0xff]   ;;  %s9259_s19 = sshll.u32 %s16256_s18, 3 }
  0x75   : > { %v793_v10 = vld [vmem:[#allocation7 + $0x700] sm:$0xff]  ;;  %v9316_v15 = vcombine.high %v794_v12, %v796_v13  ;;  %v9758_v16 = vld [vmem:[%s10266_s26 + $0x8] sm:$0xff]   ;;  %v9315_v25 = vcombine.low %v794_v12, %v796_v13  ;;  %v9760_v34 = vld [vmem:[%s10266_s26 + $0x18] sm:$0xff]   ;;  %s15502_s13 = scalar_lea.vmem %s15614_s7, %s9259_s19 }
  0x76   : > { %9603 = vmatpush3.bf16.msra.mxu0 %v9750_v1  ;;  %9657 = vmatpush3.bf16.msra.mxu1 %v9750_v1  ;;  %v795_v11 = vld [vmem:[#allocation7 + $0x780] sm:$0xff]  ;;  %v9766_v17 = vld [vmem:[%s10266_s26 + $0x48] sm:$0xff]   ;;  %v9768_v35 = vld [vmem:[%s10266_s26 + $0x58] sm:$0xff]  }
  0x77   : > { %9604 = vmatprep.subr.bf16.mxu0 %v9751_v2  ;;  %9650 = vmatprep.subr.bf16.mxu1 %v9751_v2  ;;  %v9314_v14 = vcombine.high %v793_v10, %v795_v11  ;;  %v789_v18 = vld [vmem:[#allocation7 + $0x600] sm:$0xff]  ;;  %v790_v20 = vld [vmem:[#allocation7 + $0x608] sm:$0xff]  ;;  %v9313_v24 = vcombine.low %v793_v10, %v795_v11  ;;  %v9763_v58 = vld [vmem:[%s10266_s26 + $0x30] sm:$0xff]  }
  0x78   : > { %v791_v19 = vld [vmem:[#allocation7 + $0x680] sm:$0xff]  ;;  %v792_v21 = vld [vmem:[#allocation7 + $0x688] sm:$0xff]  ;;  %v9771_v59 = vld [vmem:[%s10266_s26 + $0x70] sm:$0xff]  }
  0x79   : > { %v9310_v26 = vcombine.high %v789_v18, %v791_v19  ;;  %v9312_v27 = vcombine.high %v790_v20, %v792_v21  ;;  %v785_v28 = vld [vmem:[#allocation7 + $0x500] sm:$0xff]  ;;  %v786_v30 = vld [vmem:[#allocation7 + $0x508] sm:$0xff]  ;;  %v9309_v32 = vcombine.low %v789_v18, %v791_v19  ;;  %v9311_v33 = vcombine.low %v790_v20, %v792_v21  ;;  %v9764_v62 = vld [vmem:[%s10266_s26 + $0x38] sm:$0xff]  }
  0x7a   : > { %9605 = vmatpush3.bf16.msra.mxu0 %v9751_v2  ;;  %9658 = vmatpush3.bf16.msra.mxu1 %v9751_v2  ;;  %v787_v29 = vld [vmem:[#allocation7 + $0x580] sm:$0xff]  ;;  %v788_v31 = vld [vmem:[#allocation7 + $0x588] sm:$0xff]  ;;  %v9772_v63 = vld [vmem:[%s10266_s26 + $0x78] sm:$0xff]  }
  0x7b   : > { %9606 = vmatprep.subr.bf16.mxu0 %v9752_v3  ;;  %9651 = vmatprep.subr.bf16.mxu1 %v9752_v3  ;;  %v9306_v36 = vcombine.high %v785_v28, %v787_v29  ;;  %v9308_v37 = vcombine.high %v786_v30, %v788_v31  ;;  %v781_v38 = vld [vmem:[#allocation7 + $0x400] sm:$0xff]  ;;  %v782_v40 = vld [vmem:[#allocation7 + $0x408] sm:$0xff]  ;;  %v9305_v44 = vcombine.low %v785_v28, %v787_v29  ;;  %v1800_v29 = vld [vmem:[#allocation7 + $0x718] sm:$0xff] }
  0x7c   : > { %v783_v39 = vld [vmem:[#allocation7 + $0x480] sm:$0xff]  ;;  %v784_v41 = vld [vmem:[#allocation7 + $0x488] sm:$0xff]  ;;  %v9307_v45 = vcombine.low %v786_v30, %v788_v31  ;;  %v1802_v30 = vld [vmem:[#allocation7 + $0x798] sm:$0xff] }
  0x7d   : > { %v9761_v42 = vld [vmem:[%s10266_s26 + $0x20] sm:$0xff]   ;;  %v9302_v46 = vcombine.high %v781_v38, %v783_v39  ;;  %v9304_v47 = vcombine.high %v782_v40, %v784_v41  ;;  %v778_v50 = vld [vmem:[#allocation7 + $0x308] sm:$0xff]  ;;  %v9301_v52 = vcombine.low %v781_v38, %v783_v39  ;;  %v9303_v53 = vcombine.low %v782_v40, %v784_v41 }
  0x7e   : > { %9607 = vmatpush3.bf16.msra.mxu0 %v9752_v3  ;;  %9659 = vmatpush3.bf16.msra.mxu1 %v9752_v3  ;;  %v9769_v43 = vld [vmem:[%s10266_s26 + $0x60] sm:$0xff]   ;;  %v780_v51 = vld [vmem:[#allocation7 + $0x388] sm:$0xff]  ;;  %v9347_v31 = vcombine.low %v1800_v29, %v1802_v30 }
  0x7f   : > { %9608 = vmatprep.subr.bf16.mxu0 %v9753_v5  ;;  %9652 = vmatprep.subr.bf16.mxu1 %v9753_v5  ;;  %v777_v48 = vld [vmem:[#allocation7 + $0x300] sm:$0xff]  ;;  %v9300_v55 = vcombine.high %v778_v50, %v780_v51  ;;  %v9762_v56 = vld [vmem:[%s10266_s26 + $0x28] sm:$0xff]   ;;  %v9299_v61 = vcombine.low %v778_v50, %v780_v51 }
  0x80   : > { %v779_v49 = vld [vmem:[#allocation7 + $0x380] sm:$0xff]  ;;  %v9770_v57 = vld [vmem:[%s10266_s26 + $0x68] sm:$0xff]  }
  0x81   : > { %v9298_v54 = vcombine.high %v777_v48, %v779_v49  ;;  %v9297_v60 = vcombine.low %v777_v48, %v779_v49  ;;  %v773_v0 = vld [vmem:[#allocation7 + $0x200] sm:$0xff]  ;;  %v774_v2 = vld [vmem:[#allocation7 + $0x208] sm:$0xff]  ;;  %v1796_v48 = vld [vmem:[#allocation7 + $0x618] sm:$0xff] }
  0x82   : > { %9609 = vmatpush3.bf16.msra.mxu0 %v9753_v5  ;;  %9660 = vmatpush3.bf16.msra.mxu1 %v9753_v5  ;;  %v775_v1 = vld [vmem:[#allocation7 + $0x280] sm:$0xff]  ;;  %v776_v4 = vld [vmem:[#allocation7 + $0x288] sm:$0xff]  ;;  %v1798_v49 = vld [vmem:[#allocation7 + $0x698] sm:$0xff] }
  0x83   : > { %9610 = vmatprep.subr.bf16.mxu0 %v9754_v6  ;;  %9653 = vmatprep.subr.bf16.mxu1 %v9754_v6  ;;  %v9294_v3 = vcombine.high %v773_v0, %v775_v1  ;;  %v9293_v5 = vcombine.low %v773_v0, %v775_v1  ;;  %v9296_v7 = vcombine.high %v774_v2, %v776_v4  ;;  %v770_v10 = vld [vmem:[#allocation7 + $0x108] sm:$0xff]  ;;  %v10304_v39 = vld [vmem:[#allocation7 + $0x720] sm:$0xff] }
  0x84   : > { %v772_v12 = vld [vmem:[#allocation7 + $0x188] sm:$0xff]  ;;  %v10306_v40 = vld [vmem:[#allocation7 + $0x7a0] sm:$0xff] }
  0x85   : > { %v766_v18 = vld [vmem:[#allocation7 + $0x8] sm:$0xff] }
  0x86   : > { %9611 = vmatpush3.bf16.msra.mxu0 %v9754_v6  ;;  %9661 = vmatpush3.bf16.msra.mxu1 %v9754_v6  ;;  %v9295_v6 = vcombine.low %v774_v2, %v776_v4  ;;  %v768_v20 = vld [vmem:[#allocation7 + $0x88] sm:$0xff] }
  0x87   : > { %9612 = vmatprep.subr.bf16.mxu0 %v9755_v8  ;;  %9654 = vmatprep.subr.bf16.mxu1 %v9755_v8  ;;  %v10323_v0 = vld [vmem:[#allocation7 + $0x7a8] sm:$0xff] }
  0x8a   : > { %9613 = vmatpush3.bf16.msra.mxu0 %v9755_v8  ;;  %9662 = vmatpush3.bf16.msra.mxu1 %v9755_v8  ;;  %v769_v8 = vld [vmem:[#allocation7 + $0x100] sm:$0xff] }
  0x8b   : > { %9614 = vmatprep.subr.bf16.mxu0 %v9756_v9  ;;  %9655 = vmatprep.subr.bf16.mxu1 %v9756_v9 }
  0x8e   : > { %9615 = vmatpush3.bf16.msra.mxu0 %v9756_v9  ;;  %9663 = vmatpush3.bf16.msra.mxu1 %v9756_v9  ;;  %v771_v9 = vld [vmem:[#allocation7 + $0x180] sm:$0xff] }
  0x8f   : > { %979 = vmatprep.subr.bf16.mxu1 %v9314_v14  ;;  %1172 = vmatprep.subr.bf16.mxu0 %v9316_v15  ;;  %v9290_v11 = vcombine.high %v769_v8, %v771_v9  ;;  %v9289_v13 = vcombine.low %v769_v8, %v771_v9  ;;  %v9291_v14 = vcombine.low %v770_v10, %v772_v12  ;;  %v1789_v8 = vld [vmem:[#allocation7 + $0x490] sm:$0xff]  ;;  %v1788_v9 = vld [vmem:[#allocation7 + $0x418] sm:$0xff] }
  0x90   : > { %v9292_v15 = vcombine.high %v770_v10, %v772_v12  ;;  %v1790_v10 = vld [vmem:[#allocation7 + $0x498] sm:$0xff] }
  0x91   : > { %9617 = vmatmul.mubr.bf16.vlgmr.msra.gmra.mxu0 %v9758_v16  ;;  %9633 = vmatmul.mubr.bf16.vlgmr.msra.gmra.mxu1 %v9766_v17  ;;  %v765_v16 = vld [vmem:[#allocation7] sm:$0xff] }
  0x92   : > { %9620 = vmatprep.mubr.bf16.mxu0 %v9759_v22  ;;  %9636 = vmatprep.mubr.bf16.mxu1 %v9767_v23  ;;  %v767_v17 = vld [vmem:[#allocation7 + $0x80] sm:$0xff]  ;;  %v9287_v22 = vcombine.low %v766_v18, %v768_v20  ;;  %v9288_v23 = vcombine.high %v766_v18, %v768_v20  ;;  %v9336_v18 = vcombine.high %v1788_v9, %v1790_v10  ;;  %v1785_v20 = vld [vmem:[#allocation7 + $0x390] sm:$0xff] }
  0x93   : > { %980 = vmatpush1.bf16.msra.mxu1 %v9313_v24  ;;  %1173 = vmatpush1.bf16.msra.mxu0 %v9315_v25  ;;  %v9286_v19 = vcombine.high %v765_v16, %v767_v17  ;;  %v9285_v21 = vcombine.low %v765_v16, %v767_v17  ;;  %v15619_v24 = vmov 0   ;;  %v1799_v25 = vld [vmem:[#allocation7 + $0x710] sm:$0xff] }
  0x94   : > { %981 = vmatprep.subr.bf16.mxu1 %v9310_v26  ;;  %1174 = vmatprep.subr.bf16.mxu0 %v9312_v27  ;;  %v1801_v26 = vld [vmem:[#allocation7 + $0x790] sm:$0xff] }
  0x95   : > { %v9345_v27 = vcombine.low %v1799_v25, %v1801_v26  ;;  %v9346_v28 = vcombine.high %v1799_v25, %v1801_v26 }
  0x97   : > { %982 = vmatpush1.bf16.msra.mxu1 %v9309_v32  ;;  %1175 = vmatpush1.bf16.msra.mxu0 %v9311_v33  ;;  %v9348_v32 = vcombine.high %v1800_v29, %v1802_v30 }
  0x98   : > { %983 = vmatprep.subr.bf16.mxu1 %v9306_v36  ;;  %1176 = vmatprep.subr.bf16.mxu0 %v9308_v37 }
  0x99   : > { %9621 = vmatmul.mubr.bf16.gmra.mxu0 %v9760_v34  ;;  %9637 = vmatmul.mubr.bf16.gmra.mxu1 %v9768_v35  ;;  %v10301_v35 = vld [vmem:[%s15609_s2] ss:$0 sm:$0xff] }
  0x9a   : > { %9624 = vmatprep.mubr.bf16.mxu0 %v9761_v42  ;;  %9640 = vmatprep.mubr.bf16.mxu1 %v9769_v43  ;;  %v1795_v43 = vld [vmem:[#allocation7 + $0x610] sm:$0xff] }
  0x9b   : > { %984 = vmatpush1.bf16.msra.mxu1 %v9305_v44  ;;  %1177 = vmatpush1.bf16.msra.mxu0 %v9307_v45  ;;  %v9377_v44 = vcombine.low %v10304_v39, %v10306_v40 }
  0x9c   : > { %985 = vmatprep.subr.bf16.mxu1 %v9302_v46  ;;  %1178 = vmatprep.subr.bf16.mxu0 %v9304_v47  ;;  %v1797_v47 = vld [vmem:[#allocation7 + $0x690] sm:$0xff] }
  0x9f   : > { %986 = vmatpush1.bf16.msra.mxu1 %v9301_v52  ;;  %1179 = vmatpush1.bf16.msra.mxu0 %v9303_v53  ;;  %v1791_v53 = vld [vmem:[#allocation7 + $0x510] sm:$0xff] }
  0xa0   : > { %987 = vmatprep.subr.bf16.mxu1 %v9298_v54  ;;  %1180 = vmatprep.subr.bf16.mxu0 %v9300_v55  ;;  %v9342_v55 = vcombine.high %v1795_v43, %v1797_v47 }
  0xa1   : > { %9625 = vmatmul.mubr.bf16.gmra.mxu0 %v9762_v56  ;;  %9641 = vmatmul.mubr.bf16.gmra.mxu1 %v9770_v57  ;;  %v9344_v56 = vcombine.high %v1796_v48, %v1798_v49  ;;  %v1793_v57 = vld [vmem:[#allocation7 + $0x590] sm:$0xff] }
  0xa2   : > { %9628 = vmatprep.mubr.bf16.mxu0 %v9763_v58  ;;  %9644 = vmatprep.mubr.bf16.mxu1 %v9771_v59  ;;  %v1792_v58 = vld [vmem:[#allocation7 + $0x518] sm:$0xff]  ;;  %v9338_v2 = vcombine.high %v1791_v53, %v1793_v57 }
  0xa3   : > { %988 = vmatpush1.bf16.msra.mxu1 %v9297_v60  ;;  %1181 = vmatpush1.bf16.msra.mxu0 %v9299_v61  ;;  %v1794_v59 = vld [vmem:[#allocation7 + $0x598] sm:$0xff]  ;;  %v9341_v61 = vcombine.low %v1795_v43, %v1797_v47 }
  0xa4   : > { %989 = vmatprep.subr.bf16.mxu1 %v9294_v3  ;;  %1182 = vmatprep.subr.bf16.mxu0 %v9296_v7  ;;  %v9340_v3 = vcombine.high %v1792_v58, %v1794_v59  ;;  %v9339_v12 = vcombine.low %v1792_v58, %v1794_v59  ;;  %v1771_v59 = vld [vmem:[#allocation7 + $0x10] sm:$0xff] }
  0xa7   : > { %990 = vmatpush1.bf16.msra.mxu1 %v9293_v5  ;;  %1183 = vmatpush1.bf16.msra.mxu0 %v9295_v6  ;;  %v1787_v5 = vld [vmem:[#allocation7 + $0x410] sm:$0xff] }
  0xa8   : > { %991 = vmatprep.subr.bf16.mxu1 %v9290_v11  ;;  %1184 = vmatprep.subr.bf16.mxu0 %v9292_v15  ;;  %v9337_v11 = vcombine.low %v1791_v53, %v1793_v57  ;;  %v9334_v17 = vcombine.high %v1787_v5, %v1789_v8  ;;  %v9333_v26 = vcombine.low %v1787_v5, %v1789_v8 }
  0xa9   : > { %9629 = vmatmul.mubr.bf16.gmra.mxu0 %v9764_v62  ;;  %9645 = vmatmul.mubr.bf16.gmra.mxu1 %v9772_v63  ;;  %v9343_v62 = vcombine.low %v1796_v48, %v1798_v49  ;;  %v10321_v63 = vld [vmem:[#allocation7 + $0x728] sm:$0xff]  ;;  %v1775_v48 = vld [vmem:[#allocation7 + $0x110] sm:$0xff] }
  0xaa   : > { %1011 = vmatprep.mubr.bf16.mxu1 %v15619_v24  ;;  %1204 = vmatprep.mubr.bf16.mxu0 %v15619_v24  ;;  %v9379_v6 = vcombine.low %v10321_v63, %v10323_v0  ;;  %v1777_v49 = vld [vmem:[#allocation7 + $0x190] sm:$0xff] }
  0xab   : > { %992 = vmatpush1.bf16.msra.mxu1 %v9289_v13  ;;  %1185 = vmatpush1.bf16.msra.mxu0 %v9291_v14  ;;  %v9322_v57 = vcombine.high %v1775_v48, %v1777_v49 }
  0xac   : > { %993 = vmatprep.subr.bf16.mxu1 %v9286_v19  ;;  %1186 = vmatprep.subr.bf16.mxu0 %v9288_v23  ;;  %v1783_v19 = vld [vmem:[#allocation7 + $0x310] sm:$0xff] }
  0xad   : > { %v9330_v29 = vcombine.high %v1783_v19, %v1785_v20 }
  0xaf   : > { %994 = vmatpush1.bf16.msra.mxu1 %v9285_v21  ;;  %1187 = vmatpush1.bf16.msra.mxu0 %v9287_v22  ;;  %v1784_v21 = vld [vmem:[#allocation7 + $0x318] sm:$0xff] }
  0xb0   : > { %1985 = vmatprep.subr.bf16.mxu1 %v9346_v28  ;;  %2178 = vmatprep.subr.bf16.mxu0 %v9348_v32  ;;  %v1786_v22 = vld [vmem:[#allocation7 + $0x398] sm:$0xff]  ;;  %v1781_v32 = vld [vmem:[#allocation7 + $0x290] sm:$0xff] }
  0xb1   : > { %v9332_v30 = vcombine.high %v1784_v21, %v1786_v22 }
 0x151   : > { %v9618_v33 = vpop.f32.mrf.mxu0 }
 0x152   : > { %v599_v60 = vadd.f32 %v9618_v33, %v10301_v35  ;;  %v1780_v33 = vld [vmem:[#allocation7 + $0x218] sm:$0xff] }
 0x153   : > { %v590_v34 = vpop.f32.mrf.mxu0 }
 0x154   : > { %v591_v37 = vadd.f32 %v10301_v35, %v590_v34  ;;  %v719_v7 = vmax.f32 %v599_v60, 0.0  ;;  %v1782_v34 = vld [vmem:[#allocation7 + $0x298] sm:$0xff]  ;;  %v1773_v60 = vld [vmem:[#allocation7 + $0x90] sm:$0xff] }
 0x155   : > { %v9619_v36 = vpop.f32.mrf.mxu0  ;;  %v9328_v47 = vcombine.high %v1780_v33, %v1782_v34  ;;  %v9318_v8 = vcombine.high %v1771_v59, %v1773_v60 }
 0x156   : > { %v717_v45 = vmax.f32 %v591_v37, 0.0  ;;  %v602_v51 = vadd.f32 %v9619_v36, %v10301_v35  ;;  %v9329_v36 = vcombine.low %v1783_v19, %v1785_v20  ;;  %v9331_v37 = vcombine.low %v1784_v21, %v1786_v22 }
 0x157   : > { %v593_v38 = vpop.f32.mrf.mxu0 }
 0x158   : > { %v594_v41 = vadd.f32 %v10301_v35, %v593_v38  ;;  %v720_v1 = vmax.f32 %v602_v51, 0.0 }
 0x159   : > { %v10309_v42 = vpop.f32.mrf.mxu0 }
 0x15a   : > { %v718_v46 = vmax.f32 %v594_v41, 0.0  ;;  %v10329_v13 = vpack.c.bf16 %v720_v1, %v719_v7  ;;  %v615_v38 = vadd.f32 %v10309_v42, %v10301_v35  ;;  %v1778_v42 = vld [vmem:[#allocation7 + $0x198] sm:$0xff]  ;;  %v9321_v1 = vcombine.low %v1775_v48, %v1777_v49 }
 0x15b   : > { %v606_v50 = vpop.f32.mrf.mxu0 }
 0x15c   : > { %v10314_v52 = vpack.c.bf16 %v718_v46, %v717_v45  ;;  %v607_v14 = vadd.f32 %v10301_v35, %v606_v50  ;;  %v1776_v50 = vld [vmem:[#allocation7 + $0x118] sm:$0xff]  ;;  %v723_v51 = vmax.f32 %v615_v38, 0.0 }
 0x15d   : > { %v10316_v54 = vpop.f32.mrf.mxu0  ;;  %v9324_v58 = vcombine.high %v1776_v50, %v1778_v42 }
 0x15e   : > { %1012 = vmatmul.mubr.bf16.vlgmr.msra.gmra.mxu1 %v10314_v52  ;;  %1205 = vmatmul.mubr.bf16.vlgmr.msra.gmra.mxu0 %v10314_v52  ;;  %v721_v23 = vmax.f32 %v607_v14, 0.0  ;;  %v618_v41 = vadd.f32 %v10316_v54, %v10301_v35 }
 0x15f   : > { %1986 = vmatpush1.bf16.msra.mxu1 %v9345_v27  ;;  %2179 = vmatpush1.bf16.msra.mxu0 %v9347_v31  ;;  %v609_v4 = vpop.f32.mrf.mxu0  ;;  %v9335_v27 = vcombine.low %v1788_v9, %v1790_v10  ;;  %v1779_v31 = vld [vmem:[#allocation7 + $0x210] sm:$0xff] }
 0x160   : > { %1021 = vmatprep.mubr.bf16.mxu1 %v15619_v24  ;;  %1214 = vmatprep.mubr.bf16.mxu0 %v15619_v24  ;;  %v610_v15 = vadd.f32 %v10301_v35, %v609_v4  ;;  %v9326_v46 = vcombine.high %v1779_v31, %v1781_v32  ;;  %v724_v53 = vmax.f32 %v618_v41, 0.0  ;;  %v9325_v54 = vcombine.low %v1779_v31, %v1781_v32 }
 0x161   : > { %1987 = vmatprep.subr.bf16.mxu1 %v9342_v55  ;;  %2180 = vmatprep.subr.bf16.mxu0 %v9344_v56  ;;  %v10333_v16 = vpop.f32.mrf.mxu0  ;;  %v9327_v55 = vcombine.low %v1780_v33, %v1782_v34 }
 0x162   : > { %v722_v25 = vmax.f32 %v610_v15, 0.0  ;;  %v631_v19 = vadd.f32 %v10333_v16, %v10301_v35 }
 0x163   : > { %1988 = vmatpush1.bf16.msra.mxu1 %v9341_v61  ;;  %2181 = vmatpush1.bf16.msra.mxu0 %v9343_v62  ;;  %v622_v28 = vpop.f32.mrf.mxu0  ;;  %v1772_v61 = vld [vmem:[#allocation7 + $0x18] sm:$0xff] }
 0x164   : > { %1989 = vmatprep.subr.bf16.mxu1 %v9338_v2  ;;  %2182 = vmatprep.subr.bf16.mxu0 %v9340_v3  ;;  %v10343_v43 = vpack.c.bf16 %v722_v25, %v721_v23  ;;  %v1774_v62 = vld [vmem:[#allocation7 + $0x98] sm:$0xff]  ;;  %v9323_v2 = vcombine.low %v1776_v50, %v1778_v42  ;;  %v10349_v3 = vpack.c.bf16 %v724_v53, %v723_v51  ;;  %v727_v23 = vmax.f32 %v631_v19, 0.0 }
 0x165   : > { %v9627_v45 = vpop.f32.mrf.mxu0  ;;  %v623_v4 = vadd.f32 %v10301_v35, %v622_v28  ;;  %v9320_v9 = vcombine.high %v1772_v61, %v1774_v62  ;;  %v9319_v14 = vcombine.low %v1772_v61, %v1774_v62 }
 0x166   : > { %1022 = vmatmul.mubr.bf16.gmra.mxu1 %v10329_v13  ;;  %1215 = vmatmul.mubr.bf16.gmra.mxu0 %v10329_v13  ;;  %15735 = vst [vmem:[#allocation14_spill] sm:$0xff] %v10349_v3  ;;  %v634_v20 = vadd.f32 %v9627_v45, %v10301_v35 }
 0x167   : > { %1031 = vmatprep.mubr.bf16.mxu1 %v15619_v24  ;;  %1224 = vmatprep.mubr.bf16.mxu0 %v15619_v24  ;;  %v625_v56 = vpop.f32.mrf.mxu0  ;;  %v725_v10 = vmax.f32 %v623_v4, 0.0 }
 0x168   : > { %1990 = vmatpush1.bf16.msra.mxu1 %v9337_v11  ;;  %2183 = vmatpush1.bf16.msra.mxu0 %v9339_v12  ;;  %v626_v5 = vadd.f32 %v10301_v35, %v625_v56  ;;  %v9317_v12 = vcombine.low %v1771_v59, %v1773_v60  ;;  %v728_v25 = vmax.f32 %v634_v20, 0.0 }
 0x169   : > { %1991 = vmatprep.subr.bf16.mxu1 %v9334_v17  ;;  %2184 = vmatprep.subr.bf16.mxu0 %v9336_v18  ;;  %v9630_v7 = vpop.f32.mrf.mxu0  ;;  %v9378_v17 = vcombine.high %v10304_v39, %v10306_v40  ;;  %v9380_v18 = vcombine.high %v10321_v63, %v10323_v0  ;;  %v2789_v0 = vld [vmem:[#allocation7 + $0x320] sm:$0xff] }
 0x16a   : > { %v726_v11 = vmax.f32 %v626_v5, 0.0  ;;  %v647_v33 = vadd.f32 %v9630_v7, %v10301_v35 }
 0x16b   : > { %v638_v15 = vpop.f32.mrf.mxu0 }
 0x16c   : > { %1992 = vmatpush1.bf16.msra.mxu1 %v9333_v26  ;;  %2185 = vmatpush1.bf16.msra.mxu0 %v9335_v27  ;;  %v10364_v21 = vpack.c.bf16 %v726_v11, %v725_v10  ;;  %v10370_v26 = vpack.c.bf16 %v728_v25, %v727_v23  ;;  %v639_v27 = vadd.f32 %v10301_v35, %v638_v15  ;;  %v731_v38 = vmax.f32 %v647_v33, 0.0 }
 0x16d   : > { %1993 = vmatprep.subr.bf16.mxu1 %v9330_v29  ;;  %2186 = vmatprep.subr.bf16.mxu0 %v9332_v30  ;;  %v9631_v22 = vpop.f32.mrf.mxu0  ;;  %v9634_v29 = vpop.f32.mrf.mxu1 }
 0x16e   : > { %1032 = vmatmul.mubr.bf16.gmra.mxu1 %v10343_v43  ;;  %1225 = vmatmul.mubr.bf16.gmra.mxu0 %v10343_v43  ;;  %15736 = vst [vmem:[#allocation15_spill] sm:$0xff] %v10364_v21  ;;  %15737 = vst [vmem:[#allocation16_spill] sm:$0xff] %v10370_v26  ;;  %v729_v30 = vmax.f32 %v639_v27, 0.0  ;;  %v650_v34 = vadd.f32 %v9631_v22, %v10301_v35  ;;  %v663_v53 = vadd.f32 %v9634_v29, %v10301_v35 }
 0x16f   : > { %1041 = vmatprep.mubr.bf16.mxu1 %v15619_v24  ;;  %1234 = vmatprep.mubr.bf16.mxu0 %v15619_v24  ;;  %v641_v16 = vpop.f32.mrf.mxu0  ;;  %v654_v32 = vpop.f32.mrf.mxu1 }
 0x170   : > { %1994 = vmatpush1.bf16.msra.mxu1 %v9329_v36  ;;  %2187 = vmatpush1.bf16.msra.mxu0 %v9331_v37  ;;  %v642_v28 = vadd.f32 %v10301_v35, %v641_v16  ;;  %v732_v41 = vmax.f32 %v650_v34, 0.0 }
 0x171   : > { %1995 = vmatprep.subr.bf16.mxu1 %v9326_v46  ;;  %2188 = vmatprep.subr.bf16.mxu0 %v9328_v47  ;;  %v9635_v37 = vpop.f32.mrf.mxu1  ;;  %v655_v47 = vadd.f32 %v10301_v35, %v654_v32 }
 0x172   : > { %v730_v31 = vmax.f32 %v642_v28, 0.0  ;;  %v10386_v46 = vpack.c.bf16 %v732_v41, %v731_v38 }
 0x173   : > { %v657_v45 = vpop.f32.mrf.mxu1  ;;  %v733_v50 = vmax.f32 %v655_v47, 0.0 }
 0x174   : > { %1996 = vmatpush1.bf16.msra.mxu1 %v9325_v54  ;;  %2189 = vmatpush1.bf16.msra.mxu0 %v9327_v55  ;;  %v10380_v36 = vpack.c.bf16 %v730_v31, %v729_v30  ;;  %15739 = vst [vmem:[#allocation18_spill] sm:$0xff] %v10386_v46  ;;  %v658_v48 = vadd.f32 %v10301_v35, %v657_v45 }
 0x175   : > { %1997 = vmatprep.subr.bf16.mxu1 %v9322_v57  ;;  %2190 = vmatprep.subr.bf16.mxu0 %v9324_v58  ;;  %v9638_v49 = vpop.f32.mrf.mxu1  ;;  %v666_v54 = vadd.f32 %v9635_v37, %v10301_v35  ;;  %v735_v57 = vmax.f32 %v663_v53, 0.0  ;;  %v2804_v53 = vld [vmem:[#allocation7 + $0x6a8] sm:$0xff] }
 0x176   : > { %1042 = vmatmul.mubr.bf16.gmra.mxu1 %v10349_v3  ;;  %1235 = vmatmul.mubr.bf16.gmra.mxu0 %v10349_v3  ;;  %15738 = vst [vmem:[#allocation17_spill] sm:$0xff] %v10380_v36  ;;  %v734_v42 = vmax.f32 %v658_v48, 0.0  ;;  %v679_v7 = vadd.f32 %v9638_v49, %v10301_v35 }
 0x177   : > { %1051 = vmatprep.mubr.bf16.mxu1 %v15619_v24  ;;  %1244 = vmatprep.mubr.bf16.mxu0 %v15619_v24  ;;  %v670_v51 = vpop.f32.mrf.mxu1  ;;  %v736_v58 = vmax.f32 %v666_v54, 0.0  ;;  %v2797_v54 = vld [vmem:[#allocation7 + $0x520] sm:$0xff] }
 0x178   : > { %1998 = vmatpush1.bf16.msra.mxu1 %v9321_v1  ;;  %2191 = vmatpush1.bf16.msra.mxu0 %v9323_v2  ;;  %v10396_v55 = vpack.c.bf16 %v734_v42, %v733_v50  ;;  %v671_v61 = vadd.f32 %v10301_v35, %v670_v51  ;;  %v739_v11 = vmax.f32 %v679_v7, 0.0  ;;  %v2803_v42 = vld [vmem:[#allocation7 + $0x6a0] sm:$0xff]  ;;  %v2802_v51 = vld [vmem:[#allocation7 + $0x628] sm:$0xff] }
 0x179   : > { %1999 = vmatprep.subr.bf16.mxu1 %v9318_v8  ;;  %2192 = vmatprep.subr.bf16.mxu0 %v9320_v9  ;;  %v9639_v56 = vpop.f32.mrf.mxu1  ;;  %v10402_v60 = vpack.c.bf16 %v736_v58, %v735_v57  ;;  %v9376_v57 = vcombine.high %v2802_v51, %v2804_v53  ;;  %v2799_v58 = vld [vmem:[#allocation7 + $0x5a0] sm:$0xff] }
 0x17a   : > { %15740 = vst [vmem:[#allocation19_spill] sm:$0xff] %v10396_v55  ;;  %v737_v2 = vmax.f32 %v671_v61, 0.0  ;;  %v682_v8 = vadd.f32 %v9639_v56, %v10301_v35  ;;  %v2800_v61 = vld [vmem:[#allocation7 + $0x5a8] sm:$0xff]  ;;  %v2795_v7 = vld [vmem:[#allocation7 + $0x4a0] sm:$0xff]  ;;  %v9369_v39 = vcombine.low %v2797_v54, %v2799_v58 }
 0x17b   : > { %v673_v59 = vpop.f32.mrf.mxu1  ;;  %15741 = vst [vmem:[#allocation20_spill] sm:$0xff] %v10402_v60 }
 0x17c   : > { %2000 = vmatpush1.bf16.msra.mxu1 %v9317_v12  ;;  %2193 = vmatpush1.bf16.msra.mxu0 %v9319_v14  ;;  %v674_v62 = vadd.f32 %v10301_v35, %v673_v59  ;;  %v740_v12 = vmax.f32 %v682_v8, 0.0  ;;  %v2798_v59 = vld [vmem:[#allocation7 + $0x528] sm:$0xff] }
 0x17d   : > { %2991 = vmatprep.subr.bf16.mxu1 %v9378_v17  ;;  %3184 = vmatprep.subr.bf16.mxu0 %v9380_v18  ;;  %v9642_v1 = vpop.f32.mrf.mxu1  ;;  %v2794_v8 = vld [vmem:[#allocation7 + $0x428] sm:$0xff]  ;;  %v9371_v40 = vcombine.low %v2798_v59, %v2800_v61 }
 0x17e   : > { %1052 = vmatmul.mubr.bf16.gmra.mxu1 %v10364_v21  ;;  %1245 = vmatmul.mubr.bf16.gmra.mxu0 %v10364_v21  ;;  %v738_v4 = vmax.f32 %v674_v62, 0.0  ;;  %v10418_v15 = vpack.c.bf16 %v740_v12, %v739_v11  ;;  %v695_v25 = vadd.f32 %v9642_v1, %v10301_v35  ;;  %v9375_v1 = vcombine.low %v2802_v51, %v2804_v53  ;;  %v2790_v11 = vld [vmem:[#allocation7 + $0x328] sm:$0xff] }
 0x17f   : > { %1061 = vmatprep.mubr.bf16.mxu1 %v15619_v24  ;;  %1254 = vmatprep.mubr.bf16.mxu0 %v15619_v24  ;;  %v686_v5 = vpop.f32.mrf.mxu1  ;;  %v2792_v12 = vld [vmem:[#allocation7 + $0x3a8] sm:$0xff] }
 0x180   : > { %v10412_v9 = vpack.c.bf16 %v738_v4, %v737_v2  ;;  %15743 = vst [vmem:[#allocation22_spill] sm:$0xff] %v10418_v15  ;;  %v687_v17 = vadd.f32 %v10301_v35, %v686_v5  ;;  %v743_v29 = vmax.f32 %v695_v25, 0.0  ;;  %v9370_v2 = vcombine.high %v2797_v54, %v2799_v58  ;;  %v2793_v5 = vld [vmem:[#allocation7 + $0x420] sm:$0xff]  ;;  %v2778_v58 = vld [vmem:[#allocation7 + $0x28] sm:$0xff] }
 0x181   : > { %v9643_v10 = vpop.f32.mrf.mxu1  ;;  %v9372_v4 = vcombine.high %v2798_v59, %v2800_v61  ;;  %v2785_v25 = vld [vmem:[#allocation7 + $0x220] sm:$0xff]  ;;  %v2780_v59 = vld [vmem:[#allocation7 + $0xa8] sm:$0xff] }
 0x182   : > { %15742 = vst [vmem:[#allocation21_spill] sm:$0xff] %v10412_v9  ;;  %v741_v20 = vmax.f32 %v687_v17, 0.0  ;;  %v698_v16 = vadd.f32 %v9643_v10, %v10301_v35  ;;  %v2796_v10 = vld [vmem:[#allocation7 + $0x4a8] sm:$0xff]  ;;  %v10472_v17 = vld [vmem:[#allocation7 + $0x7b0] sm:$0xff] }
 0x183   : > { %v689_v14 = vpop.f32.mrf.mxu1  ;;  %v9368_v63 = vcombine.high %v2794_v8, %v2796_v10 }
 0x184   : > { %v690_v18 = vadd.f32 %v10301_v35, %v689_v14  ;;  %v744_v30 = vmax.f32 %v698_v16, 0.0  ;;  %v10470_v14 = vld [vmem:[#allocation7 + $0x730] sm:$0xff]  ;;  %v2787_v16 = vld [vmem:[#allocation7 + $0x2a0] sm:$0xff] }
 0x185   : > { %v9646_v19 = vpop.f32.mrf.mxu1 }
 0x186   : > { %1062 = vmatmul.mubr.bf16.gmra.mxu1 %v10370_v26  ;;  %1255 = vmatmul.mubr.bf16.gmra.mxu0 %v10370_v26  ;;  %v742_v22 = vmax.f32 %v690_v18, 0.0  ;;  %v10434_v32 = vpack.c.bf16 %v744_v30, %v743_v29  ;;  %v711_v41 = vadd.f32 %v9646_v19, %v10301_v35  ;;  %v9365_v18 = vcombine.low %v2793_v5, %v2795_v7  ;;  %v2788_v29 = vld [vmem:[#allocation7 + $0x2a8] sm:$0xff]  ;;  %v10476_v30 = vld [vmem:[#allocation7 + $0x738] sm:$0xff] }
 0x187   : > { %1071 = vmatprep.mubr.bf16.mxu1 %v15619_v24  ;;  %1264 = vmatprep.mubr.bf16.mxu0 %v15619_v24  ;;  %v702_v23 = vpop.f32.mrf.mxu1  ;;  %v9367_v19 = vcombine.low %v2794_v8, %v2796_v10  ;;  %v799_v10 = vlaneseq }
 0x188   : > { %v10428_v27 = vpack.c.bf16 %v742_v22, %v741_v20  ;;  %15745 = vst [vmem:[#allocation24_spill] sm:$0xff] %v10434_v32  ;;  %v703_v33 = vadd.f32 %v10301_v35, %v702_v23  ;;  %v747_v48 = vmax.f32 %v711_v41, 0.0  ;;  %v9364_v23 = vcombine.high %v2790_v11, %v2792_v12 }
 0x189   : > { %v9647_v28 = vpop.f32.mrf.mxu1 }
 0x18a   : > { %15744 = vst [vmem:[#allocation23_spill] sm:$0xff] %v10428_v27  ;;  %v745_v37 = vmax.f32 %v703_v33, 0.0  ;;  %v714_v45 = vadd.f32 %v9647_v28, %v10301_v35  ;;  %v2786_v28 = vld [vmem:[#allocation7 + $0x228] sm:$0xff] }
 0x18b   : > { %v705_v31 = vpop.f32.mrf.mxu1  ;;  %v9360_v41 = vcombine.high %v2786_v28, %v2788_v29  ;;  %v9359_v51 = vcombine.low %v2786_v28, %v2788_v29  ;;  %v10534_v28 = vld [vmem:[#allocation7 + $0x5b0] sm:$0xff] }
 0x18c   : > { %v706_v34 = vadd.f32 %v10301_v35, %v705_v31  ;;  %v748_v49 = vmax.f32 %v714_v45, 0.0  ;;  %v2801_v35 = vld [vmem:[#allocation7 + $0x620] sm:$0xff]  ;;  %v10478_v31 = vld [vmem:[#allocation7 + $0x7b8] sm:$0xff] }
 0x18d   : > { %v9374_v56 = vcombine.high %v2801_v35, %v2803_v42  ;;  %v9373_v62 = vcombine.low %v2801_v35, %v2803_v42  ;;  %v2781_v45 = vld [vmem:[#allocation7 + $0x120] sm:$0xff]  ;;  %v2784_v35 = vld [vmem:[#allocation7 + $0x1a8] sm:$0xff]  ;;  %v9357_v42 = vcombine.low %v2785_v25, %v2787_v16  ;;  %v9412_v8 = vcombine.high %v10476_v30, %v10478_v31 }
 0x18e   : > { %1072 = vmatmul.mubr.bf16.gmra.mxu1 %v10380_v36  ;;  %1265 = vmatmul.mubr.bf16.gmra.mxu0 %v10380_v36  ;;  %v746_v38 = vmax.f32 %v706_v34, 0.0  ;;  %v10450_v50 = vpack.c.bf16 %v748_v49, %v747_v48  ;;  %v9363_v34 = vcombine.low %v2790_v11, %v2792_v12  ;;  %v2783_v48 = vld [vmem:[#allocation7 + $0x1a0] sm:$0xff]  ;;  %v2782_v49 = vld [vmem:[#allocation7 + $0x128] sm:$0xff]  ;;  %v10518_v12 = vld [vmem:[#allocation7 + $0x630] sm:$0xff] }
 0x18f   : > { %1081 = vmatprep.mubr.bf16.mxu1 %v15619_v24  ;;  %1274 = vmatprep.mubr.bf16.mxu0 %v15619_v24  ;;  %v9354_v53 = vcombine.high %v2781_v45, %v2783_v48  ;;  %v9356_v54 = vcombine.high %v2782_v49, %v2784_v35  ;;  %v9353_v61 = vcombine.low %v2781_v45, %v2783_v48  ;;  %v1493_v11 = vld [vmem:[#allocation10] sm:$0xf] }
 0x190   : > { %v10444_v47 = vpack.c.bf16 %v746_v38, %v745_v37  ;;  %15747 = vst [vmem:[#allocation26_spill] sm:$0xff] %v10450_v50  ;;  %v9358_v38 = vcombine.high %v2785_v25, %v2787_v16  ;;  %v10530_v25 = vld [vmem:[#allocation7 + $0x6b8] sm:$0xff]  ;;  %v10532_v16 = vld [vmem:[#allocation7 + $0x530] sm:$0xff] }
 0x192   : > { %15746 = vst [vmem:[#allocation25_spill] sm:$0xff] %v10444_v47 }
 0x196   : > { %1082 = vmatmul.mubr.bf16.gmra.mxu1 %v10386_v46  ;;  %1275 = vmatmul.mubr.bf16.gmra.mxu0 %v10386_v46 }
 0x197   : > { %1091 = vmatprep.mubr.bf16.mxu1 %v15619_v24  ;;  %1284 = vmatprep.mubr.bf16.mxu0 %v15619_v24 }
 0x19e   : > { %1092 = vmatmul.mubr.bf16.gmra.mxu1 %v10396_v55  ;;  %1285 = vmatmul.mubr.bf16.gmra.mxu0 %v10396_v55 }
 0x19f   : > { %1101 = vmatprep.mubr.bf16.mxu1 %v15619_v24  ;;  %1294 = vmatprep.mubr.bf16.mxu0 %v15619_v24 }
 0x1a6   : > { %1102 = vmatmul.mubr.bf16.gmra.mxu1 %v10402_v60  ;;  %1295 = vmatmul.mubr.bf16.gmra.mxu0 %v10402_v60 }
 0x1a7   : > { %1111 = vmatprep.mubr.bf16.mxu1 %v15619_v24  ;;  %1304 = vmatprep.mubr.bf16.mxu0 %v15619_v24 }
 0x1ae   : > { %1112 = vmatmul.mubr.bf16.gmra.mxu1 %v10412_v9  ;;  %1305 = vmatmul.mubr.bf16.gmra.mxu0 %v10412_v9 }
 0x1af   : > { %1121 = vmatprep.mubr.bf16.mxu1 %v15619_v24  ;;  %1314 = vmatprep.mubr.bf16.mxu0 %v15619_v24 }
 0x1b6   : > { %1122 = vmatmul.mubr.bf16.gmra.mxu1 %v10418_v15  ;;  %1315 = vmatmul.mubr.bf16.gmra.mxu0 %v10418_v15 }
 0x1b7   : > { %1131 = vmatprep.mubr.bf16.mxu1 %v15619_v24  ;;  %1324 = vmatprep.mubr.bf16.mxu0 %v15619_v24 }
 0x1be   : > { %1132 = vmatmul.mubr.bf16.gmra.mxu1 %v10428_v27  ;;  %1325 = vmatmul.mubr.bf16.gmra.mxu0 %v10428_v27 }
 0x1bf   : > { %1141 = vmatprep.mubr.bf16.mxu1 %v15619_v24  ;;  %1334 = vmatprep.mubr.bf16.mxu0 %v15619_v24 }
 0x1c6   : > { %1142 = vmatmul.mubr.bf16.gmra.mxu1 %v10434_v32  ;;  %1335 = vmatmul.mubr.bf16.gmra.mxu0 %v10434_v32 }
 0x1c7   : > { %1151 = vmatprep.mubr.bf16.mxu1 %v15619_v24  ;;  %1344 = vmatprep.mubr.bf16.mxu0 %v15619_v24 }
 0x1ce   : > { %1152 = vmatmul.mubr.bf16.gmra.mxu1 %v10444_v47  ;;  %1345 = vmatmul.mubr.bf16.gmra.mxu0 %v10444_v47 }
 0x1cf   : > { %1161 = vmatprep.mubr.bf16.mxu1 %v15619_v24  ;;  %1354 = vmatprep.mubr.bf16.mxu0 %v15619_v24 }
 0x1d6   : > { %1162 = vmatmul.mubr.bf16.gmra.mxu1 %v10450_v50  ;;  %1355 = vmatmul.mubr.bf16.gmra.mxu0 %v10450_v50 }
 0x1d7   : > { %2017 = vmatprep.mubr.bf16.mxu1 %v15619_v24  ;;  %2210 = vmatprep.mubr.bf16.mxu0 %v15619_v24 }
 0x1de   : > { %2018 = vmatmul.mubr.bf16.vlgmr.msra.gmra.mxu1 %v10314_v52  ;;  %2211 = vmatmul.mubr.bf16.vlgmr.msra.gmra.mxu0 %v10314_v52 }
 0x1df   : > { %2992 = vmatpush1.bf16.msra.mxu1 %v9377_v44  ;;  %3185 = vmatpush1.bf16.msra.mxu0 %v9379_v6  ;;  %v9366_v44 = vcombine.high %v2793_v5, %v2795_v7  ;;  %v2791_v6 = vld [vmem:[#allocation7 + $0x3a0] sm:$0xff]  ;;  %v9351_v5 = vcombine.low %v2778_v58, %v2780_v59  ;;  %v9410_v7 = vcombine.high %v10470_v14, %v10472_v17 }
 0x1e0   : > { %2027 = vmatprep.mubr.bf16.mxu1 %v15619_v24  ;;  %2220 = vmatprep.mubr.bf16.mxu0 %v15619_v24  ;;  %v9362_v22 = vcombine.high %v2789_v0, %v2791_v6  ;;  %v9361_v33 = vcombine.low %v2789_v0, %v2791_v6 }
 0x1e1   : > { %2993 = vmatprep.subr.bf16.mxu1 %v9374_v56  ;;  %3186 = vmatprep.subr.bf16.mxu0 %v9376_v57  ;;  %v2777_v56 = vld [vmem:[#allocation7 + $0x20] sm:$0xff] }
 0x1e2   : > { %v2779_v57 = vld [vmem:[#allocation7 + $0xa0] sm:$0xff] }
 0x1e3   : > { %2994 = vmatpush1.bf16.msra.mxu1 %v9373_v62  ;;  %3187 = vmatpush1.bf16.msra.mxu0 %v9375_v1  ;;  %v9355_v62 = vcombine.low %v2782_v49, %v2784_v35  ;;  %v9350_v1 = vcombine.high %v2777_v56, %v2779_v57 }
 0x1e4   : > { %2995 = vmatprep.subr.bf16.mxu1 %v9370_v2  ;;  %3188 = vmatprep.subr.bf16.mxu0 %v9372_v4  ;;  %v9352_v2 = vcombine.high %v2778_v58, %v2780_v59  ;;  %v9349_v4 = vcombine.low %v2777_v56, %v2779_v57  ;;  %v2499_v57 = vld [vmem:[#allocation10 + $0x4] sm:$0xf] }
 0x1e6   : > { %2028 = vmatmul.mubr.bf16.gmra.mxu1 %v10329_v13  ;;  %2221 = vmatmul.mubr.bf16.gmra.mxu0 %v10329_v13 }
 0x1e7   : > { %2037 = vmatprep.mubr.bf16.mxu1 %v15619_v24  ;;  %2230 = vmatprep.mubr.bf16.mxu0 %v15619_v24 }
 0x1e8   : > { %2996 = vmatpush1.bf16.msra.mxu1 %v9369_v39  ;;  %3189 = vmatpush1.bf16.msra.mxu0 %v9371_v40  ;;  %v800_v39 = vshrl.u32 %v799_v10, 7 }
 0x1e9   : > { %2997 = vmatprep.subr.bf16.mxu1 %v9366_v44  ;;  %3190 = vmatprep.subr.bf16.mxu0 %v9368_v63  ;;  %v797_v63 = vld [vmem:[#allocation8] sm:$0xf] }
 0x1ea   : > { %v10510_v40 = vsub.s32 0, %v800_v39  ;;  %v10512_v44 = vsub.s32 2, %v800_v39  ;;  %v10514_v0 = vsub.s32 1, %v800_v39  ;;  %v10516_v6 = vsub.s32 3, %v800_v39 }
 0x1ec   : > { %2998 = vmatpush1.bf16.msra.mxu1 %v9365_v18  ;;  %3191 = vmatpush1.bf16.msra.mxu0 %v9367_v19  ;;  %15748 = vst [vmem:[#allocation27_spill] sm:$0xff] %v10510_v40  ;;  %15749 = vst [vmem:[#allocation28_spill] sm:$0xff] %v10512_v44  ;;  %v10520_v18 = vld [vmem:[#allocation7 + $0x6b0] sm:$0xff]  ;;  %v10522_v19 = vld [vmem:[#allocation7 + $0x638] sm:$0xff]  ;;  %v10537_v29 = vrot.slane %v1493_v11, %v10510_v40  ;;  %v10551_v45 = vrot.slane %v1493_v11, %v10514_v0 }
 0x1ed   : > { %2999 = vmatprep.subr.bf16.mxu1 %v9362_v22  ;;  %3192 = vmatprep.subr.bf16.mxu0 %v9364_v23  ;;  %15750 = vst [vmem:[#allocation29_spill] sm:$0xff] %v10514_v0  ;;  %15751 = vst [vmem:[#allocation30_spill] sm:$0xff] %v10516_v6  ;;  %v10525_v22 = vrot.slane %v797_v63, %v10510_v40  ;;  %v10528_v23 = vrot.slane %v797_v63, %v10512_v44 }
 0x1ee   : > { %2038 = vmatmul.mubr.bf16.gmra.mxu1 %v10343_v43  ;;  %2231 = vmatmul.mubr.bf16.gmra.mxu0 %v10343_v43  ;;  %v10554_v48 = vrot.slane %v1493_v11, %v10516_v6 }
 0x1ef   : > { %2047 = vmatprep.mubr.bf16.mxu1 %v15619_v24  ;;  %2240 = vmatprep.mubr.bf16.mxu0 %v15619_v24 }
 0x1f0   : > { %3000 = vmatpush1.bf16.msra.mxu1 %v9361_v33  ;;  %3193 = vmatpush1.bf16.msra.mxu0 %v9363_v34  ;;  %v10540_v33 = vrot.slane %v1493_v11, %v10512_v44  ;;  %v10543_v34 = vrot.slane %v797_v63, %v10514_v0 }
 0x1f1   : > { %3001 = vmatprep.subr.bf16.mxu1 %v9358_v38  ;;  %3194 = vmatprep.subr.bf16.mxu0 %v9360_v41  ;;  %v10546_v38 = vrot.slane %v797_v63, %v10516_v6  ;;  %v10548_v41 = vld [vmem:[#allocation7 + $0x538] sm:$0xff] }
 0x1f4   : > { %3002 = vmatpush1.bf16.msra.mxu1 %v9357_v42  ;;  %3195 = vmatpush1.bf16.msra.mxu0 %v9359_v51  ;;  %v10560_v42 = vld [vmem:[#allocation7 + $0x5b8] sm:$0xff]  ;;  %v10562_v51 = vld [vmem:[#allocation7 + $0x430] sm:$0xff] }
 0x1f5   : > { %3003 = vmatprep.subr.bf16.mxu1 %v9354_v53  ;;  %3196 = vmatprep.subr.bf16.mxu0 %v9356_v54  ;;  %v10564_v53 = vld [vmem:[#allocation7 + $0x4b0] sm:$0xff] }
 0x1f6   : > { %2048 = vmatmul.mubr.bf16.gmra.mxu1 %v10349_v3  ;;  %2241 = vmatmul.mubr.bf16.gmra.mxu0 %v10349_v3 }
 0x1f7   : > { %2057 = vmatprep.mubr.bf16.mxu1 %v15619_v24  ;;  %2250 = vmatprep.mubr.bf16.mxu0 %v15619_v24 }
 0x1f8   : > { %3004 = vmatpush1.bf16.msra.mxu1 %v9353_v61  ;;  %3197 = vmatpush1.bf16.msra.mxu0 %v9355_v62  ;;  %v10574_v61 = vld [vmem:[#allocation7 + $0x438] sm:$0xff] }
 0x1f9   : > { %3005 = vmatprep.subr.bf16.mxu1 %v9350_v1  ;;  %3198 = vmatprep.subr.bf16.mxu0 %v9352_v2  ;;  %v10576_v62 = vld [vmem:[#allocation7 + $0x4b8] sm:$0xff] }
 0x1fc   : > { %3006 = vmatpush1.bf16.msra.mxu1 %v9349_v4  ;;  %3199 = vmatpush1.bf16.msra.mxu0 %v9351_v5  ;;  %v1803_v5 = vld [vmem:[#allocation8 + $0x4] sm:$0xf] }
 0x1fd   : > { %3997 = vmatprep.subr.bf16.mxu1 %v9410_v7  ;;  %4190 = vmatprep.subr.bf16.mxu0 %v9412_v8  ;;  %v10599_v63 = vrot.slane %v1803_v5, %v10510_v40  ;;  %v10602_v11 = vrot.slane %v1803_v5, %v10512_v44 }
 0x1fe   : > { %2058 = vmatmul.mubr.bf16.gmra.mxu1 %v10364_v21  ;;  %2251 = vmatmul.mubr.bf16.gmra.mxu0 %v10364_v21 }
 0x1ff   : > { %2067 = vmatprep.mubr.bf16.mxu1 %v15619_v24  ;;  %2260 = vmatprep.mubr.bf16.mxu0 %v15619_v24  ;;  %15752 = vst [vmem:[#allocation31_spill] sm:$0xff] %v10599_v63  ;;  %15753 = vst [vmem:[#allocation32_spill] sm:$0xff] %v10602_v11 }
 0x206   : > { %2068 = vmatmul.mubr.bf16.gmra.mxu1 %v10370_v26  ;;  %2261 = vmatmul.mubr.bf16.gmra.mxu0 %v10370_v26 }
 0x207   : > { %2077 = vmatprep.mubr.bf16.mxu1 %v15619_v24  ;;  %2270 = vmatprep.mubr.bf16.mxu0 %v15619_v24 }
 0x20e   : > { %2078 = vmatmul.mubr.bf16.gmra.mxu1 %v10380_v36  ;;  %2271 = vmatmul.mubr.bf16.gmra.mxu0 %v10380_v36 }
 0x20f   : > { %2087 = vmatprep.mubr.bf16.mxu1 %v15619_v24  ;;  %2280 = vmatprep.mubr.bf16.mxu0 %v15619_v24 }
 0x216   : > { %2088 = vmatmul.mubr.bf16.gmra.mxu1 %v10386_v46  ;;  %2281 = vmatmul.mubr.bf16.gmra.mxu0 %v10386_v46 }
 0x217   : > { %2097 = vmatprep.mubr.bf16.mxu1 %v15619_v24  ;;  %2290 = vmatprep.mubr.bf16.mxu0 %v15619_v24 }
 0x21e   : > { %v1013_v54 = vpop.f32.mrf.mxu1  ;;  %v1206_v56 = vpop.f32.mrf.mxu0  ;;  %2098 = vmatmul.mubr.bf16.gmra.mxu1 %v10396_v55  ;;  %2291 = vmatmul.mubr.bf16.gmra.mxu0 %v10396_v55 }
 0x21f   : > { %v1014_v1 = vadd.f32 %v1013_v54, %v10525_v22  ;;  %v1207_v2 = vadd.f32 %v1206_v56, %v10528_v23  ;;  %2107 = vmatprep.mubr.bf16.mxu1 %v15619_v24  ;;  %2300 = vmatprep.mubr.bf16.mxu0 %v15619_v24  ;;  %v10616_v24 = vrot.slane %v2499_v57, %v10512_v44 }
 0x220   : > { %v1015_v7 = vpop.f32.mrf.mxu1  ;;  %v1208_v8 = vpop.f32.mrf.mxu0 }
 0x221   : > { %v1365_v54 = vmax.f32 %v1014_v1, 0.0  ;;  %v1016_v56 = vadd.f32 %v1015_v7, %v10543_v34  ;;  %v1209_v59 = vadd.f32 %v1208_v8, %v10546_v38  ;;  %v1367_v49 = vmax.f32 %v1207_v2, 0.0  ;;  %15757 = vst [vmem:[#allocation36_spill] sm:$0xff] %v10616_v24 }
 0x222   : > { %v1017_v10 = vpop.f32.mrf.mxu1  ;;  %v1210_v58 = vpop.f32.mrf.mxu0  ;;  %v10605_v7 = vrot.slane %v2499_v57, %v10510_v40  ;;  %v10608_v8 = vrot.slane %v1803_v5, %v10514_v0  ;;  %v10611_v2 = vrot.slane %v1803_v5, %v10516_v6  ;;  %v15759_v24 = vmov 0  }
 0x223   : > { %v1366_v1 = vmax.f32 %v1016_v56, 0.0  ;;  %v1368_v4 = vmax.f32 %v1209_v59, 0.0  ;;  %v1018_v35 = vadd.f32 %v1017_v10, %v10525_v22  ;;  %v1211_v39 = vadd.f32 %v1210_v58, %v10528_v23 }
 0x224   : > { %15754 = vst [vmem:[#allocation33_spill] sm:$0xff] %v10605_v7  ;;  %15755 = vst [vmem:[#allocation34_spill] sm:$0xff] %v10608_v8  ;;  %v1019_v37 = vpop.f32.mrf.mxu1  ;;  %v1212_v20 = vpop.f32.mrf.mxu0  ;;  %v1515_v56 = vmul.f32 %v10537_v29, %v1365_v54  ;;  %v1517_v5 = vmul.f32 %v10540_v33, %v1367_v49  ;;  %v10626_v58 = vrot.slane %v2499_v57, %v10514_v0  ;;  %v10633_v49 = vld [vmem:[#allocation7 + $0x3b0] sm:$0xff] }
 0x225   : > { %15756 = vst [vmem:[#allocation35_spill] sm:$0xff] %v10611_v2  ;;  %v1516_v40 = vmul.f32 %v10551_v45, %v1366_v1  ;;  %v1020_v7 = vadd.f32 %v1019_v37, %v10543_v34  ;;  %v1213_v8 = vadd.f32 %v1212_v20, %v10546_v38  ;;  %v1369_v59 = vmax.f32 %v1018_v35, 0.0  ;;  %v10631_v20 = vld [vmem:[#allocation7 + $0x330] sm:$0xff] }
 0x226   : > { %v1371_v2 = vmax.f32 %v1211_v39, 0.0  ;;  %v1023_v10 = vpop.f32.mrf.mxu1  ;;  %v1216_v11 = vpop.f32.mrf.mxu0  ;;  %2108 = vmatmul.mubr.bf16.gmra.mxu1 %v10402_v60  ;;  %2301 = vmatmul.mubr.bf16.gmra.mxu0 %v10402_v60  ;;  %15758 = vst [vmem:[#allocation37_spill] sm:$0xff] %v10626_v58  ;;  %v1518_v35 = vmul.f32 %v10554_v48, %v1368_v4 }
 0x227   : > { %v1643_v54 = vadd.f32 %v1516_v40, %v1515_v56  ;;  %v1370_v44 = vmax.f32 %v1020_v7, 0.0  ;;  %v1372_v1 = vmax.f32 %v1213_v8, 0.0  ;;  %v1024_v37 = vadd.f32 %v1023_v10, %v10525_v22  ;;  %2117 = vmatprep.mubr.bf16.mxu1 %v15759_v24  ;;  %2310 = vmatprep.mubr.bf16.mxu0 %v15759_v24 }
 0x228   : > { %v1519_v39 = vmul.f32 %v10537_v29, %v1369_v59  ;;  %v1217_v0 = vadd.f32 %v1216_v11, %v10528_v23  ;;  %v1025_v60 = vpop.f32.mrf.mxu1  ;;  %v1218_v40 = vpop.f32.mrf.mxu0  ;;  %v10639_v7 = vrot.slane %v2499_v57, %v10516_v6  ;;  %v1521_v56 = vmul.f32 %v10540_v33, %v1371_v2 }
 0x229   : > { %v1675_v8 = vadd.f32 %v1643_v54, %v1517_v5  ;;  %v1520_v10 = vmul.f32 %v10551_v45, %v1370_v44  ;;  %v1373_v63 = vmax.f32 %v1024_v37, 0.0  ;;  %v1026_v4 = vadd.f32 %v1025_v60, %v10543_v34 }
 0x22a   : > { %15760 = vst [vmem:[#allocation38_spill] sm:$0xff] %v10639_v7  ;;  %v1375_v55 = vmax.f32 %v1217_v0, 0.0  ;;  %v1219_v59 = vadd.f32 %v1218_v40, %v10546_v38  ;;  %v1027_v11 = vpop.f32.mrf.mxu1  ;;  %v1220_v46 = vpop.f32.mrf.mxu0  ;;  %v1522_v5 = vmul.f32 %v10554_v48, %v1372_v1 }
 0x22b   : > { %v10647_v36 = vadd.f32 %v1675_v8, %v1518_v35  ;;  %v1644_v57 = vadd.f32 %v1520_v10, %v1519_v39  ;;  %v1028_v2 = vadd.f32 %v1027_v11, %v10525_v22  ;;  %v1374_v54 = vmax.f32 %v1026_v4, 0.0 }
 0x22c   : > { %v1376_v44 = vmax.f32 %v1219_v59, 0.0  ;;  %v1221_v6 = vadd.f32 %v1220_v46, %v10528_v23  ;;  %v1029_v58 = vpop.f32.mrf.mxu1  ;;  %v1222_v37 = vpop.f32.mrf.mxu0  ;;  %v1523_v39 = vmul.f32 %v10537_v29, %v1373_v63  ;;  %v1525_v1 = vmul.f32 %v10540_v33, %v1375_v55 }
 0x22d   : > { %15761 = vst [vmem:[#allocation39_spill] sm:$0xff] %v10647_v36  ;;  %v1676_v0 = vadd.f32 %v1644_v57, %v1521_v56  ;;  %v1377_v40 = vmax.f32 %v1028_v2, 0.0  ;;  %v1030_v7 = vadd.f32 %v1029_v58, %v10543_v34  ;;  %v1223_v35 = vadd.f32 %v1222_v37, %v10546_v38 }
 0x22e   : > { %v1524_v8 = vmul.f32 %v10551_v45, %v1374_v54  ;;  %v1379_v10 = vmax.f32 %v1221_v6, 0.0  ;;  %v1033_v4 = vpop.f32.mrf.mxu1  ;;  %v1226_v46 = vpop.f32.mrf.mxu0  ;;  %2118 = vmatmul.mubr.bf16.gmra.mxu1 %v10412_v9  ;;  %2311 = vmatmul.mubr.bf16.gmra.mxu0 %v10412_v9  ;;  %v1526_v56 = vmul.f32 %v10554_v48, %v1376_v44 }
 0x22f   : > { %v10661_v59 = vadd.f32 %v1676_v0, %v1522_v5  ;;  %v1378_v58 = vmax.f32 %v1030_v7, 0.0  ;;  %v1380_v11 = vmax.f32 %v1223_v35, 0.0  ;;  %2127 = vmatprep.mubr.bf16.mxu1 %v15759_v24  ;;  %2320 = vmatprep.mubr.bf16.mxu0 %v15759_v24  ;;  %v1527_v63 = vmul.f32 %v10537_v29, %v1377_v40  ;;  %v10673_v0 = vld [vmem:[#allocation7 + $0x338] sm:$0xff] }
 0x230   : > { %v1645_v55 = vadd.f32 %v1524_v8, %v1523_v39  ;;  %v1034_v6 = vadd.f32 %v1033_v4, %v10525_v22  ;;  %v1227_v57 = vadd.f32 %v1226_v46, %v10528_v23  ;;  %v1035_v2 = vpop.f32.mrf.mxu1  ;;  %v1228_v54 = vpop.f32.mrf.mxu0  ;;  %v1529_v5 = vmul.f32 %v10540_v33, %v1379_v10  ;;  %v10675_v35 = vld [vmem:[#allocation7 + $0x3b8] sm:$0xff] }
 0x231   : > { %15762 = vst [vmem:[#allocation40_spill] sm:$0xff] %v10661_v59  ;;  %v1528_v37 = vmul.f32 %v10551_v45, %v1378_v58  ;;  %v1036_v7 = vadd.f32 %v1035_v2, %v10543_v34  ;;  %v1229_v44 = vadd.f32 %v1228_v54, %v10546_v38  ;;  %v1530_v40 = vmul.f32 %v10554_v48, %v1380_v11 }
 0x232   : > { %v1677_v39 = vadd.f32 %v1645_v55, %v1525_v1  ;;  %v1381_v8 = vmax.f32 %v1034_v6, 0.0  ;;  %v1383_v4 = vmax.f32 %v1227_v57, 0.0  ;;  %v1037_v46 = vpop.f32.mrf.mxu1  ;;  %v1230_v60 = vpop.f32.mrf.mxu0 }
 0x233   : > { %v1646_v59 = vadd.f32 %v1528_v37, %v1527_v63  ;;  %v1382_v9 = vmax.f32 %v1036_v7, 0.0  ;;  %v1384_v10 = vmax.f32 %v1229_v44, 0.0  ;;  %v1038_v58 = vadd.f32 %v1037_v46, %v10525_v22 }
 0x234   : > { %v10679_v36 = vadd.f32 %v1677_v39, %v1526_v56  ;;  %v1531_v2 = vmul.f32 %v10537_v29, %v1381_v8  ;;  %v1231_v54 = vadd.f32 %v1230_v60, %v10528_v23  ;;  %v1039_v26 = vpop.f32.mrf.mxu1  ;;  %v1232_v21 = vpop.f32.mrf.mxu0  ;;  %v1533_v55 = vmul.f32 %v10540_v33, %v1383_v4 }
 0x235   : > { %v1678_v11 = vadd.f32 %v1646_v59, %v1529_v5  ;;  %v1532_v63 = vmul.f32 %v10551_v45, %v1382_v9  ;;  %v1385_v6 = vmax.f32 %v1038_v58, 0.0  ;;  %v1534_v57 = vmul.f32 %v10554_v48, %v1384_v10 }
 0x236   : > { %15763 = vst [vmem:[#allocation41_spill] sm:$0xff] %v10679_v36  ;;  %v1387_v37 = vmax.f32 %v1231_v54, 0.0  ;;  %v1040_v56 = vadd.f32 %v1039_v26, %v10543_v34  ;;  %v1233_v7 = vadd.f32 %v1232_v21, %v10546_v38  ;;  %v1043_v44 = vpop.f32.mrf.mxu1  ;;  %v1236_v60 = vpop.f32.mrf.mxu0  ;;  %2128 = vmatmul.mubr.bf16.gmra.mxu1 %v10418_v15  ;;  %2321 = vmatmul.mubr.bf16.gmra.mxu0 %v10418_v15 }
 0x237   : > { %v10692_v39 = vadd.f32 %v1678_v11, %v1530_v40  ;;  %v1647_v59 = vadd.f32 %v1532_v63, %v1531_v2  ;;  %v1044_v5 = vadd.f32 %v1043_v44, %v10525_v22  ;;  %2137 = vmatprep.mubr.bf16.mxu1 %v15759_v24  ;;  %v1535_v26 = vmul.f32 %v10537_v29, %v1385_v6 }
 0x238   : > { %v1386_v8 = vmax.f32 %v1040_v56, 0.0  ;;  %v1388_v21 = vmax.f32 %v1233_v7, 0.0  ;;  %v1237_v4 = vadd.f32 %v1236_v60, %v10528_v23  ;;  %v1045_v46 = vpop.f32.mrf.mxu1  ;;  %v1238_v10 = vpop.f32.mrf.mxu0  ;;  %2330 = vmatprep.mubr.bf16.mxu0 %v15759_v24  ;;  %v1537_v11 = vmul.f32 %v10540_v33, %v1387_v37 }
 0x239   : > { %15764 = vst [vmem:[#allocation42_spill] sm:$0xff] %v10692_v39  ;;  %v1679_v40 = vadd.f32 %v1647_v59, %v1533_v55  ;;  %v1389_v58 = vmax.f32 %v1044_v5, 0.0  ;;  %v1046_v2 = vadd.f32 %v1045_v46, %v10543_v34  ;;  %v1239_v54 = vadd.f32 %v1238_v10, %v10546_v38  ;;  %v10709_v59 = vld [vmem:[#allocation7 + $0x230] sm:$0xff] }
 0x23a   : > { %v1536_v63 = vmul.f32 %v10551_v45, %v1386_v8  ;;  %v1538_v6 = vmul.f32 %v10554_v48, %v1388_v21  ;;  %v1391_v56 = vmax.f32 %v1237_v4, 0.0  ;;  %v1047_v7 = vpop.f32.mrf.mxu1  ;;  %v1240_v44 = vpop.f32.mrf.mxu0  ;;  %v10711_v5 = vld [vmem:[#allocation7 + $0x2b0] sm:$0xff] }
 0x23b   : > { %v10706_v60 = vadd.f32 %v1679_v40, %v1534_v57  ;;  %v1539_v1 = vmul.f32 %v10537_v29, %v1389_v58  ;;  %v1390_v9 = vmax.f32 %v1046_v2, 0.0  ;;  %v1392_v55 = vmax.f32 %v1239_v54, 0.0 }
 0x23c   : > { %v1648_v46 = vadd.f32 %v1536_v63, %v1535_v26  ;;  %v1541_v37 = vmul.f32 %v10540_v33, %v1391_v56  ;;  %v1048_v8 = vadd.f32 %v1047_v7, %v10525_v22  ;;  %v1241_v21 = vadd.f32 %v1240_v44, %v10528_v23  ;;  %v1049_v4 = vpop.f32.mrf.mxu1  ;;  %v1242_v10 = vpop.f32.mrf.mxu0 }
 0x23d   : > { %15765 = vst [vmem:[#allocation43_spill] sm:$0xff] %v10706_v60  ;;  %v1540_v57 = vmul.f32 %v10551_v45, %v1390_v9  ;;  %v1542_v40 = vmul.f32 %v10554_v48, %v1392_v55  ;;  %v1050_v58 = vadd.f32 %v1049_v4, %v10543_v34  ;;  %v1243_v2 = vadd.f32 %v1242_v10, %v10546_v38 }
 0x23e   : > { %v1680_v54 = vadd.f32 %v1648_v46, %v1537_v11  ;;  %v1393_v60 = vmax.f32 %v1048_v8, 0.0  ;;  %v1395_v39 = vmax.f32 %v1241_v21, 0.0  ;;  %v1053_v26 = vpop.f32.mrf.mxu1  ;;  %v1246_v63 = vpop.f32.mrf.mxu0  ;;  %2138 = vmatmul.mubr.bf16.gmra.mxu1 %v10428_v27  ;;  %2331 = vmatmul.mubr.bf16.gmra.mxu0 %v10428_v27 }
 0x23f   : > { %v1649_v7 = vadd.f32 %v1540_v57, %v1539_v1  ;;  %v1394_v9 = vmax.f32 %v1050_v58, 0.0  ;;  %v1396_v44 = vmax.f32 %v1243_v2, 0.0  ;;  %v1054_v55 = vadd.f32 %v1053_v26, %v10525_v22  ;;  %2147 = vmatprep.mubr.bf16.mxu1 %v15759_v24  ;;  %2340 = vmatprep.mubr.bf16.mxu0 %v15759_v24 }
 0x240   : > { %v10727_v11 = vadd.f32 %v1680_v54, %v1538_v6  ;;  %v1543_v46 = vmul.f32 %v10537_v29, %v1393_v60  ;;  %v1545_v8 = vmul.f32 %v10540_v33, %v1395_v39  ;;  %v1247_v21 = vadd.f32 %v1246_v63, %v10528_v23  ;;  %v1055_v4 = vpop.f32.mrf.mxu1  ;;  %v1248_v10 = vpop.f32.mrf.mxu0 }
 0x241   : > { %v1681_v56 = vadd.f32 %v1649_v7, %v1541_v37  ;;  %v1544_v1 = vmul.f32 %v10551_v45, %v1394_v9  ;;  %v1546_v57 = vmul.f32 %v10554_v48, %v1396_v44  ;;  %v1397_v58 = vmax.f32 %v1054_v55, 0.0  ;;  %v10742_v9 = vld [vmem:[#allocation7 + $0x238] sm:$0xff] }
 0x242   : > { %15766 = vst [vmem:[#allocation44_spill] sm:$0xff] %v10727_v11  ;;  %v1399_v2 = vmax.f32 %v1247_v21, 0.0  ;;  %v1056_v26 = vadd.f32 %v1055_v4, %v10543_v34  ;;  %v1249_v6 = vadd.f32 %v1248_v10, %v10546_v38  ;;  %v1057_v54 = vpop.f32.mrf.mxu1  ;;  %v1250_v11 = vpop.f32.mrf.mxu0  ;;  %v10744_v44 = vld [vmem:[#allocation7 + $0x2b8] sm:$0xff] }
 0x243   : > { %v10738_v60 = vadd.f32 %v1681_v56, %v1542_v40  ;;  %v1650_v63 = vadd.f32 %v1544_v1, %v1543_v46  ;;  %v1547_v37 = vmul.f32 %v10537_v29, %v1397_v58  ;;  %v1058_v7 = vadd.f32 %v1057_v54, %v10525_v22 }
 0x244   : > { %v1549_v55 = vmul.f32 %v10540_v33, %v1399_v2  ;;  %v1398_v21 = vmax.f32 %v1056_v26, 0.0  ;;  %v1400_v4 = vmax.f32 %v1249_v6, 0.0  ;;  %v1251_v10 = vadd.f32 %v1250_v11, %v10528_v23  ;;  %v1059_v27 = vpop.f32.mrf.mxu1  ;;  %v1252_v15 = vpop.f32.mrf.mxu0 }
 0x245   : > { %15767 = vst [vmem:[#allocation45_spill] sm:$0xff] %v10738_v60  ;;  %v1682_v39 = vadd.f32 %v1650_v63, %v1545_v8  ;;  %v1401_v40 = vmax.f32 %v1058_v7, 0.0  ;;  %v1060_v56 = vadd.f32 %v1059_v27, %v10543_v34  ;;  %v1253_v46 = vadd.f32 %v1252_v15, %v10546_v38 }
 0x246   : > { %v1548_v1 = vmul.f32 %v10551_v45, %v1398_v21  ;;  %v1550_v58 = vmul.f32 %v10554_v48, %v1400_v4  ;;  %v1403_v54 = vmax.f32 %v1251_v10, 0.0  ;;  %v1063_v60 = vpop.f32.mrf.mxu1  ;;  %v1256_v36 = vpop.f32.mrf.mxu0  ;;  %2148 = vmatmul.mubr.bf16.gmra.mxu1 %v10434_v32  ;;  %2341 = vmatmul.mubr.bf16.gmra.mxu0 %v10434_v32 }
 0x247   : > { %v10756_v8 = vadd.f32 %v1682_v39, %v1546_v57  ;;  %v1551_v27 = vmul.f32 %v10537_v29, %v1401_v40  ;;  %v1402_v2 = vmax.f32 %v1060_v56, 0.0  ;;  %v1404_v15 = vmax.f32 %v1253_v46, 0.0  ;;  %2157 = vmatprep.mubr.bf16.mxu1 %v15759_v24  ;;  %2350 = vmatprep.mubr.bf16.mxu0 %v15759_v24 }
 0x248   : > { %v1651_v26 = vadd.f32 %v1548_v1, %v1547_v37  ;;  %v1553_v6 = vmul.f32 %v10540_v33, %v1403_v54  ;;  %v1064_v63 = vadd.f32 %v1063_v60, %v10525_v22  ;;  %v1257_v7 = vadd.f32 %v1256_v36, %v10528_v23  ;;  %v1065_v21 = vpop.f32.mrf.mxu1  ;;  %v1258_v4 = vpop.f32.mrf.mxu0 }
 0x249   : > { %15768 = vst [vmem:[#allocation46_spill] sm:$0xff] %v10756_v8  ;;  %v1552_v57 = vmul.f32 %v10551_v45, %v1402_v2  ;;  %v1554_v39 = vmul.f32 %v10554_v48, %v1404_v15  ;;  %v1066_v10 = vadd.f32 %v1065_v21, %v10543_v34  ;;  %v1259_v40 = vadd.f32 %v1258_v4, %v10546_v38  ;;  %v10771_v2 = vld [vmem:[#allocation7 + $0x130] sm:$0xff] }
 0x24a   : > { %v1683_v56 = vadd.f32 %v1651_v26, %v1549_v55  ;;  %v1405_v46 = vmax.f32 %v1064_v63, 0.0  ;;  %v1407_v11 = vmax.f32 %v1257_v7, 0.0  ;;  %v1067_v37 = vpop.f32.mrf.mxu1  ;;  %v1260_v1 = vpop.f32.mrf.mxu0  ;;  %v10773_v15 = vld [vmem:[#allocation7 + $0x1b0] sm:$0xff] }
 0x24b   : > { %v1652_v54 = vadd.f32 %v1552_v57, %v1551_v27  ;;  %v1406_v36 = vmax.f32 %v1066_v10, 0.0  ;;  %v1408_v8 = vmax.f32 %v1259_v40, 0.0  ;;  %v1068_v32 = vadd.f32 %v1067_v37, %v10525_v22  ;;  %15769 = vst [vmem:[#allocation47_spill] sm:$0xff] %v10773_v15 }
 0x24c   : > { %v10775_v21 = vadd.f32 %v1683_v56, %v1550_v58  ;;  %v1555_v55 = vmul.f32 %v10537_v29, %v1405_v46  ;;  %v1557_v26 = vmul.f32 %v10540_v33, %v1407_v11  ;;  %v1261_v63 = vadd.f32 %v1260_v1, %v10528_v23  ;;  %v1069_v7 = vpop.f32.mrf.mxu1  ;;  %v1262_v4 = vpop.f32.mrf.mxu0 }
 0x24d   : > { %v1684_v60 = vadd.f32 %v1652_v54, %v1553_v6  ;;  %v1556_v27 = vmul.f32 %v10551_v45, %v1406_v36  ;;  %v1558_v57 = vmul.f32 %v10554_v48, %v1408_v8  ;;  %v1409_v10 = vmax.f32 %v1068_v32, 0.0 }
 0x24e   : > { %15770 = vst [vmem:[#allocation48_spill] sm:$0xff] %v10775_v21  ;;  %v1411_v40 = vmax.f32 %v1261_v63, 0.0  ;;  %v1070_v37 = vadd.f32 %v1069_v7, %v10543_v34  ;;  %v1263_v58 = vadd.f32 %v1262_v4, %v10546_v38  ;;  %v1073_v56 = vpop.f32.mrf.mxu1  ;;  %v1266_v21 = vpop.f32.mrf.mxu0  ;;  %2158 = vmatmul.mubr.bf16.gmra.mxu1 %v10444_v47  ;;  %2351 = vmatmul.mubr.bf16.gmra.mxu0 %v10444_v47 }
 0x24f   : > { %v10788_v6 = vadd.f32 %v1684_v60, %v1554_v39  ;;  %v1653_v46 = vadd.f32 %v1556_v27, %v1555_v55  ;;  %v1559_v8 = vmul.f32 %v10537_v29, %v1409_v10  ;;  %v1074_v32 = vadd.f32 %v1073_v56, %v10525_v22  ;;  %2167 = vmatprep.mubr.bf16.mxu1 %v15759_v24 }
 0x250   : > { %v1561_v1 = vmul.f32 %v10540_v33, %v1411_v40  ;;  %v1410_v54 = vmax.f32 %v1070_v37, 0.0  ;;  %v1412_v36 = vmax.f32 %v1263_v58, 0.0  ;;  %v1267_v63 = vadd.f32 %v1266_v21, %v10528_v23  ;;  %v1075_v7 = vpop.f32.mrf.mxu1  ;;  %v1268_v4 = vpop.f32.mrf.mxu0  ;;  %2360 = vmatprep.mubr.bf16.mxu0 %v15759_v24 }
 0x251   : > { %15771 = vst [vmem:[#allocation49_spill] sm:$0xff] %v10788_v6  ;;  %v1685_v11 = vadd.f32 %v1653_v46, %v1557_v26  ;;  %v1413_v39 = vmax.f32 %v1074_v32, 0.0  ;;  %v1076_v60 = vadd.f32 %v1075_v7, %v10543_v34  ;;  %v1269_v55 = vadd.f32 %v1268_v4, %v10546_v38  ;;  %v10805_v32 = vld [vmem:[#allocation7 + $0x138] sm:$0xff] }
 0x252   : > { %v1560_v27 = vmul.f32 %v10551_v45, %v1410_v54  ;;  %v1562_v10 = vmul.f32 %v10554_v48, %v1412_v36  ;;  %v1415_v56 = vmax.f32 %v1267_v63, 0.0  ;;  %v1077_v40 = vpop.f32.mrf.mxu1  ;;  %v1270_v37 = vpop.f32.mrf.mxu0  ;;  %v10807_v7 = vld [vmem:[#allocation7 + $0x1b8] sm:$0xff] }
 0x253   : > { %v10802_v58 = vadd.f32 %v1685_v11, %v1558_v57  ;;  %v1563_v6 = vmul.f32 %v10537_v29, %v1413_v39  ;;  %v1414_v26 = vmax.f32 %v1076_v60, 0.0  ;;  %v1416_v46 = vmax.f32 %v1269_v55, 0.0  ;;  %15773 = vst [vmem:[#allocation51_spill] sm:$0xff] %v10807_v7 }
 0x254   : > { %v1654_v4 = vadd.f32 %v1560_v27, %v1559_v8  ;;  %v1565_v54 = vmul.f32 %v10540_v33, %v1415_v56  ;;  %v1078_v36 = vadd.f32 %v1077_v40, %v10525_v22  ;;  %v1271_v63 = vadd.f32 %v1270_v37, %v10528_v23  ;;  %v1079_v47 = vpop.f32.mrf.mxu1  ;;  %v1272_v3 = vpop.f32.mrf.mxu0 }
 0x255   : > { %15772 = vst [vmem:[#allocation50_spill] sm:$0xff] %v10802_v58  ;;  %v1564_v57 = vmul.f32 %v10551_v45, %v1414_v26  ;;  %v1566_v11 = vmul.f32 %v10554_v48, %v1416_v46  ;;  %v1080_v39 = vadd.f32 %v1079_v47, %v10543_v34  ;;  %v1273_v60 = vadd.f32 %v1272_v3, %v10546_v38 }
 0x256   : > { %v1686_v55 = vadd.f32 %v1654_v4, %v1561_v1  ;;  %v1417_v21 = vmax.f32 %v1078_v36, 0.0  ;;  %v1419_v58 = vmax.f32 %v1271_v63, 0.0  ;;  %v1083_v8 = vpop.f32.mrf.mxu1  ;;  %v1276_v27 = vpop.f32.mrf.mxu0  ;;  %2168 = vmatmul.mubr.bf16.gmra.mxu1 %v10450_v50  ;;  %2361 = vmatmul.mubr.bf16.gmra.mxu0 %v10450_v50 }
 0x257   : > { %v1655_v40 = vadd.f32 %v1564_v57, %v1563_v6  ;;  %v1418_v37 = vmax.f32 %v1080_v39, 0.0  ;;  %v1420_v26 = vmax.f32 %v1273_v60, 0.0  ;;  %v1084_v46 = vadd.f32 %v1083_v8, %v10525_v22  ;;  %3023 = vmatprep.mubr.bf16.mxu1 %v15759_v24  ;;  %3216 = vmatprep.mubr.bf16.mxu0 %v15759_v24 }
 0x258   : > { %v10823_v3 = vadd.f32 %v1686_v55, %v1562_v10  ;;  %v1567_v47 = vmul.f32 %v10537_v29, %v1417_v21  ;;  %v1569_v1 = vmul.f32 %v10540_v33, %v1419_v58  ;;  %v1277_v4 = vadd.f32 %v1276_v27, %v10528_v23  ;;  %v1085_v36 = vpop.f32.mrf.mxu1  ;;  %v1278_v63 = vpop.f32.mrf.mxu0 }
 0x259   : > { %v1687_v56 = vadd.f32 %v1655_v40, %v1565_v54  ;;  %v1568_v6 = vmul.f32 %v10551_v45, %v1418_v37  ;;  %v1570_v57 = vmul.f32 %v10554_v48, %v1420_v26  ;;  %v1421_v39 = vmax.f32 %v1084_v46, 0.0  ;;  %v10838_v37 = vld [vmem:[#allocation7 + $0x30] sm:$0xff] }
 0x25a   : > { %15774 = vst [vmem:[#allocation52_spill] sm:$0xff] %v10823_v3  ;;  %v1423_v60 = vmax.f32 %v1277_v4, 0.0  ;;  %v1086_v8 = vadd.f32 %v1085_v36, %v10543_v34  ;;  %v1279_v10 = vadd.f32 %v1278_v63, %v10546_v38  ;;  %v1087_v55 = vpop.f32.mrf.mxu1  ;;  %v1280_v3 = vpop.f32.mrf.mxu0  ;;  %v10840_v26 = vld [vmem:[#allocation7 + $0xb0] sm:$0xff] }
 0x25b   : > { %v10834_v58 = vadd.f32 %v1687_v56, %v1566_v11  ;;  %v1656_v27 = vadd.f32 %v1568_v6, %v1567_v47  ;;  %v1571_v54 = vmul.f32 %v10537_v29, %v1421_v39  ;;  %v1088_v40 = vadd.f32 %v1087_v55, %v10525_v22 }
 0x25c   : > { %v1573_v46 = vmul.f32 %v10540_v33, %v1423_v60  ;;  %v1422_v4 = vmax.f32 %v1086_v8, 0.0  ;;  %v1424_v36 = vmax.f32 %v1279_v10, 0.0  ;;  %v1281_v63 = vadd.f32 %v1280_v3, %v10528_v23  ;;  %v1089_v50 = vpop.f32.mrf.mxu1  ;;  %v1282_v15 = vpop.f32.mrf.mxu0 }
 0x25d   : > { %15775 = vst [vmem:[#allocation53_spill] sm:$0xff] %v10834_v58  ;;  %v1688_v21 = vadd.f32 %v1656_v27, %v1569_v1  ;;  %v1425_v11 = vmax.f32 %v1088_v40, 0.0  ;;  %v1090_v56 = vadd.f32 %v1089_v50, %v10543_v34  ;;  %v1283_v47 = vadd.f32 %v1282_v15, %v10546_v38 }
 0x25e   : > { %v1572_v6 = vmul.f32 %v10551_v45, %v1422_v4  ;;  %v1574_v39 = vmul.f32 %v10554_v48, %v1424_v36  ;;  %v1427_v55 = vmax.f32 %v1281_v63, 0.0  ;;  %v1093_v58 = vpop.f32.mrf.mxu1  ;;  %v1286_v7 = vpop.f32.mrf.mxu0  ;;  %3024 = vmatmul.mubr.bf16.vlgmr.msra.gmra.mxu1 %v10314_v52  ;;  %3217 = vmatmul.mubr.bf16.vlgmr.msra.gmra.mxu0 %v10314_v52  ;;  %v9381_v3 = vcombine.low %v10838_v37, %v10840_v26 }
 0x25f   : > { %v10852_v1 = vadd.f32 %v1688_v21, %v1570_v57  ;;  %v1575_v50 = vmul.f32 %v10537_v29, %v1425_v11  ;;  %v1426_v60 = vmax.f32 %v1090_v56, 0.0  ;;  %v1428_v15 = vmax.f32 %v1283_v47, 0.0  ;;  %3033 = vmatprep.mubr.bf16.mxu1 %v15759_v24  ;;  %3226 = vmatprep.mubr.bf16.mxu0 %v15759_v24 }
 0x260   : > { %v15776_v8 = vcombine.low %v10470_v14, %v10472_v17  ;;  %v15777_v10 = vcombine.low %v10476_v30, %v10478_v31  ;;  %v1657_v27 = vadd.f32 %v1572_v6, %v1571_v54  ;;  %v1577_v40 = vmul.f32 %v10540_v33, %v1427_v55  ;;  %v1095_v21 = vpop.f32.mrf.mxu1  ;;  %v1288_v36 = vpop.f32.mrf.mxu0 }
 0x261   : > { %v1094_v4 = vadd.f32 %v1093_v58, %v10525_v22  ;;  %v1287_v57 = vadd.f32 %v1286_v7, %v10528_v23  ;;  %v1576_v63 = vmul.f32 %v10551_v45, %v1426_v60  ;;  %v1578_v14 = vmul.f32 %v10554_v48, %v1428_v15 }
 0x262   : > { %3998 = vmatpush1.bf16.msra.mxu1 %v15776_v8  ;;  %4191 = vmatpush1.bf16.msra.mxu0 %v15777_v10  ;;  %v1096_v17 = vadd.f32 %v1095_v21, %v10543_v34  ;;  %v1289_v30 = vadd.f32 %v1288_v36, %v10546_v38  ;;  %v1689_v31 = vadd.f32 %v1657_v27, %v1573_v46  ;;  %v1097_v58 = vpop.f32.mrf.mxu1  ;;  %v1290_v56 = vpop.f32.mrf.mxu0  ;;  %v10885_v27 = vld [vmem:[#allocation7 + $0x38] sm:$0xff] }
 0x263   : > { %v1429_v54 = vmax.f32 %v1094_v4, 0.0  ;;  %v1431_v11 = vmax.f32 %v1287_v57, 0.0  ;;  %v15778_v7 = vcombine.high %v10518_v12, %v10520_v18  ;;  %v15779_v47 = vcombine.high %v10522_v19, %v10530_v25  ;;  %v10887_v4 = vld [vmem:[#allocation7 + $0xb8] sm:$0xff] }
 0x264   : > { %v9382_v6 = vcombine.high %v10838_v37, %v10840_v26  ;;  %v1658_v55 = vadd.f32 %v1576_v63, %v1575_v50  ;;  %v1430_v60 = vmax.f32 %v1096_v17, 0.0  ;;  %v1432_v15 = vmax.f32 %v1289_v30, 0.0  ;;  %v1099_v63 = vpop.f32.mrf.mxu1  ;;  %v1292_v17 = vpop.f32.mrf.mxu0 }
 0x265   : > { %3999 = vmatprep.subr.bf16.mxu1 %v15778_v7  ;;  %4192 = vmatprep.subr.bf16.mxu0 %v15779_v47  ;;  %v1098_v46 = vadd.f32 %v1097_v58, %v10525_v22  ;;  %v15780_v8 = vcombine.low %v10518_v12, %v10520_v18  ;;  %v15781_v10 = vcombine.low %v10522_v19, %v10530_v25 }
 0x266   : > { %v10889_v57 = vadd.f32 %v1689_v31, %v1574_v39  ;;  %v1579_v50 = vmul.f32 %v10537_v29, %v1429_v54  ;;  %v1581_v21 = vmul.f32 %v10540_v33, %v1431_v11  ;;  %v1291_v36 = vadd.f32 %v1290_v56, %v10528_v23  ;;  %v1103_v58 = vpop.f32.mrf.mxu1  ;;  %v1296_v56 = vpop.f32.mrf.mxu0  ;;  %3034 = vmatmul.mubr.bf16.gmra.mxu1 %v10329_v13 }
 0x267   : > { %4000 = vmatpush1.bf16.msra.mxu1 %v15780_v8  ;;  %4193 = vmatpush1.bf16.msra.mxu0 %v15781_v10  ;;  %v15782_v12 = vcombine.high %v10532_v16, %v10534_v28  ;;  %v1690_v18 = vadd.f32 %v1658_v55, %v1577_v40  ;;  %v1580_v19 = vmul.f32 %v10551_v45, %v1430_v60  ;;  %v1433_v30 = vmax.f32 %v1098_v46, 0.0 }
 0x268   : > { %v1582_v25 = vmul.f32 %v10554_v48, %v1432_v15  ;;  %v15783_v39 = vcombine.high %v10548_v41, %v10560_v42  ;;  %v1435_v31 = vmax.f32 %v1291_v36, 0.0  ;;  %v1100_v54 = vadd.f32 %v1099_v63, %v10543_v34  ;;  %3227 = vmatmul.mubr.bf16.gmra.mxu0 %v10329_v13  ;;  %3043 = vmatprep.mubr.bf16.mxu1 %v15759_v24  ;;  %v1105_v36 = vpop.f32.mrf.mxu1  ;;  %v1298_v63 = vpop.f32.mrf.mxu0 }
 0x269   : > { %4001 = vmatprep.subr.bf16.mxu1 %v15782_v12  ;;  %v1293_v11 = vadd.f32 %v1292_v17, %v10546_v38  ;;  %v9383_v40 = vcombine.low %v10885_v27, %v10887_v4  ;;  %v10908_v7 = vadd.f32 %v1690_v18, %v1578_v14  ;;  %v1659_v47 = vadd.f32 %v1580_v19, %v1579_v50 }
 0x26a   : > { %4194 = vmatprep.subr.bf16.mxu0 %v15783_v39  ;;  %v1583_v55 = vmul.f32 %v10537_v29, %v1433_v30  ;;  %v1104_v60 = vadd.f32 %v1103_v58, %v10525_v22  ;;  %v1585_v15 = vmul.f32 %v10540_v33, %v1435_v31  ;;  %v1434_v46 = vmax.f32 %v1100_v54, 0.0  ;;  %3236 = vmatprep.mubr.bf16.mxu0 %v15759_v24 }
 0x26b   : > { %v1436_v8 = vmax.f32 %v1293_v11, 0.0  ;;  %v1297_v10 = vadd.f32 %v1296_v56, %v10528_v23  ;;  %v15784_v14 = vcombine.low %v10532_v16, %v10534_v28  ;;  %v1691_v50 = vadd.f32 %v1659_v47, %v1581_v21  ;;  %v1107_v28 = vpop.f32.mrf.mxu1  ;;  %v1300_v21 = vpop.f32.mrf.mxu0  ;;  %v10937_v47 = vld [vmem:[#allocation7 + $0x740] sm:$0xff] }
 0x26c   : > { %v1437_v17 = vmax.f32 %v1104_v60, 0.0  ;;  %v1106_v12 = vadd.f32 %v1105_v36, %v10543_v34  ;;  %v1299_v18 = vadd.f32 %v1298_v63, %v10546_v38  ;;  %v15785_v19 = vcombine.low %v10548_v41, %v10560_v42  ;;  %v10939_v60 = vld [vmem:[#allocation7 + $0x7c0] sm:$0xff] }
 0x26d   : > { %4002 = vmatpush1.bf16.msra.mxu1 %v15784_v14  ;;  %v15786_v30 = vcombine.high %v10562_v51, %v10564_v53  ;;  %v1584_v39 = vmul.f32 %v10551_v45, %v1434_v46  ;;  %v1586_v31 = vmul.f32 %v10554_v48, %v1436_v8  ;;  %v1439_v16 = vmax.f32 %v1297_v10, 0.0  ;;  %v1109_v63 = vpop.f32.mrf.mxu1  ;;  %v1302_v14 = vpop.f32.mrf.mxu0 }
 0x26e   : > { %4195 = vmatpush1.bf16.msra.mxu0 %v15785_v19  ;;  %v15787_v54 = vcombine.high %v10574_v61, %v10576_v62  ;;  %v9384_v11 = vcombine.high %v10885_v27, %v10887_v4  ;;  %v10934_v41 = vadd.f32 %v1691_v50, %v1582_v25  ;;  %v1587_v42 = vmul.f32 %v10537_v29, %v1437_v17 }
 0x26f   : > { %4003 = vmatprep.subr.bf16.mxu1 %v15786_v30  ;;  %v1438_v58 = vmax.f32 %v1106_v12, 0.0  ;;  %v1440_v56 = vmax.f32 %v1299_v18, 0.0  ;;  %v1660_v46 = vadd.f32 %v1584_v39, %v1583_v55  ;;  %v1589_v8 = vmul.f32 %v10540_v33, %v1439_v16  ;;  %v1113_v16 = vpop.f32.mrf.mxu1  ;;  %3044 = vmatmul.mubr.bf16.gmra.mxu1 %v10343_v43 }
 0x270   : > { %4196 = vmatprep.subr.bf16.mxu0 %v15787_v54  ;;  %v1108_v10 = vadd.f32 %v1107_v28, %v10525_v22  ;;  %v1301_v36 = vadd.f32 %v1300_v21, %v10528_v23  ;;  %v15788_v25 = vcombine.low %v10562_v51, %v10564_v53  ;;  %v1110_v12 = vadd.f32 %v1109_v63, %v10543_v34  ;;  %v1306_v28 = vpop.f32.mrf.mxu0 }
 0x271   : > { %v1588_v50 = vmul.f32 %v10551_v45, %v1438_v58  ;;  %v1590_v17 = vmul.f32 %v10554_v48, %v1440_v56  ;;  %v1303_v55 = vadd.f32 %v1302_v14, %v10546_v38  ;;  %v15789_v18 = vcombine.low %v10574_v61, %v10576_v62  ;;  %3237 = vmatmul.mubr.bf16.gmra.mxu0 %v10343_v43 }
 0x272   : > { %4004 = vmatpush1.bf16.msra.mxu1 %v15788_v25  ;;  %v1692_v19 = vadd.f32 %v1660_v46, %v1585_v15  ;;  %v1441_v30 = vmax.f32 %v1108_v10, 0.0  ;;  %v1443_v39 = vmax.f32 %v1301_v36, 0.0  ;;  %v1442_v21 = vmax.f32 %v1110_v12, 0.0  ;;  %3053 = vmatprep.mubr.bf16.mxu1 %v15759_v24  ;;  %v1115_v46 = vpop.f32.mrf.mxu1  ;;  %v1308_v10 = vpop.f32.mrf.mxu0 }
 0x273   : > { %4197 = vmatpush1.bf16.msra.mxu0 %v15789_v18  ;;  %v1661_v53 = vadd.f32 %v1588_v50, %v1587_v42  ;;  %v1444_v54 = vmax.f32 %v1303_v55, 0.0  ;;  %v1114_v58 = vadd.f32 %v1113_v16, %v10525_v22  ;;  %3246 = vmatprep.mubr.bf16.mxu0 %v15759_v24  ;;  %v1307_v56 = vadd.f32 %v1306_v28, %v10528_v23 }
 0x274   : > { %v10961_v61 = vadd.f32 %v1692_v19, %v1586_v31  ;;  %v1591_v62 = vmul.f32 %v10537_v29, %v1441_v30  ;;  %v1593_v15 = vmul.f32 %v10540_v33, %v1443_v39  ;;  %v15790_v42 = vcombine.high %v10631_v20, %v10633_v49  ;;  %v1117_v19 = vpop.f32.mrf.mxu1 }
 0x275   : > { %v1693_v36 = vadd.f32 %v1661_v53, %v1589_v8  ;;  %v1592_v63 = vmul.f32 %v10551_v45, %v1442_v21  ;;  %v1594_v14 = vmul.f32 %v10554_v48, %v1444_v54  ;;  %v1445_v25 = vmax.f32 %v1114_v58, 0.0  ;;  %v1310_v8 = vpop.f32.mrf.mxu0 }
 0x276   : > { %4005 = vmatprep.subr.bf16.mxu1 %v15790_v42  ;;  %v15791_v31 = vcombine.low %v10631_v20, %v10633_v49  ;;  %v15792_v50 = vcombine.high %v10673_v0, %v10675_v35  ;;  %v1447_v12 = vmax.f32 %v1307_v56, 0.0  ;;  %v1116_v55 = vadd.f32 %v1115_v46, %v10543_v34  ;;  %v1119_v46 = vpop.f32.mrf.mxu1 }
 0x277   : > { %v1309_v18 = vadd.f32 %v1308_v10, %v10546_v38  ;;  %v15793_v30 = vcombine.low %v10673_v0, %v10675_v35  ;;  %v15794_v39 = vcombine.high %v10709_v59, %v10711_v5  ;;  %v9442_v20 = vcombine.high %v10937_v47, %v10939_v60  ;;  %v10994_v0 = vld [vmem:[#allocation7 + $0x748] sm:$0xff] }
 0x278   : > { %4006 = vmatpush1.bf16.msra.mxu1 %v15791_v31  ;;  %4198 = vmatprep.subr.bf16.mxu0 %v15792_v50  ;;  %v10987_v49 = vadd.f32 %v1693_v36, %v1590_v17  ;;  %v1662_v16 = vadd.f32 %v1592_v63, %v1591_v62  ;;  %v1595_v28 = vmul.f32 %v10537_v29, %v1445_v25  ;;  %v10996_v35 = vld [vmem:[#allocation7 + $0x7c8] sm:$0xff]  ;;  %v1446_v58 = vmax.f32 %v1116_v55, 0.0  ;;  %v1312_v62 = vpop.f32.mrf.mxu0  ;;  %v1123_v55 = vpop.f32.mrf.mxu1 }
 0x279   : > { %4199 = vmatpush1.bf16.msra.mxu0 %v15793_v30  ;;  %4007 = vmatprep.subr.bf16.mxu1 %v15794_v39  ;;  %v1118_v53 = vadd.f32 %v1117_v19, %v10525_v22  ;;  %v15795_v21 = vcombine.high %v10742_v9, %v10744_v44  ;;  %v1597_v54 = vmul.f32 %v10540_v33, %v1447_v12  ;;  %v1448_v56 = vmax.f32 %v1309_v18, 0.0  ;;  %v15797_v19 = vld [vmem:[#allocation14_spill] sm:$0xff] }
 0x27a   : > { %v1311_v17 = vadd.f32 %v1310_v8, %v10528_v23  ;;  %v1694_v10 = vadd.f32 %v1662_v16, %v1593_v15  ;;  %v1120_v36 = vadd.f32 %v1119_v46, %v10543_v34  ;;  %v1313_v63 = vadd.f32 %v1312_v62, %v10546_v38  ;;  %v1316_v18 = vpop.f32.mrf.mxu0  ;;  %3054 = vmatmul.mubr.bf16.gmra.mxu1 %v15797_v19 }
 0x27b   : > { %4200 = vmatprep.subr.bf16.mxu0 %v15795_v21  ;;  %v1449_v42 = vmax.f32 %v1118_v53, 0.0  ;;  %v15796_v25 = vcombine.low %v10709_v59, %v10711_v5  ;;  %v1596_v31 = vmul.f32 %v10551_v45, %v1446_v58  ;;  %v1598_v50 = vmul.f32 %v10554_v48, %v1448_v56  ;;  %3247 = vmatmul.mubr.bf16.gmra.mxu0 %v15797_v19  ;;  %v1125_v58 = vpop.f32.mrf.mxu1 }
 0x27c   : > { %v1451_v12 = vmax.f32 %v1311_v17, 0.0  ;;  %v11011_v8 = vadd.f32 %v1694_v10, %v1594_v14  ;;  %v1450_v59 = vmax.f32 %v1120_v36, 0.0  ;;  %v1452_v5 = vmax.f32 %v1313_v63, 0.0  ;;  %3063 = vmatprep.mubr.bf16.mxu1 %v15759_v24  ;;  %3256 = vmatprep.mubr.bf16.mxu0 %v15759_v24  ;;  %v1318_v56 = vpop.f32.mrf.mxu0  ;;  %v15799_v10 = vld [vmem:[#allocation47_spill] sm:$0xff] }
 0x27d   : > { %4008 = vmatpush1.bf16.msra.mxu1 %v15796_v25  ;;  %v1599_v30 = vmul.f32 %v10537_v29, %v1449_v42  ;;  %v1663_v39 = vadd.f32 %v1596_v31, %v1595_v28  ;;  %v1124_v53 = vadd.f32 %v1123_v55, %v10525_v22  ;;  %v1317_v21 = vadd.f32 %v1316_v18, %v10528_v23  ;;  %v1127_v31 = vpop.f32.mrf.mxu1 }
 0x27e   : > { %v1601_v16 = vmul.f32 %v10540_v33, %v1451_v12  ;;  %v15798_v14 = vcombine.low %v10742_v9, %v10744_v44  ;;  %v1600_v17 = vmul.f32 %v10551_v45, %v1450_v59  ;;  %v1602_v46 = vmul.f32 %v10554_v48, %v1452_v5  ;;  %v1320_v12 = vpop.f32.mrf.mxu0  ;;  %v15802_v44 = vld [vmem:[#allocation51_spill] sm:$0xff] }
 0x27f   : > { %v1126_v62 = vadd.f32 %v1125_v58, %v10543_v34  ;;  %v1319_v28 = vadd.f32 %v1318_v56, %v10546_v38  ;;  %v15800_v42 = vcombine.high %v10771_v2, %v15799_v10  ;;  %v1695_v36 = vadd.f32 %v1663_v39, %v1597_v54  ;;  %v11041_v39 = vld [vmem:[#allocation7 + $0x640] sm:$0xff] }
 0x280   : > { %4201 = vmatpush1.bf16.msra.mxu0 %v15798_v14  ;;  %v1453_v63 = vmax.f32 %v1124_v53, 0.0  ;;  %v1455_v25 = vmax.f32 %v1317_v21, 0.0  ;;  %v15801_v9 = vcombine.low %v10771_v2, %v15799_v10  ;;  %v15803_v55 = vcombine.high %v10805_v32, %v15802_v44  ;;  %v11043_v2 = vld [vmem:[#allocation7 + $0x6c0] sm:$0xff]  ;;  %v1129_v14 = vpop.f32.mrf.mxu1 }
 0x281   : > { %4009 = vmatprep.subr.bf16.mxu1 %v15800_v42  ;;  %v9444_v18 = vcombine.high %v10994_v0, %v10996_v35  ;;  %v1664_v59 = vadd.f32 %v1600_v17, %v1599_v30  ;;  %v1454_v5 = vmax.f32 %v1126_v62, 0.0  ;;  %v1456_v58 = vmax.f32 %v1319_v28, 0.0  ;;  %v1322_v17 = vpop.f32.mrf.mxu0 }
 0x282   : > { %4010 = vmatpush1.bf16.msra.mxu1 %v15801_v9  ;;  %4202 = vmatprep.subr.bf16.mxu0 %v15803_v55  ;;  %v1128_v54 = vadd.f32 %v1127_v31, %v10525_v22  ;;  %v11045_v53 = vadd.f32 %v1695_v36, %v1598_v50  ;;  %v1603_v21 = vmul.f32 %v10537_v29, %v1453_v63 }
 0x283   : > { %4011 = vmatprep.subr.bf16.mxu1 %v9382_v6  ;;  %v1605_v56 = vmul.f32 %v10540_v33, %v1455_v25  ;;  %v1321_v30 = vadd.f32 %v1320_v12, %v10528_v23  ;;  %v15804_v62 = vcombine.low %v10805_v32, %v15802_v44  ;;  %v1696_v28 = vadd.f32 %v1664_v59, %v1601_v16  ;;  %v1133_v25 = vpop.f32.mrf.mxu1  ;;  %v1326_v31 = vpop.f32.mrf.mxu0  ;;  %v15805_v12 = vld [vmem:[#allocation15_spill] sm:$0xff] }
 0x284   : > { %v1604_v6 = vmul.f32 %v10551_v45, %v1454_v5  ;;  %v1606_v10 = vmul.f32 %v10554_v48, %v1456_v58  ;;  %v1457_v42 = vmax.f32 %v1128_v54, 0.0  ;;  %v1130_v36 = vadd.f32 %v1129_v14, %v10543_v34  ;;  %3064 = vmatmul.mubr.bf16.gmra.mxu1 %v15805_v12  ;;  %3257 = vmatmul.mubr.bf16.gmra.mxu0 %v15805_v12 }
 0x285   : > { %4203 = vmatpush1.bf16.msra.mxu0 %v15804_v62  ;;  %v1459_v50 = vmax.f32 %v1321_v30, 0.0  ;;  %v1323_v63 = vadd.f32 %v1322_v17, %v10546_v38  ;;  %v11064_v16 = vadd.f32 %v1696_v28, %v1602_v46  ;;  %3073 = vmatprep.mubr.bf16.mxu1 %v15759_v24  ;;  %v1327_v58 = vadd.f32 %v1326_v31, %v10528_v23  ;;  %v1135_v54 = vpop.f32.mrf.mxu1  ;;  %v1328_v30 = vpop.f32.mrf.mxu0 }
 0x286   : > { %4204 = vmatprep.subr.bf16.mxu0 %v9384_v11  ;;  %v1665_v9 = vadd.f32 %v1604_v6, %v1603_v21  ;;  %v1607_v44 = vmul.f32 %v10537_v29, %v1457_v42  ;;  %v1134_v11 = vadd.f32 %v1133_v25, %v10525_v22  ;;  %v1458_v59 = vmax.f32 %v1130_v36, 0.0  ;;  %3266 = vmatprep.mubr.bf16.mxu0 %v15759_v24  ;;  %v11090_v42 = vld [vmem:[#allocation7 + $0x648] sm:$0xff] }
 0x287   : > { %15806 = vst [vmem:[#allocation14_spill] sm:$0xff] %v11064_v16  ;;  %v1609_v55 = vmul.f32 %v10540_v33, %v1459_v50  ;;  %v1460_v5 = vmax.f32 %v1323_v63, 0.0  ;;  %4012 = vmatpush1.bf16.msra.mxu1 %v9381_v3  ;;  %v1136_v14 = vadd.f32 %v1135_v54, %v10543_v34  ;;  %v1329_v17 = vadd.f32 %v1328_v30, %v10546_v38  ;;  %v1137_v26 = vpop.f32.mrf.mxu1  ;;  %v1330_v3 = vpop.f32.mrf.mxu0 }
 0x288   : > { %v1697_v46 = vadd.f32 %v1665_v9, %v1605_v56  ;;  %v1461_v21 = vmax.f32 %v1134_v11, 0.0  ;;  %5003 = vmatprep.subr.bf16.mxu1 %v9442_v20  ;;  %v1608_v62 = vmul.f32 %v10551_v45, %v1458_v59  ;;  %v1463_v37 = vmax.f32 %v1327_v58, 0.0  ;;  %v11092_v20 = vld [vmem:[#allocation7 + $0x6c8] sm:$0xff] }
 0x289   : > { %4205 = vmatpush1.bf16.msra.mxu0 %v9383_v40  ;;  %v1610_v28 = vmul.f32 %v10554_v48, %v1460_v5  ;;  %v1462_v4 = vmax.f32 %v1136_v14, 0.0  ;;  %v1464_v40 = vmax.f32 %v1329_v17, 0.0  ;;  %v1138_v63 = vadd.f32 %v1137_v26, %v10525_v22  ;;  %v1139_v25 = vpop.f32.mrf.mxu1  ;;  %v1332_v31 = vpop.f32.mrf.mxu0 }
 0x28a   : > { %5196 = vmatprep.subr.bf16.mxu0 %v9444_v18  ;;  %v11087_v6 = vadd.f32 %v1697_v46, %v1606_v10  ;;  %v1611_v27 = vmul.f32 %v10537_v29, %v1461_v21  ;;  %v1666_v50 = vadd.f32 %v1608_v62, %v1607_v44  ;;  %v1613_v36 = vmul.f32 %v10540_v33, %v1463_v37  ;;  %v15808_v46 = vld [vmem:[#allocation16_spill] sm:$0xff] }
 0x28b   : > { %v1331_v18 = vadd.f32 %v1330_v3, %v10528_v23  ;;  %v1612_v10 = vmul.f32 %v10551_v45, %v1462_v4  ;;  %v1614_v9 = vmul.f32 %v10554_v48, %v1464_v40  ;;  %v1140_v11 = vadd.f32 %v1139_v25, %v10543_v34  ;;  %v1143_v44 = vpop.f32.mrf.mxu1  ;;  %v1336_v30 = vpop.f32.mrf.mxu0 }
 0x28c   : > { %15807 = vst [vmem:[#allocation47_spill] sm:$0xff] %v11087_v6  ;;  %v1333_v59 = vadd.f32 %v1332_v31, %v10546_v38  ;;  %v1698_v5 = vadd.f32 %v1666_v50, %v1609_v55  ;;  %v1465_v58 = vmax.f32 %v1138_v63, 0.0  ;;  %3074 = vmatmul.mubr.bf16.gmra.mxu1 %v15808_v46  ;;  %3267 = vmatmul.mubr.bf16.gmra.mxu0 %v15808_v46 }
 0x28d   : > { %v1467_v54 = vmax.f32 %v1331_v18, 0.0  ;;  %v1667_v14 = vadd.f32 %v1612_v10, %v1611_v27  ;;  %v1466_v17 = vmax.f32 %v1140_v11, 0.0  ;;  %v1144_v37 = vadd.f32 %v1143_v44, %v10525_v22  ;;  %3083 = vmatprep.mubr.bf16.mxu1 %v15759_v24  ;;  %3276 = vmatprep.mubr.bf16.mxu0 %v15759_v24  ;;  %v1145_v40 = vpop.f32.mrf.mxu1  ;;  %v1338_v50 = vpop.f32.mrf.mxu0 }
 0x28e   : > { %v1468_v62 = vmax.f32 %v1333_v59, 0.0  ;;  %v11108_v55 = vadd.f32 %v1698_v5, %v1610_v28  ;;  %v1615_v26 = vmul.f32 %v10537_v29, %v1465_v58  ;;  %v1337_v4 = vadd.f32 %v1336_v30, %v10528_v23  ;;  %v11123_v30 = vld [vmem:[#allocation7 + $0x540] sm:$0xff] }
 0x28f   : > { %v1617_v3 = vmul.f32 %v10540_v33, %v1467_v54  ;;  %v1699_v63 = vadd.f32 %v1667_v14, %v1613_v36  ;;  %v1616_v27 = vmul.f32 %v10551_v45, %v1466_v17  ;;  %v1469_v25 = vmax.f32 %v1144_v37, 0.0  ;;  %v1147_v11 = vpop.f32.mrf.mxu1  ;;  %v1340_v59 = vpop.f32.mrf.mxu0  ;;  %v11125_v14 = vld [vmem:[#allocation7 + $0x5c0] sm:$0xff] }
 0x290   : > { %15809 = vst [vmem:[#allocation51_spill] sm:$0xff] %v11108_v55  ;;  %v1618_v18 = vmul.f32 %v10554_v48, %v1468_v62  ;;  %v1471_v31 = vmax.f32 %v1337_v4, 0.0  ;;  %v1146_v10 = vadd.f32 %v1145_v40, %v10543_v34  ;;  %v1339_v28 = vadd.f32 %v1338_v50, %v10546_v38 }
 0x291   : > { %v11119_v58 = vadd.f32 %v1699_v63, %v1614_v9  ;;  %v1668_v54 = vadd.f32 %v1616_v27, %v1615_v26  ;;  %v1619_v36 = vmul.f32 %v10537_v29, %v1469_v25  ;;  %v1148_v44 = vadd.f32 %v1147_v11, %v10525_v22  ;;  %v1149_v40 = vpop.f32.mrf.mxu1  ;;  %v1342_v50 = vpop.f32.mrf.mxu0 }
 0x292   : > { %v1621_v17 = vmul.f32 %v10540_v33, %v1471_v31  ;;  %v1470_v62 = vmax.f32 %v1146_v10, 0.0  ;;  %v1472_v37 = vmax.f32 %v1339_v28, 0.0  ;;  %v1341_v4 = vadd.f32 %v1340_v59, %v10528_v23  ;;  %v15811_v31 = vld [vmem:[#allocation17_spill] sm:$0xff] }
 0x293   : > { %15810 = vst [vmem:[#allocation54_spill] sm:$0xff] %v11119_v58  ;;  %v1700_v21 = vadd.f32 %v1668_v54, %v1617_v3  ;;  %v1473_v9 = vmax.f32 %v1148_v44, 0.0  ;;  %v1150_v26 = vadd.f32 %v1149_v40, %v10543_v34  ;;  %v1343_v63 = vadd.f32 %v1342_v50, %v10546_v38  ;;  %v1153_v32 = vpop.f32.mrf.mxu1  ;;  %v1346_v5 = vpop.f32.mrf.mxu0 }
 0x294   : > { %v1620_v27 = vmul.f32 %v10551_v45, %v1470_v62  ;;  %v1622_v25 = vmul.f32 %v10554_v48, %v1472_v37  ;;  %v1475_v11 = vmax.f32 %v1341_v4, 0.0  ;;  %3084 = vmatmul.mubr.bf16.gmra.mxu1 %v15811_v31  ;;  %3277 = vmatmul.mubr.bf16.gmra.mxu0 %v15811_v31  ;;  %v1154_v37 = vadd.f32 %v1153_v32, %v10525_v22 }
 0x295   : > { %v11137_v3 = vadd.f32 %v1700_v21, %v1618_v18  ;;  %v1623_v28 = vmul.f32 %v10537_v29, %v1473_v9  ;;  %v1474_v59 = vmax.f32 %v1150_v26, 0.0  ;;  %v1476_v54 = vmax.f32 %v1343_v63, 0.0  ;;  %3093 = vmatprep.mubr.bf16.mxu1 %v15759_v24  ;;  %3286 = vmatprep.mubr.bf16.mxu0 %v15759_v24  ;;  %v1155_v40 = vpop.f32.mrf.mxu1  ;;  %v1348_v50 = vpop.f32.mrf.mxu0 }
 0x296   : > { %v1669_v44 = vadd.f32 %v1620_v27, %v1619_v36  ;;  %v1625_v62 = vmul.f32 %v10540_v33, %v1475_v11  ;;  %v1347_v4 = vadd.f32 %v1346_v5, %v10528_v23  ;;  %v1156_v9 = vadd.f32 %v1155_v40, %v10543_v34 }
 0x297   : > { %15812 = vst [vmem:[#allocation55_spill] sm:$0xff] %v11137_v3  ;;  %v1624_v21 = vmul.f32 %v10551_v45, %v1474_v59  ;;  %v1626_v18 = vmul.f32 %v10554_v48, %v1476_v54  ;;  %v1349_v26 = vadd.f32 %v1348_v50, %v10546_v38  ;;  %v1477_v10 = vmax.f32 %v1154_v37, 0.0  ;;  %v1157_v36 = vpop.f32.mrf.mxu1  ;;  %v1350_v27 = vpop.f32.mrf.mxu0  ;;  %v11152_v59 = vld [vmem:[#allocation7 + $0x548] sm:$0xff] }
 0x298   : > { %v1701_v63 = vadd.f32 %v1669_v44, %v1621_v17  ;;  %v1479_v56 = vmax.f32 %v1347_v4, 0.0  ;;  %v1478_v5 = vmax.f32 %v1156_v9, 0.0  ;;  %v1158_v51 = vadd.f32 %v1157_v36, %v10525_v22  ;;  %v11154_v54 = vld [vmem:[#allocation7 + $0x5c8] sm:$0xff] }
 0x299   : > { %v1670_v11 = vadd.f32 %v1624_v21, %v1623_v28  ;;  %v1480_v15 = vmax.f32 %v1349_v26, 0.0  ;;  %v1627_v17 = vmul.f32 %v10537_v29, %v1477_v10  ;;  %v1351_v37 = vadd.f32 %v1350_v27, %v10528_v23  ;;  %v1159_v4 = vpop.f32.mrf.mxu1  ;;  %v1352_v50 = vpop.f32.mrf.mxu0  ;;  %v15814_v10 = vld [vmem:[#allocation18_spill] sm:$0xff] }
 0x29a   : > { %v11156_v40 = vadd.f32 %v1701_v63, %v1622_v25  ;;  %v1629_v44 = vmul.f32 %v10540_v33, %v1479_v56  ;;  %v1628_v28 = vmul.f32 %v10551_v45, %v1478_v5  ;;  %v1481_v9 = vmax.f32 %v1158_v51, 0.0 }
 0x29b   : > { %v1702_v32 = vadd.f32 %v1670_v11, %v1625_v62  ;;  %v1630_v21 = vmul.f32 %v10554_v48, %v1480_v15  ;;  %v1483_v26 = vmax.f32 %v1351_v37, 0.0  ;;  %v1160_v36 = vadd.f32 %v1159_v4, %v10543_v34  ;;  %v1163_v63 = vpop.f32.mrf.mxu1 }
 0x29c   : > { %15813 = vst [vmem:[#allocation56_spill] sm:$0xff] %v11156_v40  ;;  %v1353_v25 = vadd.f32 %v1352_v50, %v10546_v38  ;;  %v1356_v40 = vpop.f32.mrf.mxu0  ;;  %3094 = vmatmul.mubr.bf16.gmra.mxu1 %v15814_v10  ;;  %3287 = vmatmul.mubr.bf16.gmra.mxu0 %v15814_v10  ;;  %v1671_v27 = vadd.f32 %v1628_v28, %v1627_v17 }
 0x29d   : > { %v11169_v62 = vadd.f32 %v1702_v32, %v1626_v18  ;;  %v1631_v15 = vmul.f32 %v10537_v29, %v1481_v9  ;;  %v1164_v51 = vadd.f32 %v1163_v63, %v10525_v22  ;;  %3103 = vmatprep.mubr.bf16.mxu1 %v15759_v24  ;;  %v1633_v11 = vmul.f32 %v10540_v33, %v1483_v26  ;;  %v1165_v50 = vpop.f32.mrf.mxu1 }
 0x29e   : > { %v1482_v5 = vmax.f32 %v1160_v36, 0.0  ;;  %v1484_v37 = vmax.f32 %v1353_v25, 0.0  ;;  %v1357_v4 = vadd.f32 %v1356_v40, %v10528_v23  ;;  %v1358_v10 = vpop.f32.mrf.mxu0  ;;  %3296 = vmatprep.mubr.bf16.mxu0 %v15759_v24  ;;  %v1703_v56 = vadd.f32 %v1671_v27, %v1629_v44 }
 0x29f   : > { %15815 = vst [vmem:[#allocation57_spill] sm:$0xff] %v11169_v62  ;;  %v1485_v18 = vmax.f32 %v1164_v51, 0.0  ;;  %v1166_v32 = vadd.f32 %v1165_v50, %v10543_v34  ;;  %v1359_v17 = vadd.f32 %v1358_v10, %v10546_v38  ;;  %v1167_v26 = vpop.f32.mrf.mxu1  ;;  %v11186_v51 = vld [vmem:[#allocation7 + $0x440] sm:$0xff] }
 0x2a0   : > { %v1632_v28 = vmul.f32 %v10551_v45, %v1482_v5  ;;  %v1634_v9 = vmul.f32 %v10554_v48, %v1484_v37  ;;  %v1487_v63 = vmax.f32 %v1357_v4, 0.0  ;;  %v1360_v36 = vpop.f32.mrf.mxu0  ;;  %v11183_v25 = vadd.f32 %v1703_v56, %v1630_v21  ;;  %v11188_v50 = vld [vmem:[#allocation7 + $0x4c0] sm:$0xff] }
 0x2a1   : > { %v1635_v62 = vmul.f32 %v10537_v29, %v1485_v18  ;;  %v1486_v44 = vmax.f32 %v1166_v32, 0.0  ;;  %v1488_v27 = vmax.f32 %v1359_v17, 0.0  ;;  %v1168_v37 = vadd.f32 %v1167_v26, %v10525_v22  ;;  %v1169_v3 = vpop.f32.mrf.mxu1 }
 0x2a2   : > { %15816 = vst [vmem:[#allocation58_spill] sm:$0xff] %v11183_v25  ;;  %v1672_v10 = vadd.f32 %v1632_v28, %v1631_v15  ;;  %v1637_v5 = vmul.f32 %v10540_v33, %v1487_v63  ;;  %v1361_v4 = vadd.f32 %v1360_v36, %v10528_v23  ;;  %v1362_v31 = vpop.f32.mrf.mxu0  ;;  %v1170_v18 = vadd.f32 %v1169_v3, %v10543_v34  ;;  %v15817_v63 = vld [vmem:[#allocation19_spill] sm:$0xff]  ;;  %v15820_v3 = vld [vmem:[#allocation32_spill] sm:$0xff] }
 0x2a3   : > { %v1636_v21 = vmul.f32 %v10551_v45, %v1486_v44  ;;  %v1638_v56 = vmul.f32 %v10554_v48, %v1488_v27  ;;  %v1363_v32 = vadd.f32 %v1362_v31, %v10546_v38  ;;  %v1489_v40 = vmax.f32 %v1168_v37, 0.0  ;;  %v2019_v15 = vpop.f32.mrf.mxu1  ;;  %v15818_v44 = vld [vmem:[#allocation31_spill] sm:$0xff] }
 0x2a4   : > { %v1704_v17 = vadd.f32 %v1672_v10, %v1633_v11  ;;  %v1491_v25 = vmax.f32 %v1361_v4, 0.0  ;;  %v2212_v28 = vpop.f32.mrf.mxu0  ;;  %3104 = vmatmul.mubr.bf16.gmra.mxu1 %v15817_v63  ;;  %3297 = vmatmul.mubr.bf16.gmra.mxu0 %v15817_v63  ;;  %v1490_v26 = vmax.f32 %v1170_v18, 0.0  ;;  %v2020_v27 = vadd.f32 %v2019_v15, %v15818_v44  ;;  %v15821_v15 = vld [vmem:[#allocation34_spill] sm:$0xff]  ;;  %v15822_v63 = vld [vmem:[#allocation35_spill] sm:$0xff] }
 0x2a5   : > { %v1673_v23 = vadd.f32 %v1636_v21, %v1635_v62  ;;  %v1492_v36 = vmax.f32 %v1363_v32, 0.0  ;;  %3113 = vmatprep.mubr.bf16.mxu1 %v15759_v24  ;;  %3306 = vmatprep.mubr.bf16.mxu0 %v15759_v24  ;;  %v1639_v38 = vmul.f32 %v10537_v29, %v1489_v40  ;;  %v2213_v11 = vadd.f32 %v2212_v28, %v15820_v3  ;;  %v2021_v10 = vpop.f32.mrf.mxu1  ;;  %v11219_v28 = vld [vmem:[#allocation7 + $0x448] sm:$0xff] }
 0x2a6   : > { %v11204_v34 = vadd.f32 %v1704_v17, %v1634_v9  ;;  %v1641_v31 = vmul.f32 %v10540_v33, %v1491_v25  ;;  %v2214_v37 = vpop.f32.mrf.mxu0  ;;  %v1640_v62 = vmul.f32 %v10551_v45, %v1490_v26  ;;  %v2371_v18 = vmax.f32 %v2020_v27, 0.0  ;;  %v15824_v25 = vld [vmem:[#allocation33_spill] sm:$0xff] }
 0x2a7   : > { %v1705_v4 = vadd.f32 %v1673_v23, %v1637_v5  ;;  %v1642_v21 = vmul.f32 %v10554_v48, %v1492_v36  ;;  %v2373_v32 = vmax.f32 %v2213_v11, 0.0  ;;  %v2022_v22 = vadd.f32 %v2021_v10, %v15821_v15  ;;  %v2023_v17 = vpop.f32.mrf.mxu1  ;;  %v11221_v48 = vld [vmem:[#allocation7 + $0x4c8] sm:$0xff]  ;;  %v15825_v23 = vld [vmem:[#allocation36_spill] sm:$0xff] }
 0x2a8   : > { %15819 = vst [vmem:[#allocation31_spill] sm:$0xff] %v11204_v34  ;;  %v2215_v9 = vadd.f32 %v2214_v37, %v15822_v63  ;;  %v2216_v34 = vpop.f32.mrf.mxu0  ;;  %v1674_v40 = vadd.f32 %v1640_v62, %v1639_v38  ;;  %v2521_v5 = vmul.f32 %v15824_v25, %v2371_v18  ;;  %v2024_v45 = vadd.f32 %v2023_v17, %v15818_v44  ;;  %v15826_v62 = vld [vmem:[#allocation37_spill] sm:$0xff]  ;;  %v15827_v17 = vld [vmem:[#allocation38_spill] sm:$0xff] }
 0x2a9   : > { %v11215_v33 = vadd.f32 %v1705_v4, %v1638_v56  ;;  %v2523_v26 = vmul.f32 %v15825_v23, %v2373_v32  ;;  %v2372_v36 = vmax.f32 %v2022_v22, 0.0  ;;  %v2217_v11 = vadd.f32 %v2216_v34, %v15820_v3  ;;  %v2025_v10 = vpop.f32.mrf.mxu1  ;;  %v15828_v32 = vld [vmem:[#allocation20_spill] sm:$0xff] }
 0x2aa   : > { %v2374_v27 = vmax.f32 %v2215_v9, 0.0  ;;  %v2218_v37 = vpop.f32.mrf.mxu0  ;;  %v1706_v29 = vadd.f32 %v1674_v40, %v1641_v31  ;;  %v2375_v56 = vmax.f32 %v2024_v45, 0.0  ;;  %v2026_v38 = vadd.f32 %v2025_v10, %v15821_v15 }
 0x2ab   : > { %15823 = vst [vmem:[#allocation32_spill] sm:$0xff] %v11215_v33  ;;  %v2219_v4 = vadd.f32 %v2218_v37, %v15822_v63  ;;  %v2522_v18 = vmul.f32 %v15826_v62, %v2372_v36  ;;  %v2377_v58 = vmax.f32 %v2217_v11, 0.0  ;;  %v2029_v55 = vpop.f32.mrf.mxu1 }
 0x2ac   : > { %v2524_v33 = vmul.f32 %v15827_v17, %v2374_v27  ;;  %v2222_v46 = vpop.f32.mrf.mxu0  ;;  %3114 = vmatmul.mubr.bf16.gmra.mxu1 %v15828_v32  ;;  %3307 = vmatmul.mubr.bf16.gmra.mxu0 %v15828_v32  ;;  %v11233_v34 = vadd.f32 %v1706_v29, %v1642_v21  ;;  %v2525_v31 = vmul.f32 %v15824_v25, %v2375_v56  ;;  %v2376_v9 = vmax.f32 %v2026_v38, 0.0 }
 0x2ad   : > { %v2378_v40 = vmax.f32 %v2219_v4, 0.0  ;;  %3123 = vmatprep.mubr.bf16.mxu1 %v15759_v24  ;;  %3316 = vmatprep.mubr.bf16.mxu0 %v15759_v24  ;;  %v2649_v45 = vadd.f32 %v2522_v18, %v2521_v5  ;;  %v2527_v36 = vmul.f32 %v15825_v23, %v2377_v58  ;;  %v2030_v27 = vadd.f32 %v2029_v55, %v15818_v44  ;;  %v2031_v10 = vpop.f32.mrf.mxu1 }
 0x2ae   : > { %15829 = vst [vmem:[#allocation34_spill] sm:$0xff] %v11233_v34  ;;  %v2223_v11 = vadd.f32 %v2222_v46, %v15820_v3  ;;  %v2224_v37 = vpop.f32.mrf.mxu0  ;;  %v2526_v21 = vmul.f32 %v15826_v62, %v2376_v9  ;;  %v2032_v56 = vadd.f32 %v2031_v10, %v15821_v15 }
 0x2af   : > { %v2528_v29 = vmul.f32 %v15827_v17, %v2378_v40  ;;  %v2225_v38 = vadd.f32 %v2224_v37, %v15822_v63  ;;  %v2681_v4 = vadd.f32 %v2649_v45, %v2523_v26  ;;  %v2379_v22 = vmax.f32 %v2030_v27, 0.0  ;;  %v2033_v5 = vpop.f32.mrf.mxu1 }
 0x2b0   : > { %v2381_v34 = vmax.f32 %v2223_v11, 0.0  ;;  %v2226_v18 = vpop.f32.mrf.mxu0  ;;  %v2650_v58 = vadd.f32 %v2526_v21, %v2525_v31  ;;  %v2380_v46 = vmax.f32 %v2032_v56, 0.0  ;;  %v2034_v6 = vadd.f32 %v2033_v5, %v15818_v44  ;;  %v15830_v31 = vld [vmem:[#allocation39_spill] sm:$0xff] }
 0x2b1   : > { %v2382_v32 = vmax.f32 %v2225_v38, 0.0  ;;  %v2713_v9 = vadd.f32 %v2681_v4, %v2524_v33  ;;  %v2529_v40 = vmul.f32 %v15824_v25, %v2379_v22  ;;  %v2227_v37 = vadd.f32 %v2226_v18, %v15820_v3  ;;  %v2035_v26 = vpop.f32.mrf.mxu1  ;;  %v15832_v4 = vld [vmem:[#allocation21_spill] sm:$0xff] }
 0x2b2   : > { %v2531_v10 = vmul.f32 %v15825_v23, %v2381_v34  ;;  %v2228_v45 = vpop.f32.mrf.mxu0  ;;  %v2682_v27 = vadd.f32 %v2650_v58, %v2527_v36  ;;  %v2530_v11 = vmul.f32 %v15826_v62, %v2380_v46  ;;  %v2383_v55 = vmax.f32 %v2034_v6, 0.0 }
 0x2b3   : > { %v2532_v16 = vmul.f32 %v15827_v17, %v2382_v32  ;;  %v11254_v21 = vadd.f32 %v2713_v9, %v15830_v31  ;;  %v2385_v56 = vmax.f32 %v2227_v37, 0.0  ;;  %v2036_v33 = vadd.f32 %v2035_v26, %v15821_v15  ;;  %v2039_v38 = vpop.f32.mrf.mxu1 }
 0x2b4   : > { %v2229_v22 = vadd.f32 %v2228_v45, %v15822_v63  ;;  %v2232_v34 = vpop.f32.mrf.mxu0  ;;  %3124 = vmatmul.mubr.bf16.gmra.mxu1 %v15832_v4  ;;  %3317 = vmatmul.mubr.bf16.gmra.mxu0 %v15832_v4  ;;  %v2714_v36 = vadd.f32 %v2682_v27, %v2528_v29  ;;  %v2651_v5 = vadd.f32 %v2530_v11, %v2529_v40  ;;  %v15833_v45 = vld [vmem:[#allocation40_spill] sm:$0xff] }
 0x2b5   : > { %15831 = vst [vmem:[#allocation35_spill] sm:$0xff] %v11254_v21  ;;  %v2533_v18 = vmul.f32 %v15824_v25, %v2383_v55  ;;  %v2040_v6 = vadd.f32 %v2039_v38, %v15818_v44  ;;  %3133 = vmatprep.mubr.bf16.mxu1 %v15759_v24  ;;  %v2535_v32 = vmul.f32 %v15825_v23, %v2385_v56  ;;  %v2384_v58 = vmax.f32 %v2036_v33, 0.0  ;;  %v2041_v37 = vpop.f32.mrf.mxu1 }
 0x2b6   : > { %v2386_v46 = vmax.f32 %v2229_v22, 0.0  ;;  %v2233_v9 = vadd.f32 %v2232_v34, %v15820_v3  ;;  %v2234_v26 = vpop.f32.mrf.mxu0  ;;  %3326 = vmatprep.mubr.bf16.mxu0 %v15759_v24  ;;  %v11267_v31 = vadd.f32 %v2714_v36, %v15833_v45  ;;  %v2683_v29 = vadd.f32 %v2651_v5, %v2531_v10 }
 0x2b7   : > { %v2387_v40 = vmax.f32 %v2040_v6, 0.0  ;;  %v2042_v55 = vadd.f32 %v2041_v37, %v15821_v15  ;;  %v2534_v27 = vmul.f32 %v15826_v62, %v2384_v58  ;;  %v2235_v33 = vadd.f32 %v2234_v26, %v15822_v63  ;;  %v2043_v22 = vpop.f32.mrf.mxu1 }
 0x2b8   : > { %15834 = vst [vmem:[#allocation33_spill] sm:$0xff] %v11267_v31  ;;  %v2536_v11 = vmul.f32 %v15827_v17, %v2386_v46  ;;  %v2389_v56 = vmax.f32 %v2233_v9, 0.0  ;;  %v2236_v38 = vpop.f32.mrf.mxu0  ;;  %v2715_v34 = vadd.f32 %v2683_v29, %v2532_v16  ;;  %v2044_v36 = vadd.f32 %v2043_v22, %v15818_v44  ;;  %v15835_v46 = vld [vmem:[#allocation41_spill] sm:$0xff] }
 0x2b9   : > { %v2537_v21 = vmul.f32 %v15824_v25, %v2387_v40  ;;  %v2388_v4 = vmax.f32 %v2042_v55, 0.0  ;;  %v2652_v45 = vadd.f32 %v2534_v27, %v2533_v18  ;;  %v2390_v5 = vmax.f32 %v2235_v33, 0.0  ;;  %v2045_v58 = vpop.f32.mrf.mxu1  ;;  %v15837_v33 = vld [vmem:[#allocation22_spill] sm:$0xff] }
 0x2ba   : > { %v2539_v10 = vmul.f32 %v15825_v23, %v2389_v56  ;;  %v2237_v6 = vadd.f32 %v2236_v38, %v15820_v3  ;;  %v2238_v37 = vpop.f32.mrf.mxu0  ;;  %v11278_v9 = vadd.f32 %v2715_v34, %v15835_v46  ;;  %v2391_v31 = vmax.f32 %v2044_v36, 0.0 }
 0x2bb   : > { %v2538_v26 = vmul.f32 %v15826_v62, %v2388_v4  ;;  %v2046_v16 = vadd.f32 %v2045_v58, %v15821_v15  ;;  %v2684_v29 = vadd.f32 %v2652_v45, %v2535_v32  ;;  %v2540_v40 = vmul.f32 %v15827_v17, %v2390_v5  ;;  %v2049_v27 = vpop.f32.mrf.mxu1 }
 0x2bc   : > { %15836 = vst [vmem:[#allocation36_spill] sm:$0xff] %v11278_v9  ;;  %v2393_v55 = vmax.f32 %v2237_v6, 0.0  ;;  %v2239_v18 = vadd.f32 %v2238_v37, %v15822_v63  ;;  %v2242_v56 = vpop.f32.mrf.mxu0  ;;  %3134 = vmatmul.mubr.bf16.gmra.mxu1 %v15837_v33  ;;  %3327 = vmatmul.mubr.bf16.gmra.mxu0 %v15837_v33  ;;  %v2541_v38 = vmul.f32 %v15824_v25, %v2391_v31 }
 0x2bd   : > { %v2653_v22 = vadd.f32 %v2538_v26, %v2537_v21  ;;  %v2392_v34 = vmax.f32 %v2046_v16, 0.0  ;;  %v2050_v4 = vadd.f32 %v2049_v27, %v15818_v44  ;;  %3143 = vmatprep.mubr.bf16.mxu1 %v15759_v24  ;;  %3336 = vmatprep.mubr.bf16.mxu0 %v15759_v24  ;;  %v2716_v32 = vadd.f32 %v2684_v29, %v2536_v11  ;;  %v2051_v6 = vpop.f32.mrf.mxu1  ;;  %v15838_v26 = vld [vmem:[#allocation42_spill] sm:$0xff] }
 0x2be   : > { %v2543_v36 = vmul.f32 %v15825_v23, %v2393_v55  ;;  %v2394_v45 = vmax.f32 %v2239_v18, 0.0  ;;  %v2243_v5 = vadd.f32 %v2242_v56, %v15820_v3  ;;  %v2244_v58 = vpop.f32.mrf.mxu0  ;;  %v2052_v31 = vadd.f32 %v2051_v6, %v15821_v15 }
 0x2bf   : > { %v2685_v37 = vadd.f32 %v2653_v22, %v2539_v10  ;;  %v2542_v21 = vmul.f32 %v15826_v62, %v2392_v34  ;;  %v2395_v46 = vmax.f32 %v2050_v4, 0.0  ;;  %v11295_v16 = vadd.f32 %v2716_v32, %v15838_v26  ;;  %v2053_v29 = vpop.f32.mrf.mxu1 }
 0x2c0   : > { %v2544_v27 = vmul.f32 %v15827_v17, %v2394_v45  ;;  %v2397_v9 = vmax.f32 %v2243_v5, 0.0  ;;  %v2245_v11 = vadd.f32 %v2244_v58, %v15822_v63  ;;  %v2246_v55 = vpop.f32.mrf.mxu0  ;;  %v2396_v10 = vmax.f32 %v2052_v31, 0.0  ;;  %v15840_v45 = vld [vmem:[#allocation43_spill] sm:$0xff] }
 0x2c1   : > { %15839 = vst [vmem:[#allocation37_spill] sm:$0xff] %v11295_v16  ;;  %v2717_v18 = vadd.f32 %v2685_v37, %v2540_v40  ;;  %v2654_v56 = vadd.f32 %v2542_v21, %v2541_v38  ;;  %v2545_v33 = vmul.f32 %v15824_v25, %v2395_v46  ;;  %v2054_v4 = vadd.f32 %v2053_v29, %v15818_v44  ;;  %v2055_v6 = vpop.f32.mrf.mxu1 }
 0x2c2   : > { %v2547_v22 = vmul.f32 %v15825_v23, %v2397_v9  ;;  %v2398_v34 = vmax.f32 %v2245_v11, 0.0  ;;  %v2247_v32 = vadd.f32 %v2246_v55, %v15820_v3  ;;  %v2248_v26 = vpop.f32.mrf.mxu0  ;;  %v2546_v16 = vmul.f32 %v15826_v62, %v2396_v10  ;;  %v15842_v11 = vld [vmem:[#allocation23_spill] sm:$0xff] }
 0x2c3   : > { %v11304_v5 = vadd.f32 %v2717_v18, %v15840_v45  ;;  %v2686_v58 = vadd.f32 %v2654_v56, %v2543_v36  ;;  %v2056_v40 = vadd.f32 %v2055_v6, %v15821_v15  ;;  %v2399_v37 = vmax.f32 %v2054_v4, 0.0  ;;  %v2059_v46 = vpop.f32.mrf.mxu1 }
 0x2c4   : > { %v2548_v38 = vmul.f32 %v15827_v17, %v2398_v34  ;;  %v2401_v21 = vmax.f32 %v2247_v32, 0.0  ;;  %v2249_v9 = vadd.f32 %v2248_v26, %v15822_v63  ;;  %v2252_v31 = vpop.f32.mrf.mxu0  ;;  %3144 = vmatmul.mubr.bf16.gmra.mxu1 %v15842_v11  ;;  %3337 = vmatmul.mubr.bf16.gmra.mxu0 %v15842_v11  ;;  %v2655_v55 = vadd.f32 %v2546_v16, %v2545_v33  ;;  %v15843_v26 = vld [vmem:[#allocation44_spill] sm:$0xff] }
 0x2c5   : > { %15841 = vst [vmem:[#allocation38_spill] sm:$0xff] %v11304_v5  ;;  %v2718_v29 = vadd.f32 %v2686_v58, %v2544_v27  ;;  %v2400_v18 = vmax.f32 %v2056_v40, 0.0  ;;  %v2060_v36 = vadd.f32 %v2059_v46, %v15818_v44  ;;  %3153 = vmatprep.mubr.bf16.mxu1 %v15759_v24  ;;  %3346 = vmatprep.mubr.bf16.mxu0 %v15759_v24  ;;  %v2061_v32 = vpop.f32.mrf.mxu1 }
 0x2c6   : > { %v2549_v56 = vmul.f32 %v15824_v25, %v2399_v37  ;;  %v2551_v10 = vmul.f32 %v15825_v23, %v2401_v21  ;;  %v2402_v34 = vmax.f32 %v2249_v9, 0.0  ;;  %v2253_v4 = vadd.f32 %v2252_v31, %v15820_v3  ;;  %v2254_v6 = vpop.f32.mrf.mxu0 }
 0x2c7   : > { %v11319_v45 = vadd.f32 %v2718_v29, %v15843_v26  ;;  %v2687_v33 = vadd.f32 %v2655_v55, %v2547_v22  ;;  %v2550_v16 = vmul.f32 %v15826_v62, %v2400_v18  ;;  %v2403_v27 = vmax.f32 %v2060_v36, 0.0  ;;  %v2063_v21 = vpop.f32.mrf.mxu1  ;;  %v15845_v26 = vld [vmem:[#allocation45_spill] sm:$0xff] }
 0x2c8   : > { %v2552_v58 = vmul.f32 %v15827_v17, %v2402_v34  ;;  %v2405_v40 = vmax.f32 %v2253_v4, 0.0  ;;  %v2062_v46 = vadd.f32 %v2061_v32, %v15821_v15  ;;  %v2255_v37 = vadd.f32 %v2254_v6, %v15822_v63  ;;  %v2256_v9 = vpop.f32.mrf.mxu0 }
 0x2c9   : > { %15844 = vst [vmem:[#allocation39_spill] sm:$0xff] %v11319_v45  ;;  %v2719_v5 = vadd.f32 %v2687_v33, %v2548_v38  ;;  %v2656_v31 = vadd.f32 %v2550_v16, %v2549_v56  ;;  %v2553_v11 = vmul.f32 %v15824_v25, %v2403_v27  ;;  %v2064_v29 = vadd.f32 %v2063_v21, %v15818_v44  ;;  %v2065_v34 = vpop.f32.mrf.mxu1 }
 0x2ca   : > { %v2555_v22 = vmul.f32 %v15825_v23, %v2405_v40  ;;  %v2404_v55 = vmax.f32 %v2062_v46, 0.0  ;;  %v2406_v18 = vmax.f32 %v2255_v37, 0.0  ;;  %v2257_v36 = vadd.f32 %v2256_v9, %v15820_v3  ;;  %v2258_v4 = vpop.f32.mrf.mxu0  ;;  %v15847_v37 = vld [vmem:[#allocation24_spill] sm:$0xff] }
 0x2cb   : > { %v11330_v32 = vadd.f32 %v2719_v5, %v15845_v26  ;;  %v2688_v6 = vadd.f32 %v2656_v31, %v2551_v10  ;;  %v2407_v45 = vmax.f32 %v2064_v29, 0.0  ;;  %v2066_v38 = vadd.f32 %v2065_v34, %v15821_v15  ;;  %v2069_v40 = vpop.f32.mrf.mxu1 }
 0x2cc   : > { %v2554_v56 = vmul.f32 %v15826_v62, %v2404_v55  ;;  %v2556_v33 = vmul.f32 %v15827_v17, %v2406_v18  ;;  %v2409_v16 = vmax.f32 %v2257_v36, 0.0  ;;  %v2259_v27 = vadd.f32 %v2258_v4, %v15822_v63  ;;  %v2262_v46 = vpop.f32.mrf.mxu0  ;;  %3154 = vmatmul.mubr.bf16.gmra.mxu1 %v15847_v37  ;;  %3347 = vmatmul.mubr.bf16.gmra.mxu0 %v15847_v37  ;;  %v15848_v4 = vld [vmem:[#allocation46_spill] sm:$0xff] }
 0x2cd   : > { %15846 = vst [vmem:[#allocation40_spill] sm:$0xff] %v11330_v32  ;;  %v2720_v21 = vadd.f32 %v2688_v6, %v2552_v58  ;;  %v2557_v5 = vmul.f32 %v15824_v25, %v2407_v45  ;;  %v2408_v10 = vmax.f32 %v2066_v38, 0.0  ;;  %v2070_v9 = vadd.f32 %v2069_v40, %v15818_v44  ;;  %3163 = vmatprep.mubr.bf16.mxu1 %v15759_v24  ;;  %v2071_v36 = vpop.f32.mrf.mxu1 }
 0x2ce   : > { %3356 = vmatprep.mubr.bf16.mxu0 %v15759_v24  ;;  %v2657_v31 = vadd.f32 %v2554_v56, %v2553_v11  ;;  %v2559_v29 = vmul.f32 %v15825_v23, %v2409_v16  ;;  %v2410_v55 = vmax.f32 %v2259_v27, 0.0  ;;  %v2263_v18 = vadd.f32 %v2262_v46, %v15820_v3  ;;  %v2264_v34 = vpop.f32.mrf.mxu0 }
 0x2cf   : > { %v11345_v26 = vadd.f32 %v2720_v21, %v15848_v4  ;;  %v2558_v45 = vmul.f32 %v15826_v62, %v2408_v10  ;;  %v2411_v58 = vmax.f32 %v2070_v9, 0.0  ;;  %v2072_v6 = vadd.f32 %v2071_v36, %v15821_v15  ;;  %v2073_v56 = vpop.f32.mrf.mxu1 }
 0x2d0   : > { %v2689_v38 = vadd.f32 %v2657_v31, %v2555_v22  ;;  %v2560_v40 = vmul.f32 %v15827_v17, %v2410_v55  ;;  %v2413_v32 = vmax.f32 %v2263_v18, 0.0  ;;  %v2265_v11 = vadd.f32 %v2264_v34, %v15822_v63  ;;  %v2266_v16 = vpop.f32.mrf.mxu0 }
 0x2d1   : > { %15849 = vst [vmem:[#allocation41_spill] sm:$0xff] %v11345_v26  ;;  %v2658_v27 = vadd.f32 %v2558_v45, %v2557_v5  ;;  %v2561_v46 = vmul.f32 %v15824_v25, %v2411_v58  ;;  %v2412_v37 = vmax.f32 %v2072_v6, 0.0  ;;  %v2074_v21 = vadd.f32 %v2073_v56, %v15818_v44  ;;  %v2075_v22 = vpop.f32.mrf.mxu1  ;;  %v15850_v5 = vld [vmem:[#allocation48_spill] sm:$0xff] }
 0x2d2   : > { %v2721_v4 = vadd.f32 %v2689_v38, %v2556_v33  ;;  %v2563_v10 = vmul.f32 %v15825_v23, %v2413_v32  ;;  %v2414_v9 = vmax.f32 %v2265_v11, 0.0  ;;  %v2267_v36 = vadd.f32 %v2266_v16, %v15820_v3  ;;  %v2268_v31 = vpop.f32.mrf.mxu0  ;;  %v15852_v11 = vld [vmem:[#allocation25_spill] sm:$0xff] }
 0x2d3   : > { %v2690_v55 = vadd.f32 %v2658_v27, %v2559_v29  ;;  %v2562_v18 = vmul.f32 %v15826_v62, %v2412_v37  ;;  %v2415_v34 = vmax.f32 %v2074_v21, 0.0  ;;  %v2076_v26 = vadd.f32 %v2075_v22, %v15821_v15  ;;  %v2079_v32 = vpop.f32.mrf.mxu1 }
 0x2d4   : > { %v11358_v45 = vadd.f32 %v2721_v4, %v15850_v5  ;;  %v2564_v58 = vmul.f32 %v15827_v17, %v2414_v9  ;;  %v2417_v6 = vmax.f32 %v2267_v36, 0.0  ;;  %v2269_v33 = vadd.f32 %v2268_v31, %v15822_v63  ;;  %v2272_v38 = vpop.f32.mrf.mxu0  ;;  %3164 = vmatmul.mubr.bf16.gmra.mxu1 %v15852_v11  ;;  %3357 = vmatmul.mubr.bf16.gmra.mxu0 %v15852_v11  ;;  %v15853_v31 = vld [vmem:[#allocation49_spill] sm:$0xff] }
 0x2d5   : > { %v2722_v29 = vadd.f32 %v2690_v55, %v2560_v40  ;;  %v2659_v56 = vadd.f32 %v2562_v18, %v2561_v46  ;;  %v2565_v37 = vmul.f32 %v15824_v25, %v2415_v34  ;;  %v2416_v16 = vmax.f32 %v2076_v26, 0.0  ;;  %3173 = vmatprep.mubr.bf16.mxu1 %v15759_v24  ;;  %3366 = vmatprep.mubr.bf16.mxu0 %v15759_v24  ;;  %v2081_v36 = vpop.f32.mrf.mxu1 }
 0x2d6   : > { %15851 = vst [vmem:[#allocation42_spill] sm:$0xff] %v11358_v45  ;;  %v2567_v27 = vmul.f32 %v15825_v23, %v2417_v6  ;;  %v2418_v21 = vmax.f32 %v2269_v33, 0.0  ;;  %v2080_v4 = vadd.f32 %v2079_v32, %v15818_v44  ;;  %v2273_v9 = vadd.f32 %v2272_v38, %v15820_v3  ;;  %v2274_v22 = vpop.f32.mrf.mxu0 }
 0x2d7   : > { %v11371_v5 = vadd.f32 %v2722_v29, %v15853_v31  ;;  %v2691_v40 = vadd.f32 %v2659_v56, %v2563_v10  ;;  %v2566_v46 = vmul.f32 %v15826_v62, %v2416_v16  ;;  %v2082_v26 = vadd.f32 %v2081_v36, %v15821_v15  ;;  %v2083_v33 = vpop.f32.mrf.mxu1 }
 0x2d8   : > { %v2568_v55 = vmul.f32 %v15827_v17, %v2418_v21  ;;  %v2419_v18 = vmax.f32 %v2080_v4, 0.0  ;;  %v2421_v34 = vmax.f32 %v2273_v9, 0.0  ;;  %v2275_v6 = vadd.f32 %v2274_v22, %v15822_v63  ;;  %v2276_v32 = vpop.f32.mrf.mxu0  ;;  %v15854_v4 = vld [vmem:[#allocation50_spill] sm:$0xff] }
 0x2d9   : > { %v2723_v45 = vadd.f32 %v2691_v40, %v2564_v58  ;;  %v2660_v38 = vadd.f32 %v2566_v46, %v2565_v37  ;;  %v2420_v11 = vmax.f32 %v2082_v26, 0.0  ;;  %v2084_v12 = vadd.f32 %v2083_v33, %v15818_v44  ;;  %v2085_v36 = vpop.f32.mrf.mxu1 }
 0x2da   : > { %v2569_v29 = vmul.f32 %v15824_v25, %v2419_v18  ;;  %v2571_v10 = vmul.f32 %v15825_v23, %v2421_v34  ;;  %v2422_v56 = vmax.f32 %v2275_v6, 0.0  ;;  %v2277_v16 = vadd.f32 %v2276_v32, %v15820_v3  ;;  %v2278_v21 = vpop.f32.mrf.mxu0  ;;  %v15856_v6 = vld [vmem:[#allocation26_spill] sm:$0xff] }
 0x2db   : > { %v11382_v9 = vadd.f32 %v2723_v45, %v15854_v4  ;;  %v2692_v22 = vadd.f32 %v2660_v38, %v2567_v27  ;;  %v2570_v31 = vmul.f32 %v15826_v62, %v2420_v11  ;;  %v2423_v58 = vmax.f32 %v2084_v12, 0.0  ;;  %v2089_v18 = vpop.f32.mrf.mxu1 }
 0x2dc   : > { %v2572_v37 = vmul.f32 %v15827_v17, %v2422_v56  ;;  %v2425_v40 = vmax.f32 %v2277_v16, 0.0  ;;  %v2086_v46 = vadd.f32 %v2085_v36, %v15821_v15  ;;  %v2279_v26 = vadd.f32 %v2278_v21, %v15822_v63  ;;  %v2282_v34 = vpop.f32.mrf.mxu0  ;;  %3174 = vmatmul.mubr.bf16.gmra.mxu1 %v15856_v6  ;;  %3367 = vmatmul.mubr.bf16.gmra.mxu0 %v15856_v6  ;;  %v15857_v21 = vld [vmem:[#allocation52_spill] sm:$0xff] }
 0x2dd   : > { %15855 = vst [vmem:[#allocation43_spill] sm:$0xff] %v11382_v9  ;;  %v2724_v33 = vadd.f32 %v2692_v22, %v2568_v55  ;;  %v2661_v45 = vadd.f32 %v2570_v31, %v2569_v29  ;;  %v2573_v27 = vmul.f32 %v15824_v25, %v2423_v58  ;;  %v2090_v11 = vadd.f32 %v2089_v18, %v15818_v44  ;;  %v2091_v16 = vpop.f32.mrf.mxu1 }
 0x2de   : > { %4029 = vmatprep.mubr.bf16.mxu1 %v15759_v24  ;;  %v2575_v12 = vmul.f32 %v15825_v23, %v2425_v40  ;;  %v2424_v32 = vmax.f32 %v2086_v46, 0.0  ;;  %v2426_v38 = vmax.f32 %v2279_v26, 0.0  ;;  %v2283_v56 = vadd.f32 %v2282_v34, %v15820_v3  ;;  %v2284_v36 = vpop.f32.mrf.mxu0  ;;  %4222 = vmatprep.mubr.bf16.mxu0 %v15759_v24 }
 0x2df   : > { %v11397_v4 = vadd.f32 %v2724_v33, %v15857_v21  ;;  %v2693_v55 = vadd.f32 %v2661_v45, %v2571_v10  ;;  %v2427_v29 = vmax.f32 %v2090_v11, 0.0  ;;  %v2092_v22 = vadd.f32 %v2091_v16, %v15821_v15  ;;  %v2093_v26 = vpop.f32.mrf.mxu1 }
 0x2e0   : > { %v2574_v31 = vmul.f32 %v15826_v62, %v2424_v32  ;;  %v2576_v58 = vmul.f32 %v15827_v17, %v2426_v38  ;;  %v2429_v40 = vmax.f32 %v2283_v56, 0.0  ;;  %v2285_v46 = vadd.f32 %v2284_v36, %v15822_v63  ;;  %v2286_v18 = vpop.f32.mrf.mxu0  ;;  %v15859_v38 = vld [vmem:[#allocation53_spill] sm:$0xff] }
 0x2e1   : > { %15858 = vst [vmem:[#allocation44_spill] sm:$0xff] %v11397_v4  ;;  %v2725_v34 = vadd.f32 %v2693_v55, %v2572_v37  ;;  %v2577_v9 = vmul.f32 %v15824_v25, %v2427_v29  ;;  %v2428_v6 = vmax.f32 %v2092_v22, 0.0  ;;  %v2094_v33 = vadd.f32 %v2093_v26, %v15818_v44  ;;  %v2095_v32 = vpop.f32.mrf.mxu1 }
 0x2e2   : > { %v2662_v21 = vadd.f32 %v2574_v31, %v2573_v27  ;;  %v2579_v10 = vmul.f32 %v15825_v23, %v2429_v40  ;;  %v2430_v45 = vmax.f32 %v2285_v46, 0.0  ;;  %v2287_v11 = vadd.f32 %v2286_v18, %v15820_v3  ;;  %v2288_v16 = vpop.f32.mrf.mxu0 }
 0x2e3   : > { %v11408_v56 = vadd.f32 %v2725_v34, %v15859_v38  ;;  %v2578_v36 = vmul.f32 %v15826_v62, %v2428_v6  ;;  %v2431_v4 = vmax.f32 %v2094_v33, 0.0  ;;  %v2096_v37 = vadd.f32 %v2095_v32, %v15821_v15  ;;  %v2099_v31 = vpop.f32.mrf.mxu1 }
 0x2e4   : > { %v2694_v55 = vadd.f32 %v2662_v21, %v2575_v12  ;;  %v2580_v29 = vmul.f32 %v15827_v17, %v2430_v45  ;;  %v2433_v22 = vmax.f32 %v2287_v11, 0.0  ;;  %v2289_v27 = vadd.f32 %v2288_v16, %v15822_v63  ;;  %v2292_v40 = vpop.f32.mrf.mxu0  ;;  %4030 = vmatmul.mubr.bf16.vlgmr.msra.gmra.mxu1 %v10314_v52  ;;  %4223 = vmatmul.mubr.bf16.vlgmr.msra.gmra.mxu0 %v10314_v52 }
 0x2e5   : > { %v2663_v46 = vadd.f32 %v2578_v36, %v2577_v9  ;;  %v2581_v26 = vmul.f32 %v15824_v25, %v2431_v4  ;;  %v2432_v18 = vmax.f32 %v2096_v37, 0.0  ;;  %v2100_v6 = vadd.f32 %v2099_v31, %v15818_v44  ;;  %v2101_v9 = vpop.f32.mrf.mxu1  ;;  %4039 = vmatprep.mubr.bf16.mxu1 %v15759_v24  ;;  %4232 = vmatprep.mubr.bf16.mxu0 %v15759_v24 }
 0x2e6   : > { %v15860_v12 = vcombine.low %v10937_v47, %v10939_v60  ;;  %v15861_v34 = vcombine.low %v10994_v0, %v10996_v35  ;;  %v2726_v33 = vadd.f32 %v2694_v55, %v2576_v58  ;;  %v2583_v21 = vmul.f32 %v15825_v23, %v2433_v22  ;;  %v2294_v32 = vpop.f32.mrf.mxu0 }
 0x2e7   : > { %v2434_v45 = vmax.f32 %v2289_v27, 0.0  ;;  %v2293_v11 = vadd.f32 %v2292_v40, %v15820_v3  ;;  %v2695_v4 = vadd.f32 %v2663_v46, %v2579_v10  ;;  %v2582_v47 = vmul.f32 %v15826_v62, %v2432_v18  ;;  %v2103_v37 = vpop.f32.mrf.mxu1 }
 0x2e8   : > { %5004 = vmatpush1.bf16.msra.mxu1 %v15860_v12  ;;  %5197 = vmatpush1.bf16.msra.mxu0 %v15861_v34  ;;  %v2435_v60 = vmax.f32 %v2100_v6, 0.0  ;;  %v2102_v16 = vadd.f32 %v2101_v9, %v15821_v15  ;;  %v15862_v0 = vcombine.high %v11041_v39, %v11043_v2  ;;  %v15863_v35 = vcombine.high %v11090_v42, %v11092_v20  ;;  %v2296_v55 = vpop.f32.mrf.mxu0 }
 0x2e9   : > { %v11437_v58 = vadd.f32 %v2726_v33, %v10852_v1  ;;  %v2584_v38 = vmul.f32 %v15827_v17, %v2434_v45  ;;  %v2437_v36 = vmax.f32 %v2293_v11, 0.0  ;;  %v2295_v10 = vadd.f32 %v2294_v32, %v15822_v63 }
 0x2ea   : > { %5005 = vmatprep.subr.bf16.mxu1 %v15862_v0  ;;  %5198 = vmatprep.subr.bf16.mxu0 %v15863_v35  ;;  %v2727_v22 = vadd.f32 %v2695_v4, %v2580_v29  ;;  %v2664_v27 = vadd.f32 %v2582_v47, %v2581_v26  ;;  %v2585_v31 = vmul.f32 %v15824_v25, %v2435_v60  ;;  %v2436_v40 = vmax.f32 %v2102_v16, 0.0  ;;  %v2105_v29 = vpop.f32.mrf.mxu1  ;;  %v2298_v26 = vpop.f32.mrf.mxu0 }
 0x2eb   : > { %v15864_v46 = vcombine.low %v11041_v39, %v11043_v2  ;;  %v15865_v1 = vcombine.low %v11090_v42, %v11092_v20  ;;  %v2587_v18 = vmul.f32 %v15825_v23, %v2437_v36  ;;  %v2438_v6 = vmax.f32 %v2295_v10, 0.0 }
 0x2ec   : > { %v2104_v12 = vadd.f32 %v2103_v37, %v15818_v44  ;;  %v2297_v34 = vadd.f32 %v2296_v55, %v15820_v3  ;;  %v15866_v33 = vcombine.high %v11123_v30, %v11125_v14  ;;  %v15867_v39 = vcombine.high %v11152_v59, %v11154_v54  ;;  %v2109_v47 = vpop.f32.mrf.mxu1  ;;  %v2302_v60 = vpop.f32.mrf.mxu0  ;;  %4040 = vmatmul.mubr.bf16.gmra.mxu1 %v10329_v13 }
 0x2ed   : > { %5006 = vmatpush1.bf16.msra.mxu1 %v15864_v46  ;;  %5199 = vmatpush1.bf16.msra.mxu0 %v15865_v1  ;;  %v11458_v2 = vadd.f32 %v2727_v22, %v10889_v57  ;;  %v2696_v42 = vadd.f32 %v2664_v27, %v2583_v21  ;;  %v2586_v20 = vmul.f32 %v15826_v62, %v2436_v40 }
 0x2ee   : > { %5007 = vmatprep.subr.bf16.mxu1 %v15866_v33  ;;  %5200 = vmatprep.subr.bf16.mxu0 %v15867_v39  ;;  %v2106_v45 = vadd.f32 %v2105_v29, %v15821_v15  ;;  %v2588_v11 = vmul.f32 %v15827_v17, %v2438_v6  ;;  %v2439_v9 = vmax.f32 %v2104_v12, 0.0  ;;  %v2441_v32 = vmax.f32 %v2297_v34, 0.0  ;;  %v2111_v55 = vpop.f32.mrf.mxu1  ;;  %v2304_v22 = vpop.f32.mrf.mxu0 }
 0x2ef   : > { %v2299_v4 = vadd.f32 %v2298_v26, %v15822_v63  ;;  %4233 = vmatmul.mubr.bf16.gmra.mxu0 %v10329_v13  ;;  %v2728_v16 = vadd.f32 %v2696_v42, %v2584_v38  ;;  %v2665_v57 = vadd.f32 %v2586_v20, %v2585_v31  ;;  %v2110_v21 = vadd.f32 %v2109_v47, %v15818_v44 }
 0x2f0   : > { %v2440_v0 = vmax.f32 %v2106_v45, 0.0  ;;  %4049 = vmatprep.mubr.bf16.mxu1 %v15759_v24  ;;  %4242 = vmatprep.mubr.bf16.mxu0 %v15759_v24  ;;  %v2589_v35 = vmul.f32 %v15824_v25, %v2439_v9  ;;  %v2591_v36 = vmul.f32 %v15825_v23, %v2441_v32  ;;  %v2303_v37 = vadd.f32 %v2302_v60, %v15820_v3 }
 0x2f1   : > { %v2442_v10 = vmax.f32 %v2299_v4, 0.0  ;;  %v15868_v38 = vcombine.low %v11123_v30, %v11125_v14  ;;  %v15869_v27 = vcombine.low %v11152_v59, %v11154_v54  ;;  %v11479_v31 = vadd.f32 %v2728_v16, %v10908_v7  ;;  %v2113_v54 = vpop.f32.mrf.mxu1 }
 0x2f2   : > { %v2697_v40 = vadd.f32 %v2665_v57, %v2587_v18  ;;  %v2590_v46 = vmul.f32 %v15826_v62, %v2440_v0  ;;  %v2443_v1 = vmax.f32 %v2110_v21, 0.0  ;;  %v15870_v6 = vcombine.high %v11186_v51, %v11188_v50  ;;  %v2306_v18 = vpop.f32.mrf.mxu0 }
 0x2f3   : > { %5008 = vmatpush1.bf16.msra.mxu1 %v15868_v38  ;;  %5201 = vmatpush1.bf16.msra.mxu0 %v15869_v27  ;;  %v15871_v12 = vcombine.high %v11219_v28, %v11221_v48  ;;  %v2592_v30 = vmul.f32 %v15827_v17, %v2442_v10  ;;  %v2445_v14 = vmax.f32 %v2303_v37, 0.0  ;;  %v2112_v59 = vadd.f32 %v2111_v55, %v15821_v15  ;;  %v2115_v9 = vpop.f32.mrf.mxu1 }
 0x2f4   : > { %5009 = vmatprep.subr.bf16.mxu1 %v15870_v6  ;;  %v2305_v7 = vadd.f32 %v2304_v22, %v15822_v63  ;;  %v2729_v34 = vadd.f32 %v2697_v40, %v2588_v11  ;;  %v2666_v29 = vadd.f32 %v2590_v46, %v2589_v35  ;;  %v2593_v26 = vmul.f32 %v15824_v25, %v2443_v1  ;;  %v2308_v32 = vpop.f32.mrf.mxu0 }
 0x2f5   : > { %5202 = vmatprep.subr.bf16.mxu0 %v15871_v12  ;;  %v2114_v33 = vadd.f32 %v2113_v54, %v15818_v44  ;;  %v2595_v39 = vmul.f32 %v15825_v23, %v2445_v14  ;;  %v2444_v42 = vmax.f32 %v2112_v59, 0.0  ;;  %v2307_v45 = vadd.f32 %v2306_v18, %v15820_v3  ;;  %4050 = vmatmul.mubr.bf16.gmra.mxu1 %v10343_v43 }
 0x2f6   : > { %v2446_v20 = vmax.f32 %v2305_v7, 0.0  ;;  %v15872_v4 = vcombine.low %v11186_v51, %v11188_v50  ;;  %v15873_v11 = vcombine.low %v11219_v28, %v11221_v48  ;;  %v11502_v47 = vadd.f32 %v2729_v34, %v10934_v41  ;;  %v2119_v51 = vpop.f32.mrf.mxu1  ;;  %v2312_v50 = vpop.f32.mrf.mxu0  ;;  %4059 = vmatprep.mubr.bf16.mxu1 %v15759_v24 }
 0x2f7   : > { %v2698_v60 = vadd.f32 %v2666_v29, %v2591_v36  ;;  %v2447_v16 = vmax.f32 %v2114_v33, 0.0  ;;  %v2116_v57 = vadd.f32 %v2115_v9, %v15821_v15  ;;  %v2594_v0 = vmul.f32 %v15826_v62, %v2444_v42  ;;  %4243 = vmatmul.mubr.bf16.gmra.mxu0 %v10343_v43 }
 0x2f8   : > { %5010 = vmatpush1.bf16.msra.mxu1 %v15872_v4  ;;  %5203 = vmatpush1.bf16.msra.mxu0 %v15873_v11  ;;  %v2596_v21 = vmul.f32 %v15827_v17, %v2446_v20  ;;  %v2449_v35 = vmax.f32 %v2307_v45, 0.0  ;;  %v2309_v10 = vadd.f32 %v2308_v32, %v15822_v63  ;;  %v2120_v36 = vadd.f32 %v2119_v51, %v15818_v44  ;;  %v2121_v27 = vpop.f32.mrf.mxu1  ;;  %v2314_v40 = vpop.f32.mrf.mxu0 }
 0x2f9   : > { %v2730_v28 = vadd.f32 %v2698_v60, %v2592_v30  ;;  %v2597_v41 = vmul.f32 %v15824_v25, %v2447_v16  ;;  %v2448_v48 = vmax.f32 %v2116_v57, 0.0  ;;  %4252 = vmatprep.mubr.bf16.mxu0 %v15759_v24  ;;  %v2667_v37 = vadd.f32 %v2594_v0, %v2593_v26 }
 0x2fa   : > { %v2599_v55 = vmul.f32 %v15825_v23, %v2449_v35  ;;  %v2450_v22 = vmax.f32 %v2309_v10, 0.0  ;;  %v2313_v38 = vadd.f32 %v2312_v50, %v15820_v3  ;;  %v2451_v6 = vmax.f32 %v2120_v36, 0.0  ;;  %v2123_v54 = vpop.f32.mrf.mxu1  ;;  %v2316_v18 = vpop.f32.mrf.mxu0 }
 0x2fb   : > { %v11517_v46 = vadd.f32 %v2730_v28, %v10961_v61  ;;  %v2598_v1 = vmul.f32 %v15826_v62, %v2448_v48  ;;  %v2122_v12 = vadd.f32 %v2121_v27, %v15821_v15  ;;  %v2699_v30 = vadd.f32 %v2667_v37, %v2595_v39 }
 0x2fc   : > { %v2600_v14 = vmul.f32 %v15827_v17, %v2450_v22  ;;  %v2453_v59 = vmax.f32 %v2313_v38, 0.0  ;;  %v2315_v7 = vadd.f32 %v2314_v40, %v15822_v63  ;;  %v2601_v29 = vmul.f32 %v15824_v25, %v2451_v6  ;;  %v2125_v39 = vpop.f32.mrf.mxu1  ;;  %v2318_v9 = vpop.f32.mrf.mxu0 }
 0x2fd   : > { %v2668_v34 = vadd.f32 %v2598_v1, %v2597_v41  ;;  %v2452_v26 = vmax.f32 %v2122_v12, 0.0  ;;  %v2124_v61 = vadd.f32 %v2123_v54, %v15818_v44  ;;  %v2731_v33 = vadd.f32 %v2699_v30, %v2596_v21  ;;  %4060 = vmatmul.mubr.bf16.gmra.mxu1 %v15797_v19 }
 0x2fe   : > { %v2603_v42 = vmul.f32 %v15825_v23, %v2453_v59  ;;  %v2454_v20 = vmax.f32 %v2315_v7, 0.0  ;;  %v2317_v45 = vadd.f32 %v2316_v18, %v15820_v3  ;;  %v2126_v60 = vadd.f32 %v2125_v39, %v15821_v15  ;;  %v2129_v35 = vpop.f32.mrf.mxu1  ;;  %v2322_v10 = vpop.f32.mrf.mxu0  ;;  %4069 = vmatprep.mubr.bf16.mxu1 %v15759_v24 }
 0x2ff   : > { %v2700_v32 = vadd.f32 %v2668_v34, %v2599_v55  ;;  %v2602_v4 = vmul.f32 %v15826_v62, %v2452_v26  ;;  %v2455_v11 = vmax.f32 %v2124_v61, 0.0  ;;  %v11530_v16 = vadd.f32 %v2731_v33, %v10987_v49  ;;  %4253 = vmatmul.mubr.bf16.gmra.mxu0 %v15797_v19 }
 0x300   : > { %v2604_v57 = vmul.f32 %v15827_v17, %v2454_v20  ;;  %v2457_v0 = vmax.f32 %v2317_v45, 0.0  ;;  %v2319_v21 = vadd.f32 %v2318_v9, %v15822_v63  ;;  %v2456_v41 = vmax.f32 %v2126_v60, 0.0  ;;  %4262 = vmatprep.mubr.bf16.mxu0 %v15759_v24  ;;  %v2131_v55 = vpop.f32.mrf.mxu1  ;;  %v2324_v22 = vpop.f32.mrf.mxu0 }
 0x301   : > { %v2732_v51 = vadd.f32 %v2700_v32, %v2600_v14  ;;  %v2669_v50 = vadd.f32 %v2602_v4, %v2601_v29  ;;  %v2605_v28 = vmul.f32 %v15824_v25, %v2455_v11  ;;  %v2130_v36 = vadd.f32 %v2129_v35, %v15818_v44  ;;  %v15874_v35 = vld [vmem:[#allocation15_spill] sm:$0xff] }
 0x302   : > { %v2607_v49 = vmul.f32 %v15825_v23, %v2457_v0  ;;  %v2458_v48 = vmax.f32 %v2319_v21, 0.0  ;;  %v2323_v37 = vadd.f32 %v2322_v10, %v15820_v3  ;;  %v2606_v40 = vmul.f32 %v15826_v62, %v2456_v41  ;;  %v2133_v59 = vpop.f32.mrf.mxu1  ;;  %v2326_v7 = vpop.f32.mrf.mxu0 }
 0x303   : > { %v11543_v38 = vadd.f32 %v2732_v51, %v11011_v8  ;;  %v2701_v27 = vadd.f32 %v2669_v50, %v2603_v42  ;;  %v2132_v1 = vadd.f32 %v2131_v55, %v15821_v15  ;;  %v2459_v12 = vmax.f32 %v2130_v36, 0.0  ;;  %v15875_v55 = vld [vmem:[#allocation14_spill] sm:$0xff] }
 0x304   : > { %v2608_v6 = vmul.f32 %v15827_v17, %v2458_v48  ;;  %v2461_v30 = vmax.f32 %v2323_v37, 0.0  ;;  %v2325_v14 = vadd.f32 %v2324_v22, %v15822_v63  ;;  %v2670_v18 = vadd.f32 %v2606_v40, %v2605_v28  ;;  %v2135_v42 = vpop.f32.mrf.mxu1  ;;  %v2328_v20 = vpop.f32.mrf.mxu0 }
 0x305   : > { %v2733_v54 = vadd.f32 %v2701_v27, %v2604_v57  ;;  %v2460_v34 = vmax.f32 %v2132_v1, 0.0  ;;  %v2134_v29 = vadd.f32 %v2133_v59, %v15818_v44  ;;  %v2609_v8 = vmul.f32 %v15824_v25, %v2459_v12  ;;  %4070 = vmatmul.mubr.bf16.gmra.mxu1 %v15874_v35 }
 0x306   : > { %v2611_v26 = vmul.f32 %v15825_v23, %v2461_v30  ;;  %v2462_v61 = vmax.f32 %v2325_v14, 0.0  ;;  %v2327_v33 = vadd.f32 %v2326_v7, %v15820_v3  ;;  %v2702_v39 = vadd.f32 %v2670_v18, %v2607_v49  ;;  %v2139_v0 = vpop.f32.mrf.mxu1  ;;  %v2332_v21 = vpop.f32.mrf.mxu0  ;;  %4079 = vmatprep.mubr.bf16.mxu1 %v15759_v24 }
 0x307   : > { %v11554_v45 = vadd.f32 %v2733_v54, %v11045_v53  ;;  %v2610_v9 = vmul.f32 %v15826_v62, %v2460_v34  ;;  %v2463_v32 = vmax.f32 %v2134_v29, 0.0  ;;  %v2136_v60 = vadd.f32 %v2135_v42, %v15821_v15  ;;  %4263 = vmatmul.mubr.bf16.gmra.mxu0 %v15874_v35 }
 0x308   : > { %v2612_v4 = vmul.f32 %v15827_v17, %v2462_v61  ;;  %v2465_v11 = vmax.f32 %v2327_v33, 0.0  ;;  %v2329_v57 = vadd.f32 %v2328_v20, %v15822_v63  ;;  %v2734_v10 = vadd.f32 %v2702_v39, %v2608_v6  ;;  %v2141_v36 = vpop.f32.mrf.mxu1  ;;  %v2334_v37 = vpop.f32.mrf.mxu0  ;;  %4272 = vmatprep.mubr.bf16.mxu0 %v15759_v24  ;;  %v15876_v39 = vld [vmem:[#allocation47_spill] sm:$0xff] }
 0x309   : > { %v2671_v53 = vadd.f32 %v2610_v9, %v2609_v8  ;;  %v2613_v51 = vmul.f32 %v15824_v25, %v2463_v32  ;;  %v2140_v50 = vadd.f32 %v2139_v0, %v15818_v44  ;;  %v2464_v41 = vmax.f32 %v2136_v60, 0.0 }
 0x30a   : > { %v2615_v28 = vmul.f32 %v15825_v23, %v2465_v11  ;;  %v2466_v49 = vmax.f32 %v2329_v57, 0.0  ;;  %v2333_v48 = vadd.f32 %v2332_v21, %v15820_v3  ;;  %v11569_v22 = vadd.f32 %v2734_v10, %v15875_v55  ;;  %v2143_v59 = vpop.f32.mrf.mxu1  ;;  %v2336_v7 = vpop.f32.mrf.mxu0 }
 0x30b   : > { %v2703_v27 = vadd.f32 %v2671_v53, %v2611_v26  ;;  %v2467_v40 = vmax.f32 %v2140_v50, 0.0  ;;  %v2142_v1 = vadd.f32 %v2141_v36, %v15821_v15  ;;  %v2614_v6 = vmul.f32 %v15826_v62, %v2464_v41 }
 0x30c   : > { %v2616_v12 = vmul.f32 %v15827_v17, %v2466_v49  ;;  %v2469_v30 = vmax.f32 %v2333_v48, 0.0  ;;  %v2335_v14 = vadd.f32 %v2334_v37, %v15822_v63  ;;  %v2144_v29 = vadd.f32 %v2143_v59, %v15818_v44  ;;  %v2145_v42 = vpop.f32.mrf.mxu1  ;;  %v2338_v20 = vpop.f32.mrf.mxu0  ;;  %v15878_v59 = vld [vmem:[#allocation51_spill] sm:$0xff] }
 0x30d   : > { %v2735_v54 = vadd.f32 %v2703_v27, %v2612_v4  ;;  %v2617_v18 = vmul.f32 %v15824_v25, %v2467_v40  ;;  %v2468_v34 = vmax.f32 %v2142_v1, 0.0  ;;  %v2672_v8 = vadd.f32 %v2614_v6, %v2613_v51  ;;  %v15877_v51 = vld [vmem:[#allocation16_spill] sm:$0xff] }
 0x30e   : > { %v2619_v26 = vmul.f32 %v15825_v23, %v2469_v30  ;;  %v2470_v61 = vmax.f32 %v2335_v14, 0.0  ;;  %v2337_v33 = vadd.f32 %v2336_v7, %v15820_v3  ;;  %v2471_v11 = vmax.f32 %v2144_v29, 0.0  ;;  %v2149_v10 = vpop.f32.mrf.mxu1  ;;  %v2342_v53 = vpop.f32.mrf.mxu0  ;;  %4080 = vmatmul.mubr.bf16.gmra.mxu1 %v15877_v51 }
 0x30f   : > { %v11580_v9 = vadd.f32 %v2735_v54, %v15876_v39  ;;  %v2618_v32 = vmul.f32 %v15826_v62, %v2468_v34  ;;  %v2146_v4 = vadd.f32 %v2145_v42, %v15821_v15  ;;  %v2704_v60 = vadd.f32 %v2672_v8, %v2615_v28  ;;  %4273 = vmatmul.mubr.bf16.gmra.mxu0 %v15877_v51 }
 0x310   : > { %v2620_v57 = vmul.f32 %v15827_v17, %v2470_v61  ;;  %v2473_v0 = vmax.f32 %v2337_v33, 0.0  ;;  %v2339_v21 = vadd.f32 %v2338_v20, %v15822_v63  ;;  %v2621_v41 = vmul.f32 %v15824_v25, %v2471_v11  ;;  %4089 = vmatprep.mubr.bf16.mxu1 %v15759_v24  ;;  %4282 = vmatprep.mubr.bf16.mxu0 %v15759_v24  ;;  %v2151_v27 = vpop.f32.mrf.mxu1  ;;  %v2344_v40 = vpop.f32.mrf.mxu0 }
 0x311   : > { %v2673_v50 = vadd.f32 %v2618_v32, %v2617_v18  ;;  %v2472_v49 = vmax.f32 %v2146_v4, 0.0  ;;  %v2150_v48 = vadd.f32 %v2149_v10, %v15818_v44  ;;  %v2736_v28 = vadd.f32 %v2704_v60, %v2616_v12  ;;  %v15879_v60 = vld [vmem:[#allocation54_spill] sm:$0xff] }
 0x312   : > { %v2623_v36 = vmul.f32 %v15825_v23, %v2473_v0  ;;  %v2474_v37 = vmax.f32 %v2339_v21, 0.0  ;;  %v2343_v55 = vadd.f32 %v2342_v53, %v15820_v3  ;;  %v2152_v14 = vadd.f32 %v2151_v27, %v15821_v15  ;;  %v2153_v34 = vpop.f32.mrf.mxu1  ;;  %v2346_v29 = vpop.f32.mrf.mxu0 }
 0x313   : > { %v2705_v1 = vadd.f32 %v2673_v50, %v2619_v26  ;;  %v2622_v6 = vmul.f32 %v15826_v62, %v2472_v49  ;;  %v2475_v30 = vmax.f32 %v2150_v48, 0.0  ;;  %v11597_v7 = vadd.f32 %v2736_v28, %v15878_v59 }
 0x314   : > { %v2624_v54 = vmul.f32 %v15827_v17, %v2474_v37  ;;  %v2477_v18 = vmax.f32 %v2343_v55, 0.0  ;;  %v2345_v12 = vadd.f32 %v2344_v40, %v15822_v63  ;;  %v2476_v26 = vmax.f32 %v2152_v14, 0.0  ;;  %v2155_v11 = vpop.f32.mrf.mxu1  ;;  %v2348_v4 = vpop.f32.mrf.mxu0  ;;  %v15881_v37 = vld [vmem:[#allocation17_spill] sm:$0xff] }
 0x315   : > { %v2737_v8 = vadd.f32 %v2705_v1, %v2620_v57  ;;  %v2674_v61 = vadd.f32 %v2622_v6, %v2621_v41  ;;  %v2625_v33 = vmul.f32 %v15824_v25, %v2475_v30  ;;  %v2154_v39 = vadd.f32 %v2153_v34, %v15818_v44 }
 0x316   : > { %v2627_v42 = vmul.f32 %v15825_v23, %v2477_v18  ;;  %v2478_v20 = vmax.f32 %v2345_v12, 0.0  ;;  %v2347_v32 = vadd.f32 %v2346_v29, %v15820_v3  ;;  %v2626_v10 = vmul.f32 %v15826_v62, %v2476_v26  ;;  %v2159_v48 = vpop.f32.mrf.mxu1  ;;  %v2352_v28 = vpop.f32.mrf.mxu0  ;;  %4090 = vmatmul.mubr.bf16.gmra.mxu1 %v15881_v37  ;;  %v15882_v12 = vld [vmem:[#allocation55_spill] sm:$0xff] }
 0x317   : > { %v11606_v0 = vadd.f32 %v2737_v8, %v15879_v60  ;;  %v2706_v21 = vadd.f32 %v2674_v61, %v2623_v36  ;;  %v2156_v57 = vadd.f32 %v2155_v11, %v15821_v15  ;;  %v2479_v50 = vmax.f32 %v2154_v39, 0.0  ;;  %4283 = vmatmul.mubr.bf16.gmra.mxu0 %v15881_v37  ;;  %4099 = vmatprep.mubr.bf16.mxu1 %v15759_v24 }
 0x318   : > { %v2628_v53 = vmul.f32 %v15827_v17, %v2478_v20  ;;  %v2481_v41 = vmax.f32 %v2347_v32, 0.0  ;;  %v2349_v49 = vadd.f32 %v2348_v4, %v15822_v63  ;;  %v2675_v27 = vadd.f32 %v2626_v10, %v2625_v33  ;;  %4292 = vmatprep.mubr.bf16.mxu0 %v15759_v24  ;;  %v2161_v59 = vpop.f32.mrf.mxu1  ;;  %v2354_v18 = vpop.f32.mrf.mxu0 }
 0x319   : > { %15880 = vst [vmem:[#allocation45_spill] sm:$0xff] %v11606_v0  ;;  %v2738_v55 = vadd.f32 %v2706_v21, %v2624_v54  ;;  %v2480_v40 = vmax.f32 %v2156_v57, 0.0  ;;  %v2160_v36 = vadd.f32 %v2159_v48, %v15818_v44  ;;  %v2629_v1 = vmul.f32 %v15824_v25, %v2479_v50  ;;  %v15884_v48 = vld [vmem:[#allocation56_spill] sm:$0xff] }
 0x31a   : > { %v2631_v6 = vmul.f32 %v15825_v23, %v2481_v41  ;;  %v2482_v30 = vmax.f32 %v2349_v49, 0.0  ;;  %v2353_v14 = vadd.f32 %v2352_v28, %v15820_v3  ;;  %v2707_v54 = vadd.f32 %v2675_v27, %v2627_v42  ;;  %v2163_v39 = vpop.f32.mrf.mxu1  ;;  %v2356_v32 = vpop.f32.mrf.mxu0 }
 0x31b   : > { %v11621_v34 = vadd.f32 %v2738_v55, %v15882_v12  ;;  %v2630_v29 = vmul.f32 %v15826_v62, %v2480_v40  ;;  %v2483_v8 = vmax.f32 %v2160_v36, 0.0  ;;  %v2162_v26 = vadd.f32 %v2161_v59, %v15821_v15 }
 0x31c   : > { %v2632_v61 = vmul.f32 %v15827_v17, %v2482_v30  ;;  %v2485_v33 = vmax.f32 %v2353_v14, 0.0  ;;  %v2355_v20 = vadd.f32 %v2354_v18, %v15822_v63  ;;  %v2739_v11 = vadd.f32 %v2707_v54, %v2628_v53  ;;  %v2165_v41 = vpop.f32.mrf.mxu1  ;;  %v2358_v49 = vpop.f32.mrf.mxu0  ;;  %v15886_v18 = vld [vmem:[#allocation18_spill] sm:$0xff] }
 0x31d   : > { %15883 = vst [vmem:[#allocation46_spill] sm:$0xff] %v11621_v34  ;;  %v2676_v4 = vadd.f32 %v2630_v29, %v2629_v1  ;;  %v2633_v60 = vmul.f32 %v15824_v25, %v2483_v8  ;;  %v2164_v21 = vadd.f32 %v2163_v39, %v15818_v44  ;;  %v2484_v10 = vmax.f32 %v2162_v26, 0.0  ;;  %v15918_v34 = vld [vmem:[#allocation24_spill] sm:$0xff] }
 0x31e   : > { %v2635_v42 = vmul.f32 %v15825_v23, %v2485_v33  ;;  %v2486_v57 = vmax.f32 %v2355_v20, 0.0  ;;  %v2357_v50 = vadd.f32 %v2356_v32, %v15820_v3  ;;  %v11632_v28 = vadd.f32 %v2739_v11, %v15884_v48  ;;  %v2169_v14 = vpop.f32.mrf.mxu1  ;;  %v2362_v59 = vpop.f32.mrf.mxu0  ;;  %4100 = vmatmul.mubr.bf16.gmra.mxu1 %v15886_v18  ;;  %v15887_v11 = vld [vmem:[#allocation57_spill] sm:$0xff] }
 0x31f   : > { %v2708_v55 = vadd.f32 %v2676_v4, %v2631_v6  ;;  %v2487_v27 = vmax.f32 %v2164_v21, 0.0  ;;  %v2166_v53 = vadd.f32 %v2165_v41, %v15821_v15  ;;  %v2634_v40 = vmul.f32 %v15826_v62, %v2484_v10  ;;  %4293 = vmatmul.mubr.bf16.gmra.mxu0 %v15886_v18  ;;  %4109 = vmatprep.mubr.bf16.mxu1 %v15759_v24  ;;  %v4798_v18 = vld [vmem:[#allocation7 + $0x248] sm:$0xff] }
 0x320   : > { %15885 = vst [vmem:[#allocation48_spill] sm:$0xff] %v11632_v28  ;;  %v2636_v36 = vmul.f32 %v15827_v17, %v2486_v57  ;;  %v2489_v1 = vmax.f32 %v2357_v50, 0.0  ;;  %v2359_v30 = vadd.f32 %v2358_v49, %v15822_v63  ;;  %v2170_v29 = vadd.f32 %v2169_v14, %v15818_v44  ;;  %4302 = vmatprep.mubr.bf16.mxu0 %v15759_v24  ;;  %v2171_v39 = vpop.f32.mrf.mxu1  ;;  %v2364_v32 = vpop.f32.mrf.mxu0 }
 0x321   : > { %v2740_v12 = vadd.f32 %v2708_v55, %v2632_v61  ;;  %v2637_v54 = vmul.f32 %v15824_v25, %v2487_v27  ;;  %v2488_v6 = vmax.f32 %v2166_v53, 0.0  ;;  %v2677_v8 = vadd.f32 %v2634_v40, %v2633_v60 }
 0x322   : > { %v2639_v33 = vmul.f32 %v15825_v23, %v2489_v1  ;;  %v2490_v26 = vmax.f32 %v2359_v30, 0.0  ;;  %v2363_v20 = vadd.f32 %v2362_v59, %v15820_v3  ;;  %v2491_v21 = vmax.f32 %v2170_v29, 0.0  ;;  %v2173_v49 = vpop.f32.mrf.mxu1  ;;  %v2366_v48 = vpop.f32.mrf.mxu0 }
 0x323   : > { %v11647_v4 = vadd.f32 %v2740_v12, %v15887_v11  ;;  %v2638_v61 = vmul.f32 %v15826_v62, %v2488_v6  ;;  %v2172_v10 = vadd.f32 %v2171_v39, %v15821_v15  ;;  %v2709_v57 = vadd.f32 %v2677_v8, %v2635_v42  ;;  %v15889_v39 = vld [vmem:[#allocation58_spill] sm:$0xff] }
 0x324   : > { %v2640_v50 = vmul.f32 %v15827_v17, %v2490_v26  ;;  %v2493_v41 = vmax.f32 %v2363_v20, 0.0  ;;  %v2365_v60 = vadd.f32 %v2364_v32, %v15822_v63  ;;  %v2641_v27 = vmul.f32 %v15824_v25, %v2491_v21  ;;  %v2175_v42 = vpop.f32.mrf.mxu1  ;;  %v2368_v12 = vpop.f32.mrf.mxu0  ;;  %v4803_v20 = vld [vmem:[#allocation7 + $0x3c0] sm:$0xff] }
 0x325   : > { %15888 = vst [vmem:[#allocation49_spill] sm:$0xff] %v11647_v4  ;;  %v2678_v55 = vadd.f32 %v2638_v61, %v2637_v54  ;;  %v2492_v53 = vmax.f32 %v2172_v10, 0.0  ;;  %v2174_v40 = vadd.f32 %v2173_v49, %v15818_v44  ;;  %v2741_v1 = vadd.f32 %v2709_v57, %v2636_v36  ;;  %v4801_v54 = vld [vmem:[#allocation7 + $0x340] sm:$0xff]  ;;  %v2809_v61 = vld [vmem:[#allocation8 + $0x8] sm:$0xf] }
 0x326   : > { %v2643_v30 = vmul.f32 %v15825_v23, %v2493_v41  ;;  %v2494_v14 = vmax.f32 %v2365_v60, 0.0  ;;  %v2367_v59 = vadd.f32 %v2366_v48, %v15820_v3  ;;  %v2176_v26 = vadd.f32 %v2175_v42, %v15821_v15  ;;  %v3025_v3 = vpop.f32.mrf.mxu1  ;;  %v3218_v21 = vpop.f32.mrf.mxu0  ;;  %v15891_v10 = vld [vmem:[#allocation19_spill] sm:$0xff] }
 0x327   : > { %v2710_v6 = vadd.f32 %v2678_v55, %v2639_v33  ;;  %v2642_v29 = vmul.f32 %v15826_v62, %v2492_v53  ;;  %v2495_v8 = vmax.f32 %v2174_v40, 0.0  ;;  %v11660_v32 = vadd.f32 %v2741_v1, %v15889_v39  ;;  %4110 = vmatmul.mubr.bf16.gmra.mxu1 %v15891_v10  ;;  %4303 = vmatmul.mubr.bf16.gmra.mxu0 %v15891_v10  ;;  %v3505_v60 = vld [vmem:[#allocation10 + $0x8] sm:$0xf] }
 0x328   : > { %v2644_v44 = vmul.f32 %v15827_v17, %v2494_v14  ;;  %v2497_v36 = vmax.f32 %v2367_v59, 0.0  ;;  %v2369_v11 = vadd.f32 %v2368_v12, %v15822_v63  ;;  %v2496_v41 = vmax.f32 %v2176_v26, 0.0  ;;  %4119 = vmatprep.mubr.bf16.mxu1 %v15759_v24  ;;  %4312 = vmatprep.mubr.bf16.mxu0 %v15759_v24  ;;  %v3027_v53 = vpop.f32.mrf.mxu1  ;;  %v3220_v40 = vpop.f32.mrf.mxu0  ;;  %v15892_v1 = vld [vmem:[#allocation31_spill] sm:$0xff] }
 0x329   : > { %15890 = vst [vmem:[#allocation50_spill] sm:$0xff] %v11660_v32  ;;  %v2742_v33 = vadd.f32 %v2710_v6, %v2640_v50  ;;  %v2679_v57 = vadd.f32 %v2642_v29, %v2641_v27  ;;  %v2645_v15 = vmul.f32 %v15824_v25, %v2495_v8  ;;  %v9425_v48 = vcombine.low %v4801_v54, %v4803_v20  ;;  %v15894_v25 = vld [vmem:[#allocation27_spill] sm:$0xff] }
 0x32a   : > { %v2647_v49 = vmul.f32 %v15825_v23, %v2497_v36  ;;  %v2498_v63 = vmax.f32 %v2369_v11, 0.0  ;;  %v9426_v55 = vcombine.high %v4801_v54, %v4803_v20  ;;  %v2646_v27 = vmul.f32 %v15826_v62, %v2496_v41  ;;  %v15895_v23 = vld [vmem:[#allocation28_spill] sm:$0xff]  ;;  %v3029_v8 = vpop.f32.mrf.mxu1  ;;  %v3222_v26 = vpop.f32.mrf.mxu0  ;;  %v15896_v20 = vld [vmem:[#allocation29_spill] sm:$0xff]  ;;  %v4804_v36 = vld [vmem:[#allocation7 + $0x3c8] sm:$0xff] }
 0x32b   : > { %v11671_v14 = vadd.f32 %v2742_v33, %v15892_v1  ;;  %v2711_v50 = vadd.f32 %v2679_v57, %v2643_v30  ;;  %v11675_v59 = vrot.slane %v2809_v61, %v15894_v25  ;;  %v11679_v12 = vrot.slane %v3505_v60, %v15894_v25  ;;  %v15897_v57 = vld [vmem:[#allocation30_spill] sm:$0xff]  ;;  %v15900_v25 = vld [vmem:[#allocation20_spill] sm:$0xff] }
 0x32c   : > { %v2648_v42 = vmul.f32 %v15827_v17, %v2498_v63  ;;  %5011 = vmatprep.subr.bf16.mxu1 %v9426_v55  ;;  %v11682_v6 = vrot.slane %v2809_v61, %v15895_v23  ;;  %v11685_v29 = vrot.slane %v3505_v60, %v15895_v23  ;;  %v2680_v54 = vadd.f32 %v2646_v27, %v2645_v15  ;;  %v4802_v17 = vld [vmem:[#allocation7 + $0x348] sm:$0xff]  ;;  %v3224_v15 = vpop.f32.mrf.mxu0 }
 0x32d   : > { %15893 = vst [vmem:[#allocation52_spill] sm:$0xff] %v11671_v14  ;;  %v2743_v30 = vadd.f32 %v2711_v50, %v2644_v44  ;;  %v3026_v62 = vadd.f32 %v3025_v3, %v11675_v59  ;;  %5012 = vmatpush1.bf16.msra.mxu1 %v9425_v48  ;;  %v11689_v39 = vrot.slane %v2809_v61, %v15896_v20  ;;  %v3031_v44 = vpop.f32.mrf.mxu1  ;;  %v15898_v3 = vld [vmem:[#allocation32_spill] sm:$0xff] }
 0x32e   : > { %v3219_v11 = vadd.f32 %v3218_v21, %v11682_v6  ;;  %v11693_v33 = vrot.slane %v3505_v60, %v15896_v20  ;;  %v11696_v41 = vrot.slane %v2809_v61, %v15897_v57  ;;  %v11699_v63 = vrot.slane %v3505_v60, %v15897_v57  ;;  %v3228_v61 = vpop.f32.mrf.mxu0 }
 0x32f   : > { %v11702_v48 = vadd.f32 %v2743_v30, %v15898_v3  ;;  %v2712_v55 = vadd.f32 %v2680_v54, %v2647_v49  ;;  %v3377_v1 = vmax.f32 %v3026_v62, 0.0  ;;  %v3028_v50 = vadd.f32 %v3027_v53, %v11689_v39  ;;  %v3035_v14 = vpop.f32.mrf.mxu1  ;;  %4120 = vmatmul.mubr.bf16.gmra.mxu1 %v15900_v25  ;;  %4313 = vmatmul.mubr.bf16.gmra.mxu0 %v15900_v25 }
 0x330   : > { %v3379_v27 = vmax.f32 %v3219_v11, 0.0  ;;  %v3221_v21 = vadd.f32 %v3220_v40, %v11696_v41  ;;  %v9427_v20 = vcombine.low %v4802_v17, %v4804_v36  ;;  %v9428_v23 = vcombine.high %v4802_v17, %v4804_v36  ;;  %4129 = vmatprep.mubr.bf16.mxu1 %v15759_v24  ;;  %4322 = vmatprep.mubr.bf16.mxu0 %v15759_v24  ;;  %v3230_v36 = vpop.f32.mrf.mxu0 }
 0x331   : > { %15899 = vst [vmem:[#allocation53_spill] sm:$0xff] %v11702_v48  ;;  %v2744_v60 = vadd.f32 %v2712_v55, %v2648_v42  ;;  %v3527_v57 = vmul.f32 %v11679_v12, %v3377_v1  ;;  %v3378_v30 = vmax.f32 %v3028_v50, 0.0  ;;  %v3030_v49 = vadd.f32 %v3029_v8, %v11675_v59  ;;  %v3037_v17 = vpop.f32.mrf.mxu1  ;;  %v15901_v42 = vld [vmem:[#allocation34_spill] sm:$0xff] }
 0x332   : > { %v3529_v53 = vmul.f32 %v11685_v29, %v3379_v27  ;;  %v3380_v40 = vmax.f32 %v3221_v21, 0.0  ;;  %5204 = vmatprep.subr.bf16.mxu0 %v9428_v23  ;;  %v3223_v54 = vadd.f32 %v3222_v26, %v11682_v6  ;;  %v3032_v62 = vadd.f32 %v3031_v44, %v11689_v39  ;;  %v3232_v21 = vpop.f32.mrf.mxu0 }
 0x333   : > { %v11716_v11 = vadd.f32 %v2744_v60, %v15901_v42  ;;  %v3528_v3 = vmul.f32 %v11693_v33, %v3378_v30  ;;  %v3381_v8 = vmax.f32 %v3030_v49, 0.0  ;;  %5205 = vmatpush1.bf16.msra.mxu0 %v9427_v20  ;;  %v3225_v55 = vadd.f32 %v3224_v15, %v11696_v41  ;;  %v3039_v26 = vpop.f32.mrf.mxu1 }
 0x334   : > { %v3530_v1 = vmul.f32 %v11699_v63, %v3380_v40  ;;  %v3383_v50 = vmax.f32 %v3223_v54, 0.0  ;;  %v3382_v27 = vmax.f32 %v3032_v62, 0.0  ;;  %v3036_v23 = vadd.f32 %v3035_v14, %v11675_v59  ;;  %v3234_v54 = vpop.f32.mrf.mxu0 }
 0x335   : > { %15902 = vst [vmem:[#allocation14_spill] sm:$0xff] %v11716_v11  ;;  %v3655_v44 = vadd.f32 %v3528_v3, %v3527_v57  ;;  %v3531_v48 = vmul.f32 %v11679_v12, %v3381_v8  ;;  %v3384_v25 = vmax.f32 %v3225_v55, 0.0  ;;  %v3229_v60 = vadd.f32 %v3228_v61, %v11682_v6  ;;  %v3041_v40 = vpop.f32.mrf.mxu1 }
 0x336   : > { %v3533_v30 = vmul.f32 %v11685_v29, %v3383_v50  ;;  %v3532_v20 = vmul.f32 %v11693_v33, %v3382_v27  ;;  %v3385_v49 = vmax.f32 %v3036_v23, 0.0  ;;  %v3038_v15 = vadd.f32 %v3037_v17, %v11689_v39  ;;  %v3238_v11 = vpop.f32.mrf.mxu0  ;;  %v15903_v27 = vld [vmem:[#allocation21_spill] sm:$0xff] }
 0x337   : > { %v3687_v62 = vadd.f32 %v3655_v44, %v3529_v53  ;;  %v3534_v14 = vmul.f32 %v11699_v63, %v3384_v25  ;;  %v3387_v42 = vmax.f32 %v3229_v60, 0.0  ;;  %v3231_v57 = vadd.f32 %v3230_v36, %v11696_v41  ;;  %v3045_v50 = vpop.f32.mrf.mxu1  ;;  %4130 = vmatmul.mubr.bf16.gmra.mxu1 %v15903_v27  ;;  %4323 = vmatmul.mubr.bf16.gmra.mxu0 %v15903_v27  ;;  %v4797_v60 = vld [vmem:[#allocation7 + $0x240] sm:$0xff] }
 0x338   : > { %v3656_v3 = vadd.f32 %v3532_v20, %v3531_v48  ;;  %v3535_v8 = vmul.f32 %v11679_v12, %v3385_v49  ;;  %v3386_v55 = vmax.f32 %v3038_v15, 0.0  ;;  %v3040_v61 = vadd.f32 %v3039_v26, %v11675_v59  ;;  %4139 = vmatprep.mubr.bf16.mxu1 %v15759_v24  ;;  %4332 = vmatprep.mubr.bf16.mxu0 %v15759_v24  ;;  %v4799_v20 = vld [vmem:[#allocation7 + $0x2c0] sm:$0xff]  ;;  %v3240_v15 = vpop.f32.mrf.mxu0 }
 0x339   : > { %v3719_v17 = vadd.f32 %v3687_v62, %v3530_v1  ;;  %v3537_v53 = vmul.f32 %v11685_v29, %v3387_v42  ;;  %v3388_v23 = vmax.f32 %v3231_v57, 0.0  ;;  %v3233_v25 = vadd.f32 %v3232_v21, %v11682_v6  ;;  %v3047_v49 = vpop.f32.mrf.mxu1  ;;  %v15904_v1 = vld [vmem:[#allocation35_spill] sm:$0xff] }
 0x33a   : > { %v3688_v48 = vadd.f32 %v3656_v3, %v3533_v30  ;;  %v3536_v36 = vmul.f32 %v11693_v33, %v3386_v55  ;;  %v3389_v26 = vmax.f32 %v3040_v61, 0.0  ;;  %v3042_v44 = vadd.f32 %v3041_v40, %v11689_v39  ;;  %v3242_v61 = vpop.f32.mrf.mxu0 }
 0x33b   : > { %v11740_v62 = vadd.f32 %v3719_v17, %v15904_v1  ;;  %v3538_v42 = vmul.f32 %v11699_v63, %v3388_v23  ;;  %v3391_v21 = vmax.f32 %v3233_v25, 0.0  ;;  %v3235_v57 = vadd.f32 %v3234_v54, %v11696_v41  ;;  %v3049_v55 = vpop.f32.mrf.mxu1  ;;  %v4800_v17 = vld [vmem:[#allocation7 + $0x2c8] sm:$0xff]  ;;  %v15906_v1 = vld [vmem:[#allocation33_spill] sm:$0xff] }
 0x33c   : > { %v3720_v27 = vadd.f32 %v3688_v48, %v3534_v14  ;;  %v3657_v32 = vadd.f32 %v3536_v36, %v3535_v8  ;;  %v3539_v30 = vmul.f32 %v11679_v12, %v3389_v26  ;;  %v3390_v3 = vmax.f32 %v3042_v44, 0.0  ;;  %v3244_v25 = vpop.f32.mrf.mxu0 }
 0x33d   : > { %15905 = vst [vmem:[#allocation47_spill] sm:$0xff] %v11740_v62  ;;  %v3541_v40 = vmul.f32 %v11685_v29, %v3391_v21  ;;  %v3392_v10 = vmax.f32 %v3235_v57, 0.0  ;;  %v9421_v4 = vcombine.low %v4797_v60, %v4799_v20  ;;  %v9422_v28 = vcombine.high %v4797_v60, %v4799_v20  ;;  %v3051_v8 = vpop.f32.mrf.mxu1  ;;  %v15908_v57 = vld [vmem:[#allocation22_spill] sm:$0xff] }
 0x33e   : > { %v11747_v62 = vadd.f32 %v3720_v27, %v15906_v1  ;;  %v3689_v23 = vadd.f32 %v3657_v32, %v3537_v53  ;;  %v3540_v54 = vmul.f32 %v11693_v33, %v3390_v3  ;;  %v3046_v14 = vadd.f32 %v3045_v50, %v11675_v59  ;;  %v3248_v21 = vpop.f32.mrf.mxu0 }
 0x33f   : > { %v3542_v48 = vmul.f32 %v11699_v63, %v3392_v10  ;;  %5013 = vmatprep.subr.bf16.mxu1 %v9422_v28  ;;  %v3239_v36 = vadd.f32 %v3238_v11, %v11682_v6  ;;  %v3048_v26 = vadd.f32 %v3047_v49, %v11689_v39  ;;  %v3241_v44 = vadd.f32 %v3240_v15, %v11696_v41  ;;  %v3055_v53 = vpop.f32.mrf.mxu1  ;;  %v15909_v28 = vld [vmem:[#allocation36_spill] sm:$0xff] }
 0x340   : > { %15907 = vst [vmem:[#allocation51_spill] sm:$0xff] %v11747_v62  ;;  %v3721_v60 = vadd.f32 %v3689_v23, %v3538_v42  ;;  %v3658_v20 = vadd.f32 %v3540_v54, %v3539_v30  ;;  %v3393_v27 = vmax.f32 %v3046_v14, 0.0  ;;  %5014 = vmatpush1.bf16.msra.mxu1 %v9421_v4  ;;  %v9423_v32 = vcombine.low %v4798_v18, %v4800_v17  ;;  %v3250_v30 = vpop.f32.mrf.mxu0 }
 0x341   : > { %4333 = vmatmul.mubr.bf16.gmra.mxu0 %v15908_v57  ;;  %v3395_v50 = vmax.f32 %v3239_v36, 0.0  ;;  %v3394_v3 = vmax.f32 %v3048_v26, 0.0  ;;  %v3396_v1 = vmax.f32 %v3241_v44, 0.0  ;;  %v9424_v10 = vcombine.high %v4798_v18, %v4800_v17  ;;  %4140 = vmatmul.mubr.bf16.gmra.mxu1 %v15908_v57  ;;  %v3057_v42 = vpop.f32.mrf.mxu1 }
 0x342   : > { %4342 = vmatprep.mubr.bf16.mxu0 %v15759_v24  ;;  %v11759_v11 = vadd.f32 %v3721_v60, %v15909_v28  ;;  %v3690_v49 = vadd.f32 %v3658_v20, %v3541_v40  ;;  %v3543_v15 = vmul.f32 %v11679_v12, %v3393_v27  ;;  %v3050_v4 = vadd.f32 %v3049_v55, %v11675_v59  ;;  %v3252_v44 = vpop.f32.mrf.mxu0 }
 0x343   : > { %4149 = vmatprep.mubr.bf16.mxu1 %v15759_v24  ;;  %v3545_v23 = vmul.f32 %v11685_v29, %v3395_v50  ;;  %v3544_v18 = vmul.f32 %v11693_v33, %v3394_v3  ;;  %v3546_v17 = vmul.f32 %v11699_v63, %v3396_v1  ;;  %5206 = vmatprep.subr.bf16.mxu0 %v9424_v10  ;;  %v3059_v26 = vpop.f32.mrf.mxu1  ;;  %v15911_v3 = vld [vmem:[#allocation37_spill] sm:$0xff] }
 0x344   : > { %15910 = vst [vmem:[#allocation54_spill] sm:$0xff] %v11759_v11  ;;  %v3243_v54 = vadd.f32 %v3242_v61, %v11682_v6  ;;  %v3722_v14 = vadd.f32 %v3690_v49, %v3542_v48  ;;  %v3397_v36 = vmax.f32 %v3050_v4, 0.0  ;;  %5207 = vmatpush1.bf16.msra.mxu0 %v9423_v32  ;;  %v3052_v40 = vadd.f32 %v3051_v8, %v11689_v39  ;;  %v3254_v28 = vpop.f32.mrf.mxu0 }
 0x345   : > { %v3245_v55 = vadd.f32 %v3244_v25, %v11696_v41  ;;  %v3659_v60 = vadd.f32 %v3544_v18, %v3543_v15  ;;  %v3056_v27 = vadd.f32 %v3055_v53, %v11675_v59  ;;  %v3249_v50 = vadd.f32 %v3248_v21, %v11682_v6  ;;  %v3061_v32 = vpop.f32.mrf.mxu1 }
 0x346   : > { %v3399_v20 = vmax.f32 %v3243_v54, 0.0  ;;  %v11773_v1 = vadd.f32 %v3722_v14, %v15911_v3  ;;  %v3547_v61 = vmul.f32 %v11679_v12, %v3397_v36  ;;  %v3398_v48 = vmax.f32 %v3052_v40, 0.0  ;;  %v3258_v14 = vpop.f32.mrf.mxu0  ;;  %v15913_v36 = vld [vmem:[#allocation23_spill] sm:$0xff]  ;;  %v4793_v3 = vld [vmem:[#allocation7 + $0x140] sm:$0xff] }
 0x347   : > { %v3400_v10 = vmax.f32 %v3245_v55, 0.0  ;;  %v3691_v8 = vadd.f32 %v3659_v60, %v3545_v23  ;;  %v3401_v49 = vmax.f32 %v3056_v27, 0.0  ;;  %v3403_v4 = vmax.f32 %v3249_v50, 0.0  ;;  %v3065_v54 = vpop.f32.mrf.mxu1 }
 0x348   : > { %15912 = vst [vmem:[#allocation55_spill] sm:$0xff] %v11773_v1  ;;  %v3549_v25 = vmul.f32 %v11685_v29, %v3399_v20  ;;  %v3548_v15 = vmul.f32 %v11693_v33, %v3398_v48  ;;  %v3058_v21 = vadd.f32 %v3057_v42, %v11689_v39  ;;  %v3251_v18 = vadd.f32 %v3250_v30, %v11696_v41  ;;  %v4795_v30 = vld [vmem:[#allocation7 + $0x1c0] sm:$0xff] }
 0x349   : > { %v3550_v53 = vmul.f32 %v11699_v63, %v3400_v10  ;;  %4343 = vmatmul.mubr.bf16.gmra.mxu0 %v15913_v36  ;;  %v3723_v40 = vadd.f32 %v3691_v8, %v3546_v17  ;;  %v3551_v55 = vmul.f32 %v11679_v12, %v3401_v49  ;;  %v3553_v23 = vmul.f32 %v11685_v29, %v3403_v4  ;;  %v3067_v48 = vpop.f32.mrf.mxu1  ;;  %v3260_v10 = vpop.f32.mrf.mxu0  ;;  %v15914_v17 = vld [vmem:[#allocation38_spill] sm:$0xff] }
 0x34a   : > { %v3060_v60 = vadd.f32 %v3059_v26, %v11675_v59  ;;  %4150 = vmatmul.mubr.bf16.gmra.mxu1 %v15913_v36  ;;  %v3660_v20 = vadd.f32 %v3548_v15, %v3547_v61  ;;  %v3402_v27 = vmax.f32 %v3058_v21, 0.0  ;;  %v3404_v50 = vmax.f32 %v3251_v18, 0.0  ;;  %4352 = vmatprep.mubr.bf16.mxu0 %v15759_v24 }
 0x34b   : > { %v3253_v42 = vadd.f32 %v3252_v44, %v11682_v6  ;;  %4159 = vmatprep.mubr.bf16.mxu1 %v15759_v24  ;;  %v11790_v8 = vadd.f32 %v3723_v40, %v15914_v17  ;;  %v3062_v26 = vadd.f32 %v3061_v32, %v11689_v39  ;;  %v3255_v61 = vadd.f32 %v3254_v28, %v11696_v41  ;;  %v3069_v18 = vpop.f32.mrf.mxu1  ;;  %v3262_v36 = vpop.f32.mrf.mxu0  ;;  %v4796_v28 = vld [vmem:[#allocation7 + $0x1c8] sm:$0xff] }
 0x34c   : > { %v3405_v49 = vmax.f32 %v3060_v60, 0.0  ;;  %v3692_v4 = vadd.f32 %v3660_v20, %v3549_v25  ;;  %v3552_v15 = vmul.f32 %v11693_v33, %v3402_v27  ;;  %v3554_v44 = vmul.f32 %v11699_v63, %v3404_v50 }
 0x34d   : > { %15915 = vst [vmem:[#allocation56_spill] sm:$0xff] %v11790_v8  ;;  %v3407_v21 = vmax.f32 %v3253_v42, 0.0  ;;  %v3406_v11 = vmax.f32 %v3062_v26, 0.0  ;;  %v3408_v57 = vmax.f32 %v3255_v61, 0.0  ;;  %v9417_v62 = vcombine.low %v4793_v3, %v4795_v30  ;;  %v4794_v8 = vld [vmem:[#allocation7 + $0x148] sm:$0xff]  ;;  %v3071_v25 = vpop.f32.mrf.mxu1  ;;  %v3264_v20 = vpop.f32.mrf.mxu0 }
 0x34e   : > { %v3555_v1 = vmul.f32 %v11679_v12, %v3405_v49  ;;  %v3724_v40 = vadd.f32 %v3692_v4, %v3550_v53  ;;  %v3661_v17 = vadd.f32 %v3552_v15, %v3551_v55  ;;  %v9418_v32 = vcombine.high %v4793_v3, %v4795_v30  ;;  %v15916_v26 = vld [vmem:[#allocation39_spill] sm:$0xff] }
 0x34f   : > { %v3557_v60 = vmul.f32 %v11685_v29, %v3407_v21  ;;  %v3556_v27 = vmul.f32 %v11693_v33, %v3406_v11  ;;  %v3558_v50 = vmul.f32 %v11699_v63, %v3408_v57  ;;  %v3066_v42 = vadd.f32 %v3065_v54, %v11675_v59  ;;  %v3075_v30 = vpop.f32.mrf.mxu1  ;;  %v3268_v4 = vpop.f32.mrf.mxu0 }
 0x350   : > { %v3259_v49 = vadd.f32 %v3258_v14, %v11682_v6  ;;  %v11803_v61 = vadd.f32 %v3724_v40, %v15916_v26  ;;  %v3693_v53 = vadd.f32 %v3661_v17, %v3553_v23  ;;  %5015 = vmatprep.subr.bf16.mxu1 %v9418_v32  ;;  %v3068_v55 = vadd.f32 %v3067_v48, %v11689_v39  ;;  %v15919_v32 = vld [vmem:[#allocation40_spill] sm:$0xff] }
 0x351   : > { %v3261_v3 = vadd.f32 %v3260_v10, %v11696_v41  ;;  %v3662_v15 = vadd.f32 %v3556_v27, %v3555_v1  ;;  %v3409_v21 = vmax.f32 %v3066_v42, 0.0  ;;  %5016 = vmatpush1.bf16.msra.mxu1 %v9417_v62  ;;  %v9419_v57 = vcombine.low %v4794_v8, %v4796_v28  ;;  %4353 = vmatmul.mubr.bf16.gmra.mxu0 %v15918_v34  ;;  %v3077_v23 = vpop.f32.mrf.mxu1  ;;  %v3270_v17 = vpop.f32.mrf.mxu0 }
 0x352   : > { %15917 = vst [vmem:[#allocation57_spill] sm:$0xff] %v11803_v61  ;;  %v3411_v11 = vmax.f32 %v3259_v49, 0.0  ;;  %v3725_v54 = vadd.f32 %v3693_v53, %v3554_v44  ;;  %v3410_v14 = vmax.f32 %v3068_v55, 0.0  ;;  %v9420_v40 = vcombine.high %v4794_v8, %v4796_v28  ;;  %4160 = vmatmul.mubr.bf16.gmra.mxu1 %v15918_v34  ;;  %4362 = vmatprep.mubr.bf16.mxu0 %v15759_v24  ;;  %v4790_v61 = vld [vmem:[#allocation7 + $0x48] sm:$0xff] }
 0x353   : > { %v3412_v0 = vmax.f32 %v3261_v3, 0.0  ;;  %v3694_v48 = vadd.f32 %v3662_v15, %v3557_v60  ;;  %v3559_v10 = vmul.f32 %v11679_v12, %v3409_v21  ;;  %v3070_v62 = vadd.f32 %v3069_v18, %v11675_v59  ;;  %4169 = vmatprep.mubr.bf16.mxu1 %v15759_v24  ;;  %v3079_v42 = vpop.f32.mrf.mxu1  ;;  %v3272_v60 = vpop.f32.mrf.mxu0  ;;  %v4792_v34 = vld [vmem:[#allocation7 + $0xc8] sm:$0xff] }
 0x354   : > { %v3561_v1 = vmul.f32 %v11685_v29, %v3411_v11  ;;  %v11815_v44 = vadd.f32 %v3725_v54, %v15919_v32  ;;  %v3560_v8 = vmul.f32 %v11693_v33, %v3410_v14  ;;  %5208 = vmatprep.subr.bf16.mxu0 %v9420_v40  ;;  %v3263_v27 = vadd.f32 %v3262_v36, %v11682_v6  ;;  %v15921_v54 = vld [vmem:[#allocation41_spill] sm:$0xff] }
 0x355   : > { %v3562_v28 = vmul.f32 %v11699_v63, %v3412_v0  ;;  %v3726_v49 = vadd.f32 %v3694_v48, %v3558_v50  ;;  %v3413_v26 = vmax.f32 %v3070_v62, 0.0  ;;  %5209 = vmatpush1.bf16.msra.mxu0 %v9419_v57  ;;  %v3072_v53 = vadd.f32 %v3071_v25, %v11689_v39  ;;  %v3081_v11 = vpop.f32.mrf.mxu1  ;;  %v3274_v0 = vpop.f32.mrf.mxu0 }
 0x356   : > { %15920 = vst [vmem:[#allocation58_spill] sm:$0xff] %v11815_v44  ;;  %v3265_v18 = vadd.f32 %v3264_v20, %v11696_v41  ;;  %v3663_v55 = vadd.f32 %v3560_v8, %v3559_v10  ;;  %v3415_v3 = vmax.f32 %v3263_v27, 0.0  ;;  %v3076_v15 = vadd.f32 %v3075_v30, %v11675_v59  ;;  %v15923_v27 = vld [vmem:[#allocation25_spill] sm:$0xff] }
 0x357   : > { %v3269_v21 = vadd.f32 %v3268_v4, %v11682_v6  ;;  %v11825_v14 = vadd.f32 %v3726_v49, %v15921_v54  ;;  %v3563_v36 = vmul.f32 %v11679_v12, %v3413_v26  ;;  %v3414_v50 = vmax.f32 %v3072_v53, 0.0  ;;  %v3085_v10 = vpop.f32.mrf.mxu1  ;;  %v3278_v62 = vpop.f32.mrf.mxu0  ;;  %v4789_v54 = vld [vmem:[#allocation7 + $0x40] sm:$0xff] }
 0x358   : > { %v3416_v40 = vmax.f32 %v3265_v18, 0.0  ;;  %v3695_v57 = vadd.f32 %v3663_v55, %v3561_v1  ;;  %v3565_v25 = vmul.f32 %v11685_v29, %v3415_v3  ;;  %v3417_v48 = vmax.f32 %v3076_v15, 0.0 }
 0x359   : > { %15922 = vst [vmem:[#allocation31_spill] sm:$0xff] %v11825_v14  ;;  %v3419_v20 = vmax.f32 %v3269_v21, 0.0  ;;  %v3564_v30 = vmul.f32 %v11693_v33, %v3414_v50  ;;  %v3078_v32 = vadd.f32 %v3077_v23, %v11689_v39  ;;  %v3271_v8 = vadd.f32 %v3270_v17, %v11696_v41  ;;  %4363 = vmatmul.mubr.bf16.gmra.mxu0 %v15923_v27  ;;  %v3087_v18 = vpop.f32.mrf.mxu1  ;;  %v3280_v55 = vpop.f32.mrf.mxu0  ;;  %v4791_v17 = vld [vmem:[#allocation7 + $0xc0] sm:$0xff] }
 0x35a   : > { %v3566_v4 = vmul.f32 %v11699_v63, %v3416_v40  ;;  %v3727_v49 = vadd.f32 %v3695_v57, %v3562_v28  ;;  %v3567_v26 = vmul.f32 %v11679_v12, %v3417_v48  ;;  %v3080_v53 = vadd.f32 %v3079_v42, %v11675_v59  ;;  %4170 = vmatmul.mubr.bf16.gmra.mxu1 %v15923_v27  ;;  %v15924_v28 = vld [vmem:[#allocation42_spill] sm:$0xff] }
 0x35b   : > { %v3569_v1 = vmul.f32 %v11685_v29, %v3419_v20  ;;  %v3664_v3 = vadd.f32 %v3564_v30, %v3563_v36  ;;  %v3418_v15 = vmax.f32 %v3078_v32, 0.0  ;;  %v3420_v21 = vmax.f32 %v3271_v8, 0.0  ;;  %4179 = vmatprep.mubr.bf16.mxu1 %v15759_v24  ;;  %4372 = vmatprep.mubr.bf16.mxu0 %v15759_v24  ;;  %v3089_v48 = vpop.f32.mrf.mxu1  ;;  %v3282_v36 = vpop.f32.mrf.mxu0 }
 0x35c   : > { %v3273_v23 = vadd.f32 %v3272_v60, %v11682_v6  ;;  %v11842_v50 = vadd.f32 %v3727_v49, %v15924_v28  ;;  %v3421_v40 = vmax.f32 %v3080_v53, 0.0  ;;  %v3082_v42 = vadd.f32 %v3081_v11, %v11689_v39 }
 0x35d   : > { %v3275_v57 = vadd.f32 %v3274_v0, %v11696_v41  ;;  %v3696_v20 = vadd.f32 %v3664_v3, %v3565_v25  ;;  %v3568_v30 = vmul.f32 %v11693_v33, %v3418_v15  ;;  %v3570_v60 = vmul.f32 %v11699_v63, %v3420_v21  ;;  %v3091_v49 = vpop.f32.mrf.mxu1  ;;  %v3284_v28 = vpop.f32.mrf.mxu0 }
 0x35e   : > { %15925 = vst [vmem:[#allocation32_spill] sm:$0xff] %v11842_v50  ;;  %v3423_v32 = vmax.f32 %v3273_v23, 0.0  ;;  %v3571_v8 = vmul.f32 %v11679_v12, %v3421_v40  ;;  %v3422_v14 = vmax.f32 %v3082_v42, 0.0  ;;  %v9413_v44 = vcombine.low %v4789_v54, %v4791_v17 }
 0x35f   : > { %v3424_v27 = vmax.f32 %v3275_v57, 0.0  ;;  %v3728_v53 = vadd.f32 %v3696_v20, %v3566_v4  ;;  %v3665_v50 = vadd.f32 %v3568_v30, %v3567_v26  ;;  %v9414_v0 = vcombine.high %v4789_v54, %v4791_v17  ;;  %v3095_v23 = vpop.f32.mrf.mxu1  ;;  %v3288_v40 = vpop.f32.mrf.mxu0  ;;  %v15926_v20 = vld [vmem:[#allocation26_spill] sm:$0xff] }
 0x360   : > { %v3573_v11 = vmul.f32 %v11685_v29, %v3423_v32  ;;  %v3572_v25 = vmul.f32 %v11693_v33, %v3422_v14  ;;  %v3086_v15 = vadd.f32 %v3085_v10, %v11675_v59  ;;  %v3279_v21 = vadd.f32 %v3278_v62, %v11682_v6 }
 0x361   : > { %v3574_v3 = vmul.f32 %v11699_v63, %v3424_v27  ;;  %v11855_v42 = vadd.f32 %v3728_v53, %v11371_v5  ;;  %v3697_v4 = vadd.f32 %v3665_v50, %v3569_v1  ;;  %5017 = vmatprep.subr.bf16.mxu1 %v9414_v0  ;;  %v3088_v26 = vadd.f32 %v3087_v18, %v11689_v39  ;;  %v3097_v10 = vpop.f32.mrf.mxu1  ;;  %v3290_v62 = vpop.f32.mrf.mxu0  ;;  %v15927_v53 = vld [vmem:[#allocation43_spill] sm:$0xff] }
 0x362   : > { %v3281_v54 = vadd.f32 %v3280_v55, %v11696_v41  ;;  %v3666_v17 = vadd.f32 %v3572_v25, %v3571_v8  ;;  %v3425_v57 = vmax.f32 %v3086_v15, 0.0  ;;  %v3427_v14 = vmax.f32 %v3279_v21, 0.0  ;;  %5018 = vmatpush1.bf16.msra.mxu1 %v9413_v44  ;;  %4373 = vmatmul.mubr.bf16.gmra.mxu0 %v15926_v20 }
 0x363   : > { %v9415_v27 = vcombine.low %v4790_v61, %v4792_v34  ;;  %v3729_v30 = vadd.f32 %v3697_v4, %v3570_v60  ;;  %v3426_v32 = vmax.f32 %v3088_v26, 0.0  ;;  %v9416_v5 = vcombine.high %v4790_v61, %v4792_v34  ;;  %4180 = vmatmul.mubr.bf16.gmra.mxu1 %v15926_v20  ;;  %5228 = vmatprep.mubr.bf16.mxu0 %v15759_v24  ;;  %v3099_v50 = vpop.f32.mrf.mxu1  ;;  %v3292_v8 = vpop.f32.mrf.mxu0 }
 0x364   : > { %v3428_v37 = vmax.f32 %v3281_v54, 0.0  ;;  %v3698_v1 = vadd.f32 %v3666_v17, %v3573_v11  ;;  %v3575_v18 = vmul.f32 %v11679_v12, %v3425_v57  ;;  %v3577_v55 = vmul.f32 %v11685_v29, %v3427_v14  ;;  %5035 = vmatprep.mubr.bf16.mxu1 %v15759_v24  ;;  %v15928_v14 = vld [vmem:[#allocation44_spill] sm:$0xff] }
 0x365   : > { %v3090_v44 = vadd.f32 %v3089_v48, %v11675_v59  ;;  %v11867_v60 = vadd.f32 %v3729_v30, %v15927_v53  ;;  %v3576_v34 = vmul.f32 %v11693_v33, %v3426_v32  ;;  %5210 = vmatprep.subr.bf16.mxu0 %v9416_v5  ;;  %v3283_v11 = vadd.f32 %v3282_v36, %v11682_v6  ;;  %v3101_v21 = vpop.f32.mrf.mxu1  ;;  %v3294_v4 = vpop.f32.mrf.mxu0 }
 0x366   : > { %v3578_v61 = vmul.f32 %v11699_v63, %v3428_v37  ;;  %v3730_v0 = vadd.f32 %v3698_v1, %v3574_v3  ;;  %5211 = vmatpush1.bf16.msra.mxu0 %v9415_v27  ;;  %v3092_v15 = vadd.f32 %v3091_v49, %v11689_v39  ;;  %v3285_v48 = vadd.f32 %v3284_v28, %v11696_v41 }
 0x367   : > { %v3429_v25 = vmax.f32 %v3090_v44, 0.0  ;;  %v3667_v26 = vadd.f32 %v3576_v34, %v3575_v18  ;;  %v3431_v54 = vmax.f32 %v3283_v11, 0.0  ;;  %v3096_v17 = vadd.f32 %v3095_v23, %v11675_v59  ;;  %v3105_v27 = vpop.f32.mrf.mxu1  ;;  %v3298_v32 = vpop.f32.mrf.mxu0 }
 0x368   : > { %v3289_v57 = vadd.f32 %v3288_v40, %v11682_v6  ;;  %v11877_v37 = vadd.f32 %v3730_v0, %v15928_v14  ;;  %v3430_v3 = vmax.f32 %v3092_v15, 0.0  ;;  %v3432_v30 = vmax.f32 %v3285_v48, 0.0 }
 0x369   : > { %v3579_v36 = vmul.f32 %v11679_v12, %v3429_v25  ;;  %v3699_v49 = vadd.f32 %v3667_v26, %v3577_v55  ;;  %v3581_v28 = vmul.f32 %v11685_v29, %v3431_v54  ;;  %v3433_v5 = vmax.f32 %v3096_v17, 0.0  ;;  %v3107_v53 = vpop.f32.mrf.mxu1  ;;  %v3300_v34 = vpop.f32.mrf.mxu0  ;;  %v5823_v54 = vld [vmem:[#allocation7 + $0x750] sm:$0xff] }
 0x36a   : > { %15929 = vst [vmem:[#allocation34_spill] sm:$0xff] %v11877_v37  ;;  %v3435_v1 = vmax.f32 %v3289_v57, 0.0  ;;  %v3580_v18 = vmul.f32 %v11693_v33, %v3430_v3  ;;  %v3582_v23 = vmul.f32 %v11699_v63, %v3432_v30  ;;  %v3098_v40 = vadd.f32 %v3097_v10, %v11689_v39  ;;  %5229 = vmatmul.mubr.bf16.vlgmr.msra.gmra.mxu0 %v10314_v52 }
 0x36b   : > { %v3291_v44 = vadd.f32 %v3290_v62, %v11696_v41  ;;  %v3731_v11 = vadd.f32 %v3699_v49, %v3578_v61  ;;  %v3583_v0 = vmul.f32 %v11679_v12, %v3433_v5  ;;  %v3100_v25 = vadd.f32 %v3099_v50, %v11675_v59  ;;  %5036 = vmatmul.mubr.bf16.vlgmr.msra.gmra.mxu1 %v10314_v52  ;;  %v5825_v62 = vld [vmem:[#allocation7 + $0x7d0] sm:$0xff]  ;;  %v3109_v17 = vpop.f32.mrf.mxu1  ;;  %v3302_v57 = vpop.f32.mrf.mxu0 }
 0x36c   : > { %v3585_v55 = vmul.f32 %v11685_v29, %v3435_v1  ;;  %v3668_v15 = vadd.f32 %v3580_v18, %v3579_v36  ;;  %v3434_v48 = vmax.f32 %v3098_v40, 0.0  ;;  %v3293_v10 = vadd.f32 %v3292_v8, %v11682_v6  ;;  %5045 = vmatprep.mubr.bf16.mxu1 %v15759_v24  ;;  %5238 = vmatprep.mubr.bf16.mxu0 %v15759_v24 }
 0x36d   : > { %v3436_v26 = vmax.f32 %v3291_v44, 0.0  ;;  %v11894_v61 = vadd.f32 %v3731_v11, %v11408_v56  ;;  %v3437_v14 = vmax.f32 %v3100_v25, 0.0  ;;  %v3102_v50 = vadd.f32 %v3101_v21, %v11689_v39  ;;  %v3111_v5 = vpop.f32.mrf.mxu1  ;;  %v3304_v1 = vpop.f32.mrf.mxu0 }
 0x36e   : > { %v3295_v36 = vadd.f32 %v3294_v4, %v11696_v41  ;;  %v3700_v3 = vadd.f32 %v3668_v15, %v3581_v28  ;;  %v3584_v30 = vmul.f32 %v11693_v33, %v3434_v48  ;;  %v3439_v49 = vmax.f32 %v3293_v10, 0.0  ;;  %v5826_v4 = vld [vmem:[#allocation7 + $0x7d8] sm:$0xff] }
 0x36f   : > { %15930 = vst [vmem:[#allocation35_spill] sm:$0xff] %v11894_v61  ;;  %v3586_v8 = vmul.f32 %v11699_v63, %v3436_v26  ;;  %v3587_v18 = vmul.f32 %v11679_v12, %v3437_v14  ;;  %v3438_v40 = vmax.f32 %v3102_v50, 0.0  ;;  %v9473_v37 = vcombine.low %v5823_v54, %v5825_v62  ;;  %v5824_v61 = vld [vmem:[#allocation7 + $0x758] sm:$0xff]  ;;  %v3115_v28 = vpop.f32.mrf.mxu1  ;;  %v3308_v15 = vpop.f32.mrf.mxu0 }
 0x370   : > { %v3440_v44 = vmax.f32 %v3295_v36, 0.0  ;;  %v3732_v56 = vadd.f32 %v3700_v3, %v3582_v23  ;;  %v3669_v11 = vadd.f32 %v3584_v30, %v3583_v0  ;;  %v3589_v25 = vmul.f32 %v11685_v29, %v3439_v49 }
 0x371   : > { %v9474_v21 = vcombine.high %v5823_v54, %v5825_v62  ;;  %v3588_v48 = vmul.f32 %v11693_v33, %v3438_v40  ;;  %v3106_v10 = vadd.f32 %v3105_v27, %v11675_v59  ;;  %v3299_v14 = vadd.f32 %v3298_v32, %v11682_v6  ;;  %v3117_v62 = vpop.f32.mrf.mxu1  ;;  %v3310_v36 = vpop.f32.mrf.mxu0 }
 0x372   : > { %v3590_v26 = vmul.f32 %v11699_v63, %v3440_v44  ;;  %v11907_v50 = vadd.f32 %v3732_v56, %v11437_v58  ;;  %v3701_v23 = vadd.f32 %v3669_v11, %v3585_v55  ;;  %v3108_v0 = vadd.f32 %v3107_v53, %v11689_v39  ;;  %5239 = vmatmul.mubr.bf16.gmra.mxu0 %v10329_v13 }
 0x373   : > { %6009 = vmatprep.subr.bf16.mxu1 %v9474_v21  ;;  %v3301_v54 = vadd.f32 %v3300_v34, %v11696_v41  ;;  %v3670_v3 = vadd.f32 %v3588_v48, %v3587_v18  ;;  %v3441_v30 = vmax.f32 %v3106_v10, 0.0  ;;  %v3443_v49 = vmax.f32 %v3299_v14, 0.0  ;;  %5046 = vmatmul.mubr.bf16.gmra.mxu1 %v10329_v13  ;;  %v3119_v55 = vpop.f32.mrf.mxu1  ;;  %v3312_v56 = vpop.f32.mrf.mxu0 }
 0x374   : > { %6010 = vmatpush1.bf16.msra.mxu1 %v9473_v37  ;;  %v9475_v40 = vcombine.low %v5824_v61, %v5826_v4  ;;  %v3733_v27 = vadd.f32 %v3701_v23, %v3586_v8  ;;  %v3442_v32 = vmax.f32 %v3108_v0, 0.0  ;;  %v9476_v58 = vcombine.high %v5824_v61, %v5826_v4  ;;  %5248 = vmatprep.mubr.bf16.mxu0 %v15759_v24 }
 0x375   : > { %v3444_v44 = vmax.f32 %v3301_v54, 0.0  ;;  %v3702_v53 = vadd.f32 %v3670_v3, %v3589_v25  ;;  %v3591_v34 = vmul.f32 %v11679_v12, %v3441_v30  ;;  %v3593_v18 = vmul.f32 %v11685_v29, %v3443_v49  ;;  %5055 = vmatprep.mubr.bf16.mxu1 %v15759_v24  ;;  %v3121_v4 = vpop.f32.mrf.mxu1  ;;  %v3314_v25 = vpop.f32.mrf.mxu0 }
 0x376   : > { %v3110_v37 = vadd.f32 %v3109_v17, %v11675_v59  ;;  %v11919_v8 = vadd.f32 %v3733_v27, %v11458_v2  ;;  %v3592_v61 = vmul.f32 %v11693_v33, %v3442_v32  ;;  %6202 = vmatprep.subr.bf16.mxu0 %v9476_v58  ;;  %v3303_v21 = vadd.f32 %v3302_v57, %v11682_v6 }
 0x377   : > { %v3594_v11 = vmul.f32 %v11699_v63, %v3444_v44  ;;  %v3734_v48 = vadd.f32 %v3702_v53, %v3590_v26  ;;  %6203 = vmatpush1.bf16.msra.mxu0 %v9475_v40  ;;  %v3112_v14 = vadd.f32 %v3111_v5, %v11689_v39  ;;  %v3305_v17 = vadd.f32 %v3304_v1, %v11696_v41  ;;  %v3125_v3 = vpop.f32.mrf.mxu1  ;;  %v3318_v30 = vpop.f32.mrf.mxu0 }
 0x378   : > { %v3445_v10 = vmax.f32 %v3110_v37, 0.0  ;;  %v3671_v23 = vadd.f32 %v3592_v61, %v3591_v34  ;;  %v3447_v0 = vmax.f32 %v3303_v21, 0.0  ;;  %v3116_v2 = vadd.f32 %v3115_v28, %v11675_v59 }
 0x379   : > { %v3309_v54 = vadd.f32 %v3308_v15, %v11682_v6  ;;  %v11929_v49 = vadd.f32 %v3734_v48, %v11479_v31  ;;  %v3446_v26 = vmax.f32 %v3112_v14, 0.0  ;;  %v3448_v27 = vmax.f32 %v3305_v17, 0.0  ;;  %v3127_v44 = vpop.f32.mrf.mxu1  ;;  %v3320_v58 = vpop.f32.mrf.mxu0 }
 0x37a   : > { %v3595_v57 = vmul.f32 %v11679_v12, %v3445_v10  ;;  %v3703_v40 = vadd.f32 %v3671_v23, %v3593_v18  ;;  %v3597_v5 = vmul.f32 %v11685_v29, %v3447_v0  ;;  %v3449_v32 = vmax.f32 %v3116_v2, 0.0  ;;  %5249 = vmatmul.mubr.bf16.gmra.mxu0 %v10343_v43  ;;  %v5821_v23 = vld [vmem:[#allocation7 + $0x6d0] sm:$0xff] }
 0x37b   : > { %15931 = vst [vmem:[#allocation33_spill] sm:$0xff] %v11929_v49  ;;  %v3451_v1 = vmax.f32 %v3309_v54, 0.0  ;;  %v3596_v28 = vmul.f32 %v11693_v33, %v3446_v26  ;;  %v3598_v15 = vmul.f32 %v11699_v63, %v3448_v27  ;;  %v3118_v53 = vadd.f32 %v3117_v62, %v11689_v39  ;;  %5056 = vmatmul.mubr.bf16.gmra.mxu1 %v10343_v43  ;;  %v3129_v21 = vpop.f32.mrf.mxu1  ;;  %v11942_v48 = vpop.f32.mrf.mxu0  ;;  %v5822_v49 = vld [vmem:[#allocation7 + $0x6d8] sm:$0xff] }
 0x37c   : > { %v3311_v31 = vadd.f32 %v3310_v36, %v11696_v41  ;;  %v3735_v34 = vadd.f32 %v3703_v40, %v3594_v11  ;;  %v3599_v37 = vmul.f32 %v11679_v12, %v3449_v32  ;;  %v3120_v61 = vadd.f32 %v3119_v55, %v11675_v59  ;;  %v5819_v36 = vld [vmem:[#allocation7 + $0x650] sm:$0xff]  ;;  %5065 = vmatprep.mubr.bf16.mxu1 %v15759_v24 }
 0x37d   : > { %v3601_v18 = vmul.f32 %v11685_v29, %v3451_v1  ;;  %v3672_v10 = vadd.f32 %v3596_v28, %v3595_v57  ;;  %v3450_v14 = vmax.f32 %v3118_v53, 0.0  ;;  %v3313_v62 = vadd.f32 %v3312_v56, %v11682_v6  ;;  %5258 = vmatprep.mubr.bf16.mxu0 %v15759_v24  ;;  %v3131_v54 = vpop.f32.mrf.mxu1  ;;  %v3324_v57 = vpop.f32.mrf.mxu0 }
 0x37e   : > { %v3452_v17 = vmax.f32 %v3311_v31, 0.0  ;;  %v11948_v11 = vadd.f32 %v3735_v34, %v11502_v47  ;;  %v3453_v55 = vmax.f32 %v3120_v61, 0.0  ;;  %v3122_v0 = vadd.f32 %v3121_v4, %v11689_v39 }
 0x37f   : > { %v3315_v2 = vadd.f32 %v3314_v25, %v11696_v41  ;;  %v3704_v26 = vadd.f32 %v3672_v10, %v3597_v5  ;;  %v3600_v27 = vmul.f32 %v11693_v33, %v3450_v14  ;;  %v3455_v40 = vmax.f32 %v3313_v62, 0.0  ;;  %v3135_v47 = vpop.f32.mrf.mxu1  ;;  %v3328_v31 = vpop.f32.mrf.mxu0 }
 0x380   : > { %15932 = vst [vmem:[#allocation36_spill] sm:$0xff] %v11948_v11  ;;  %v3602_v56 = vmul.f32 %v11699_v63, %v3452_v17  ;;  %v3603_v32 = vmul.f32 %v11679_v12, %v3453_v55  ;;  %v3454_v1 = vmax.f32 %v3122_v0, 0.0  ;;  %v9469_v53 = vcombine.low %v5819_v36, %v5821_v23  ;;  %v5820_v11 = vld [vmem:[#allocation7 + $0x658] sm:$0xff] }
 0x381   : > { %v3456_v28 = vmax.f32 %v3315_v2, 0.0  ;;  %v3736_v34 = vadd.f32 %v3704_v26, %v3598_v15  ;;  %v3673_v61 = vadd.f32 %v3600_v27, %v3599_v37  ;;  %v3605_v4 = vmul.f32 %v11685_v29, %v3455_v40  ;;  %v3137_v62 = vpop.f32.mrf.mxu1  ;;  %v3330_v55 = vpop.f32.mrf.mxu0 }
 0x382   : > { %v9470_v25 = vcombine.high %v5819_v36, %v5821_v23  ;;  %v3604_v5 = vmul.f32 %v11693_v33, %v3454_v1  ;;  %v3126_v14 = vadd.f32 %v3125_v3, %v11675_v59  ;;  %v3319_v17 = vadd.f32 %v3318_v30, %v11682_v6  ;;  %5259 = vmatmul.mubr.bf16.gmra.mxu0 %v15797_v19 }
 0x383   : > { %v3606_v10 = vmul.f32 %v11699_v63, %v3456_v28  ;;  %v11961_v0 = vadd.f32 %v3736_v34, %v11517_v46  ;;  %v3705_v15 = vadd.f32 %v3673_v61, %v3601_v18  ;;  %v3128_v37 = vadd.f32 %v3127_v44, %v11689_v39  ;;  %v3139_v3 = vpop.f32.mrf.mxu1  ;;  %v3332_v30 = vpop.f32.mrf.mxu0  ;;  %5066 = vmatmul.mubr.bf16.gmra.mxu1 %v15797_v19 }
 0x384   : > { %6011 = vmatprep.subr.bf16.mxu1 %v9470_v25  ;;  %v3321_v36 = vadd.f32 %v3320_v58, %v11696_v41  ;;  %v3674_v23 = vadd.f32 %v3604_v5, %v3603_v32  ;;  %v3457_v2 = vmax.f32 %v3126_v14, 0.0  ;;  %v3459_v26 = vmax.f32 %v3319_v17, 0.0  ;;  %5268 = vmatprep.mubr.bf16.mxu0 %v15759_v24 }
 0x385   : > { %6012 = vmatpush1.bf16.msra.mxu1 %v9469_v53  ;;  %v9471_v27 = vcombine.low %v5820_v11, %v5822_v49  ;;  %v3737_v40 = vadd.f32 %v3705_v15, %v3602_v56  ;;  %v3458_v1 = vmax.f32 %v3128_v37, 0.0  ;;  %v9472_v46 = vcombine.high %v5820_v11, %v5822_v49  ;;  %v3141_v53 = vpop.f32.mrf.mxu1  ;;  %v3334_v34 = vpop.f32.mrf.mxu0  ;;  %5075 = vmatprep.mubr.bf16.mxu1 %v15759_v24 }
 0x386   : > { %v3460_v28 = vmax.f32 %v3321_v36, 0.0  ;;  %v3706_v44 = vadd.f32 %v3674_v23, %v3605_v4  ;;  %v3607_v58 = vmul.f32 %v11679_v12, %v3457_v2  ;;  %v3609_v18 = vmul.f32 %v11685_v29, %v3459_v26 }
 0x387   : > { %v3130_v32 = vadd.f32 %v3129_v21, %v11675_v59  ;;  %v11973_v56 = vadd.f32 %v3737_v40, %v11530_v16  ;;  %v3608_v49 = vmul.f32 %v11693_v33, %v3458_v1  ;;  %6204 = vmatprep.subr.bf16.mxu0 %v9472_v46  ;;  %v3323_v61 = vadd.f32 %v11942_v48, %v11682_v6  ;;  %v3145_v14 = vpop.f32.mrf.mxu1  ;;  %v3338_v17 = vpop.f32.mrf.mxu0 }
 0x388   : > { %v3610_v11 = vmul.f32 %v11699_v63, %v3460_v28  ;;  %v3738_v4 = vadd.f32 %v3706_v44, %v3606_v10  ;;  %6205 = vmatpush1.bf16.msra.mxu0 %v9471_v27  ;;  %v3132_v21 = vadd.f32 %v3131_v54, %v11689_v39  ;;  %v3325_v5 = vadd.f32 %v3324_v57, %v11696_v41 }
 0x389   : > { %v3461_v25 = vmax.f32 %v3130_v32, 0.0  ;;  %v3675_v15 = vadd.f32 %v3608_v49, %v3607_v58  ;;  %v3463_v16 = vmax.f32 %v3323_v61, 0.0  ;;  %v3136_v37 = vadd.f32 %v3135_v47, %v11675_v59  ;;  %v3147_v26 = vpop.f32.mrf.mxu1  ;;  %v3340_v27 = vpop.f32.mrf.mxu0 }
 0x38a   : > { %v3329_v36 = vadd.f32 %v3328_v31, %v11682_v6  ;;  %v11984_v23 = vadd.f32 %v3738_v4, %v11543_v38  ;;  %v3462_v10 = vmax.f32 %v3132_v21, 0.0  ;;  %v3464_v2 = vmax.f32 %v3325_v5, 0.0  ;;  %5269 = vmatmul.mubr.bf16.gmra.mxu0 %v15874_v35  ;;  %v5817_v21 = vld [vmem:[#allocation7 + $0x5d0] sm:$0xff] }
 0x38b   : > { %v3611_v48 = vmul.f32 %v11679_v12, %v3461_v25  ;;  %v3707_v54 = vadd.f32 %v3675_v15, %v3609_v18  ;;  %v3613_v57 = vmul.f32 %v11685_v29, %v3463_v16  ;;  %v3465_v40 = vmax.f32 %v3136_v37, 0.0  ;;  %v11993_v46 = vpop.f32.mrf.mxu1  ;;  %v11995_v44 = vpop.f32.mrf.mxu0  ;;  %5076 = vmatmul.mubr.bf16.gmra.mxu1 %v15874_v35  ;;  %v5815_v25 = vld [vmem:[#allocation7 + $0x550] sm:$0xff]  ;;  %5278 = vmatprep.mubr.bf16.mxu0 %v15759_v24 }
 0x38c   : > { %v3467_v1 = vmax.f32 %v3329_v36, 0.0  ;;  %v3612_v28 = vmul.f32 %v11693_v33, %v3462_v10  ;;  %v3614_v47 = vmul.f32 %v11699_v63, %v3464_v2  ;;  %v3138_v31 = vadd.f32 %v3137_v62, %v11689_v39  ;;  %5085 = vmatprep.mubr.bf16.mxu1 %v15759_v24 }
 0x38d   : > { %v3331_v38 = vadd.f32 %v3330_v55, %v11696_v41  ;;  %v3739_v58 = vadd.f32 %v3707_v54, %v3610_v11  ;;  %v3615_v18 = vmul.f32 %v11679_v12, %v3465_v40  ;;  %v3140_v49 = vadd.f32 %v3139_v3, %v11675_v59  ;;  %v12002_v5 = vpop.f32.mrf.mxu1  ;;  %v12004_v15 = vpop.f32.mrf.mxu0 }
 0x38e   : > { %v3617_v32 = vmul.f32 %v11685_v29, %v3467_v1  ;;  %v3676_v61 = vadd.f32 %v3612_v28, %v3611_v48  ;;  %v3466_v4 = vmax.f32 %v3138_v31, 0.0  ;;  %v3333_v55 = vadd.f32 %v3332_v30, %v11682_v6 }
 0x38f   : > { %v3468_v62 = vmax.f32 %v3331_v38, 0.0  ;;  %v12009_v11 = vadd.f32 %v3739_v58, %v11554_v45  ;;  %v3469_v3 = vmax.f32 %v3140_v49, 0.0  ;;  %v3142_v16 = vadd.f32 %v3141_v53, %v11689_v39  ;;  %v3155_v2 = vpop.f32.mrf.mxu1  ;;  %v3348_v54 = vpop.f32.mrf.mxu0  ;;  %v5816_v49 = vld [vmem:[#allocation7 + $0x558] sm:$0xff] }
 0x390   : > { %v3335_v37 = vadd.f32 %v3334_v34, %v11696_v41  ;;  %v3708_v36 = vadd.f32 %v3676_v61, %v3613_v57  ;;  %v3616_v30 = vmul.f32 %v11693_v33, %v3466_v4  ;;  %v3471_v10 = vmax.f32 %v3333_v55, 0.0  ;;  %v5818_v34 = vld [vmem:[#allocation7 + $0x5d8] sm:$0xff] }
 0x391   : > { %15933 = vst [vmem:[#allocation37_spill] sm:$0xff] %v12009_v11  ;;  %v3618_v48 = vmul.f32 %v11699_v63, %v3468_v62  ;;  %v3619_v40 = vmul.f32 %v11679_v12, %v3469_v3  ;;  %v3470_v1 = vmax.f32 %v3142_v16, 0.0  ;;  %v9465_v31 = vcombine.low %v5815_v25, %v5817_v21  ;;  %v3157_v57 = vpop.f32.mrf.mxu1  ;;  %v3350_v61 = vpop.f32.mrf.mxu0 }
 0x392   : > { %v3472_v28 = vmax.f32 %v3335_v37, 0.0  ;;  %v3740_v45 = vadd.f32 %v3708_v36, %v3614_v47  ;;  %v3677_v38 = vadd.f32 %v3616_v30, %v3615_v18  ;;  %v3621_v58 = vmul.f32 %v11685_v29, %v3471_v10  ;;  %5279 = vmatmul.mubr.bf16.gmra.mxu0 %v15877_v51 }
 0x393   : > { %v9466_v53 = vcombine.high %v5815_v25, %v5817_v21  ;;  %v3620_v4 = vmul.f32 %v11693_v33, %v3470_v1  ;;  %v3146_v55 = vadd.f32 %v3145_v14, %v11675_v59  ;;  %v3339_v3 = vadd.f32 %v3338_v17, %v11682_v6  ;;  %v3159_v21 = vpop.f32.mrf.mxu1  ;;  %v12026_v37 = vpop.f32.mrf.mxu0  ;;  %5086 = vmatmul.mubr.bf16.gmra.mxu1 %v15877_v51 }
 0x394   : > { %v3622_v62 = vmul.f32 %v11699_v63, %v3472_v28  ;;  %v12022_v16 = vadd.f32 %v3740_v45, %v11569_v22  ;;  %v3709_v47 = vadd.f32 %v3677_v38, %v3617_v32  ;;  %v3148_v18 = vadd.f32 %v3147_v26, %v11689_v39  ;;  %5288 = vmatprep.mubr.bf16.mxu0 %v15759_v24 }
 0x395   : > { %6013 = vmatprep.subr.bf16.mxu1 %v9466_v53  ;;  %v3341_v25 = vadd.f32 %v3340_v27, %v11696_v41  ;;  %v3678_v36 = vadd.f32 %v3620_v4, %v3619_v40  ;;  %v3473_v30 = vmax.f32 %v3146_v55, 0.0  ;;  %v3475_v10 = vmax.f32 %v3339_v3, 0.0  ;;  %v3161_v32 = vpop.f32.mrf.mxu1  ;;  %v3354_v26 = vpop.f32.mrf.mxu0  ;;  %5095 = vmatprep.mubr.bf16.mxu1 %v15759_v24 }
 0x396   : > { %15934 = vst [vmem:[#allocation38_spill] sm:$0xff] %v12022_v16  ;;  %6014 = vmatpush1.bf16.msra.mxu1 %v9465_v31  ;;  %v9467_v1 = vcombine.low %v5816_v49, %v5818_v34  ;;  %v3741_v14 = vadd.f32 %v3709_v47, %v3618_v48  ;;  %v3474_v17 = vmax.f32 %v3148_v18, 0.0  ;;  %v9468_v28 = vcombine.high %v5816_v49, %v5818_v34 }
 0x397   : > { %v3476_v22 = vmax.f32 %v3341_v25, 0.0  ;;  %v3710_v27 = vadd.f32 %v3678_v36, %v3621_v58  ;;  %v3623_v45 = vmul.f32 %v11679_v12, %v3473_v30  ;;  %v3625_v40 = vmul.f32 %v11685_v29, %v3475_v10  ;;  %v12043_v49 = vpop.f32.mrf.mxu1  ;;  %v12045_v34 = vpop.f32.mrf.mxu0 }
 0x398   : > { %v3150_v31 = vadd.f32 %v11993_v46, %v11675_v59  ;;  %v12037_v48 = vadd.f32 %v3741_v14, %v11580_v9  ;;  %v3624_v38 = vmul.f32 %v11693_v33, %v3474_v17  ;;  %6206 = vmatprep.subr.bf16.mxu0 %v9468_v28  ;;  %v3343_v58 = vadd.f32 %v11995_v44, %v11682_v6 }
 0x399   : > { %v3626_v53 = vmul.f32 %v11699_v63, %v3476_v22  ;;  %v3742_v4 = vadd.f32 %v3710_v27, %v3622_v62  ;;  %6207 = vmatpush1.bf16.msra.mxu0 %v9467_v1  ;;  %v3152_v46 = vadd.f32 %v12002_v5, %v11689_v39  ;;  %v3345_v9 = vadd.f32 %v12004_v15, %v11696_v41  ;;  %v12053_v44 = vpop.f32.mrf.mxu1  ;;  %v12055_v36 = vpop.f32.mrf.mxu0 }
 0x39a   : > { %15935 = vst [vmem:[#allocation39_spill] sm:$0xff] %v12037_v48  ;;  %v3477_v55 = vmax.f32 %v3150_v31, 0.0  ;;  %v3679_v3 = vadd.f32 %v3624_v38, %v3623_v45  ;;  %v3479_v47 = vmax.f32 %v3343_v58, 0.0  ;;  %v3156_v18 = vadd.f32 %v3155_v2, %v11675_v59  ;;  %v15937_v45 = vld [vmem:[#allocation17_spill] sm:$0xff] }
 0x39b   : > { %v3349_v25 = vadd.f32 %v3348_v54, %v11682_v6  ;;  %v12058_v62 = vadd.f32 %v3742_v4, %v11597_v7  ;;  %v3478_v10 = vmax.f32 %v3152_v46, 0.0  ;;  %v3480_v5 = vmax.f32 %v3345_v9, 0.0  ;;  %v12062_v22 = vpop.f32.mrf.mxu1  ;;  %v12064_v2 = vpop.f32.mrf.mxu0  ;;  %5289 = vmatmul.mubr.bf16.gmra.mxu0 %v15937_v45  ;;  %5096 = vmatmul.mubr.bf16.gmra.mxu1 %v15937_v45 }
 0x39c   : > { %v3627_v30 = vmul.f32 %v11679_v12, %v3477_v55  ;;  %v3711_v1 = vadd.f32 %v3679_v3, %v3625_v40  ;;  %v3629_v15 = vmul.f32 %v11685_v29, %v3479_v47  ;;  %v3481_v14 = vmax.f32 %v3156_v18, 0.0  ;;  %v5811_v3 = vld [vmem:[#allocation7 + $0x450] sm:$0xff]  ;;  %5105 = vmatprep.mubr.bf16.mxu1 %v15759_v24  ;;  %5298 = vmatprep.mubr.bf16.mxu0 %v15759_v24  ;;  %v15938_v47 = vld [vmem:[#allocation45_spill] sm:$0xff] }
 0x39d   : > { %15936 = vst [vmem:[#allocation40_spill] sm:$0xff] %v12058_v62  ;;  %v3483_v17 = vmax.f32 %v3349_v25, 0.0  ;;  %v3628_v54 = vmul.f32 %v11693_v33, %v3478_v10  ;;  %v3630_v28 = vmul.f32 %v11699_v63, %v3480_v5  ;;  %v3158_v7 = vadd.f32 %v3157_v57, %v11689_v39  ;;  %v12075_v4 = vpop.f32.mrf.mxu1  ;;  %v12077_v55 = vpop.f32.mrf.mxu0 }
 0x39e   : > { %v3351_v27 = vadd.f32 %v3350_v61, %v11696_v41  ;;  %v3743_v31 = vadd.f32 %v3711_v1, %v3626_v53  ;;  %v3631_v40 = vmul.f32 %v11679_v12, %v3481_v14  ;;  %v3160_v58 = vadd.f32 %v3159_v21, %v11675_v59  ;;  %v5813_v53 = vld [vmem:[#allocation7 + $0x4d0] sm:$0xff] }
 0x39f   : > { %v3633_v38 = vmul.f32 %v11685_v29, %v3483_v17  ;;  %v3680_v46 = vadd.f32 %v3628_v54, %v3627_v30  ;;  %v3482_v9 = vmax.f32 %v3158_v7, 0.0  ;;  %v3353_v61 = vadd.f32 %v12026_v37, %v11682_v6  ;;  %v12088_v30 = vpop.f32.mrf.mxu1  ;;  %v12090_v5 = vpop.f32.mrf.mxu0 }
 0x3a0   : > { %v3484_v57 = vmax.f32 %v3351_v27, 0.0  ;;  %v12084_v21 = vadd.f32 %v3743_v31, %v15938_v47  ;;  %v3485_v18 = vmax.f32 %v3160_v58, 0.0  ;;  %v3162_v25 = vadd.f32 %v3161_v32, %v11689_v39 }
 0x3a1   : > { %v3355_v10 = vadd.f32 %v3354_v26, %v11696_v41  ;;  %v3712_v1 = vadd.f32 %v3680_v46, %v3629_v15  ;;  %v3632_v37 = vmul.f32 %v11693_v33, %v3482_v9  ;;  %v3487_v17 = vmax.f32 %v3353_v61, 0.0  ;;  %v12095_v58 = vpop.f32.mrf.mxu1  ;;  %v12097_v32 = vpop.f32.mrf.mxu0  ;;  %v5812_v15 = vld [vmem:[#allocation7 + $0x458] sm:$0xff] }
 0x3a2   : > { %15939 = vst [vmem:[#allocation41_spill] sm:$0xff] %v12084_v21  ;;  %v3634_v14 = vmul.f32 %v11699_v63, %v3484_v57  ;;  %v3635_v54 = vmul.f32 %v11679_v12, %v3485_v18  ;;  %v3486_v7 = vmax.f32 %v3162_v25, 0.0  ;;  %v9461_v31 = vcombine.low %v5811_v3, %v5813_v53  ;;  %v5814_v46 = vld [vmem:[#allocation7 + $0x4d8] sm:$0xff] }
 0x3a3   : > { %v3488_v27 = vmax.f32 %v3355_v10, 0.0  ;;  %v3744_v26 = vadd.f32 %v3712_v1, %v3630_v28  ;;  %v3681_v47 = vadd.f32 %v3632_v37, %v3631_v40  ;;  %v3637_v21 = vmul.f32 %v11685_v29, %v3487_v17  ;;  %v12106_v25 = vpop.f32.mrf.mxu1  ;;  %v12108_v10 = vpop.f32.mrf.mxu0  ;;  %v15940_v28 = vld [vmem:[#allocation46_spill] sm:$0xff] }
 0x3a4   : > { %v9462_v62 = vcombine.high %v5811_v3, %v5813_v53  ;;  %v3636_v9 = vmul.f32 %v11693_v33, %v3486_v7  ;;  %v3166_v61 = vadd.f32 %v12043_v49, %v11675_v59  ;;  %v3359_v18 = vadd.f32 %v12045_v34, %v11682_v6  ;;  %v15942_v7 = vld [vmem:[#allocation18_spill] sm:$0xff] }
 0x3a5   : > { %v3638_v57 = vmul.f32 %v11699_v63, %v3488_v27  ;;  %v12111_v40 = vadd.f32 %v3744_v26, %v15940_v28  ;;  %v3713_v3 = vadd.f32 %v3681_v47, %v3633_v38  ;;  %v3168_v53 = vadd.f32 %v12053_v44, %v11689_v39  ;;  %5299 = vmatmul.mubr.bf16.gmra.mxu0 %v15942_v7  ;;  %v12118_v27 = vpop.f32.mrf.mxu1  ;;  %v12120_v45 = vpop.f32.mrf.mxu0 }
 0x3a6   : > { %6015 = vmatprep.subr.bf16.mxu1 %v9462_v62  ;;  %v3361_v1 = vadd.f32 %v12055_v36, %v11696_v41  ;;  %v3682_v37 = vadd.f32 %v3636_v9, %v3635_v54  ;;  %v3489_v49 = vmax.f32 %v3166_v61, 0.0  ;;  %v3491_v17 = vmax.f32 %v3359_v18, 0.0  ;;  %5106 = vmatmul.mubr.bf16.gmra.mxu1 %v15942_v7  ;;  %v15943_v61 = vld [vmem:[#allocation48_spill] sm:$0xff] }
 0x3a7   : > { %15941 = vst [vmem:[#allocation42_spill] sm:$0xff] %v12111_v40  ;;  %6016 = vmatpush1.bf16.msra.mxu1 %v9461_v31  ;;  %v9463_v34 = vcombine.low %v5812_v15, %v5814_v46  ;;  %v3745_v26 = vadd.f32 %v3713_v3, %v3634_v14  ;;  %v3490_v38 = vmax.f32 %v3168_v53, 0.0  ;;  %v9464_v47 = vcombine.high %v5812_v15, %v5814_v46  ;;  %v12129_v9 = vpop.f32.mrf.mxu1  ;;  %v12131_v14 = vpop.f32.mrf.mxu0 }
 0x3a8   : > { %v3492_v62 = vmax.f32 %v3361_v1, 0.0  ;;  %5308 = vmatprep.mubr.bf16.mxu0 %v15759_v24  ;;  %v3714_v44 = vadd.f32 %v3682_v37, %v3637_v21  ;;  %v3639_v36 = vmul.f32 %v11679_v12, %v3489_v49  ;;  %v3641_v54 = vmul.f32 %v11685_v29, %v3491_v17  ;;  %5115 = vmatprep.mubr.bf16.mxu1 %v15759_v24 }
 0x3a9   : > { %v3170_v31 = vadd.f32 %v12062_v22, %v11675_v59  ;;  %v12134_v15 = vadd.f32 %v3745_v26, %v15943_v61  ;;  %v3640_v46 = vmul.f32 %v11693_v33, %v3490_v38  ;;  %6208 = vmatprep.subr.bf16.mxu0 %v9464_v47  ;;  %v3363_v18 = vadd.f32 %v12064_v2, %v11682_v6  ;;  %v12144_v1 = vpop.f32.mrf.mxu1  ;;  %v12146_v37 = vpop.f32.mrf.mxu0 }
 0x3aa   : > { %v3642_v21 = vmul.f32 %v11699_v63, %v3492_v62  ;;  %v3746_v28 = vadd.f32 %v3714_v44, %v3638_v57  ;;  %6209 = vmatpush1.bf16.msra.mxu0 %v9463_v34  ;;  %v3172_v22 = vadd.f32 %v12075_v4, %v11689_v39  ;;  %v3365_v53 = vadd.f32 %v12077_v55, %v11696_v41  ;;  %v15945_v57 = vld [vmem:[#allocation49_spill] sm:$0xff] }
 0x3ab   : > { %15944 = vst [vmem:[#allocation26_spill] sm:$0xff] %v12134_v15  ;;  %v3493_v3 = vmax.f32 %v3170_v31, 0.0  ;;  %v3683_v49 = vadd.f32 %v3640_v46, %v3639_v36  ;;  %v3495_v17 = vmax.f32 %v3363_v18, 0.0  ;;  %v3176_v26 = vadd.f32 %v12088_v30, %v11675_v59  ;;  %v12156_v55 = vpop.f32.mrf.mxu1  ;;  %v12158_v47 = vpop.f32.mrf.mxu0 }
 0x3ac   : > { %v3369_v2 = vadd.f32 %v12090_v5, %v11682_v6  ;;  %v12153_v34 = vadd.f32 %v3746_v28, %v15945_v57  ;;  %v3494_v38 = vmax.f32 %v3172_v22, 0.0  ;;  %v3496_v62 = vmax.f32 %v3365_v53, 0.0  ;;  %v15947_v28 = vld [vmem:[#allocation19_spill] sm:$0xff]  ;;  %v5807_v57 = vld [vmem:[#allocation7 + $0x350] sm:$0xff] }
 0x3ad   : > { %v3643_v4 = vmul.f32 %v11679_v12, %v3493_v3  ;;  %v3715_v44 = vadd.f32 %v3683_v49, %v3641_v54  ;;  %v3645_v36 = vmul.f32 %v11685_v29, %v3495_v17  ;;  %v3497_v31 = vmax.f32 %v3176_v26, 0.0  ;;  %5309 = vmatmul.mubr.bf16.gmra.mxu0 %v15947_v28  ;;  %v12168_v3 = vpop.f32.mrf.mxu1  ;;  %v12170_v22 = vpop.f32.mrf.mxu0 }
 0x3ae   : > { %15946 = vst [vmem:[#allocation43_spill] sm:$0xff] %v12153_v34  ;;  %v3499_v61 = vmax.f32 %v3369_v2, 0.0  ;;  %v3644_v30 = vmul.f32 %v11693_v33, %v3494_v38  ;;  %v3646_v5 = vmul.f32 %v11699_v63, %v3496_v62  ;;  %v3178_v46 = vadd.f32 %v12095_v58, %v11689_v39  ;;  %5116 = vmatmul.mubr.bf16.gmra.mxu1 %v15947_v28  ;;  %v5809_v38 = vld [vmem:[#allocation7 + $0x3d0] sm:$0xff] }
 0x3af   : > { %v3371_v18 = vadd.f32 %v12097_v32, %v11696_v41  ;;  %v3747_v54 = vadd.f32 %v3715_v44, %v3642_v21  ;;  %v3647_v53 = vmul.f32 %v11679_v12, %v3497_v31  ;;  %v3180_v17 = vadd.f32 %v12106_v25, %v11675_v59  ;;  %5125 = vmatprep.mubr.bf16.mxu1 %v15759_v24  ;;  %v12181_v21 = vpop.f32.mrf.mxu1  ;;  %v12183_v62 = vpop.f32.mrf.mxu0  ;;  %v15948_v44 = vld [vmem:[#allocation50_spill] sm:$0xff] }
 0x3b0   : > { %v3649_v49 = vmul.f32 %v11685_v29, %v3499_v61  ;;  %v3684_v58 = vadd.f32 %v3644_v30, %v3643_v4  ;;  %v3498_v26 = vmax.f32 %v3178_v46, 0.0  ;;  %v3373_v32 = vadd.f32 %v12108_v10, %v11682_v6  ;;  %5318 = vmatprep.mubr.bf16.mxu0 %v15759_v24  ;;  %v3815_v46 = vld [vmem:[#allocation8 + $0xc] sm:$0xf] }
 0x3b1   : > { %v3500_v2 = vmax.f32 %v3371_v18, 0.0  ;;  %v12186_v59 = vadd.f32 %v3747_v54, %v15948_v44  ;;  %v3501_v25 = vmax.f32 %v3180_v17, 0.0  ;;  %v3182_v4 = vadd.f32 %v12118_v27, %v11689_v39  ;;  %v4511_v18 = vld [vmem:[#allocation10 + $0xc] sm:$0xf]  ;;  %v12194_v34 = vpop.f32.mrf.mxu1  ;;  %v12196_v28 = vpop.f32.mrf.mxu0 }
 0x3b2   : > { %v3375_v6 = vadd.f32 %v12120_v45, %v11696_v41  ;;  %v3716_v10 = vadd.f32 %v3684_v58, %v3645_v36  ;;  %v3648_v31 = vmul.f32 %v11693_v33, %v3498_v26  ;;  %v3503_v30 = vmax.f32 %v3373_v32, 0.0  ;;  %v15950_v32 = vld [vmem:[#allocation27_spill] sm:$0xff] }
 0x3b3   : > { %15949 = vst [vmem:[#allocation44_spill] sm:$0xff] %v12186_v59  ;;  %v3650_v61 = vmul.f32 %v11699_v63, %v3500_v2  ;;  %v3651_v54 = vmul.f32 %v11679_v12, %v3501_v25  ;;  %v3502_v17 = vmax.f32 %v3182_v4, 0.0  ;;  %v9457_v39 = vcombine.low %v5807_v57, %v5809_v38  ;;  %v12200_v36 = vpop.f32.mrf.mxu1  ;;  %v12202_v58 = vpop.f32.mrf.mxu0  ;;  %v15951_v25 = vld [vmem:[#allocation52_spill] sm:$0xff]  ;;  %v5810_v4 = vld [vmem:[#allocation7 + $0x3d8] sm:$0xff] }
 0x3b4   : > { %v3504_v44 = vmax.f32 %v3375_v6, 0.0  ;;  %v3748_v27 = vadd.f32 %v3716_v10, %v3646_v5  ;;  %v3685_v59 = vadd.f32 %v3648_v31, %v3647_v53  ;;  %v3653_v41 = vmul.f32 %v11685_v29, %v3503_v30  ;;  %v15953_v29 = vld [vmem:[#allocation28_spill] sm:$0xff]  ;;  %v15954_v30 = vld [vmem:[#allocation29_spill] sm:$0xff] }
 0x3b5   : > { %v9458_v45 = vcombine.high %v5807_v57, %v5809_v38  ;;  %v3652_v26 = vmul.f32 %v11693_v33, %v3502_v17  ;;  %v12207_v15 = vrot.slane %v3815_v46, %v15950_v32  ;;  %v12210_v12 = vrot.slane %v4511_v18, %v15950_v32  ;;  %v5808_v33 = vld [vmem:[#allocation7 + $0x358] sm:$0xff]  ;;  %v12223_v6 = vpop.f32.mrf.mxu0 }
 0x3b6   : > { %v3654_v2 = vmul.f32 %v11699_v63, %v3504_v44  ;;  %v12213_v5 = vadd.f32 %v3748_v27, %v15951_v25  ;;  %v3717_v53 = vadd.f32 %v3685_v59, %v3649_v49  ;;  %v12216_v57 = vrot.slane %v3815_v46, %v15953_v29  ;;  %v12221_v63 = vpop.f32.mrf.mxu1  ;;  %v15955_v27 = vld [vmem:[#allocation30_spill] sm:$0xff] }
 0x3b7   : > { %6017 = vmatprep.subr.bf16.mxu1 %v9458_v45  ;;  %v12219_v38 = vrot.slane %v4511_v18, %v15953_v29  ;;  %v3686_v10 = vadd.f32 %v3652_v26, %v3651_v54  ;;  %v4032_v31 = vadd.f32 %v12129_v9, %v12207_v15  ;;  %v12228_v49 = vrot.slane %v3815_v46, %v15954_v30  ;;  %v15956_v54 = vld [vmem:[#allocation20_spill] sm:$0xff] }
 0x3b8   : > { %15952 = vst [vmem:[#allocation45_spill] sm:$0xff] %v12213_v5  ;;  %6018 = vmatpush1.bf16.msra.mxu1 %v9457_v39  ;;  %v12231_v59 = vrot.slane %v4511_v18, %v15954_v30  ;;  %v3749_v17 = vadd.f32 %v3717_v53, %v3650_v61  ;;  %v4225_v44 = vadd.f32 %v12131_v14, %v12216_v57  ;;  %v12242_v9 = vpop.f32.mrf.mxu1  ;;  %v12244_v39 = vpop.f32.mrf.mxu0  ;;  %v15957_v14 = vld [vmem:[#allocation53_spill] sm:$0xff] }
 0x3b9   : > { %v12236_v45 = vrot.slane %v3815_v46, %v15955_v27  ;;  %v12239_v25 = vrot.slane %v4511_v18, %v15955_v27  ;;  %5126 = vmatmul.mubr.bf16.gmra.mxu1 %v15956_v54  ;;  %v3718_v26 = vadd.f32 %v3686_v10, %v3653_v41  ;;  %v4383_v29 = vmax.f32 %v4032_v31, 0.0  ;;  %5319 = vmatmul.mubr.bf16.gmra.mxu0 %v15956_v54 }
 0x3ba   : > { %v4034_v61 = vadd.f32 %v12144_v1, %v12228_v49  ;;  %v9459_v53 = vcombine.low %v5808_v33, %v5810_v4  ;;  %5135 = vmatprep.mubr.bf16.mxu1 %v15759_v24  ;;  %v12251_v46 = vadd.f32 %v3749_v17, %v15957_v14  ;;  %v4385_v18 = vmax.f32 %v4225_v44, 0.0  ;;  %5328 = vmatprep.mubr.bf16.mxu0 %v15759_v24  ;;  %v12256_v41 = vpop.f32.mrf.mxu1  ;;  %v12258_v10 = vpop.f32.mrf.mxu0 }
 0x3bb   : > { %v4227_v27 = vadd.f32 %v12146_v37, %v12236_v45  ;;  %v9460_v30 = vcombine.high %v5808_v33, %v5810_v4  ;;  %v3750_v1 = vadd.f32 %v3718_v26, %v3654_v2  ;;  %v4533_v31 = vmul.f32 %v12210_v12, %v4383_v29  ;;  %v15959_v2 = vld [vmem:[#allocation14_spill] sm:$0xff] }
 0x3bc   : > { %15958 = vst [vmem:[#allocation46_spill] sm:$0xff] %v12251_v46  ;;  %v4384_v5 = vmax.f32 %v4034_v61, 0.0  ;;  %v4036_v32 = vadd.f32 %v12156_v55, %v12207_v15  ;;  %v4535_v17 = vmul.f32 %v12219_v38, %v4385_v18  ;;  %v4229_v37 = vadd.f32 %v12158_v47, %v12216_v57  ;;  %v12268_v4 = vpop.f32.mrf.mxu1  ;;  %v12270_v14 = vpop.f32.mrf.mxu0 }
 0x3bd   : > { %v4386_v44 = vmax.f32 %v4227_v27, 0.0  ;;  %6210 = vmatprep.subr.bf16.mxu0 %v9460_v30  ;;  %v4038_v33 = vadd.f32 %v12168_v3, %v12228_v49  ;;  %v12273_v29 = vadd.f32 %v3750_v1, %v15959_v2  ;;  %v4231_v30 = vadd.f32 %v12170_v22, %v12236_v45 }
 0x3be   : > { %v4534_v26 = vmul.f32 %v12231_v59, %v4384_v5  ;;  %v4387_v55 = vmax.f32 %v4036_v32, 0.0  ;;  %6211 = vmatpush1.bf16.msra.mxu0 %v9459_v53  ;;  %v4389_v47 = vmax.f32 %v4229_v37, 0.0  ;;  %v4042_v3 = vadd.f32 %v12181_v21, %v12207_v15  ;;  %v12281_v18 = vpop.f32.mrf.mxu1  ;;  %v12283_v46 = vpop.f32.mrf.mxu0  ;;  %v15961_v21 = vld [vmem:[#allocation21_spill] sm:$0xff] }
 0x3bf   : > { %15960 = vst [vmem:[#allocation48_spill] sm:$0xff] %v12273_v29  ;;  %v4536_v27 = vmul.f32 %v12239_v25, %v4386_v44  ;;  %v4388_v61 = vmax.f32 %v4038_v33, 0.0  ;;  %v4390_v5 = vmax.f32 %v4231_v30, 0.0  ;;  %v4235_v32 = vadd.f32 %v12183_v62, %v12216_v57 }
 0x3c0   : > { %v4661_v1 = vadd.f32 %v4534_v26, %v4533_v31  ;;  %v4537_v2 = vmul.f32 %v12210_v12, %v4387_v55  ;;  %v4539_v22 = vmul.f32 %v12219_v38, %v4389_v47  ;;  %v4391_v44 = vmax.f32 %v4042_v3, 0.0  ;;  %v12293_v33 = vpop.f32.mrf.mxu1  ;;  %v12295_v29 = vpop.f32.mrf.mxu0 }
 0x3c1   : > { %v4538_v53 = vmul.f32 %v12231_v59, %v4388_v61  ;;  %v4044_v37 = vadd.f32 %v12194_v34, %v12228_v49  ;;  %5136 = vmatmul.mubr.bf16.gmra.mxu1 %v15961_v21  ;;  %v4540_v26 = vmul.f32 %v12239_v25, %v4390_v5  ;;  %v4393_v55 = vmax.f32 %v4235_v32, 0.0  ;;  %5329 = vmatmul.mubr.bf16.gmra.mxu0 %v15961_v21  ;;  %v5805_v21 = vld [vmem:[#allocation7 + $0x2d0] sm:$0xff] }
 0x3c2   : > { %v4693_v31 = vadd.f32 %v4661_v1, %v4535_v17  ;;  %v4237_v62 = vadd.f32 %v12196_v28, %v12236_v45  ;;  %5145 = vmatprep.mubr.bf16.mxu1 %v15759_v24  ;;  %v4541_v34 = vmul.f32 %v12210_v12, %v4391_v44  ;;  %v4046_v61 = vadd.f32 %v12200_v36, %v12207_v15  ;;  %v12306_v17 = vpop.f32.mrf.mxu1  ;;  %v12308_v3 = vpop.f32.mrf.mxu0 }
 0x3c3   : > { %v4662_v30 = vadd.f32 %v4538_v53, %v4537_v2  ;;  %v4392_v47 = vmax.f32 %v4044_v37, 0.0  ;;  %5338 = vmatprep.mubr.bf16.mxu0 %v15759_v24  ;;  %v4543_v28 = vmul.f32 %v12219_v38, %v4393_v55  ;;  %v4239_v32 = vadd.f32 %v12202_v58, %v12216_v57  ;;  %v5803_v37 = vld [vmem:[#allocation7 + $0x250] sm:$0xff] }
 0x3c4   : > { %v4725_v1 = vadd.f32 %v4693_v31, %v4536_v27  ;;  %v4394_v5 = vmax.f32 %v4237_v62, 0.0  ;;  %v4395_v44 = vmax.f32 %v4046_v61, 0.0  ;;  %v4048_v36 = vadd.f32 %v12221_v63, %v12228_v49  ;;  %v12316_v54 = vpop.f32.mrf.mxu1  ;;  %v12318_v40 = vpop.f32.mrf.mxu0  ;;  %v15962_v27 = vld [vmem:[#allocation47_spill] sm:$0xff] }
 0x3c5   : > { %v4694_v2 = vadd.f32 %v4662_v30, %v4539_v22  ;;  %v4542_v53 = vmul.f32 %v12231_v59, %v4392_v47  ;;  %v4397_v62 = vmax.f32 %v4239_v32, 0.0  ;;  %v4241_v58 = vadd.f32 %v12223_v6, %v12236_v45  ;;  %v15964_v32 = vld [vmem:[#allocation51_spill] sm:$0xff] }
 0x3c6   : > { %v12321_v31 = vadd.f32 %v4725_v1, %v15962_v27  ;;  %v4544_v55 = vmul.f32 %v12239_v25, %v4394_v5  ;;  %v4545_v47 = vmul.f32 %v12210_v12, %v4395_v44  ;;  %v4396_v63 = vmax.f32 %v4048_v36, 0.0  ;;  %v12327_v61 = vpop.f32.mrf.mxu1  ;;  %v12329_v7 = vpop.f32.mrf.mxu0  ;;  %v5806_v5 = vld [vmem:[#allocation7 + $0x2d8] sm:$0xff] }
 0x3c7   : > { %v4726_v22 = vadd.f32 %v4694_v2, %v4540_v26  ;;  %v4663_v30 = vadd.f32 %v4542_v53, %v4541_v34  ;;  %v4547_v48 = vmul.f32 %v12219_v38, %v4397_v62  ;;  %v4398_v16 = vmax.f32 %v4241_v58, 0.0  ;;  %v15966_v2 = vld [vmem:[#allocation22_spill] sm:$0xff] }
 0x3c8   : > { %15963 = vst [vmem:[#allocation49_spill] sm:$0xff] %v12321_v31  ;;  %v9453_v1 = vcombine.low %v5803_v37, %v5805_v21  ;;  %v9454_v27 = vcombine.high %v5803_v37, %v5805_v21  ;;  %v5804_v31 = vld [vmem:[#allocation7 + $0x258] sm:$0xff]  ;;  %v4546_v26 = vmul.f32 %v12231_v59, %v4396_v63  ;;  %v4052_v34 = vadd.f32 %v12242_v9, %v12207_v15  ;;  %v12339_v53 = vpop.f32.mrf.mxu1  ;;  %v12341_v44 = vpop.f32.mrf.mxu0 }
 0x3c9   : > { %v12333_v51 = vadd.f32 %v4726_v22, %v15964_v32  ;;  %v4695_v6 = vadd.f32 %v4663_v30, %v4543_v28  ;;  %5146 = vmatmul.mubr.bf16.gmra.mxu1 %v15966_v2  ;;  %v4548_v36 = vmul.f32 %v12239_v25, %v4398_v16  ;;  %v4245_v21 = vadd.f32 %v12244_v39, %v12216_v57 }
 0x3ca   : > { %6019 = vmatprep.subr.bf16.mxu1 %v9454_v27  ;;  %v4054_v28 = vadd.f32 %v12256_v41, %v12228_v49  ;;  %v4247_v37 = vadd.f32 %v12258_v10, %v12236_v45  ;;  %v4664_v9 = vadd.f32 %v4546_v26, %v4545_v47  ;;  %v4399_v58 = vmax.f32 %v4052_v34, 0.0  ;;  %5339 = vmatmul.mubr.bf16.gmra.mxu0 %v15966_v2  ;;  %v12351_v30 = vpop.f32.mrf.mxu1  ;;  %v12353_v16 = vpop.f32.mrf.mxu0  ;;  %v15967_v41 = vld [vmem:[#allocation54_spill] sm:$0xff] }
 0x3cb   : > { %15965 = vst [vmem:[#allocation50_spill] sm:$0xff] %v12333_v51  ;;  %v4727_v62 = vadd.f32 %v4695_v6, %v4544_v55  ;;  %6020 = vmatpush1.bf16.msra.mxu1 %v9453_v1  ;;  %v9455_v22 = vcombine.low %v5804_v31, %v5806_v5  ;;  %v4401_v63 = vmax.f32 %v4245_v21, 0.0  ;;  %v9456_v32 = vcombine.high %v5804_v31, %v5806_v5 }
 0x3cc   : > { %v4400_v27 = vmax.f32 %v4054_v28, 0.0  ;;  %v4402_v39 = vmax.f32 %v4247_v37, 0.0  ;;  %5155 = vmatprep.mubr.bf16.mxu1 %v15759_v24  ;;  %5348 = vmatprep.mubr.bf16.mxu0 %v15759_v24  ;;  %v4696_v55 = vadd.f32 %v4664_v9, %v4547_v48  ;;  %v4549_v47 = vmul.f32 %v12210_v12, %v4399_v58  ;;  %v12363_v6 = vpop.f32.mrf.mxu1  ;;  %v12365_v26 = vpop.f32.mrf.mxu0 }
 0x3cd   : > { %v12358_v10 = vadd.f32 %v4727_v62, %v15967_v41  ;;  %v4056_v1 = vadd.f32 %v12268_v4, %v12207_v15  ;;  %v4551_v34 = vmul.f32 %v12219_v38, %v4401_v63  ;;  %6212 = vmatprep.subr.bf16.mxu0 %v9456_v32  ;;  %v4249_v21 = vadd.f32 %v12270_v14, %v12216_v57 }
 0x3ce   : > { %v4550_v31 = vmul.f32 %v12231_v59, %v4400_v27  ;;  %v4552_v5 = vmul.f32 %v12239_v25, %v4402_v39  ;;  %v4728_v48 = vadd.f32 %v4696_v55, %v4548_v36  ;;  %6213 = vmatpush1.bf16.msra.mxu0 %v9455_v22  ;;  %v4058_v4 = vadd.f32 %v12281_v18, %v12228_v49  ;;  %v12376_v62 = vpop.f32.mrf.mxu1  ;;  %v12378_v9 = vpop.f32.mrf.mxu0  ;;  %v15969_v36 = vld [vmem:[#allocation55_spill] sm:$0xff] }
 0x3cf   : > { %15968 = vst [vmem:[#allocation52_spill] sm:$0xff] %v12358_v10  ;;  %v4403_v28 = vmax.f32 %v4056_v1, 0.0  ;;  %v4251_v37 = vadd.f32 %v12283_v46, %v12236_v45  ;;  %v4405_v63 = vmax.f32 %v4249_v21, 0.0  ;;  %v4062_v27 = vadd.f32 %v12293_v33, %v12207_v15  ;;  %v15971_v46 = vld [vmem:[#allocation23_spill] sm:$0xff] }
 0x3d0   : > { %v4665_v58 = vadd.f32 %v4550_v31, %v4549_v47  ;;  %v4255_v14 = vadd.f32 %v12295_v29, %v12216_v57  ;;  %v12385_v22 = vadd.f32 %v4728_v48, %v15969_v36  ;;  %v4404_v39 = vmax.f32 %v4058_v4, 0.0  ;;  %v12389_v41 = vpop.f32.mrf.mxu1  ;;  %v12391_v55 = vpop.f32.mrf.mxu0 }
 0x3d1   : > { %v4553_v18 = vmul.f32 %v12210_v12, %v4403_v28  ;;  %v4406_v32 = vmax.f32 %v4251_v37, 0.0  ;;  %5156 = vmatmul.mubr.bf16.gmra.mxu1 %v15971_v46  ;;  %v4555_v1 = vmul.f32 %v12219_v38, %v4405_v63  ;;  %v4407_v33 = vmax.f32 %v4062_v27, 0.0 }
 0x3d2   : > { %15970 = vst [vmem:[#allocation53_spill] sm:$0xff] %v12385_v22  ;;  %v4697_v47 = vadd.f32 %v4665_v58, %v4551_v34  ;;  %v4409_v31 = vmax.f32 %v4255_v14, 0.0  ;;  %5165 = vmatprep.mubr.bf16.mxu1 %v15759_v24  ;;  %v4554_v29 = vmul.f32 %v12231_v59, %v4404_v39  ;;  %v4064_v48 = vadd.f32 %v12306_v17, %v12228_v49  ;;  %v12402_v4 = vpop.f32.mrf.mxu1  ;;  %v12404_v34 = vpop.f32.mrf.mxu0  ;;  %v5799_v39 = vld [vmem:[#allocation7 + $0x150] sm:$0xff] }
 0x3d3   : > { %v4556_v21 = vmul.f32 %v12239_v25, %v4406_v32  ;;  %v4257_v28 = vadd.f32 %v12308_v3, %v12236_v45  ;;  %5349 = vmatmul.mubr.bf16.gmra.mxu0 %v15971_v46  ;;  %v4557_v58 = vmul.f32 %v12210_v12, %v4407_v33  ;;  %v4066_v27 = vadd.f32 %v12316_v54, %v12207_v15  ;;  %v5801_v32 = vld [vmem:[#allocation7 + $0x1d0] sm:$0xff] }
 0x3d4   : > { %v4729_v37 = vadd.f32 %v4697_v47, %v4552_v5  ;;  %v4559_v63 = vmul.f32 %v12219_v38, %v4409_v31  ;;  %5358 = vmatprep.mubr.bf16.mxu0 %v15759_v24  ;;  %v4666_v17 = vadd.f32 %v4554_v29, %v4553_v18  ;;  %v4408_v14 = vmax.f32 %v4064_v48, 0.0  ;;  %v12413_v22 = vpop.f32.mrf.mxu1  ;;  %v12415_v5 = vpop.f32.mrf.mxu0  ;;  %v15972_v47 = vld [vmem:[#allocation56_spill] sm:$0xff] }
 0x3d5   : > { %v4410_v36 = vmax.f32 %v4257_v28, 0.0  ;;  %v4259_v3 = vadd.f32 %v12318_v40, %v12216_v57  ;;  %v4411_v31 = vmax.f32 %v4066_v27, 0.0  ;;  %v4068_v54 = vadd.f32 %v12327_v61, %v12228_v49 }
 0x3d6   : > { %v12418_v33 = vadd.f32 %v4729_v37, %v15972_v47  ;;  %v4261_v18 = vadd.f32 %v12329_v7, %v12236_v45  ;;  %v4698_v29 = vadd.f32 %v4666_v17, %v4555_v1  ;;  %v4558_v48 = vmul.f32 %v12231_v59, %v4408_v14  ;;  %v12426_v10 = vpop.f32.mrf.mxu1  ;;  %v12428_v51 = vpop.f32.mrf.mxu0  ;;  %v5800_v1 = vld [vmem:[#allocation7 + $0x158] sm:$0xff]  ;;  %v15974_v14 = vld [vmem:[#allocation24_spill] sm:$0xff] }
 0x3d7   : > { %v4560_v40 = vmul.f32 %v12239_v25, %v4410_v36  ;;  %v4413_v28 = vmax.f32 %v4259_v3, 0.0  ;;  %v4561_v37 = vmul.f32 %v12210_v12, %v4411_v31  ;;  %v4412_v47 = vmax.f32 %v4068_v54, 0.0  ;;  %v5802_v17 = vld [vmem:[#allocation7 + $0x1d8] sm:$0xff] }
 0x3d8   : > { %15973 = vst [vmem:[#allocation14_spill] sm:$0xff] %v12418_v33  ;;  %v4414_v27 = vmax.f32 %v4261_v18, 0.0  ;;  %v9449_v33 = vcombine.low %v5799_v39, %v5801_v32  ;;  %v4730_v46 = vadd.f32 %v4698_v29, %v4556_v21  ;;  %v4667_v61 = vadd.f32 %v4558_v48, %v4557_v58  ;;  %v12433_v36 = vpop.f32.mrf.mxu1  ;;  %v12435_v3 = vpop.f32.mrf.mxu0  ;;  %v15975_v58 = vld [vmem:[#allocation57_spill] sm:$0xff] }
 0x3d9   : > { %v4563_v2 = vmul.f32 %v12219_v38, %v4413_v28  ;;  %v9450_v7 = vcombine.high %v5799_v39, %v5801_v32  ;;  %5166 = vmatmul.mubr.bf16.gmra.mxu1 %v15974_v14  ;;  %v4562_v11 = vmul.f32 %v12231_v59, %v4412_v47  ;;  %v4072_v54 = vadd.f32 %v12339_v53, %v12207_v15 }
 0x3da   : > { %v4564_v31 = vmul.f32 %v12239_v25, %v4414_v27  ;;  %v4265_v21 = vadd.f32 %v12341_v44, %v12216_v57  ;;  %5175 = vmatprep.mubr.bf16.mxu1 %v15759_v24  ;;  %v12445_v39 = vadd.f32 %v4730_v46, %v15975_v58  ;;  %v4699_v32 = vadd.f32 %v4667_v61, %v4559_v63  ;;  %v12451_v48 = vpop.f32.mrf.mxu1  ;;  %v12453_v28 = vpop.f32.mrf.mxu0 }
 0x3db   : > { %6021 = vmatprep.subr.bf16.mxu1 %v9450_v7  ;;  %v4074_v18 = vadd.f32 %v12351_v30, %v12228_v49  ;;  %v4267_v29 = vadd.f32 %v12353_v16, %v12236_v45  ;;  %v4668_v53 = vadd.f32 %v4562_v11, %v4561_v37  ;;  %v4415_v47 = vmax.f32 %v4072_v54, 0.0  ;;  %5359 = vmatmul.mubr.bf16.gmra.mxu0 %v15974_v14  ;;  %v15977_v37 = vld [vmem:[#allocation58_spill] sm:$0xff]  ;;  %v5798_v14 = vld [vmem:[#allocation7 + $0xd8] sm:$0xff] }
 0x3dc   : > { %15976 = vst [vmem:[#allocation47_spill] sm:$0xff] %v12445_v39  ;;  %v4417_v44 = vmax.f32 %v4265_v21, 0.0  ;;  %6022 = vmatpush1.bf16.msra.mxu1 %v9449_v33  ;;  %v9451_v27 = vcombine.low %v5800_v1, %v5802_v17  ;;  %v4731_v46 = vadd.f32 %v4699_v32, %v4560_v40  ;;  %v9452_v7 = vcombine.high %v5800_v1, %v5802_v17  ;;  %v12457_v30 = vpop.f32.mrf.mxu1  ;;  %v12459_v16 = vpop.f32.mrf.mxu0 }
 0x3dd   : > { %v4416_v63 = vmax.f32 %v4074_v18, 0.0  ;;  %v4418_v61 = vmax.f32 %v4267_v29, 0.0  ;;  %5368 = vmatprep.mubr.bf16.mxu0 %v15759_v24  ;;  %v4700_v58 = vadd.f32 %v4668_v53, %v4563_v2  ;;  %v4565_v39 = vmul.f32 %v12210_v12, %v4415_v47 }
 0x3de   : > { %v4567_v11 = vmul.f32 %v12219_v38, %v4417_v44  ;;  %v4076_v33 = vadd.f32 %v12363_v6, %v12207_v15  ;;  %v12466_v54 = vadd.f32 %v4731_v46, %v15977_v37  ;;  %6214 = vmatprep.subr.bf16.mxu0 %v9452_v7  ;;  %v4269_v17 = vadd.f32 %v12365_v26, %v12216_v57  ;;  %v12472_v21 = vpop.f32.mrf.mxu1  ;;  %v12474_v2 = vpop.f32.mrf.mxu0  ;;  %v15979_v46 = vld [vmem:[#allocation25_spill] sm:$0xff] }
 0x3df   : > { %v4566_v40 = vmul.f32 %v12231_v59, %v4416_v63  ;;  %v4568_v1 = vmul.f32 %v12239_v25, %v4418_v61  ;;  %v4732_v32 = vadd.f32 %v4700_v58, %v4564_v31  ;;  %6215 = vmatpush1.bf16.msra.mxu0 %v9451_v27  ;;  %v4078_v6 = vadd.f32 %v12376_v62, %v12228_v49  ;;  %v15980_v27 = vld [vmem:[#allocation31_spill] sm:$0xff] }
 0x3e0   : > { %15978 = vst [vmem:[#allocation51_spill] sm:$0xff] %v12466_v54  ;;  %v4419_v18 = vmax.f32 %v4076_v33, 0.0  ;;  %v4271_v29 = vadd.f32 %v12378_v9, %v12236_v45  ;;  %v4421_v47 = vmax.f32 %v4269_v17, 0.0  ;;  %v4082_v44 = vadd.f32 %v12389_v41, %v12207_v15  ;;  %v12485_v63 = vpop.f32.mrf.mxu1  ;;  %v12487_v31 = vpop.f32.mrf.mxu0 }
 0x3e1   : > { %v4669_v53 = vadd.f32 %v4566_v40, %v4565_v39  ;;  %v4275_v26 = vadd.f32 %v12391_v55, %v12216_v57  ;;  %5176 = vmatmul.mubr.bf16.gmra.mxu1 %v15979_v46  ;;  %v12490_v61 = vadd.f32 %v4732_v32, %v15980_v27  ;;  %v4420_v9 = vmax.f32 %v4078_v6, 0.0 }
 0x3e2   : > { %v4569_v62 = vmul.f32 %v12210_v12, %v4419_v18  ;;  %v4422_v39 = vmax.f32 %v4271_v29, 0.0  ;;  %5185 = vmatprep.mubr.bf16.mxu1 %v15759_v24  ;;  %v4571_v41 = vmul.f32 %v12219_v38, %v4421_v47  ;;  %v4423_v58 = vmax.f32 %v4082_v44, 0.0  ;;  %v12495_v33 = vpop.f32.mrf.mxu1  ;;  %v12497_v37 = vpop.f32.mrf.mxu0 }
 0x3e3   : > { %15981 = vst [vmem:[#allocation54_spill] sm:$0xff] %v12490_v61  ;;  %v4701_v7 = vadd.f32 %v4669_v53, %v4567_v11  ;;  %v4425_v55 = vmax.f32 %v4275_v26, 0.0  ;;  %v4570_v40 = vmul.f32 %v12231_v59, %v4420_v9  ;;  %v4084_v32 = vadd.f32 %v12402_v4, %v12228_v49  ;;  %5369 = vmatmul.mubr.bf16.gmra.mxu0 %v15979_v46  ;;  %v5797_v9 = vld [vmem:[#allocation7 + $0xd0] sm:$0xff] }
 0x3e4   : > { %v4572_v17 = vmul.f32 %v12239_v25, %v4422_v39  ;;  %v4277_v18 = vadd.f32 %v12404_v34, %v12236_v45  ;;  %v4573_v6 = vmul.f32 %v12210_v12, %v4423_v58  ;;  %v4086_v53 = vadd.f32 %v12413_v22, %v12207_v15  ;;  %5378 = vmatprep.mubr.bf16.mxu0 %v15759_v24  ;;  %v12511_v47 = vpop.f32.mrf.mxu1  ;;  %v12513_v44 = vpop.f32.mrf.mxu0  ;;  %v15982_v39 = vld [vmem:[#allocation32_spill] sm:$0xff] }
 0x3e5   : > { %v4733_v11 = vadd.f32 %v4701_v7, %v4568_v1  ;;  %v4575_v29 = vmul.f32 %v12219_v38, %v4425_v55  ;;  %v4670_v4 = vadd.f32 %v4570_v40, %v4569_v62  ;;  %v4424_v26 = vmax.f32 %v4084_v32, 0.0  ;;  %v5795_v1 = vld [vmem:[#allocation7 + $0x50] sm:$0xff] }
 0x3e6   : > { %v4426_v27 = vmax.f32 %v4277_v18, 0.0  ;;  %v4279_v34 = vadd.f32 %v12415_v5, %v12216_v57  ;;  %v4427_v58 = vmax.f32 %v4086_v53, 0.0  ;;  %v4088_v22 = vadd.f32 %v12426_v10, %v12228_v49  ;;  %v12524_v61 = vpop.f32.mrf.mxu1  ;;  %v12526_v62 = vpop.f32.mrf.mxu0 }
 0x3e7   : > { %v12518_v7 = vadd.f32 %v4733_v11, %v15982_v39  ;;  %v4281_v55 = vadd.f32 %v12428_v51, %v12236_v45  ;;  %v4702_v40 = vadd.f32 %v4670_v4, %v4571_v41  ;;  %v4574_v32 = vmul.f32 %v12231_v59, %v4424_v26  ;;  %v5796_v26 = vld [vmem:[#allocation7 + $0x58] sm:$0xff] }
 0x3e8   : > { %v4576_v5 = vmul.f32 %v12239_v25, %v4426_v27  ;;  %v4429_v18 = vmax.f32 %v4279_v34, 0.0  ;;  %v4577_v11 = vmul.f32 %v12210_v12, %v4427_v58  ;;  %v4428_v39 = vmax.f32 %v4088_v22, 0.0  ;;  %v12532_v10 = vpop.f32.mrf.mxu1  ;;  %v12534_v51 = vpop.f32.mrf.mxu0 }
 0x3e9   : > { %15983 = vst [vmem:[#allocation55_spill] sm:$0xff] %v12518_v7  ;;  %v4430_v53 = vmax.f32 %v4281_v55, 0.0  ;;  %v9445_v7 = vcombine.low %v5795_v1, %v5797_v9  ;;  %5186 = vmatmul.mubr.bf16.gmra.mxu1 %v15926_v20  ;;  %v4734_v54 = vadd.f32 %v4702_v40, %v4572_v17  ;;  %v4671_v46 = vadd.f32 %v4574_v32, %v4573_v6 }
 0x3ea   : > { %v4579_v41 = vmul.f32 %v12219_v38, %v4429_v18  ;;  %v9446_v4 = vcombine.high %v5795_v1, %v5797_v9  ;;  %6041 = vmatprep.mubr.bf16.mxu1 %v15759_v24  ;;  %v4578_v27 = vmul.f32 %v12231_v59, %v4428_v39  ;;  %v4092_v58 = vadd.f32 %v12433_v36, %v12207_v15  ;;  %v12544_v55 = vpop.f32.mrf.mxu1  ;;  %v12546_v17 = vpop.f32.mrf.mxu0 }
 0x3eb   : > { %v4580_v34 = vmul.f32 %v12239_v25, %v4430_v53  ;;  %v4285_v22 = vadd.f32 %v12435_v3, %v12216_v57  ;;  %v12549_v6 = vadd.f32 %v4734_v54, %v11855_v42  ;;  %v4703_v1 = vadd.f32 %v4671_v46, %v4575_v29  ;;  %5379 = vmatmul.mubr.bf16.gmra.mxu0 %v15926_v20 }
 0x3ec   : > { %6023 = vmatprep.subr.bf16.mxu1 %v9446_v4  ;;  %v4094_v9 = vadd.f32 %v12451_v48, %v12228_v49  ;;  %v4287_v40 = vadd.f32 %v12453_v28, %v12236_v45  ;;  %v4672_v32 = vadd.f32 %v4578_v27, %v4577_v11  ;;  %v4431_v36 = vmax.f32 %v4092_v58, 0.0  ;;  %v12556_v39 = vpop.f32.mrf.mxu1  ;;  %v12558_v53 = vpop.f32.mrf.mxu0  ;;  %6234 = vmatprep.mubr.bf16.mxu0 %v15759_v24 }
 0x3ed   : > { %15984 = vst [vmem:[#allocation56_spill] sm:$0xff] %v12549_v6  ;;  %v4433_v18 = vmax.f32 %v4285_v22, 0.0  ;;  %6024 = vmatpush1.bf16.msra.mxu1 %v9445_v7  ;;  %v9447_v3 = vcombine.low %v5796_v26, %v5798_v14  ;;  %v4735_v42 = vadd.f32 %v4703_v1, %v4576_v5  ;;  %v9448_v29 = vcombine.high %v5796_v26, %v5798_v14 }
 0x3ee   : > { %v4432_v54 = vmax.f32 %v4094_v9, 0.0  ;;  %v4434_v46 = vmax.f32 %v4287_v40, 0.0  ;;  %v4704_v48 = vadd.f32 %v4672_v32, %v4579_v41  ;;  %v4581_v28 = vmul.f32 %v12210_v12, %v4431_v36  ;;  %v12565_v4 = vpop.f32.mrf.mxu1  ;;  %v12567_v27 = vpop.f32.mrf.mxu0 }
 0x3ef   : > { %v4583_v11 = vmul.f32 %v12219_v38, %v4433_v18  ;;  %v4096_v7 = vadd.f32 %v12457_v30, %v12207_v15  ;;  %v12570_v58 = vadd.f32 %v4735_v42, %v11867_v60  ;;  %6216 = vmatprep.subr.bf16.mxu0 %v9448_v29  ;;  %v4289_v41 = vadd.f32 %v12459_v16, %v12216_v57 }
 0x3f0   : > { %v4582_v5 = vmul.f32 %v12231_v59, %v4432_v54  ;;  %v4584_v14 = vmul.f32 %v12239_v25, %v4434_v46  ;;  %v4736_v26 = vadd.f32 %v4704_v48, %v4580_v34  ;;  %6217 = vmatpush1.bf16.msra.mxu0 %v9447_v3  ;;  %v4098_v30 = vadd.f32 %v12472_v21, %v12228_v49  ;;  %v12581_v60 = vpop.f32.mrf.mxu1  ;;  %v12583_v9 = vpop.f32.mrf.mxu0  ;;  %v15985_v21 = vld [vmem:[#allocation34_spill] sm:$0xff] }
 0x3f1   : > { %v4435_v22 = vmax.f32 %v4096_v7, 0.0  ;;  %v4291_v1 = vadd.f32 %v12474_v2, %v12236_v45  ;;  %6042 = vmatmul.mubr.bf16.vlgmr.msra.gmra.mxu1 %v10314_v52  ;;  %v4437_v32 = vmax.f32 %v4289_v41, 0.0  ;;  %v4102_v16 = vadd.f32 %v12485_v63, %v12207_v15 }
 0x3f2   : > { %v4673_v40 = vadd.f32 %v4582_v5, %v4581_v28  ;;  %v4295_v34 = vadd.f32 %v12487_v31, %v12216_v57  ;;  %6051 = vmatprep.mubr.bf16.mxu1 %v15759_v24  ;;  %v12591_v36 = vadd.f32 %v4736_v26, %v15985_v21  ;;  %v4436_v18 = vmax.f32 %v4098_v30, 0.0  ;;  %v12594_v42 = vpop.f32.mrf.mxu1  ;;  %v12596_v54 = vpop.f32.mrf.mxu0 }
 0x3f3   : > { %v4585_v2 = vmul.f32 %v12210_v12, %v4435_v22  ;;  %v4438_v3 = vmax.f32 %v4291_v1, 0.0  ;;  %v4587_v29 = vmul.f32 %v12219_v38, %v4437_v32  ;;  %v4439_v63 = vmax.f32 %v4102_v16, 0.0  ;;  %6235 = vmatmul.mubr.bf16.vlgmr.msra.gmra.mxu0 %v10314_v52  ;;  %v6829_v16 = vld [vmem:[#allocation7 + $0x760] sm:$0xff] }
 0x3f4   : > { %15986 = vst [vmem:[#allocation57_spill] sm:$0xff] %v12591_v36  ;;  %v4705_v46 = vadd.f32 %v4673_v40, %v4583_v11  ;;  %v4441_v48 = vmax.f32 %v4295_v34, 0.0  ;;  %v4586_v31 = vmul.f32 %v12231_v59, %v4436_v18  ;;  %v4104_v7 = vadd.f32 %v12495_v33, %v12228_v49  ;;  %v12606_v41 = vpop.f32.mrf.mxu1  ;;  %v12608_v26 = vpop.f32.mrf.mxu0  ;;  %6244 = vmatprep.mubr.bf16.mxu0 %v15759_v24  ;;  %v6831_v34 = vld [vmem:[#allocation7 + $0x7e0] sm:$0xff]  ;;  %v15987_v18 = vld [vmem:[#allocation35_spill] sm:$0xff] }
 0x3f5   : > { %v4588_v28 = vmul.f32 %v12239_v25, %v4438_v3  ;;  %v4297_v5 = vadd.f32 %v12497_v37, %v12236_v45  ;;  %v4589_v22 = vmul.f32 %v12210_v12, %v4439_v63  ;;  %v4106_v1 = vadd.f32 %v12511_v47, %v12207_v15 }
 0x3f6   : > { %v4737_v11 = vadd.f32 %v4705_v46, %v4584_v14  ;;  %v4591_v30 = vmul.f32 %v12219_v38, %v4441_v48  ;;  %v4674_v33 = vadd.f32 %v4586_v31, %v4585_v2  ;;  %v4440_v40 = vmax.f32 %v4104_v7, 0.0  ;;  %v12617_v21 = vpop.f32.mrf.mxu1  ;;  %v12619_v14 = vpop.f32.mrf.mxu0 }
 0x3f7   : > { %v4442_v32 = vmax.f32 %v4297_v5, 0.0  ;;  %v4299_v37 = vadd.f32 %v12513_v44, %v12216_v57  ;;  %v4443_v46 = vmax.f32 %v4106_v1, 0.0  ;;  %v4108_v47 = vadd.f32 %v12524_v61, %v12228_v49 }
 0x3f8   : > { %v12622_v3 = vadd.f32 %v4737_v11, %v15987_v18  ;;  %v4301_v2 = vadd.f32 %v12526_v62, %v12236_v45  ;;  %v4706_v63 = vadd.f32 %v4674_v33, %v4587_v29  ;;  %v4590_v48 = vmul.f32 %v12231_v59, %v4440_v40  ;;  %v12631_v7 = vpop.f32.mrf.mxu1  ;;  %v12633_v5 = vpop.f32.mrf.mxu0 }
 0x3f9   : > { %v4592_v44 = vmul.f32 %v12239_v25, %v4442_v32  ;;  %v4445_v31 = vmax.f32 %v4299_v37, 0.0  ;;  %6052 = vmatmul.mubr.bf16.gmra.mxu1 %v10329_v13  ;;  %v4593_v11 = vmul.f32 %v12210_v12, %v4443_v46  ;;  %v4444_v1 = vmax.f32 %v4108_v47, 0.0  ;;  %v6830_v32 = vld [vmem:[#allocation7 + $0x768] sm:$0xff] }
 0x3fa   : > { %15988 = vst [vmem:[#allocation58_spill] sm:$0xff] %v12622_v3  ;;  %v4446_v18 = vmax.f32 %v4301_v2, 0.0  ;;  %v9505_v61 = vcombine.low %v6829_v16, %v6831_v34  ;;  %6061 = vmatprep.mubr.bf16.mxu1 %v15759_v24  ;;  %v4738_v62 = vadd.f32 %v4706_v63, %v4588_v28  ;;  %v4675_v29 = vadd.f32 %v4590_v48, %v4589_v22  ;;  %v6832_v37 = vld [vmem:[#allocation7 + $0x7e8] sm:$0xff]  ;;  %v12638_v36 = vpop.f32.mrf.mxu1  ;;  %v12640_v6 = vpop.f32.mrf.mxu0 }
 0x3fb   : > { %v4595_v33 = vmul.f32 %v12219_v38, %v4445_v31  ;;  %v9506_v40 = vcombine.high %v6829_v16, %v6831_v34  ;;  %v4594_v3 = vmul.f32 %v12231_v59, %v4444_v1  ;;  %v4112_v47 = vadd.f32 %v12532_v10, %v12207_v15  ;;  %6245 = vmatmul.mubr.bf16.gmra.mxu0 %v10329_v13 }
 0x3fc   : > { %v4596_v46 = vmul.f32 %v12239_v25, %v4446_v18  ;;  %v4305_v28 = vadd.f32 %v12534_v51, %v12216_v57  ;;  %v12649_v22 = vadd.f32 %v4738_v62, %v11907_v50  ;;  %v4707_v16 = vadd.f32 %v4675_v29, %v4591_v30  ;;  %v12655_v63 = vpop.f32.mrf.mxu1  ;;  %v12657_v48 = vpop.f32.mrf.mxu0  ;;  %6254 = vmatprep.mubr.bf16.mxu0 %v15759_v24 }
 0x3fd   : > { %7015 = vmatprep.subr.bf16.mxu1 %v9506_v40  ;;  %v4114_v34 = vadd.f32 %v12544_v55, %v12228_v49  ;;  %v4307_v2 = vadd.f32 %v12546_v17, %v12236_v45  ;;  %v4676_v31 = vadd.f32 %v4594_v3, %v4593_v11  ;;  %v4447_v10 = vmax.f32 %v4112_v47, 0.0 }
 0x3fe   : > { %15989 = vst [vmem:[#allocation31_spill] sm:$0xff] %v12649_v22  ;;  %v4449_v1 = vmax.f32 %v4305_v28, 0.0  ;;  %7016 = vmatpush1.bf16.msra.mxu1 %v9505_v61  ;;  %v9507_v51 = vcombine.low %v6830_v32, %v6832_v37  ;;  %v4739_v50 = vadd.f32 %v4707_v16, %v4592_v44  ;;  %v9508_v62 = vcombine.high %v6830_v32, %v6832_v37  ;;  %v12661_v55 = vpop.f32.mrf.mxu1  ;;  %v12663_v17 = vpop.f32.mrf.mxu0 }
 0x3ff   : > { %v4448_v30 = vmax.f32 %v4114_v34, 0.0  ;;  %v4450_v18 = vmax.f32 %v4307_v2, 0.0  ;;  %v4708_v29 = vadd.f32 %v4676_v31, %v4595_v33  ;;  %v4597_v40 = vmul.f32 %v12210_v12, %v4447_v10 }
 0x400   : > { %v4599_v3 = vmul.f32 %v12219_v38, %v4449_v1  ;;  %v4116_v11 = vadd.f32 %v12556_v39, %v12207_v15  ;;  %v12670_v61 = vadd.f32 %v4739_v50, %v11919_v8  ;;  %7208 = vmatprep.subr.bf16.mxu0 %v9508_v62  ;;  %v4309_v37 = vadd.f32 %v12558_v53, %v12216_v57 }
 0x401   : > { %v4598_v44 = vmul.f32 %v12231_v59, %v4448_v30  ;;  %v4600_v32 = vmul.f32 %v12239_v25, %v4450_v18  ;;  %v12676_v47 = vpop.f32.mrf.mxu0  ;;  %v4740_v33 = vadd.f32 %v4708_v29, %v4596_v46  ;;  %7209 = vmatpush1.bf16.msra.mxu0 %v9507_v51  ;;  %v4118_v16 = vadd.f32 %v12565_v4, %v12228_v49  ;;  %v12683_v39 = vpop.f32.mrf.mxu1  ;;  %v15990_v4 = vld [vmem:[#allocation33_spill] sm:$0xff] }
 0x402   : > { %v4451_v28 = vmax.f32 %v4116_v11, 0.0  ;;  %v4311_v8 = vadd.f32 %v12567_v27, %v12236_v45  ;;  %6062 = vmatmul.mubr.bf16.gmra.mxu1 %v10343_v43  ;;  %v4453_v2 = vmax.f32 %v4309_v37, 0.0  ;;  %v4122_v53 = vadd.f32 %v12581_v60, %v12207_v15 }
 0x403   : > { %v4677_v34 = vadd.f32 %v4598_v44, %v4597_v40  ;;  %v4315_v46 = vadd.f32 %v12583_v9, %v12216_v57  ;;  %6071 = vmatprep.mubr.bf16.mxu1 %v15759_v24  ;;  %v12690_v31 = vpop.f32.mrf.mxu0  ;;  %v12693_v10 = vadd.f32 %v4740_v33, %v15990_v4  ;;  %v4452_v1 = vmax.f32 %v4118_v16, 0.0  ;;  %v12696_v50 = vpop.f32.mrf.mxu1  ;;  %6255 = vmatmul.mubr.bf16.gmra.mxu0 %v10343_v43  ;;  %v15992_v4 = vld [vmem:[#allocation36_spill] sm:$0xff] }
 0x404   : > { %v4601_v27 = vmul.f32 %v12210_v12, %v4451_v28  ;;  %v4454_v51 = vmax.f32 %v4311_v8, 0.0  ;;  %v4603_v18 = vmul.f32 %v12219_v38, %v4453_v2  ;;  %v4455_v60 = vmax.f32 %v4122_v53, 0.0  ;;  %6264 = vmatprep.mubr.bf16.mxu0 %v15759_v24  ;;  %v6825_v53 = vld [vmem:[#allocation7 + $0x660] sm:$0xff] }
 0x405   : > { %15991 = vst [vmem:[#allocation32_spill] sm:$0xff] %v12693_v10  ;;  %v4709_v30 = vadd.f32 %v4677_v34, %v4599_v3  ;;  %v4457_v62 = vmax.f32 %v4315_v46, 0.0  ;;  %v12699_v29 = vpop.f32.mrf.mxu0  ;;  %v4602_v9 = vmul.f32 %v12231_v59, %v4452_v1  ;;  %v4124_v11 = vadd.f32 %v12594_v42, %v12228_v49  ;;  %v12708_v37 = vpop.f32.mrf.mxu1  ;;  %v6827_v46 = vld [vmem:[#allocation7 + $0x6e0] sm:$0xff] }
 0x406   : > { %v4604_v40 = vmul.f32 %v12239_v25, %v4454_v51  ;;  %v4317_v44 = vadd.f32 %v12596_v54, %v12236_v45  ;;  %v4605_v33 = vmul.f32 %v12210_v12, %v4455_v60  ;;  %v4126_v16 = vadd.f32 %v12606_v41, %v12207_v15 }
 0x407   : > { %v4741_v3 = vadd.f32 %v4709_v30, %v4600_v32  ;;  %v4607_v28 = vmul.f32 %v12219_v38, %v4457_v62  ;;  %v12715_v8 = vpop.f32.mrf.mxu0  ;;  %v4678_v42 = vadd.f32 %v4602_v9, %v4601_v27  ;;  %v4456_v34 = vmax.f32 %v4124_v11, 0.0  ;;  %v12719_v32 = vpop.f32.mrf.mxu1 }
 0x408   : > { %v4458_v2 = vmax.f32 %v4317_v44, 0.0  ;;  %v4319_v54 = vadd.f32 %v12608_v26, %v12216_v57  ;;  %v4459_v51 = vmax.f32 %v4126_v16, 0.0  ;;  %v4128_v41 = vadd.f32 %v12617_v21, %v12228_v49 }
 0x409   : > { %v12722_v1 = vadd.f32 %v4741_v3, %v15992_v4  ;;  %v4321_v30 = vadd.f32 %v12619_v14, %v12236_v45  ;;  %v12728_v27 = vpop.f32.mrf.mxu0  ;;  %v4710_v60 = vadd.f32 %v4678_v42, %v4603_v18  ;;  %v4606_v62 = vmul.f32 %v12231_v59, %v4456_v34 }
 0x40a   : > { %v4608_v26 = vmul.f32 %v12239_v25, %v4458_v2  ;;  %v4461_v9 = vmax.f32 %v4319_v54, 0.0  ;;  %6072 = vmatmul.mubr.bf16.gmra.mxu1 %v15797_v19  ;;  %v12733_v11 = vpop.f32.mrf.mxu1  ;;  %v4609_v44 = vmul.f32 %v12210_v12, %v4459_v51  ;;  %v4460_v3 = vmax.f32 %v4128_v41, 0.0  ;;  %v6826_v2 = vld [vmem:[#allocation7 + $0x668] sm:$0xff] }
 0x40b   : > { %15993 = vst [vmem:[#allocation34_spill] sm:$0xff] %v12722_v1  ;;  %v4462_v16 = vmax.f32 %v4321_v30, 0.0  ;;  %v9501_v21 = vcombine.low %v6825_v53, %v6827_v46  ;;  %6081 = vmatprep.mubr.bf16.mxu1 %v15759_v24  ;;  %v12737_v14 = vpop.f32.mrf.mxu0  ;;  %v4742_v4 = vadd.f32 %v4710_v60, %v4604_v40  ;;  %v4679_v18 = vadd.f32 %v4606_v62, %v4605_v33  ;;  %v6828_v54 = vld [vmem:[#allocation7 + $0x6e8] sm:$0xff] }
 0x40c   : > { %v4611_v42 = vmul.f32 %v12219_v38, %v4461_v9  ;;  %v9502_v34 = vcombine.high %v6825_v53, %v6827_v46  ;;  %v12740_v10 = vpop.f32.mrf.mxu1  ;;  %v4610_v22 = vmul.f32 %v12231_v59, %v4460_v3  ;;  %v4132_v41 = vadd.f32 %v12631_v7, %v12207_v15  ;;  %6265 = vmatmul.mubr.bf16.gmra.mxu0 %v15797_v19 }
 0x40d   : > { %v4612_v51 = vmul.f32 %v12239_v25, %v4462_v16  ;;  %v4325_v30 = vadd.f32 %v12633_v5, %v12216_v57  ;;  %v12748_v1 = vpop.f32.mrf.mxu0  ;;  %v12751_v40 = vadd.f32 %v4742_v4, %v11961_v0  ;;  %v4711_v33 = vadd.f32 %v4679_v18, %v4607_v28  ;;  %6274 = vmatprep.mubr.bf16.mxu0 %v15759_v24 }
 0x40e   : > { %7017 = vmatprep.subr.bf16.mxu1 %v9502_v34  ;;  %v4134_v53 = vadd.f32 %v12638_v36, %v12228_v49  ;;  %v4327_v46 = vadd.f32 %v12640_v6, %v12236_v45  ;;  %v12757_v60 = vpop.f32.mrf.mxu1  ;;  %v4680_v62 = vadd.f32 %v4610_v22, %v4609_v44  ;;  %v4463_v7 = vmax.f32 %v4132_v41, 0.0 }
 0x40f   : > { %15994 = vst [vmem:[#allocation35_spill] sm:$0xff] %v12751_v40  ;;  %v4465_v9 = vmax.f32 %v4325_v30, 0.0  ;;  %7018 = vmatpush1.bf16.msra.mxu1 %v9501_v21  ;;  %v9503_v5 = vcombine.low %v6826_v2, %v6828_v54  ;;  %v12760_v3 = vpop.f32.mrf.mxu0  ;;  %v4743_v0 = vadd.f32 %v4711_v33, %v4608_v26  ;;  %v9504_v4 = vcombine.high %v6826_v2, %v6828_v54 }
 0x410   : > { %v4464_v28 = vmax.f32 %v4134_v53, 0.0  ;;  %v4466_v16 = vmax.f32 %v4327_v46, 0.0  ;;  %v12763_v36 = vpop.f32.mrf.mxu1  ;;  %v4712_v6 = vadd.f32 %v4680_v62, %v4611_v42  ;;  %v4613_v18 = vmul.f32 %v12210_v12, %v4463_v7 }
 0x411   : > { %v4615_v22 = vmul.f32 %v12219_v38, %v4465_v9  ;;  %v4136_v44 = vadd.f32 %v12655_v63, %v12207_v15  ;;  %v12770_v21 = vadd.f32 %v4743_v0, %v11973_v56  ;;  %7210 = vmatprep.subr.bf16.mxu0 %v9504_v4  ;;  %v4329_v2 = vadd.f32 %v12657_v48, %v12216_v57  ;;  %v12776_v54 = vpop.f32.mrf.mxu0 }
 0x412   : > { %v4614_v26 = vmul.f32 %v12231_v59, %v4464_v28  ;;  %v4616_v34 = vmul.f32 %v12239_v25, %v4466_v16  ;;  %v4744_v42 = vadd.f32 %v4712_v6, %v4612_v51  ;;  %7211 = vmatpush1.bf16.msra.mxu0 %v9503_v5  ;;  %v4138_v30 = vadd.f32 %v12661_v55, %v12228_v49  ;;  %v12783_v63 = vpop.f32.mrf.mxu1 }
 0x413   : > { %v4467_v41 = vmax.f32 %v4136_v44, 0.0  ;;  %v4331_v56 = vadd.f32 %v12663_v17, %v12236_v45  ;;  %6082 = vmatmul.mubr.bf16.gmra.mxu1 %v15874_v35  ;;  %v4469_v53 = vmax.f32 %v4329_v2, 0.0  ;;  %v4142_v48 = vadd.f32 %v12683_v39, %v12207_v15  ;;  %v12790_v46 = vpop.f32.mrf.mxu0 }
 0x414   : > { %v4681_v33 = vadd.f32 %v4614_v26, %v4613_v18  ;;  %v4335_v51 = vadd.f32 %v12676_v47, %v12216_v57  ;;  %6091 = vmatprep.mubr.bf16.mxu1 %v15759_v24  ;;  %v12793_v55 = vadd.f32 %v4744_v42, %v11984_v23  ;;  %v4468_v62 = vmax.f32 %v4138_v30, 0.0  ;;  %v12796_v9 = vpop.f32.mrf.mxu1  ;;  %6275 = vmatmul.mubr.bf16.gmra.mxu0 %v15874_v35 }
 0x415   : > { %v4617_v17 = vmul.f32 %v12210_v12, %v4467_v41  ;;  %v4470_v7 = vmax.f32 %v4331_v56, 0.0  ;;  %v4619_v0 = vmul.f32 %v12219_v38, %v4469_v53  ;;  %v4471_v39 = vmax.f32 %v4142_v48, 0.0  ;;  %v12799_v16 = vpop.f32.mrf.mxu0  ;;  %6284 = vmatprep.mubr.bf16.mxu0 %v15759_v24  ;;  %v6821_v56 = vld [vmem:[#allocation7 + $0x560] sm:$0xff]  ;;  %v15996_v53 = vld [vmem:[#allocation37_spill] sm:$0xff] }
 0x416   : > { %15995 = vst [vmem:[#allocation33_spill] sm:$0xff] %v12793_v55  ;;  %v4713_v5 = vadd.f32 %v4681_v33, %v4615_v22  ;;  %v4473_v28 = vmax.f32 %v4335_v51, 0.0  ;;  %v4618_v47 = vmul.f32 %v12231_v59, %v4468_v62  ;;  %v4144_v23 = vadd.f32 %v12696_v50, %v12228_v49  ;;  %v12808_v18 = vpop.f32.mrf.mxu1  ;;  %v6823_v33 = vld [vmem:[#allocation7 + $0x5e0] sm:$0xff] }
 0x417   : > { %v4620_v4 = vmul.f32 %v12239_v25, %v4470_v7  ;;  %v4337_v6 = vadd.f32 %v12690_v31, %v12236_v45  ;;  %v4621_v44 = vmul.f32 %v12210_v12, %v4471_v39  ;;  %v4146_v2 = vadd.f32 %v12708_v37, %v12207_v15  ;;  %v12815_v42 = vpop.f32.mrf.mxu0 }
 0x418   : > { %v4745_v22 = vadd.f32 %v4713_v5, %v4616_v34  ;;  %v4623_v26 = vmul.f32 %v12219_v38, %v4473_v28  ;;  %v4682_v50 = vadd.f32 %v4618_v47, %v4617_v17  ;;  %v4472_v41 = vmax.f32 %v4144_v23, 0.0  ;;  %v12819_v34 = vpop.f32.mrf.mxu1  ;;  %v15998_v28 = vld [vmem:[#allocation16_spill] sm:$0xff] }
 0x419   : > { %v4474_v30 = vmax.f32 %v4337_v6, 0.0  ;;  %v4339_v31 = vadd.f32 %v12699_v29, %v12216_v57  ;;  %v4475_v51 = vmax.f32 %v4146_v2, 0.0  ;;  %v4148_v37 = vadd.f32 %v12719_v32, %v12228_v49  ;;  %v12828_v17 = vpop.f32.mrf.mxu0 }
 0x41a   : > { %v12822_v48 = vadd.f32 %v4745_v22, %v15996_v53  ;;  %v4341_v62 = vadd.f32 %v12715_v8, %v12236_v45  ;;  %v4714_v7 = vadd.f32 %v4682_v50, %v4619_v0  ;;  %v4622_v5 = vmul.f32 %v12231_v59, %v4472_v41  ;;  %v12833_v47 = vpop.f32.mrf.mxu1 }
 0x41b   : > { %v4624_v29 = vmul.f32 %v12239_v25, %v4474_v30  ;;  %v4477_v39 = vmax.f32 %v4339_v31, 0.0  ;;  %6092 = vmatmul.mubr.bf16.gmra.mxu1 %v15998_v28  ;;  %v4625_v23 = vmul.f32 %v12210_v12, %v4475_v51  ;;  %v4476_v6 = vmax.f32 %v4148_v37, 0.0  ;;  %v12837_v8 = vpop.f32.mrf.mxu0  ;;  %v6822_v30 = vld [vmem:[#allocation7 + $0x568] sm:$0xff] }
 0x41c   : > { %15997 = vst [vmem:[#allocation36_spill] sm:$0xff] %v12822_v48  ;;  %v4478_v22 = vmax.f32 %v4341_v62, 0.0  ;;  %v9497_v32 = vcombine.low %v6821_v56, %v6823_v33  ;;  %6101 = vmatprep.mubr.bf16.mxu1 %v15759_v24  ;;  %v4746_v2 = vadd.f32 %v4714_v7, %v4620_v4  ;;  %v4683_v0 = vadd.f32 %v4622_v5, %v4621_v44  ;;  %v6824_v31 = vld [vmem:[#allocation7 + $0x5e8] sm:$0xff]  ;;  %v12840_v53 = vpop.f32.mrf.mxu1  ;;  %v15999_v4 = vld [vmem:[#allocation38_spill] sm:$0xff] }
 0x41d   : > { %v4627_v50 = vmul.f32 %v12219_v38, %v4477_v39  ;;  %v9498_v41 = vcombine.high %v6821_v56, %v6823_v33  ;;  %v4626_v55 = vmul.f32 %v12231_v59, %v4476_v6  ;;  %v4152_v37 = vadd.f32 %v12733_v11, %v12207_v15  ;;  %v12848_v40 = vpop.f32.mrf.mxu0  ;;  %6285 = vmatmul.mubr.bf16.gmra.mxu0 %v15998_v28 }
 0x41e   : > { %v4628_v51 = vmul.f32 %v12239_v25, %v4478_v22  ;;  %v4345_v62 = vadd.f32 %v12728_v27, %v12216_v57  ;;  %v12851_v44 = vadd.f32 %v4746_v2, %v15999_v4  ;;  %v4715_v56 = vadd.f32 %v4683_v0, %v4623_v26  ;;  %v12857_v5 = vpop.f32.mrf.mxu1  ;;  %6294 = vmatprep.mubr.bf16.mxu0 %v15759_v24 }
 0x41f   : > { %7019 = vmatprep.subr.bf16.mxu1 %v9498_v41  ;;  %v4154_v33 = vadd.f32 %v12740_v10, %v12228_v49  ;;  %v4347_v7 = vadd.f32 %v12737_v14, %v12236_v45  ;;  %v4684_v39 = vadd.f32 %v4626_v55, %v4625_v23  ;;  %v4479_v11 = vmax.f32 %v4152_v37, 0.0  ;;  %v12860_v22 = vpop.f32.mrf.mxu0 }
 0x420   : > { %16000 = vst [vmem:[#allocation37_spill] sm:$0xff] %v12851_v44  ;;  %v4481_v6 = vmax.f32 %v4345_v62, 0.0  ;;  %7020 = vmatpush1.bf16.msra.mxu1 %v9497_v32  ;;  %v9499_v27 = vcombine.low %v6822_v30, %v6824_v31  ;;  %v4747_v2 = vadd.f32 %v4715_v56, %v4624_v29  ;;  %v9500_v41 = vcombine.high %v6822_v30, %v6824_v31  ;;  %v12863_v10 = vpop.f32.mrf.mxu1  ;;  %v16001_v32 = vld [vmem:[#allocation39_spill] sm:$0xff] }
 0x421   : > { %v4480_v26 = vmax.f32 %v4154_v33, 0.0  ;;  %v4482_v0 = vmax.f32 %v4347_v7, 0.0  ;;  %v4716_v14 = vadd.f32 %v4684_v39, %v4627_v50  ;;  %v4629_v4 = vmul.f32 %v12210_v12, %v4479_v11  ;;  %v16003_v7 = vld [vmem:[#allocation17_spill] sm:$0xff] }
 0x422   : > { %v4631_v55 = vmul.f32 %v12219_v38, %v4481_v6  ;;  %v4156_v23 = vadd.f32 %v12757_v60, %v12207_v15  ;;  %v12870_v37 = vadd.f32 %v4747_v2, %v16001_v32  ;;  %7212 = vmatprep.subr.bf16.mxu0 %v9500_v41  ;;  %v4349_v30 = vadd.f32 %v12748_v1, %v12216_v57  ;;  %v12876_v31 = vpop.f32.mrf.mxu0 }
 0x423   : > { %v4630_v29 = vmul.f32 %v12231_v59, %v4480_v26  ;;  %v4632_v62 = vmul.f32 %v12239_v25, %v4482_v0  ;;  %v4748_v50 = vadd.f32 %v4716_v14, %v4628_v51  ;;  %7213 = vmatpush1.bf16.msra.mxu0 %v9499_v27  ;;  %v4158_v33 = vadd.f32 %v12763_v36, %v12228_v49  ;;  %v12883_v39 = vpop.f32.mrf.mxu1  ;;  %v16004_v36 = vld [vmem:[#allocation40_spill] sm:$0xff] }
 0x424   : > { %16002 = vst [vmem:[#allocation38_spill] sm:$0xff] %v12870_v37  ;;  %v4483_v56 = vmax.f32 %v4156_v23, 0.0  ;;  %v4351_v60 = vadd.f32 %v12760_v3, %v12236_v45  ;;  %6102 = vmatmul.mubr.bf16.gmra.mxu1 %v16003_v7  ;;  %v4485_v6 = vmax.f32 %v4349_v30, 0.0  ;;  %v4162_v1 = vadd.f32 %v12783_v63, %v12207_v15  ;;  %v12890_v27 = vpop.f32.mrf.mxu0 }
 0x425   : > { %v4685_v11 = vadd.f32 %v4630_v29, %v4629_v4  ;;  %v4355_v51 = vadd.f32 %v12776_v54, %v12216_v57  ;;  %6111 = vmatprep.mubr.bf16.mxu1 %v15759_v24  ;;  %v12893_v2 = vadd.f32 %v4748_v50, %v16004_v36  ;;  %v4484_v26 = vmax.f32 %v4158_v33, 0.0  ;;  %v12896_v41 = vpop.f32.mrf.mxu1  ;;  %6295 = vmatmul.mubr.bf16.gmra.mxu0 %v16003_v7  ;;  %v6817_v36 = vld [vmem:[#allocation7 + $0x460] sm:$0xff] }
 0x426   : > { %v4633_v3 = vmul.f32 %v12210_v12, %v4483_v56  ;;  %v4486_v0 = vmax.f32 %v4351_v60, 0.0  ;;  %v4635_v4 = vmul.f32 %v12219_v38, %v4485_v6  ;;  %v4487_v63 = vmax.f32 %v4162_v1, 0.0  ;;  %v12899_v32 = vpop.f32.mrf.mxu0  ;;  %6304 = vmatprep.mubr.bf16.mxu0 %v15759_v24 }
 0x427   : > { %16005 = vst [vmem:[#allocation39_spill] sm:$0xff] %v12893_v2  ;;  %v4717_v14 = vadd.f32 %v4685_v11, %v4631_v55  ;;  %v4489_v23 = vmax.f32 %v4355_v51, 0.0  ;;  %v4634_v54 = vmul.f32 %v12231_v59, %v4484_v26  ;;  %v4164_v30 = vadd.f32 %v12796_v9, %v12228_v49  ;;  %v12908_v56 = vpop.f32.mrf.mxu1  ;;  %v6819_v26 = vld [vmem:[#allocation7 + $0x4e0] sm:$0xff] }
 0x428   : > { %v4636_v29 = vmul.f32 %v12239_v25, %v4486_v0  ;;  %v4357_v50 = vadd.f32 %v12790_v46, %v12236_v45  ;;  %v4637_v33 = vmul.f32 %v12210_v12, %v4487_v63  ;;  %v4166_v11 = vadd.f32 %v12808_v18, %v12207_v15  ;;  %v12915_v6 = vpop.f32.mrf.mxu0  ;;  %v16006_v0 = vld [vmem:[#allocation41_spill] sm:$0xff]  ;;  %v16008_v2 = vld [vmem:[#allocation18_spill] sm:$0xff] }
 0x429   : > { %v4749_v55 = vadd.f32 %v4717_v14, %v4632_v62  ;;  %v4639_v60 = vmul.f32 %v12219_v38, %v4489_v23  ;;  %v4686_v9 = vadd.f32 %v4634_v54, %v4633_v3  ;;  %v4488_v1 = vmax.f32 %v4164_v30, 0.0  ;;  %v12919_v62 = vpop.f32.mrf.mxu1 }
 0x42a   : > { %v4490_v51 = vmax.f32 %v4357_v50, 0.0  ;;  %v4359_v46 = vadd.f32 %v12799_v16, %v12216_v57  ;;  %v4491_v63 = vmax.f32 %v4166_v11, 0.0  ;;  %v4168_v18 = vadd.f32 %v12819_v34, %v12228_v49  ;;  %v12928_v3 = vpop.f32.mrf.mxu0 }
 0x42b   : > { %v12922_v14 = vadd.f32 %v4749_v55, %v16006_v0  ;;  %v4361_v23 = vadd.f32 %v12815_v42, %v12236_v45  ;;  %v4718_v54 = vadd.f32 %v4686_v9, %v4635_v4  ;;  %v4638_v30 = vmul.f32 %v12231_v59, %v4488_v1  ;;  %v12933_v44 = vpop.f32.mrf.mxu1 }
 0x42c   : > { %v4640_v16 = vmul.f32 %v12239_v25, %v4490_v51  ;;  %v4493_v50 = vmax.f32 %v4359_v46, 0.0  ;;  %6112 = vmatmul.mubr.bf16.gmra.mxu1 %v16008_v2  ;;  %v4641_v55 = vmul.f32 %v12210_v12, %v4491_v63  ;;  %v4492_v11 = vmax.f32 %v4168_v18, 0.0  ;;  %v12937_v42 = vpop.f32.mrf.mxu0  ;;  %v6818_v51 = vld [vmem:[#allocation7 + $0x468] sm:$0xff] }
 0x42d   : > { %16007 = vst [vmem:[#allocation40_spill] sm:$0xff] %v12922_v14  ;;  %v4494_v0 = vmax.f32 %v4361_v23, 0.0  ;;  %v9493_v34 = vcombine.low %v6817_v36, %v6819_v26  ;;  %6121 = vmatprep.mubr.bf16.mxu1 %v15759_v24  ;;  %v4750_v14 = vadd.f32 %v4718_v54, %v4636_v29  ;;  %v4687_v4 = vadd.f32 %v4638_v30, %v4637_v33  ;;  %v6820_v46 = vld [vmem:[#allocation7 + $0x4e8] sm:$0xff]  ;;  %v12940_v7 = vpop.f32.mrf.mxu1  ;;  %v16009_v29 = vld [vmem:[#allocation42_spill] sm:$0xff] }
 0x42e   : > { %v4643_v9 = vmul.f32 %v12219_v38, %v4493_v50  ;;  %v9494_v1 = vcombine.high %v6817_v36, %v6819_v26  ;;  %v4642_v37 = vmul.f32 %v12231_v59, %v4492_v11  ;;  %v4172_v18 = vadd.f32 %v12833_v47, %v12207_v15  ;;  %v12948_v28 = vpop.f32.mrf.mxu0  ;;  %6305 = vmatmul.mubr.bf16.gmra.mxu0 %v16008_v2 }
 0x42f   : > { %v4644_v63 = vmul.f32 %v12239_v25, %v4494_v0  ;;  %v4365_v23 = vadd.f32 %v12828_v17, %v12216_v57  ;;  %v12951_v33 = vadd.f32 %v4750_v14, %v16009_v29  ;;  %v4719_v36 = vadd.f32 %v4687_v4, %v4639_v60  ;;  %v12957_v30 = vpop.f32.mrf.mxu1  ;;  %6314 = vmatprep.mubr.bf16.mxu0 %v15759_v24 }
 0x430   : > { %7021 = vmatprep.subr.bf16.mxu1 %v9494_v1  ;;  %v4174_v26 = vadd.f32 %v12840_v53, %v12228_v49  ;;  %v4367_v54 = vadd.f32 %v12837_v8, %v12236_v45  ;;  %v4688_v50 = vadd.f32 %v4642_v37, %v4641_v55  ;;  %v4495_v47 = vmax.f32 %v4172_v18, 0.0  ;;  %v12960_v0 = vpop.f32.mrf.mxu0 }
 0x431   : > { %16010 = vst [vmem:[#allocation41_spill] sm:$0xff] %v12951_v33  ;;  %v4497_v11 = vmax.f32 %v4365_v23, 0.0  ;;  %7022 = vmatpush1.bf16.msra.mxu1 %v9493_v34  ;;  %v9495_v17 = vcombine.low %v6818_v51, %v6820_v46  ;;  %v4751_v14 = vadd.f32 %v4719_v36, %v4640_v16  ;;  %v9496_v1 = vcombine.high %v6818_v51, %v6820_v46  ;;  %v12963_v53 = vpop.f32.mrf.mxu1  ;;  %v16011_v34 = vld [vmem:[#allocation26_spill] sm:$0xff] }
 0x432   : > { %v4496_v60 = vmax.f32 %v4174_v26, 0.0  ;;  %v4498_v4 = vmax.f32 %v4367_v54, 0.0  ;;  %v4720_v8 = vadd.f32 %v4688_v50, %v4643_v9  ;;  %v4645_v29 = vmul.f32 %v12210_v12, %v4495_v47  ;;  %v12976_v46 = vpop.f32.mrf.mxu0  ;;  %v16013_v54 = vld [vmem:[#allocation19_spill] sm:$0xff] }
 0x433   : > { %v4647_v37 = vmul.f32 %v12219_v38, %v4497_v11  ;;  %v4176_v55 = vadd.f32 %v12857_v5, %v12207_v15  ;;  %v12970_v18 = vadd.f32 %v4751_v14, %v16011_v34  ;;  %7214 = vmatprep.subr.bf16.mxu0 %v9496_v1  ;;  %v4369_v51 = vadd.f32 %v12848_v40, %v12216_v57  ;;  %v12983_v50 = vpop.f32.mrf.mxu1 }
 0x434   : > { %v4646_v16 = vmul.f32 %v12231_v59, %v4496_v60  ;;  %v4648_v23 = vmul.f32 %v12239_v25, %v4498_v4  ;;  %v4752_v9 = vadd.f32 %v4720_v8, %v4644_v63  ;;  %7215 = vmatpush1.bf16.msra.mxu0 %v9495_v17  ;;  %v4178_v26 = vadd.f32 %v12863_v10, %v12228_v49  ;;  %v12990_v17 = vpop.f32.mrf.mxu0  ;;  %v16014_v10 = vld [vmem:[#allocation43_spill] sm:$0xff] }
 0x435   : > { %16012 = vst [vmem:[#allocation42_spill] sm:$0xff] %v12970_v18  ;;  %v4499_v36 = vmax.f32 %v4176_v55, 0.0  ;;  %v4371_v5 = vadd.f32 %v12860_v22, %v12236_v45  ;;  %6122 = vmatmul.mubr.bf16.gmra.mxu1 %v16013_v54  ;;  %v4501_v11 = vmax.f32 %v4369_v51, 0.0  ;;  %v4182_v40 = vadd.f32 %v12883_v39, %v12207_v15  ;;  %v12996_v1 = vpop.f32.mrf.mxu1  ;;  %v6812_v18 = vld [vmem:[#allocation7 + $0x2e8] sm:$0xff] }
 0x436   : > { %v4689_v47 = vadd.f32 %v4646_v16, %v4645_v29  ;;  %v4375_v63 = vadd.f32 %v12876_v31, %v12216_v57  ;;  %6131 = vmatprep.mubr.bf16.mxu1 %v15759_v24  ;;  %v12993_v14 = vadd.f32 %v4752_v9, %v16014_v10  ;;  %v4500_v60 = vmax.f32 %v4178_v26, 0.0  ;;  %v12999_v34 = vpop.f32.mrf.mxu0  ;;  %6315 = vmatmul.mubr.bf16.gmra.mxu0 %v16013_v54  ;;  %v6813_v10 = vld [vmem:[#allocation7 + $0x360] sm:$0xff] }
 0x437   : > { %v4649_v22 = vmul.f32 %v12210_v12, %v4499_v36  ;;  %v4502_v4 = vmax.f32 %v4371_v5, 0.0  ;;  %v4651_v29 = vmul.f32 %v12219_v38, %v4501_v11  ;;  %v4503_v39 = vmax.f32 %v4182_v40, 0.0  ;;  %v13008_v36 = vpop.f32.mrf.mxu1  ;;  %6324 = vmatprep.mubr.bf16.mxu0 %v15759_v24 }
 0x438   : > { %16015 = vst [vmem:[#allocation26_spill] sm:$0xff] %v12993_v14  ;;  %v4721_v8 = vadd.f32 %v4689_v47, %v4647_v37  ;;  %v4505_v55 = vmax.f32 %v4375_v63, 0.0  ;;  %v4650_v31 = vmul.f32 %v12231_v59, %v4500_v60  ;;  %v4184_v51 = vadd.f32 %v12896_v41, %v12228_v49  ;;  %v13015_v11 = vpop.f32.mrf.mxu0  ;;  %v6815_v60 = vld [vmem:[#allocation7 + $0x3e0] sm:$0xff]  ;;  %v16018_v14 = vld [vmem:[#allocation20_spill] sm:$0xff] }
 0x439   : > { %v4652_v16 = vmul.f32 %v12239_v25, %v4502_v4  ;;  %v4377_v9 = vadd.f32 %v12890_v27, %v12236_v45  ;;  %v4653_v26 = vmul.f32 %v12210_v12, %v4503_v39  ;;  %v4186_v47 = vadd.f32 %v12908_v56, %v12207_v15  ;;  %v16016_v4 = vld [vmem:[#allocation44_spill] sm:$0xff] }
 0x43a   : > { %v4753_v37 = vadd.f32 %v4721_v8, %v4648_v23  ;;  %v4655_v5 = vmul.f32 %v12219_v38, %v4505_v55  ;;  %v4690_v41 = vadd.f32 %v4650_v31, %v4649_v22  ;;  %v4504_v40 = vmax.f32 %v4184_v51, 0.0  ;;  %v13019_v23 = vpop.f32.mrf.mxu1  ;;  %v13028_v22 = vpop.f32.mrf.mxu0  ;;  %v4821_v51 = vld [vmem:[#allocation8 + $0x10] sm:$0xf] }
 0x43b   : > { %v4506_v63 = vmax.f32 %v4377_v9, 0.0  ;;  %v4379_v27 = vadd.f32 %v12899_v32, %v12216_v57  ;;  %v4507_v39 = vmax.f32 %v4186_v47, 0.0  ;;  %v4188_v15 = vadd.f32 %v12919_v62, %v12228_v49  ;;  %v5517_v9 = vld [vmem:[#allocation10 + $0x10] sm:$0xf] }
 0x43c   : > { %v13022_v8 = vadd.f32 %v4753_v37, %v16016_v4  ;;  %v4381_v56 = vadd.f32 %v12915_v6, %v12236_v45  ;;  %v4722_v55 = vadd.f32 %v4690_v41, %v4651_v29  ;;  %v4654_v31 = vmul.f32 %v12231_v59, %v4504_v40  ;;  %v13033_v37 = vpop.f32.mrf.mxu1  ;;  %v13037_v45 = vpop.f32.mrf.mxu0 }
 0x43d   : > { %v4656_v57 = vmul.f32 %v12239_v25, %v4506_v63  ;;  %v4509_v32 = vmax.f32 %v4379_v27, 0.0  ;;  %6132 = vmatmul.mubr.bf16.gmra.mxu1 %v16018_v14  ;;  %v4657_v47 = vmul.f32 %v12210_v12, %v4507_v39  ;;  %v4508_v49 = vmax.f32 %v4188_v15, 0.0 }
 0x43e   : > { %16017 = vst [vmem:[#allocation43_spill] sm:$0xff] %v13022_v8  ;;  %v4510_v62 = vmax.f32 %v4381_v56, 0.0  ;;  %v9489_v4 = vcombine.low %v6813_v10, %v6815_v60  ;;  %6141 = vmatprep.mubr.bf16.mxu1 %v15759_v24  ;;  %v4754_v6 = vadd.f32 %v4722_v55, %v4652_v16  ;;  %v4691_v29 = vadd.f32 %v4654_v31, %v4653_v26  ;;  %v13040_v63 = vpop.f32.mrf.mxu1  ;;  %v16019_v8 = vld [vmem:[#allocation27_spill] sm:$0xff]  ;;  %v13050_v15 = vpop.f32.mrf.mxu0  ;;  %v16020_v56 = vld [vmem:[#allocation45_spill] sm:$0xff] }
 0x43f   : > { %v4659_v41 = vmul.f32 %v12219_v38, %v4509_v32  ;;  %v9490_v40 = vcombine.high %v6813_v10, %v6815_v60  ;;  %v4658_v27 = vmul.f32 %v12231_v59, %v4508_v49  ;;  %v13045_v12 = vrot.slane %v4821_v51, %v16019_v8  ;;  %v16022_v38 = vld [vmem:[#allocation28_spill] sm:$0xff]  ;;  %v6816_v60 = vld [vmem:[#allocation7 + $0x3e8] sm:$0xff]  ;;  %v16023_v49 = vld [vmem:[#allocation29_spill] sm:$0xff]  ;;  %6325 = vmatmul.mubr.bf16.gmra.mxu0 %v16018_v14 }
 0x440   : > { %v4660_v33 = vmul.f32 %v12239_v25, %v4510_v62  ;;  %v13048_v39 = vrot.slane %v5517_v9, %v16019_v8  ;;  %v13053_v16 = vadd.f32 %v4754_v6, %v16020_v56  ;;  %v4723_v26 = vadd.f32 %v4691_v29, %v4655_v5  ;;  %v6814_v25 = vld [vmem:[#allocation7 + $0x368] sm:$0xff]  ;;  %v13061_v55 = vpop.f32.mrf.mxu1  ;;  %v13071_v6 = vpop.f32.mrf.mxu0  ;;  %v16024_v56 = vld [vmem:[#allocation30_spill] sm:$0xff]  ;;  %6334 = vmatprep.mubr.bf16.mxu0 %v15759_v24 }
 0x441   : > { %7023 = vmatprep.subr.bf16.mxu1 %v9490_v40  ;;  %v13056_v10 = vrot.slane %v4821_v51, %v16022_v38  ;;  %v13059_v59 = vrot.slane %v5517_v9, %v16022_v38  ;;  %v4692_v31 = vadd.f32 %v4658_v27, %v4657_v47  ;;  %v5038_v32 = vadd.f32 %v12933_v44, %v13045_v12 }
 0x442   : > { %16021 = vst [vmem:[#allocation44_spill] sm:$0xff] %v13053_v16  ;;  %7024 = vmatpush1.bf16.msra.mxu1 %v9489_v4  ;;  %v13066_v62 = vrot.slane %v4821_v51, %v16023_v49  ;;  %v13069_v5 = vrot.slane %v5517_v9, %v16023_v49  ;;  %v4755_v29 = vadd.f32 %v4723_v26, %v4656_v57  ;;  %v13082_v44 = vpop.f32.mrf.mxu1  ;;  %v16025_v57 = vld [vmem:[#allocation46_spill] sm:$0xff]  ;;  %v13093_v8 = vpop.f32.mrf.mxu0 }
 0x443   : > { %v5231_v40 = vadd.f32 %v12928_v3, %v13056_v10  ;;  %v13076_v16 = vrot.slane %v4821_v51, %v16024_v56  ;;  %v13079_v47 = vrot.slane %v5517_v9, %v16024_v56  ;;  %v4724_v4 = vadd.f32 %v4692_v31, %v4659_v41  ;;  %v16027_v56 = vld [vmem:[#allocation21_spill] sm:$0xff] }
 0x444   : > { %v5389_v27 = vmax.f32 %v5038_v32, 0.0  ;;  %v5040_v49 = vadd.f32 %v12940_v7, %v13066_v62  ;;  %v9491_v38 = vcombine.low %v6814_v25, %v6816_v60  ;;  %v13088_v3 = vadd.f32 %v4755_v29, %v16025_v57  ;;  %v13099_v29 = vpop.f32.mrf.mxu1 }
 0x445   : > { %v5391_v51 = vmax.f32 %v5231_v40, 0.0  ;;  %v5233_v9 = vadd.f32 %v12937_v42, %v13076_v16  ;;  %v9492_v26 = vcombine.high %v6814_v25, %v6816_v60  ;;  %6142 = vmatmul.mubr.bf16.gmra.mxu1 %v16027_v56  ;;  %v4756_v41 = vadd.f32 %v4724_v4, %v4660_v33  ;;  %v13106_v25 = vpop.f32.mrf.mxu0  ;;  %v16028_v60 = vld [vmem:[#allocation48_spill] sm:$0xff] }
 0x446   : > { %16026 = vst [vmem:[#allocation45_spill] sm:$0xff] %v13088_v3  ;;  %v5539_v31 = vmul.f32 %v13048_v39, %v5389_v27  ;;  %v5390_v32 = vmax.f32 %v5040_v49, 0.0  ;;  %v5042_v7 = vadd.f32 %v12957_v30, %v13045_v12  ;;  %6151 = vmatprep.mubr.bf16.mxu1 %v15759_v24  ;;  %v5235_v42 = vadd.f32 %v12948_v28, %v13056_v10 }
 0x447   : > { %v5541_v40 = vmul.f32 %v13059_v59, %v5391_v51  ;;  %v5392_v57 = vmax.f32 %v5233_v9, 0.0  ;;  %7216 = vmatprep.subr.bf16.mxu0 %v9492_v26  ;;  %v5044_v33 = vadd.f32 %v12963_v53, %v13066_v62  ;;  %v13109_v49 = vadd.f32 %v4756_v41, %v16028_v60  ;;  %v13114_v51 = vpop.f32.mrf.mxu1  ;;  %v13119_v3 = vpop.f32.mrf.mxu0  ;;  %6335 = vmatmul.mubr.bf16.gmra.mxu0 %v16027_v56  ;;  %v6811_v56 = vld [vmem:[#allocation7 + $0x2e0] sm:$0xff] }
 0x448   : > { %v5540_v30 = vmul.f32 %v13069_v5, %v5390_v32  ;;  %v5393_v4 = vmax.f32 %v5042_v7, 0.0  ;;  %7217 = vmatpush1.bf16.msra.mxu0 %v9491_v38  ;;  %v5237_v27 = vadd.f32 %v12960_v0, %v13076_v16  ;;  %v5395_v28 = vmax.f32 %v5235_v42, 0.0  ;;  %6344 = vmatprep.mubr.bf16.mxu0 %v15759_v24 }
 0x449   : > { %16029 = vst [vmem:[#allocation46_spill] sm:$0xff] %v13109_v49  ;;  %v5542_v9 = vmul.f32 %v13079_v47, %v5392_v57  ;;  %v5394_v26 = vmax.f32 %v5044_v33, 0.0  ;;  %v5048_v53 = vadd.f32 %v12983_v50, %v13045_v12  ;;  %v5241_v38 = vadd.f32 %v12976_v46, %v13056_v10  ;;  %v13124_v7 = vpop.f32.mrf.mxu1  ;;  %v13131_v50 = vpop.f32.mrf.mxu0  ;;  %v6809_v49 = vld [vmem:[#allocation7 + $0x260] sm:$0xff] }
 0x44a   : > { %v5667_v41 = vadd.f32 %v5540_v30, %v5539_v31  ;;  %v5543_v60 = vmul.f32 %v13048_v39, %v5393_v4  ;;  %v5396_v32 = vmax.f32 %v5237_v27, 0.0  ;;  %v5545_v0 = vmul.f32 %v13059_v59, %v5395_v28 }
 0x44b   : > { %v5544_v57 = vmul.f32 %v13069_v5, %v5394_v26  ;;  %v5397_v42 = vmax.f32 %v5048_v53, 0.0  ;;  %v5050_v33 = vadd.f32 %v12996_v1, %v13066_v62  ;;  %v5399_v4 = vmax.f32 %v5241_v38, 0.0  ;;  %v13137_v27 = vpop.f32.mrf.mxu1 }
 0x44c   : > { %v5699_v31 = vadd.f32 %v5667_v41, %v5541_v40  ;;  %v5546_v30 = vmul.f32 %v13079_v47, %v5396_v32  ;;  %v5243_v46 = vadd.f32 %v12990_v17, %v13076_v16  ;;  %v5052_v1 = vadd.f32 %v13008_v36, %v13045_v12  ;;  %v16030_v40 = vld [vmem:[#allocation22_spill] sm:$0xff]  ;;  %v13143_v41 = vpop.f32.mrf.mxu0 }
 0x44d   : > { %v5668_v28 = vadd.f32 %v5544_v57, %v5543_v60  ;;  %v5547_v26 = vmul.f32 %v13048_v39, %v5397_v42  ;;  %v5398_v53 = vmax.f32 %v5050_v33, 0.0  ;;  %6152 = vmatmul.mubr.bf16.gmra.mxu1 %v16030_v40  ;;  %v5549_v17 = vmul.f32 %v13059_v59, %v5399_v4  ;;  %v13151_v57 = vpop.f32.mrf.mxu1 }
 0x44e   : > { %v13145_v32 = vadd.f32 %v5699_v31, %v5542_v9  ;;  %v5400_v38 = vmax.f32 %v5243_v46, 0.0  ;;  %v5245_v60 = vadd.f32 %v12999_v34, %v13056_v10  ;;  %6161 = vmatprep.mubr.bf16.mxu1 %v15759_v24  ;;  %v5401_v33 = vmax.f32 %v5052_v1, 0.0  ;;  %v13156_v54 = vpop.f32.mrf.mxu0  ;;  %v6810_v1 = vld [vmem:[#allocation7 + $0x268] sm:$0xff] }
 0x44f   : > { %v5700_v42 = vadd.f32 %v5668_v28, %v5545_v0  ;;  %v5548_v36 = vmul.f32 %v13069_v5, %v5398_v53  ;;  %v5054_v14 = vadd.f32 %v13019_v23, %v13066_v62  ;;  %v5247_v4 = vadd.f32 %v13015_v11, %v13076_v16  ;;  %v13161_v46 = vpop.f32.mrf.mxu1  ;;  %6345 = vmatmul.mubr.bf16.gmra.mxu0 %v16030_v40 }
 0x450   : > { %16031 = vst [vmem:[#allocation48_spill] sm:$0xff] %v13145_v32  ;;  %v5550_v9 = vmul.f32 %v13079_v47, %v5400_v38  ;;  %v5403_v31 = vmax.f32 %v5245_v60, 0.0  ;;  %v9485_v34 = vcombine.low %v6809_v49, %v6811_v56  ;;  %v5551_v28 = vmul.f32 %v13048_v39, %v5401_v33  ;;  %v13166_v23 = vpop.f32.mrf.mxu0  ;;  %6354 = vmatprep.mubr.bf16.mxu0 %v15759_v24 }
 0x451   : > { %v13163_v32 = vadd.f32 %v5700_v42, %v5546_v30  ;;  %v5669_v0 = vadd.f32 %v5548_v36, %v5547_v26  ;;  %v5402_v53 = vmax.f32 %v5054_v14, 0.0  ;;  %v5404_v38 = vmax.f32 %v5247_v4, 0.0  ;;  %v13171_v48 = vpop.f32.mrf.mxu1 }
 0x452   : > { %v5553_v2 = vmul.f32 %v13059_v59, %v5403_v31  ;;  %v9486_v60 = vcombine.high %v6809_v49, %v6811_v56  ;;  %v5058_v11 = vadd.f32 %v13033_v37, %v13045_v12  ;;  %v5251_v26 = vadd.f32 %v13028_v22, %v13056_v10  ;;  %v13179_v42 = vpop.f32.mrf.mxu0 }
 0x453   : > { %16032 = vst [vmem:[#allocation59_spill] sm:$0xff] %v13163_v32  ;;  %v5701_v35 = vadd.f32 %v5669_v0, %v5549_v17  ;;  %v5552_v30 = vmul.f32 %v13069_v5, %v5402_v53  ;;  %v5060_v14 = vadd.f32 %v13040_v63, %v13066_v62  ;;  %v5554_v56 = vmul.f32 %v13079_v47, %v5404_v38  ;;  %v13185_v36 = vpop.f32.mrf.mxu1 }
 0x454   : > { %7025 = vmatprep.subr.bf16.mxu1 %v9486_v60  ;;  %v5405_v49 = vmax.f32 %v5058_v11, 0.0  ;;  %v5253_v37 = vadd.f32 %v13037_v45, %v13076_v16  ;;  %v9487_v17 = vcombine.low %v6810_v1, %v6812_v18  ;;  %v5407_v63 = vmax.f32 %v5251_v26, 0.0  ;;  %v16034_v60 = vld [vmem:[#allocation23_spill] sm:$0xff]  ;;  %v13193_v45 = vpop.f32.mrf.mxu0 }
 0x455   : > { %v13187_v22 = vadd.f32 %v5701_v35, %v5550_v9  ;;  %v5670_v33 = vadd.f32 %v5552_v30, %v5551_v28  ;;  %7026 = vmatpush1.bf16.msra.mxu1 %v9485_v34  ;;  %v5406_v31 = vmax.f32 %v5060_v14, 0.0  ;;  %v9488_v53 = vcombine.high %v6810_v1, %v6812_v18  ;;  %v13200_v34 = vpop.f32.mrf.mxu1 }
 0x456   : > { %v5555_v4 = vmul.f32 %v13048_v39, %v5405_v49  ;;  %v5408_v0 = vmax.f32 %v5253_v37, 0.0  ;;  %v5062_v38 = vadd.f32 %v13061_v55, %v13045_v12  ;;  %6162 = vmatmul.mubr.bf16.gmra.mxu1 %v16034_v60  ;;  %v5557_v32 = vmul.f32 %v13059_v59, %v5407_v63  ;;  %v13207_v1 = vpop.f32.mrf.mxu0 }
 0x457   : > { %16033 = vst [vmem:[#allocation60_spill] sm:$0xff] %v13187_v22  ;;  %v5702_v11 = vadd.f32 %v5670_v33, %v5553_v2  ;;  %v5556_v35 = vmul.f32 %v13069_v5, %v5406_v31  ;;  %v5255_v9 = vadd.f32 %v13050_v15, %v13056_v10  ;;  %6171 = vmatprep.mubr.bf16.mxu1 %v15759_v24  ;;  %v13213_v49 = vpop.f32.mrf.mxu1 }
 0x458   : > { %v5558_v18 = vmul.f32 %v13079_v47, %v5408_v0  ;;  %7218 = vmatprep.subr.bf16.mxu0 %v9488_v53  ;;  %v5409_v55 = vmax.f32 %v5062_v38, 0.0  ;;  %v5064_v28 = vadd.f32 %v13082_v44, %v13066_v62  ;;  %v5257_v2 = vadd.f32 %v13071_v6, %v13076_v16  ;;  %v13218_v6 = vpop.f32.mrf.mxu0  ;;  %6355 = vmatmul.mubr.bf16.gmra.mxu0 %v16034_v60 }
 0x459   : > { %v13209_v30 = vadd.f32 %v5702_v11, %v5554_v56  ;;  %v5671_v26 = vadd.f32 %v5556_v35, %v5555_v4  ;;  %v5411_v15 = vmax.f32 %v5255_v9, 0.0  ;;  %7219 = vmatpush1.bf16.msra.mxu0 %v9487_v17  ;;  %v5068_v14 = vadd.f32 %v13099_v29, %v13045_v12  ;;  %v13224_v29 = vpop.f32.mrf.mxu1  ;;  %6364 = vmatprep.mubr.bf16.mxu0 %v15759_v24 }
 0x45a   : > { %v5559_v37 = vmul.f32 %v13048_v39, %v5409_v55  ;;  %v5410_v33 = vmax.f32 %v5064_v28, 0.0  ;;  %v5412_v63 = vmax.f32 %v5257_v2, 0.0  ;;  %v5261_v44 = vadd.f32 %v13093_v8, %v13056_v10 }
 0x45b   : > { %16035 = vst [vmem:[#allocation61_spill] sm:$0xff] %v13209_v30  ;;  %v5703_v31 = vadd.f32 %v5671_v26, %v5557_v32  ;;  %v5561_v56 = vmul.f32 %v13059_v59, %v5411_v15  ;;  %v5413_v4 = vmax.f32 %v5068_v14, 0.0  ;;  %v5070_v17 = vadd.f32 %v13114_v51, %v13066_v62  ;;  %v13231_v32 = vpop.f32.mrf.mxu0  ;;  %v13236_v55 = vpop.f32.mrf.mxu1  ;;  %v6805_v15 = vld [vmem:[#allocation7 + $0x160] sm:$0xff] }
 0x45c   : > { %v5560_v0 = vmul.f32 %v13069_v5, %v5410_v33  ;;  %v5562_v53 = vmul.f32 %v13079_v47, %v5412_v63  ;;  %v5415_v38 = vmax.f32 %v5261_v44, 0.0  ;;  %v5263_v8 = vadd.f32 %v13106_v25, %v13076_v16  ;;  %v6807_v14 = vld [vmem:[#allocation7 + $0x1e0] sm:$0xff]  ;;  %v16036_v33 = vld [vmem:[#allocation24_spill] sm:$0xff] }
 0x45d   : > { %v5735_v11 = vadd.f32 %v5703_v31, %v5558_v18  ;;  %v5563_v35 = vmul.f32 %v13048_v39, %v5413_v4  ;;  %v5414_v51 = vmax.f32 %v5070_v17, 0.0  ;;  %v5072_v9 = vadd.f32 %v13124_v7, %v13045_v12  ;;  %v13242_v18 = vpop.f32.mrf.mxu0  ;;  %v16037_v63 = vld [vmem:[#allocation14_spill] sm:$0xff]  ;;  %v13251_v4 = vpop.f32.mrf.mxu1 }
 0x45e   : > { %v5672_v28 = vadd.f32 %v5560_v0, %v5559_v37  ;;  %v5565_v2 = vmul.f32 %v13059_v59, %v5415_v38  ;;  %v5416_v26 = vmax.f32 %v5263_v8, 0.0  ;;  %v5265_v25 = vadd.f32 %v13119_v3, %v13056_v10  ;;  %6172 = vmatmul.mubr.bf16.gmra.mxu1 %v16036_v33 }
 0x45f   : > { %v13245_v44 = vadd.f32 %v5735_v11, %v16037_v63  ;;  %v5564_v7 = vmul.f32 %v13069_v5, %v5414_v51  ;;  %v5417_v31 = vmax.f32 %v5072_v9, 0.0  ;;  %v5074_v37 = vadd.f32 %v13137_v27, %v13066_v62  ;;  %6181 = vmatprep.mubr.bf16.mxu1 %v15759_v24  ;;  %v13256_v8 = vpop.f32.mrf.mxu0  ;;  %v6808_v27 = vld [vmem:[#allocation7 + $0x1e8] sm:$0xff]  ;;  %v13259_v30 = vpop.f32.mrf.mxu1 }
 0x460   : > { %v5704_v3 = vadd.f32 %v5672_v28, %v5561_v56  ;;  %v5566_v17 = vmul.f32 %v13079_v47, %v5416_v26  ;;  %v5419_v0 = vmax.f32 %v5265_v25, 0.0  ;;  %v5267_v38 = vadd.f32 %v13131_v50, %v13076_v16  ;;  %6365 = vmatmul.mubr.bf16.gmra.mxu0 %v16036_v33 }
 0x461   : > { %16038 = vst [vmem:[#allocation14_spill] sm:$0xff] %v13245_v44  ;;  %v5673_v11 = vadd.f32 %v5564_v7, %v5563_v35  ;;  %v5567_v51 = vmul.f32 %v13048_v39, %v5417_v31  ;;  %v5418_v9 = vmax.f32 %v5074_v37, 0.0  ;;  %v9481_v63 = vcombine.low %v6805_v15, %v6807_v14  ;;  %v6806_v44 = vld [vmem:[#allocation7 + $0x168] sm:$0xff]  ;;  %v13264_v25 = vpop.f32.mrf.mxu0  ;;  %v13272_v31 = vpop.f32.mrf.mxu1  ;;  %6374 = vmatprep.mubr.bf16.mxu0 %v15759_v24 }
 0x462   : > { %v13261_v22 = vadd.f32 %v5704_v3, %v5562_v53  ;;  %v5569_v56 = vmul.f32 %v13059_v59, %v5419_v0  ;;  %v5420_v28 = vmax.f32 %v5267_v38, 0.0  ;;  %v9482_v26 = vcombine.high %v6805_v15, %v6807_v14 }
 0x463   : > { %v5705_v50 = vadd.f32 %v5673_v11, %v5565_v2  ;;  %v5568_v60 = vmul.f32 %v13069_v5, %v5418_v9  ;;  %v5078_v35 = vadd.f32 %v13151_v57, %v13045_v12  ;;  %v5271_v7 = vadd.f32 %v13143_v41, %v13056_v10  ;;  %v13279_v37 = vpop.f32.mrf.mxu0  ;;  %v13282_v38 = vpop.f32.mrf.mxu1 }
 0x464   : > { %16039 = vst [vmem:[#allocation62_spill] sm:$0xff] %v13261_v22  ;;  %v5570_v53 = vmul.f32 %v13079_v47, %v5420_v28  ;;  %7027 = vmatprep.subr.bf16.mxu1 %v9482_v26  ;;  %v5080_v15 = vadd.f32 %v13161_v46, %v13066_v62  ;;  %v5273_v2 = vadd.f32 %v13156_v54, %v13076_v16  ;;  %v16040_v26 = vld [vmem:[#allocation25_spill] sm:$0xff]  ;;  %v16041_v54 = vld [vmem:[#allocation51_spill] sm:$0xff] }
 0x465   : > { %v9483_v14 = vcombine.low %v6806_v44, %v6808_v27  ;;  %v5737_v57 = vadd.f32 %v5705_v50, %v5566_v17  ;;  %v5674_v3 = vadd.f32 %v5568_v60, %v5567_v51  ;;  %v5421_v0 = vmax.f32 %v5078_v35, 0.0  ;;  %7028 = vmatpush1.bf16.msra.mxu1 %v9481_v63  ;;  %v13293_v63 = vpop.f32.mrf.mxu0 }
 0x466   : > { %v5423_v41 = vmax.f32 %v5271_v7, 0.0  ;;  %v5422_v11 = vmax.f32 %v5080_v15, 0.0  ;;  %v5424_v9 = vmax.f32 %v5273_v2, 0.0  ;;  %v9484_v28 = vcombine.high %v6806_v44, %v6808_v27  ;;  %6182 = vmatmul.mubr.bf16.gmra.mxu1 %v16040_v26  ;;  %v13299_v35 = vpop.f32.mrf.mxu1 }
 0x467   : > { %v5082_v46 = vadd.f32 %v13171_v48, %v13045_v12  ;;  %v13288_v22 = vadd.f32 %v5737_v57, %v16041_v54  ;;  %v5706_v17 = vadd.f32 %v5674_v3, %v5569_v56  ;;  %v5571_v60 = vmul.f32 %v13048_v39, %v5421_v0  ;;  %6191 = vmatprep.mubr.bf16.mxu1 %v15759_v24  ;;  %v13309_v57 = vpop.f32.mrf.mxu0 }
 0x468   : > { %v5573_v51 = vmul.f32 %v13059_v59, %v5423_v41  ;;  %v5572_v50 = vmul.f32 %v13069_v5, %v5422_v11  ;;  %v5574_v44 = vmul.f32 %v13079_v47, %v5424_v9  ;;  %7220 = vmatprep.subr.bf16.mxu0 %v9484_v28  ;;  %v5275_v27 = vadd.f32 %v13166_v23, %v13056_v10  ;;  %v13314_v41 = vpop.f32.mrf.mxu1 }
 0x469   : > { %16042 = vst [vmem:[#allocation51_spill] sm:$0xff] %v13288_v22  ;;  %v5425_v48 = vmax.f32 %v5082_v46, 0.0  ;;  %v13301_v56 = vadd.f32 %v5706_v17, %v5570_v53  ;;  %7221 = vmatpush1.bf16.msra.mxu0 %v9483_v14  ;;  %v5084_v7 = vadd.f32 %v13185_v36, %v13066_v62  ;;  %v5277_v15 = vadd.f32 %v13179_v42, %v13076_v16 }
 0x46a   : > { %v5088_v2 = vadd.f32 %v13200_v34, %v13045_v12  ;;  %v5675_v3 = vadd.f32 %v5572_v50, %v5571_v60  ;;  %v5427_v23 = vmax.f32 %v5275_v27, 0.0  ;;  %v5281_v53 = vadd.f32 %v13193_v45, %v13056_v10  ;;  %6375 = vmatmul.mubr.bf16.gmra.mxu0 %v16040_v26  ;;  %v13319_v34 = vpop.f32.mrf.mxu0  ;;  %v13325_v45 = vpop.f32.mrf.mxu1 }
 0x46b   : > { %16043 = vst [vmem:[#allocation63_spill] sm:$0xff] %v13301_v56  ;;  %v5575_v0 = vmul.f32 %v13048_v39, %v5425_v48  ;;  %v5426_v14 = vmax.f32 %v5084_v7, 0.0  ;;  %v5428_v11 = vmax.f32 %v5277_v15, 0.0  ;;  %v5090_v42 = vadd.f32 %v13213_v49, %v13066_v62  ;;  %6384 = vmatprep.mubr.bf16.mxu0 %v15759_v24 }
 0x46c   : > { %v5429_v36 = vmax.f32 %v5088_v2, 0.0  ;;  %v5707_v9 = vadd.f32 %v5675_v3, %v5573_v51  ;;  %v5577_v28 = vmul.f32 %v13059_v59, %v5427_v23  ;;  %v5431_v46 = vmax.f32 %v5281_v53, 0.0  ;;  %v13330_v48 = vpop.f32.mrf.mxu0  ;;  %v13336_v15 = vpop.f32.mrf.mxu1 }
 0x46d   : > { %v5283_v54 = vadd.f32 %v13207_v1, %v13076_v16  ;;  %v5576_v17 = vmul.f32 %v13069_v5, %v5426_v14  ;;  %v5578_v60 = vmul.f32 %v13079_v47, %v5428_v11  ;;  %v5430_v50 = vmax.f32 %v5090_v42, 0.0  ;;  %v6803_v14 = vld [vmem:[#allocation7 + $0xe0] sm:$0xff] }
 0x46e   : > { %v5579_v49 = vmul.f32 %v13048_v39, %v5429_v36  ;;  %v5739_v51 = vadd.f32 %v5707_v9, %v5574_v44  ;;  %v5581_v27 = vmul.f32 %v13059_v59, %v5431_v46  ;;  %v5092_v1 = vadd.f32 %v13224_v29, %v13045_v12  ;;  %6192 = vmatmul.mubr.bf16.gmra.mxu1 %v15926_v20  ;;  %v6801_v44 = vld [vmem:[#allocation7 + $0x60] sm:$0xff]  ;;  %v13344_v11 = vpop.f32.mrf.mxu0  ;;  %v16044_v29 = vld [vmem:[#allocation55_spill] sm:$0xff]  ;;  %v13352_v46 = vpop.f32.mrf.mxu1 }
 0x46f   : > { %v5432_v7 = vmax.f32 %v5283_v54, 0.0  ;;  %v5676_v2 = vadd.f32 %v5576_v17, %v5575_v0  ;;  %v5580_v3 = vmul.f32 %v13069_v5, %v5430_v50  ;;  %v5285_v23 = vadd.f32 %v13218_v6, %v13056_v10  ;;  %7047 = vmatprep.mubr.bf16.mxu1 %v15759_v24 }
 0x470   : > { %v5094_v53 = vadd.f32 %v13236_v55, %v13066_v62  ;;  %v13347_v36 = vadd.f32 %v5739_v51, %v16044_v29  ;;  %v5433_v0 = vmax.f32 %v5092_v1, 0.0  ;;  %v5287_v9 = vadd.f32 %v13231_v32, %v13076_v16  ;;  %v13354_v50 = vpop.f32.mrf.mxu0  ;;  %v6802_v29 = vld [vmem:[#allocation7 + $0x68] sm:$0xff] }
 0x471   : > { %v5582_v42 = vmul.f32 %v13079_v47, %v5432_v7  ;;  %v5708_v6 = vadd.f32 %v5676_v2, %v5577_v28  ;;  %v5677_v54 = vadd.f32 %v5580_v3, %v5579_v49  ;;  %v5435_v55 = vmax.f32 %v5285_v23, 0.0  ;;  %v13357_v7 = vpop.f32.mrf.mxu1 }
 0x472   : > { %16045 = vst [vmem:[#allocation55_spill] sm:$0xff] %v13347_v36  ;;  %v5434_v17 = vmax.f32 %v5094_v53, 0.0  ;;  %v5583_v56 = vmul.f32 %v13048_v39, %v5433_v0  ;;  %v5436_v22 = vmax.f32 %v5287_v9, 0.0  ;;  %v9477_v26 = vcombine.low %v6801_v44, %v6803_v14  ;;  %v6804_v36 = vld [vmem:[#allocation7 + $0xe8] sm:$0xff]  ;;  %6385 = vmatmul.mubr.bf16.gmra.mxu0 %v15926_v20  ;;  %v13364_v49 = vpop.f32.mrf.mxu0 }
 0x473   : > { %v9478_v51 = vcombine.high %v6801_v44, %v6803_v14  ;;  %v13359_v1 = vadd.f32 %v5708_v6, %v5578_v60  ;;  %v5709_v32 = vadd.f32 %v5677_v54, %v5581_v27  ;;  %v5585_v33 = vmul.f32 %v13059_v59, %v5435_v55  ;;  %v13373_v27 = vpop.f32.mrf.mxu1  ;;  %7240 = vmatprep.mubr.bf16.mxu0 %v15759_v24 }
 0x474   : > { %v5584_v28 = vmul.f32 %v13069_v5, %v5434_v17  ;;  %v5586_v2 = vmul.f32 %v13079_v47, %v5436_v22  ;;  %v5098_v3 = vadd.f32 %v13251_v4, %v13045_v12  ;;  %v5291_v23 = vadd.f32 %v13242_v18, %v13056_v10  ;;  %v13380_v18 = vpop.f32.mrf.mxu0 }
 0x475   : > { %16046 = vst [vmem:[#allocation64_spill] sm:$0xff] %v13359_v1  ;;  %7029 = vmatprep.subr.bf16.mxu1 %v9478_v51  ;;  %v5100_v60 = vadd.f32 %v13259_v30, %v13066_v62  ;;  %v5741_v53 = vadd.f32 %v5709_v32, %v5582_v42  ;;  %v5293_v14 = vadd.f32 %v13256_v8, %v13076_v16  ;;  %v13378_v4 = vpop.f32.mrf.mxu1 }
 0x476   : > { %v5678_v44 = vadd.f32 %v5584_v28, %v5583_v56  ;;  %7030 = vmatpush1.bf16.msra.mxu1 %v9477_v26  ;;  %v9479_v0 = vcombine.low %v6802_v29, %v6804_v36  ;;  %v5437_v22 = vmax.f32 %v5098_v3, 0.0  ;;  %v5439_v9 = vmax.f32 %v5291_v23, 0.0 }
 0x477   : > { %v5438_v6 = vmax.f32 %v5100_v60, 0.0  ;;  %v9480_v54 = vcombine.high %v6802_v29, %v6804_v36  ;;  %v13383_v30 = vadd.f32 %v5741_v53, %v12570_v58  ;;  %v5440_v56 = vmax.f32 %v5293_v14, 0.0 }
 0x478   : > { %v5710_v42 = vadd.f32 %v5678_v44, %v5585_v33  ;;  %v5102_v26 = vadd.f32 %v13272_v31, %v13045_v12  ;;  %v5587_v8 = vmul.f32 %v13048_v39, %v5437_v22  ;;  %v5589_v55 = vmul.f32 %v13059_v59, %v5439_v9 }
 0x479   : > { %16047 = vst [vmem:[#allocation65_spill] sm:$0xff] %v13383_v30  ;;  %v5588_v36 = vmul.f32 %v13069_v5, %v5438_v6  ;;  %7222 = vmatprep.subr.bf16.mxu0 %v9480_v54  ;;  %v5295_v17 = vadd.f32 %v13264_v25, %v13056_v10  ;;  %v5590_v58 = vmul.f32 %v13079_v47, %v5440_v56  ;;  %v13398_v31 = vpop.f32.mrf.mxu1 }
 0x47a   : > { %v13392_v51 = vadd.f32 %v5710_v42, %v5586_v2  ;;  %v5441_v29 = vmax.f32 %v5102_v26, 0.0  ;;  %7223 = vmatpush1.bf16.msra.mxu0 %v9479_v0  ;;  %v5104_v33 = vadd.f32 %v13282_v38, %v13066_v62  ;;  %7048 = vmatmul.mubr.bf16.vlgmr.msra.gmra.mxu1 %v10314_v52  ;;  %v5297_v3 = vadd.f32 %v13279_v37, %v13076_v16  ;;  %v13405_v2 = vpop.f32.mrf.mxu0 }
 0x47b   : > { %v5679_v32 = vadd.f32 %v5588_v36, %v5587_v8  ;;  %v5443_v28 = vmax.f32 %v5295_v17, 0.0  ;;  %v5108_v25 = vadd.f32 %v13299_v35, %v13045_v12  ;;  %7057 = vmatprep.mubr.bf16.mxu1 %v15759_v24  ;;  %v5301_v38 = vadd.f32 %v13293_v63, %v13056_v10  ;;  %v13412_v44 = vpop.f32.mrf.mxu1 }
 0x47c   : > { %16048 = vst [vmem:[#allocation66_spill] sm:$0xff] %v13392_v51  ;;  %v5591_v23 = vmul.f32 %v13048_v39, %v5441_v29  ;;  %v5442_v60 = vmax.f32 %v5104_v33, 0.0  ;;  %v5110_v53 = vadd.f32 %v13314_v41, %v13066_v62  ;;  %v5444_v0 = vmax.f32 %v5297_v3, 0.0  ;;  %v13416_v22 = vpop.f32.mrf.mxu0  ;;  %v7835_v33 = vld [vmem:[#allocation7 + $0x770] sm:$0xff] }
 0x47d   : > { %v5711_v14 = vadd.f32 %v5679_v32, %v5589_v55  ;;  %v5593_v37 = vmul.f32 %v13059_v59, %v5443_v28  ;;  %v5445_v35 = vmax.f32 %v5108_v25, 0.0  ;;  %7241 = vmatmul.mubr.bf16.vlgmr.msra.gmra.mxu0 %v10314_v52  ;;  %v5447_v6 = vmax.f32 %v5301_v38, 0.0  ;;  %v13422_v41 = vpop.f32.mrf.mxu1  ;;  %v7837_v32 = vld [vmem:[#allocation7 + $0x7f0] sm:$0xff] }
 0x47e   : > { %v5592_v9 = vmul.f32 %v13069_v5, %v5442_v60  ;;  %v5446_v54 = vmax.f32 %v5110_v53, 0.0  ;;  %v5303_v63 = vadd.f32 %v13309_v57, %v13076_v16  ;;  %7250 = vmatprep.mubr.bf16.mxu0 %v15759_v24  ;;  %v5594_v56 = vmul.f32 %v13079_v47, %v5444_v0  ;;  %v13428_v55 = vpop.f32.mrf.mxu0 }
 0x47f   : > { %v5743_v42 = vadd.f32 %v5711_v14, %v5590_v58  ;;  %v5595_v26 = vmul.f32 %v13048_v39, %v5445_v35  ;;  %v5112_v8 = vadd.f32 %v13325_v45, %v13045_v12  ;;  %v5597_v17 = vmul.f32 %v13059_v59, %v5447_v6  ;;  %v13432_v28 = vpop.f32.mrf.mxu1  ;;  %v16049_v58 = vld [vmem:[#allocation58_spill] sm:$0xff] }
 0x480   : > { %v5680_v36 = vadd.f32 %v5592_v9, %v5591_v23  ;;  %v5596_v29 = vmul.f32 %v13069_v5, %v5446_v54  ;;  %v5448_v57 = vmax.f32 %v5303_v63, 0.0  ;;  %v5305_v60 = vadd.f32 %v13319_v34, %v13056_v10  ;;  %v13441_v23 = vpop.f32.mrf.mxu0 }
 0x481   : > { %v13435_v3 = vadd.f32 %v5743_v42, %v16049_v58  ;;  %v5449_v25 = vmax.f32 %v5112_v8, 0.0  ;;  %v5114_v45 = vadd.f32 %v13336_v15, %v13066_v62  ;;  %v5307_v0 = vadd.f32 %v13330_v48, %v13076_v16  ;;  %v13447_v35 = vpop.f32.mrf.mxu1  ;;  %v7836_v8 = vld [vmem:[#allocation7 + $0x778] sm:$0xff] }
 0x482   : > { %v5712_v38 = vadd.f32 %v5680_v36, %v5593_v37  ;;  %v5681_v53 = vadd.f32 %v5596_v29, %v5595_v26  ;;  %v5598_v14 = vmul.f32 %v13079_v47, %v5448_v57  ;;  %7058 = vmatmul.mubr.bf16.gmra.mxu1 %v10329_v13  ;;  %v5451_v6 = vmax.f32 %v5305_v60, 0.0  ;;  %v13451_v15 = vpop.f32.mrf.mxu0  ;;  %v7838_v48 = vld [vmem:[#allocation7 + $0x7f8] sm:$0xff] }
 0x483   : > { %16050 = vst [vmem:[#allocation58_spill] sm:$0xff] %v13435_v3  ;;  %v5599_v9 = vmul.f32 %v13048_v39, %v5449_v25  ;;  %v5450_v34 = vmax.f32 %v5114_v45, 0.0  ;;  %v9537_v54 = vcombine.low %v7835_v33, %v7837_v32  ;;  %7067 = vmatprep.mubr.bf16.mxu1 %v15759_v24  ;;  %v5452_v42 = vmax.f32 %v5307_v0, 0.0  ;;  %v13455_v36 = vpop.f32.mrf.mxu1 }
 0x484   : > { %v13453_v37 = vadd.f32 %v5712_v38, %v5594_v56  ;;  %v5713_v63 = vadd.f32 %v5681_v53, %v5597_v17  ;;  %v9538_v26 = vcombine.high %v7835_v33, %v7837_v32  ;;  %v5601_v29 = vmul.f32 %v13059_v59, %v5451_v6  ;;  %v13464_v56 = vpop.f32.mrf.mxu0 }
 0x485   : > { %v5600_v57 = vmul.f32 %v13069_v5, %v5450_v34  ;;  %v5118_v58 = vadd.f32 %v13352_v46, %v13045_v12  ;;  %v5311_v25 = vadd.f32 %v13344_v11, %v13056_v10  ;;  %7251 = vmatmul.mubr.bf16.gmra.mxu0 %v10329_v13  ;;  %v5602_v33 = vmul.f32 %v13079_v47, %v5452_v42  ;;  %v13471_v45 = vpop.f32.mrf.mxu1 }
 0x486   : > { %16051 = vst [vmem:[#allocation67_spill] sm:$0xff] %v13453_v37  ;;  %v5745_v17 = vadd.f32 %v5713_v63, %v5598_v14  ;;  %8021 = vmatprep.subr.bf16.mxu1 %v9538_v26  ;;  %v5120_v32 = vadd.f32 %v13357_v7, %v13066_v62  ;;  %v5313_v60 = vadd.f32 %v13354_v50, %v13076_v16  ;;  %v13474_v0 = vpop.f32.mrf.mxu0 }
 0x487   : > { %v5682_v46 = vadd.f32 %v5600_v57, %v5599_v9  ;;  %v5453_v38 = vmax.f32 %v5118_v58, 0.0  ;;  %v5455_v53 = vmax.f32 %v5311_v25, 0.0  ;;  %8022 = vmatpush1.bf16.msra.mxu1 %v9537_v54  ;;  %v9539_v11 = vcombine.low %v7836_v8, %v7838_v48  ;;  %7260 = vmatprep.mubr.bf16.mxu0 %v15759_v24  ;;  %v13479_v63 = vpop.f32.mrf.mxu1 }
 0x488   : > { %v13477_v14 = vadd.f32 %v5745_v17, %v12670_v61  ;;  %v5454_v6 = vmax.f32 %v5120_v32, 0.0  ;;  %v5456_v34 = vmax.f32 %v5313_v60, 0.0  ;;  %v9540_v7 = vcombine.high %v7836_v8, %v7838_v48  ;;  %v13485_v26 = vpop.f32.mrf.mxu0 }
 0x489   : > { %v5714_v50 = vadd.f32 %v5682_v46, %v5601_v29  ;;  %v5603_v42 = vmul.f32 %v13048_v39, %v5453_v38  ;;  %v5605_v9 = vmul.f32 %v13059_v59, %v5455_v53  ;;  %v5122_v54 = vadd.f32 %v13373_v27, %v13045_v12  ;;  %v13493_v29 = vpop.f32.mrf.mxu1 }
 0x48a   : > { %16052 = vst [vmem:[#allocation68_spill] sm:$0xff] %v13477_v14  ;;  %v5604_v57 = vmul.f32 %v13069_v5, %v5454_v6  ;;  %v5606_v61 = vmul.f32 %v13079_v47, %v5456_v34  ;;  %8214 = vmatprep.subr.bf16.mxu0 %v9540_v7  ;;  %v5315_v8 = vadd.f32 %v13364_v49, %v13056_v10 }
 0x48b   : > { %v5124_v48 = vadd.f32 %v13378_v4, %v13066_v62  ;;  %v13495_v58 = vadd.f32 %v5714_v50, %v5602_v33  ;;  %v5457_v25 = vmax.f32 %v5122_v54, 0.0  ;;  %8215 = vmatpush1.bf16.msra.mxu0 %v9539_v11  ;;  %v5317_v27 = vadd.f32 %v13380_v18, %v13076_v16  ;;  %7068 = vmatmul.mubr.bf16.gmra.mxu1 %v10343_v43  ;;  %v13505_v33 = vpop.f32.mrf.mxu0  ;;  %v13507_v46 = vpop.f32.mrf.mxu1 }
 0x48c   : > { %v5128_v17 = vadd.f32 %v13398_v31, %v13045_v12  ;;  %v5683_v32 = vadd.f32 %v5604_v57, %v5603_v42  ;;  %v5459_v60 = vmax.f32 %v5315_v8, 0.0  ;;  %v5321_v4 = vadd.f32 %v13405_v2, %v13056_v10  ;;  %7077 = vmatprep.mubr.bf16.mxu1 %v15759_v24 }
 0x48d   : > { %16053 = vst [vmem:[#allocation69_spill] sm:$0xff] %v13495_v58  ;;  %v5458_v49 = vmax.f32 %v5124_v48, 0.0  ;;  %v5607_v38 = vmul.f32 %v13048_v39, %v5457_v25  ;;  %v5460_v18 = vmax.f32 %v5317_v27, 0.0  ;;  %v5130_v31 = vadd.f32 %v13412_v44, %v13066_v62  ;;  %7261 = vmatmul.mubr.bf16.gmra.mxu0 %v10343_v43  ;;  %v13516_v7 = vpop.f32.mrf.mxu0  ;;  %v13518_v50 = vpop.f32.mrf.mxu1 }
 0x48e   : > { %v5461_v53 = vmax.f32 %v5128_v17, 0.0  ;;  %v5715_v11 = vadd.f32 %v5683_v32, %v5605_v9  ;;  %v5609_v6 = vmul.f32 %v13059_v59, %v5459_v60  ;;  %v5463_v34 = vmax.f32 %v5321_v4, 0.0  ;;  %7270 = vmatprep.mubr.bf16.mxu0 %v15759_v24  ;;  %v7833_v4 = vld [vmem:[#allocation7 + $0x6f0] sm:$0xff] }
 0x48f   : > { %v5608_v2 = vmul.f32 %v13069_v5, %v5458_v49  ;;  %v5610_v42 = vmul.f32 %v13079_v47, %v5460_v18  ;;  %v5462_v57 = vmax.f32 %v5130_v31, 0.0  ;;  %v5323_v44 = vadd.f32 %v13416_v22, %v13076_v16  ;;  %v13527_v27 = vpop.f32.mrf.mxu0  ;;  %v13529_v17 = vpop.f32.mrf.mxu1 }
 0x490   : > { %v5611_v54 = vmul.f32 %v13048_v39, %v5461_v53  ;;  %v5747_v9 = vadd.f32 %v5715_v11, %v5606_v61  ;;  %v5613_v48 = vmul.f32 %v13059_v59, %v5463_v34  ;;  %v5132_v25 = vadd.f32 %v13422_v41, %v13045_v12  ;;  %v7831_v61 = vld [vmem:[#allocation7 + $0x670] sm:$0xff] }
 0x491   : > { %v5684_v8 = vadd.f32 %v5608_v2, %v5607_v38  ;;  %v5612_v32 = vmul.f32 %v13069_v5, %v5462_v57  ;;  %v5464_v60 = vmax.f32 %v5323_v44, 0.0  ;;  %v5325_v49 = vadd.f32 %v13428_v55, %v13056_v10  ;;  %v16054_v38 = vld [vmem:[#allocation34_spill] sm:$0xff]  ;;  %v13541_v11 = vpop.f32.mrf.mxu0  ;;  %v13543_v2 = vpop.f32.mrf.mxu1 }
 0x492   : > { %v5134_v22 = vadd.f32 %v13432_v28, %v13066_v62  ;;  %v13537_v18 = vadd.f32 %v5747_v9, %v16054_v38  ;;  %v5465_v41 = vmax.f32 %v5132_v25, 0.0  ;;  %v5327_v31 = vadd.f32 %v13441_v23, %v13076_v16  ;;  %v7832_v25 = vld [vmem:[#allocation7 + $0x678] sm:$0xff] }
 0x493   : > { %v5716_v53 = vadd.f32 %v5684_v8, %v5609_v6  ;;  %v5685_v34 = vadd.f32 %v5612_v32, %v5611_v54  ;;  %v5614_v55 = vmul.f32 %v13079_v47, %v5464_v60  ;;  %v5467_v57 = vmax.f32 %v5325_v49, 0.0  ;;  %7078 = vmatmul.mubr.bf16.gmra.mxu1 %v15797_v19  ;;  %v7834_v38 = vld [vmem:[#allocation7 + $0x6f8] sm:$0xff]  ;;  %v13551_v23 = vpop.f32.mrf.mxu0 }
 0x494   : > { %16055 = vst [vmem:[#allocation34_spill] sm:$0xff] %v13537_v18  ;;  %v5466_v44 = vmax.f32 %v5134_v22, 0.0  ;;  %v5615_v9 = vmul.f32 %v13048_v39, %v5465_v41  ;;  %v5468_v6 = vmax.f32 %v5327_v31, 0.0  ;;  %v9533_v8 = vcombine.low %v7831_v61, %v7833_v4  ;;  %7087 = vmatprep.mubr.bf16.mxu1 %v15759_v24  ;;  %v13553_v18 = vpop.f32.mrf.mxu1 }
 0x495   : > { %v13547_v28 = vadd.f32 %v5716_v53, %v5610_v42  ;;  %v5717_v54 = vadd.f32 %v5685_v34, %v5613_v48  ;;  %v5617_v32 = vmul.f32 %v13059_v59, %v5467_v57  ;;  %v9534_v49 = vcombine.high %v7831_v61, %v7833_v4  ;;  %7271 = vmatmul.mubr.bf16.gmra.mxu0 %v15797_v19  ;;  %v13566_v48 = vpop.f32.mrf.mxu0 }
 0x496   : > { %v5616_v60 = vmul.f32 %v13069_v5, %v5466_v44  ;;  %v5618_v42 = vmul.f32 %v13079_v47, %v5468_v6  ;;  %v5138_v22 = vadd.f32 %v13447_v35, %v13045_v12  ;;  %v5331_v53 = vadd.f32 %v13451_v15, %v13056_v10  ;;  %7280 = vmatprep.mubr.bf16.mxu0 %v15759_v24  ;;  %v13568_v31 = vpop.f32.mrf.mxu1 }
 0x497   : > { %16056 = vst [vmem:[#allocation70_spill] sm:$0xff] %v13547_v28  ;;  %v5140_v41 = vadd.f32 %v13455_v36, %v13066_v62  ;;  %v5749_v61 = vadd.f32 %v5717_v54, %v5614_v55  ;;  %8023 = vmatprep.subr.bf16.mxu1 %v9534_v49  ;;  %v5333_v34 = vadd.f32 %v13464_v56, %v13076_v16  ;;  %v13572_v28 = vpop.f32.mrf.mxu0 }
 0x498   : > { %v5686_v4 = vadd.f32 %v5616_v60, %v5615_v9  ;;  %v9535_v57 = vcombine.low %v7832_v25, %v7834_v38  ;;  %v5469_v35 = vmax.f32 %v5138_v22, 0.0  ;;  %v5471_v44 = vmax.f32 %v5331_v53, 0.0  ;;  %8024 = vmatpush1.bf16.msra.mxu1 %v9533_v8  ;;  %v13574_v36 = vpop.f32.mrf.mxu1  ;;  %v16059_v22 = vld [vmem:[#allocation15_spill] sm:$0xff] }
 0x499   : > { %v5470_v15 = vmax.f32 %v5140_v41, 0.0  ;;  %v9536_v6 = vcombine.high %v7832_v25, %v7834_v38  ;;  %v13577_v58 = vadd.f32 %v5749_v61, %v12770_v21  ;;  %v5472_v55 = vmax.f32 %v5333_v34, 0.0  ;;  %v13586_v38 = vpop.f32.mrf.mxu0 }
 0x49a   : > { %v5718_v14 = vadd.f32 %v5686_v4, %v5617_v32  ;;  %v5142_v9 = vadd.f32 %v13471_v45, %v13045_v12  ;;  %v5619_v56 = vmul.f32 %v13048_v39, %v5469_v35  ;;  %v5621_v54 = vmul.f32 %v13059_v59, %v5471_v44  ;;  %v13588_v60 = vpop.f32.mrf.mxu1 }
 0x49b   : > { %16057 = vst [vmem:[#allocation71_spill] sm:$0xff] %v13577_v58  ;;  %v5620_v8 = vmul.f32 %v13069_v5, %v5470_v15  ;;  %8216 = vmatprep.subr.bf16.mxu0 %v9536_v6  ;;  %v5335_v25 = vadd.f32 %v13474_v0, %v13056_v10  ;;  %v5622_v32 = vmul.f32 %v13079_v47, %v5472_v55 }
 0x49c   : > { %v13590_v21 = vadd.f32 %v5718_v14, %v5618_v42  ;;  %v5473_v49 = vmax.f32 %v5142_v9, 0.0  ;;  %8217 = vmatpush1.bf16.msra.mxu0 %v9535_v57  ;;  %v5144_v45 = vadd.f32 %v13479_v63, %v13066_v62  ;;  %7088 = vmatmul.mubr.bf16.gmra.mxu1 %v16059_v22  ;;  %v5337_v0 = vadd.f32 %v13485_v26, %v13076_v16  ;;  %v13601_v14 = vpop.f32.mrf.mxu1  ;;  %v13609_v57 = vpop.f32.mrf.mxu0 }
 0x49d   : > { %v5687_v53 = vadd.f32 %v5620_v8, %v5619_v56  ;;  %v5475_v41 = vmax.f32 %v5335_v25, 0.0  ;;  %v5148_v61 = vadd.f32 %v13493_v29, %v13045_v12  ;;  %7097 = vmatprep.mubr.bf16.mxu1 %v15759_v24  ;;  %v5341_v63 = vadd.f32 %v13505_v33, %v13056_v10  ;;  %7281 = vmatmul.mubr.bf16.gmra.mxu0 %v16059_v22 }
 0x49e   : > { %16058 = vst [vmem:[#allocation72_spill] sm:$0xff] %v13590_v21  ;;  %v5623_v42 = vmul.f32 %v13048_v39, %v5473_v49  ;;  %v5474_v4 = vmax.f32 %v5144_v45, 0.0  ;;  %v5150_v34 = vadd.f32 %v13507_v46, %v13066_v62  ;;  %v5476_v35 = vmax.f32 %v5337_v0, 0.0  ;;  %7290 = vmatprep.mubr.bf16.mxu0 %v15759_v24  ;;  %v13613_v15 = vpop.f32.mrf.mxu1  ;;  %v13618_v9 = vpop.f32.mrf.mxu0  ;;  %v16064_v21 = vld [vmem:[#allocation38_spill] sm:$0xff] }
 0x49f   : > { %v5719_v26 = vadd.f32 %v5687_v53, %v5621_v54  ;;  %v5625_v29 = vmul.f32 %v13059_v59, %v5475_v41  ;;  %v5477_v44 = vmax.f32 %v5148_v61, 0.0  ;;  %v5479_v55 = vmax.f32 %v5341_v63, 0.0  ;;  %v7827_v61 = vld [vmem:[#allocation7 + $0x570] sm:$0xff] }
 0x4a0   : > { %v5624_v6 = vmul.f32 %v13069_v5, %v5474_v4  ;;  %v5478_v33 = vmax.f32 %v5150_v34, 0.0  ;;  %v5343_v46 = vadd.f32 %v13516_v7, %v13076_v16  ;;  %v5626_v54 = vmul.f32 %v13079_v47, %v5476_v35  ;;  %v13624_v49 = vpop.f32.mrf.mxu1  ;;  %v7829_v7 = vld [vmem:[#allocation7 + $0x5f0] sm:$0xff]  ;;  %v13628_v4 = vpop.f32.mrf.mxu0 }
 0x4a1   : > { %v5751_v56 = vadd.f32 %v5719_v26, %v5622_v32  ;;  %v5627_v8 = vmul.f32 %v13048_v39, %v5477_v44  ;;  %v5152_v25 = vadd.f32 %v13518_v50, %v13045_v12  ;;  %v5629_v53 = vmul.f32 %v13059_v59, %v5479_v55  ;;  %v16060_v32 = vld [vmem:[#allocation36_spill] sm:$0xff] }
 0x4a2   : > { %v5688_v45 = vadd.f32 %v5624_v6, %v5623_v42  ;;  %v5628_v41 = vmul.f32 %v13069_v5, %v5478_v33  ;;  %v5480_v0 = vmax.f32 %v5343_v46, 0.0  ;;  %v5345_v26 = vadd.f32 %v13527_v27, %v13056_v10  ;;  %v13637_v42 = vpop.f32.mrf.mxu1  ;;  %v16062_v33 = vld [vmem:[#allocation16_spill] sm:$0xff]  ;;  %v13643_v46 = vpop.f32.mrf.mxu0 }
 0x4a3   : > { %v13631_v63 = vadd.f32 %v5751_v56, %v16060_v32  ;;  %v5481_v34 = vmax.f32 %v5152_v25, 0.0  ;;  %v5154_v50 = vadd.f32 %v13529_v17, %v13066_v62  ;;  %v5347_v55 = vadd.f32 %v13541_v11, %v13076_v16  ;;  %v7830_v11 = vld [vmem:[#allocation7 + $0x5f8] sm:$0xff] }
 0x4a4   : > { %v5720_v35 = vadd.f32 %v5688_v45, %v5625_v29  ;;  %v5689_v44 = vadd.f32 %v5628_v41, %v5627_v8  ;;  %v5630_v6 = vmul.f32 %v13079_v47, %v5480_v0  ;;  %7098 = vmatmul.mubr.bf16.gmra.mxu1 %v16062_v33  ;;  %v5483_v25 = vmax.f32 %v5345_v26, 0.0  ;;  %v13647_v17 = vpop.f32.mrf.mxu1  ;;  %v7828_v0 = vld [vmem:[#allocation7 + $0x578] sm:$0xff] }
 0x4a5   : > { %16061 = vst [vmem:[#allocation15_spill] sm:$0xff] %v13631_v63  ;;  %v5631_v56 = vmul.f32 %v13048_v39, %v5481_v34  ;;  %v5482_v27 = vmax.f32 %v5154_v50, 0.0  ;;  %v9529_v32 = vcombine.low %v7827_v61, %v7829_v7  ;;  %7107 = vmatprep.mubr.bf16.mxu1 %v15759_v24  ;;  %v5484_v45 = vmax.f32 %v5347_v55, 0.0  ;;  %7291 = vmatmul.mubr.bf16.gmra.mxu0 %v16062_v33  ;;  %v13652_v63 = vpop.f32.mrf.mxu0 }
 0x4a6   : > { %v13649_v29 = vadd.f32 %v5720_v35, %v5626_v54  ;;  %v5721_v8 = vadd.f32 %v5689_v44, %v5629_v53  ;;  %v9530_v41 = vcombine.high %v7827_v61, %v7829_v7  ;;  %v5633_v34 = vmul.f32 %v13059_v59, %v5483_v25  ;;  %7300 = vmatprep.mubr.bf16.mxu0 %v15759_v24  ;;  %v13661_v53 = vpop.f32.mrf.mxu1 }
 0x4a7   : > { %v5632_v26 = vmul.f32 %v13069_v5, %v5482_v27  ;;  %v5158_v50 = vadd.f32 %v13543_v2, %v13045_v12  ;;  %v5351_v54 = vadd.f32 %v13551_v23, %v13056_v10  ;;  %v5634_v7 = vmul.f32 %v13079_v47, %v5484_v45  ;;  %v13668_v55 = vpop.f32.mrf.mxu0 }
 0x4a8   : > { %16063 = vst [vmem:[#allocation36_spill] sm:$0xff] %v13649_v29  ;;  %v5753_v61 = vadd.f32 %v5721_v8, %v5630_v6  ;;  %8025 = vmatprep.subr.bf16.mxu1 %v9530_v41  ;;  %v5160_v35 = vadd.f32 %v13553_v18, %v13066_v62  ;;  %v5353_v44 = vadd.f32 %v13566_v48, %v13076_v16  ;;  %v13670_v29 = vpop.f32.mrf.mxu1 }
 0x4a9   : > { %v5690_v2 = vadd.f32 %v5632_v26, %v5631_v56  ;;  %v5485_v25 = vmax.f32 %v5158_v50, 0.0  ;;  %v5487_v27 = vmax.f32 %v5351_v54, 0.0  ;;  %8026 = vmatpush1.bf16.msra.mxu1 %v9529_v32  ;;  %v9531_v23 = vcombine.low %v7828_v0, %v7830_v11  ;;  %v13675_v58 = vpop.f32.mrf.mxu0 }
 0x4aa   : > { %v13673_v6 = vadd.f32 %v5753_v61, %v16064_v21  ;;  %v5486_v8 = vmax.f32 %v5160_v35, 0.0  ;;  %v5488_v45 = vmax.f32 %v5353_v44, 0.0  ;;  %v9532_v41 = vcombine.high %v7828_v0, %v7830_v11  ;;  %v13681_v32 = vpop.f32.mrf.mxu1  ;;  %v16067_v35 = vld [vmem:[#allocation17_spill] sm:$0xff] }
 0x4ab   : > { %v5722_v18 = vadd.f32 %v5690_v2, %v5633_v34  ;;  %v5635_v48 = vmul.f32 %v13048_v39, %v5485_v25  ;;  %v5637_v37 = vmul.f32 %v13059_v59, %v5487_v27  ;;  %v5162_v56 = vadd.f32 %v13568_v31, %v13045_v12  ;;  %v13689_v34 = vpop.f32.mrf.mxu0 }
 0x4ac   : > { %16065 = vst [vmem:[#allocation16_spill] sm:$0xff] %v13673_v6  ;;  %v5636_v26 = vmul.f32 %v13069_v5, %v5486_v8  ;;  %v5638_v21 = vmul.f32 %v13079_v47, %v5488_v45  ;;  %8218 = vmatprep.subr.bf16.mxu0 %v9532_v41  ;;  %v5355_v0 = vadd.f32 %v13572_v28, %v13056_v10  ;;  %v13698_v44 = vpop.f32.mrf.mxu1 }
 0x4ad   : > { %v5164_v11 = vadd.f32 %v13574_v36, %v13066_v62  ;;  %v13691_v50 = vadd.f32 %v5722_v18, %v5634_v7  ;;  %v5489_v54 = vmax.f32 %v5162_v56, 0.0  ;;  %8219 = vmatpush1.bf16.msra.mxu0 %v9531_v23  ;;  %v5357_v31 = vadd.f32 %v13586_v38, %v13076_v16  ;;  %7108 = vmatmul.mubr.bf16.gmra.mxu1 %v16067_v35  ;;  %v13708_v23 = vpop.f32.mrf.mxu0 }
 0x4ae   : > { %v5168_v61 = vadd.f32 %v13588_v60, %v13045_v12  ;;  %v5691_v28 = vadd.f32 %v5636_v26, %v5635_v48  ;;  %v5491_v2 = vmax.f32 %v5355_v0, 0.0  ;;  %v5361_v36 = vadd.f32 %v13609_v57, %v13056_v10  ;;  %7301 = vmatmul.mubr.bf16.gmra.mxu0 %v16067_v35  ;;  %7117 = vmatprep.mubr.bf16.mxu1 %v15759_v24  ;;  %v13710_v8 = vpop.f32.mrf.mxu1 }
 0x4af   : > { %16066 = vst [vmem:[#allocation38_spill] sm:$0xff] %v13691_v50  ;;  %v5490_v25 = vmax.f32 %v5164_v11, 0.0  ;;  %v5639_v7 = vmul.f32 %v13048_v39, %v5489_v54  ;;  %v5492_v38 = vmax.f32 %v5357_v31, 0.0  ;;  %v5170_v60 = vadd.f32 %v13601_v14, %v13066_v62  ;;  %7310 = vmatprep.mubr.bf16.mxu0 %v15759_v24  ;;  %v13718_v0 = vpop.f32.mrf.mxu0 }
 0x4b0   : > { %v5493_v27 = vmax.f32 %v5168_v61, 0.0  ;;  %v5723_v45 = vadd.f32 %v5691_v28, %v5637_v37  ;;  %v5641_v57 = vmul.f32 %v13059_v59, %v5491_v2  ;;  %v5495_v18 = vmax.f32 %v5361_v36, 0.0  ;;  %v13720_v11 = vpop.f32.mrf.mxu1  ;;  %v7823_v36 = vld [vmem:[#allocation7 + $0x470] sm:$0xff] }
 0x4b1   : > { %v5640_v41 = vmul.f32 %v13069_v5, %v5490_v25  ;;  %v5642_v48 = vmul.f32 %v13079_v47, %v5492_v38  ;;  %v5494_v26 = vmax.f32 %v5170_v60, 0.0  ;;  %v5363_v14 = vadd.f32 %v13618_v9, %v13076_v16  ;;  %v7825_v38 = vld [vmem:[#allocation7 + $0x4f0] sm:$0xff] }
 0x4b2   : > { %v5643_v56 = vmul.f32 %v13048_v39, %v5493_v27  ;;  %v5755_v54 = vadd.f32 %v5723_v45, %v5638_v21  ;;  %v5645_v37 = vmul.f32 %v13059_v59, %v5495_v18  ;;  %v5172_v61 = vadd.f32 %v13613_v15, %v13045_v12  ;;  %v13730_v27 = vpop.f32.mrf.mxu0  ;;  %v13732_v21 = vpop.f32.mrf.mxu1 }
 0x4b3   : > { %v5692_v31 = vadd.f32 %v5640_v41, %v5639_v7  ;;  %v5644_v28 = vmul.f32 %v13069_v5, %v5494_v26  ;;  %v5496_v2 = vmax.f32 %v5363_v14, 0.0  ;;  %v5365_v25 = vadd.f32 %v13628_v4, %v13056_v10  ;;  %v16068_v7 = vld [vmem:[#allocation40_spill] sm:$0xff] }
 0x4b4   : > { %v5174_v9 = vadd.f32 %v13624_v49, %v13066_v62  ;;  %v13735_v60 = vadd.f32 %v5755_v54, %v16068_v7  ;;  %v5497_v15 = vmax.f32 %v5172_v61, 0.0  ;;  %v5367_v41 = vadd.f32 %v13643_v46, %v13076_v16  ;;  %v16070_v49 = vld [vmem:[#allocation18_spill] sm:$0xff]  ;;  %v13741_v50 = vpop.f32.mrf.mxu0  ;;  %v13743_v6 = vpop.f32.mrf.mxu1  ;;  %v7824_v61 = vld [vmem:[#allocation7 + $0x478] sm:$0xff] }
 0x4b5   : > { %v5724_v45 = vadd.f32 %v5692_v31, %v5641_v57  ;;  %v5693_v18 = vadd.f32 %v5644_v28, %v5643_v56  ;;  %v5646_v4 = vmul.f32 %v13079_v47, %v5496_v2  ;;  %v5499_v26 = vmax.f32 %v5365_v25, 0.0  ;;  %7118 = vmatmul.mubr.bf16.gmra.mxu1 %v16070_v49  ;;  %v7826_v7 = vld [vmem:[#allocation7 + $0x4f8] sm:$0xff] }
 0x4b6   : > { %16069 = vst [vmem:[#allocation17_spill] sm:$0xff] %v13735_v60  ;;  %v5498_v14 = vmax.f32 %v5174_v9, 0.0  ;;  %v5647_v54 = vmul.f32 %v13048_v39, %v5497_v15  ;;  %v5500_v57 = vmax.f32 %v5367_v41, 0.0  ;;  %v9525_v31 = vcombine.low %v7823_v36, %v7825_v38  ;;  %7311 = vmatmul.mubr.bf16.gmra.mxu0 %v16070_v49  ;;  %7127 = vmatprep.mubr.bf16.mxu1 %v15759_v24  ;;  %v13755_v25 = vpop.f32.mrf.mxu1 }
 0x4b7   : > { %v13745_v3 = vadd.f32 %v5724_v45, %v5642_v48  ;;  %v5725_v46 = vadd.f32 %v5693_v18, %v5645_v37  ;;  %v5649_v56 = vmul.f32 %v13059_v59, %v5499_v26  ;;  %v9526_v2 = vcombine.high %v7823_v36, %v7825_v38  ;;  %7320 = vmatprep.mubr.bf16.mxu0 %v15759_v24  ;;  %v13753_v48 = vpop.f32.mrf.mxu0 }
 0x4b8   : > { %v5648_v28 = vmul.f32 %v13069_v5, %v5498_v14  ;;  %v5650_v9 = vmul.f32 %v13079_v47, %v5500_v57  ;;  %v5178_v45 = vadd.f32 %v13637_v42, %v13045_v12  ;;  %v5371_v15 = vadd.f32 %v13652_v63, %v13056_v10  ;;  %v13768_v14 = vpop.f32.mrf.mxu1  ;;  %v16072_v63 = vld [vmem:[#allocation42_spill] sm:$0xff] }
 0x4b9   : > { %16071 = vst [vmem:[#allocation40_spill] sm:$0xff] %v13745_v3  ;;  %v5180_v37 = vadd.f32 %v13647_v17, %v13066_v62  ;;  %v5757_v41 = vadd.f32 %v5725_v46, %v5646_v4  ;;  %8027 = vmatprep.subr.bf16.mxu1 %v9526_v2  ;;  %v5373_v36 = vadd.f32 %v13668_v55, %v13076_v16  ;;  %v13766_v26 = vpop.f32.mrf.mxu0 }
 0x4ba   : > { %v5694_v18 = vadd.f32 %v5648_v28, %v5647_v54  ;;  %v9527_v38 = vcombine.low %v7824_v61, %v7826_v7  ;;  %v5501_v57 = vmax.f32 %v5178_v45, 0.0  ;;  %v5503_v3 = vmax.f32 %v5371_v15, 0.0  ;;  %8028 = vmatpush1.bf16.msra.mxu1 %v9525_v31  ;;  %v13777_v55 = vpop.f32.mrf.mxu1  ;;  %v16075_v15 = vld [vmem:[#allocation19_spill] sm:$0xff] }
 0x4bb   : > { %v5502_v42 = vmax.f32 %v5180_v37, 0.0  ;;  %v9528_v60 = vcombine.high %v7824_v61, %v7826_v7  ;;  %v13771_v51 = vadd.f32 %v5757_v41, %v16072_v63  ;;  %v5504_v4 = vmax.f32 %v5373_v36, 0.0  ;;  %v13775_v46 = vpop.f32.mrf.mxu0 }
 0x4bc   : > { %v5726_v17 = vadd.f32 %v5694_v18, %v5649_v56  ;;  %v5182_v54 = vadd.f32 %v13661_v53, %v13045_v12  ;;  %v5651_v28 = vmul.f32 %v13048_v39, %v5501_v57  ;;  %v5653_v2 = vmul.f32 %v13059_v59, %v5503_v3  ;;  %v13792_v3 = vpop.f32.mrf.mxu1 }
 0x4bd   : > { %16073 = vst [vmem:[#allocation18_spill] sm:$0xff] %v13771_v51  ;;  %v5652_v31 = vmul.f32 %v13069_v5, %v5502_v42  ;;  %8220 = vmatprep.subr.bf16.mxu0 %v9528_v60  ;;  %v5375_v61 = vadd.f32 %v13675_v58, %v13056_v10  ;;  %v5654_v56 = vmul.f32 %v13079_v47, %v5504_v4  ;;  %v13790_v37 = vpop.f32.mrf.mxu0 }
 0x4be   : > { %v13784_v7 = vadd.f32 %v5726_v17, %v5650_v9  ;;  %v5505_v45 = vmax.f32 %v5182_v54, 0.0  ;;  %8221 = vmatpush1.bf16.msra.mxu0 %v9527_v38  ;;  %v5184_v53 = vadd.f32 %v13670_v29, %v13066_v62  ;;  %7128 = vmatmul.mubr.bf16.gmra.mxu1 %v16075_v15  ;;  %v5377_v58 = vadd.f32 %v13689_v34, %v13076_v16  ;;  %v13806_v57 = vpop.f32.mrf.mxu1 }
 0x4bf   : > { %v5695_v41 = vadd.f32 %v5652_v31, %v5651_v28  ;;  %v5507_v60 = vmax.f32 %v5375_v61, 0.0  ;;  %v5188_v9 = vadd.f32 %v13681_v32, %v13045_v12  ;;  %7321 = vmatmul.mubr.bf16.gmra.mxu0 %v16075_v15  ;;  %7137 = vmatprep.mubr.bf16.mxu1 %v15759_v24  ;;  %v5381_v36 = vadd.f32 %v13708_v23, %v13056_v10  ;;  %v13809_v17 = vpop.f32.mrf.mxu0 }
 0x4c0   : > { %16074 = vst [vmem:[#allocation42_spill] sm:$0xff] %v13784_v7  ;;  %v5655_v29 = vmul.f32 %v13048_v39, %v5505_v45  ;;  %v5506_v18 = vmax.f32 %v5184_v53, 0.0  ;;  %v5190_v38 = vadd.f32 %v13698_v44, %v13066_v62  ;;  %7330 = vmatprep.mubr.bf16.mxu0 %v15759_v24  ;;  %v5508_v42 = vmax.f32 %v5377_v58, 0.0  ;;  %v13814_v31 = vpop.f32.mrf.mxu1 }
 0x4c1   : > { %v5727_v34 = vadd.f32 %v5695_v41, %v5653_v2  ;;  %v5657_v32 = vmul.f32 %v13059_v59, %v5507_v60  ;;  %v5509_v63 = vmax.f32 %v5188_v9, 0.0  ;;  %v5511_v54 = vmax.f32 %v5381_v36, 0.0  ;;  %v13820_v53 = vpop.f32.mrf.mxu0  ;;  %v16076_v36 = vld [vmem:[#allocation43_spill] sm:$0xff] }
 0x4c2   : > { %v5656_v4 = vmul.f32 %v13069_v5, %v5506_v18  ;;  %v5510_v28 = vmax.f32 %v5190_v38, 0.0  ;;  %v5383_v23 = vadd.f32 %v13718_v0, %v13076_v16  ;;  %v5658_v61 = vmul.f32 %v13079_v47, %v5508_v42  ;;  %v7819_v18 = vld [vmem:[#allocation7 + $0x370] sm:$0xff] }
 0x4c3   : > { %v5759_v44 = vadd.f32 %v5727_v34, %v5654_v56  ;;  %v5659_v2 = vmul.f32 %v13048_v39, %v5509_v63  ;;  %v5192_v45 = vadd.f32 %v13710_v8, %v13045_v12  ;;  %v5661_v60 = vmul.f32 %v13059_v59, %v5511_v54  ;;  %v7821_v0 = vld [vmem:[#allocation7 + $0x3f0] sm:$0xff]  ;;  %v13831_v8 = vpop.f32.mrf.mxu0 }
 0x4c4   : > { %v5696_v41 = vadd.f32 %v5656_v4, %v5655_v29  ;;  %v5660_v58 = vmul.f32 %v13069_v5, %v5510_v28  ;;  %v5512_v9 = vmax.f32 %v5383_v23, 0.0  ;;  %v5385_v34 = vadd.f32 %v13730_v27, %v13056_v10  ;;  %v13833_v29 = vpop.f32.mrf.mxu1  ;;  %v5827_v28 = vld [vmem:[#allocation8 + $0x14] sm:$0xf] }
 0x4c5   : > { %v13825_v38 = vadd.f32 %v5759_v44, %v16076_v36  ;;  %v5513_v56 = vmax.f32 %v5192_v45, 0.0  ;;  %v5194_v12 = vadd.f32 %v13720_v11, %v13066_v62  ;;  %v5387_v54 = vadd.f32 %v13741_v50, %v13076_v16  ;;  %v6523_v23 = vld [vmem:[#allocation10 + $0x14] sm:$0xf]  ;;  %v13841_v11 = vpop.f32.mrf.mxu0 }
 0x4c6   : > { %v5728_v42 = vadd.f32 %v5696_v41, %v5657_v32  ;;  %v5697_v63 = vadd.f32 %v5660_v58, %v5659_v2  ;;  %v5662_v4 = vmul.f32 %v13079_v47, %v5512_v9  ;;  %v16078_v44 = vld [vmem:[#allocation20_spill] sm:$0xff]  ;;  %v5515_v27 = vmax.f32 %v5385_v34, 0.0  ;;  %v13844_v32 = vpop.f32.mrf.mxu1  ;;  %v16080_v9 = vld [vmem:[#allocation27_spill] sm:$0xff] }
 0x4c7   : > { %16077 = vst [vmem:[#allocation19_spill] sm:$0xff] %v13825_v38  ;;  %7138 = vmatmul.mubr.bf16.gmra.mxu1 %v16078_v44  ;;  %v5663_v10 = vmul.f32 %v13048_v39, %v5513_v56  ;;  %v5514_v45 = vmax.f32 %v5194_v12, 0.0  ;;  %v9521_v62 = vcombine.low %v7819_v18, %v7821_v0  ;;  %7331 = vmatmul.mubr.bf16.gmra.mxu0 %v16078_v44  ;;  %v5516_v50 = vmax.f32 %v5387_v54, 0.0  ;;  %v13857_v34 = vpop.f32.mrf.mxu0 }
 0x4c8   : > { %7147 = vmatprep.mubr.bf16.mxu1 %v15759_v24  ;;  %v13846_v2 = vadd.f32 %v5728_v42, %v5658_v61  ;;  %v5729_v16 = vadd.f32 %v5697_v63, %v5661_v60  ;;  %v9522_v41 = vcombine.high %v7819_v18, %v7821_v0  ;;  %7340 = vmatprep.mubr.bf16.mxu0 %v15759_v24  ;;  %v13859_v12 = vpop.f32.mrf.mxu1  ;;  %v16081_v18 = vld [vmem:[#allocation28_spill] sm:$0xff]  ;;  %v7822_v42 = vld [vmem:[#allocation7 + $0x3f8] sm:$0xff] }
 0x4c9   : > { %v5665_v39 = vmul.f32 %v13059_v59, %v5515_v27  ;;  %v5664_v58 = vmul.f32 %v13069_v5, %v5514_v45  ;;  %v13852_v36 = vrot.slane %v5827_v28, %v16080_v9  ;;  %v13855_v56 = vrot.slane %v6523_v23, %v16080_v9  ;;  %v7820_v5 = vld [vmem:[#allocation7 + $0x378] sm:$0xff] }
 0x4ca   : > { %16079 = vst [vmem:[#allocation43_spill] sm:$0xff] %v13846_v2  ;;  %v5761_v61 = vadd.f32 %v5729_v16, %v5662_v4  ;;  %v5666_v60 = vmul.f32 %v13079_v47, %v5516_v50  ;;  %8029 = vmatprep.subr.bf16.mxu1 %v9522_v41  ;;  %v13863_v0 = vrot.slane %v5827_v28, %v16081_v18  ;;  %v16082_v27 = vld [vmem:[#allocation29_spill] sm:$0xff]  ;;  %v13876_v47 = vpop.f32.mrf.mxu0  ;;  %v13878_v16 = vpop.f32.mrf.mxu1 }
 0x4cb   : > { %v13866_v59 = vrot.slane %v6523_v23, %v16081_v18  ;;  %v5698_v63 = vadd.f32 %v5664_v58, %v5663_v10  ;;  %v6044_v54 = vadd.f32 %v13732_v21, %v13852_v36  ;;  %8030 = vmatpush1.bf16.msra.mxu1 %v9521_v62  ;;  %v13871_v45 = vrot.slane %v5827_v28, %v16082_v27  ;;  %v16083_v50 = vld [vmem:[#allocation45_spill] sm:$0xff]  ;;  %v16085_v58 = vld [vmem:[#allocation30_spill] sm:$0xff] }
 0x4cc   : > { %v13874_v4 = vrot.slane %v6523_v23, %v16082_v27  ;;  %v13881_v41 = vadd.f32 %v5761_v61, %v16083_v50  ;;  %v6237_v10 = vadd.f32 %v13753_v48, %v13863_v0  ;;  %v13886_v2 = vrot.slane %v5827_v28, %v16085_v58  ;;  %v13893_v30 = vpop.f32.mrf.mxu0  ;;  %v13895_v1 = vpop.f32.mrf.mxu1 }
 0x4cd   : > { %v13889_v21 = vrot.slane %v6523_v23, %v16085_v58  ;;  %v5730_v62 = vadd.f32 %v5698_v63, %v5665_v39  ;;  %v6395_v38 = vmax.f32 %v6044_v54, 0.0  ;;  %v6046_v7 = vadd.f32 %v13743_v6, %v13871_v45  ;;  %v16086_v23 = vld [vmem:[#allocation21_spill] sm:$0xff]  ;;  %v7815_v58 = vld [vmem:[#allocation7 + $0x270] sm:$0xff] }
 0x4ce   : > { %16084 = vst [vmem:[#allocation27_spill] sm:$0xff] %v13881_v41  ;;  %v9523_v51 = vcombine.low %v7820_v5, %v7822_v42  ;;  %v6397_v61 = vmax.f32 %v6237_v10, 0.0  ;;  %v6239_v48 = vadd.f32 %v13766_v26, %v13886_v2  ;;  %v9524_v50 = vcombine.high %v7820_v5, %v7822_v42  ;;  %v13907_v54 = vpop.f32.mrf.mxu0  ;;  %v13910_v10 = vpop.f32.mrf.mxu1 }
 0x4cf   : > { %v6048_v28 = vadd.f32 %v13755_v25, %v13852_v36  ;;  %7148 = vmatmul.mubr.bf16.gmra.mxu1 %v16086_v23  ;;  %v13902_v39 = vadd.f32 %v5730_v62, %v5666_v60  ;;  %v6396_v63 = vmax.f32 %v6046_v7, 0.0  ;;  %v6241_v6 = vadd.f32 %v13775_v46, %v13863_v0  ;;  %7341 = vmatmul.mubr.bf16.gmra.mxu0 %v16086_v23 }
 0x4d0   : > { %7157 = vmatprep.mubr.bf16.mxu1 %v15759_v24  ;;  %v6545_v26 = vmul.f32 %v13855_v56, %v6395_v38  ;;  %v6398_v5 = vmax.f32 %v6239_v48, 0.0  ;;  %8222 = vmatprep.subr.bf16.mxu0 %v9524_v50  ;;  %v6050_v60 = vadd.f32 %v13768_v14, %v13871_v45  ;;  %v6243_v42 = vadd.f32 %v13790_v37, %v13886_v2 }
 0x4d1   : > { %16087 = vst [vmem:[#allocation45_spill] sm:$0xff] %v13902_v39  ;;  %v6399_v25 = vmax.f32 %v6048_v28, 0.0  ;;  %7350 = vmatprep.mubr.bf16.mxu0 %v15759_v24  ;;  %v6546_v46 = vmul.f32 %v13874_v4, %v6396_v63  ;;  %v6401_v7 = vmax.f32 %v6241_v6, 0.0  ;;  %8223 = vmatpush1.bf16.msra.mxu0 %v9523_v51  ;;  %v6054_v62 = vadd.f32 %v13777_v55, %v13852_v36  ;;  %v13921_v39 = vpop.f32.mrf.mxu1  ;;  %v13927_v28 = vpop.f32.mrf.mxu0 }
 0x4d2   : > { %v6547_v38 = vmul.f32 %v13866_v59, %v6397_v61  ;;  %v6548_v48 = vmul.f32 %v13889_v21, %v6398_v5  ;;  %v6400_v50 = vmax.f32 %v6050_v60, 0.0  ;;  %v6247_v14 = vadd.f32 %v13809_v17, %v13863_v0 }
 0x4d3   : > { %v6673_v63 = vadd.f32 %v6546_v46, %v6545_v26  ;;  %v6549_v51 = vmul.f32 %v13855_v56, %v6399_v25  ;;  %v6402_v6 = vmax.f32 %v6243_v42, 0.0  ;;  %v6403_v37 = vmax.f32 %v6054_v62, 0.0  ;;  %v13930_v41 = vpop.f32.mrf.mxu1  ;;  %v13937_v60 = vpop.f32.mrf.mxu0 }
 0x4d4   : > { %v6550_v55 = vmul.f32 %v13874_v4, %v6400_v50  ;;  %v6405_v23 = vmax.f32 %v6247_v14, 0.0  ;;  %v6056_v61 = vadd.f32 %v13792_v3, %v13871_v45  ;;  %v6249_v5 = vadd.f32 %v13820_v53, %v13886_v2  ;;  %v7817_v3 = vld [vmem:[#allocation7 + $0x2f0] sm:$0xff] }
 0x4d5   : > { %v6705_v17 = vadd.f32 %v6673_v63, %v6547_v38  ;;  %v6551_v26 = vmul.f32 %v13866_v59, %v6401_v7  ;;  %v6552_v25 = vmul.f32 %v13889_v21, %v6402_v6  ;;  %v6058_v46 = vadd.f32 %v13806_v57, %v13852_v36  ;;  %v13945_v53 = vpop.f32.mrf.mxu0  ;;  %v13947_v44 = vpop.f32.mrf.mxu1 }
 0x4d6   : > { %v6674_v42 = vadd.f32 %v6550_v55, %v6549_v51  ;;  %v6553_v62 = vmul.f32 %v13855_v56, %v6403_v37  ;;  %v6404_v50 = vmax.f32 %v6056_v61, 0.0  ;;  %v6406_v14 = vmax.f32 %v6249_v5, 0.0 }
 0x4d7   : > { %7158 = vmatmul.mubr.bf16.gmra.mxu1 %v16030_v40  ;;  %v13949_v38 = vadd.f32 %v6705_v17, %v6548_v48  ;;  %v6407_v7 = vmax.f32 %v6058_v46, 0.0  ;;  %v6251_v63 = vadd.f32 %v13831_v8, %v13863_v0  ;;  %v6060_v57 = vadd.f32 %v13814_v31, %v13871_v45  ;;  %7351 = vmatmul.mubr.bf16.gmra.mxu0 %v16030_v40  ;;  %v13961_v55 = vpop.f32.mrf.mxu0  ;;  %v13964_v8 = vpop.f32.mrf.mxu1 }
 0x4d8   : > { %7167 = vmatprep.mubr.bf16.mxu1 %v15759_v24  ;;  %v6706_v51 = vadd.f32 %v6674_v42, %v6551_v26  ;;  %v6555_v6 = vmul.f32 %v13866_v59, %v6405_v23  ;;  %v6554_v37 = vmul.f32 %v13874_v4, %v6404_v50  ;;  %v6253_v48 = vadd.f32 %v13841_v11, %v13886_v2  ;;  %v7816_v50 = vld [vmem:[#allocation7 + $0x278] sm:$0xff] }
 0x4d9   : > { %16088 = vst [vmem:[#allocation73_spill] sm:$0xff] %v13949_v38  ;;  %7360 = vmatprep.mubr.bf16.mxu0 %v15759_v24  ;;  %v6556_v31 = vmul.f32 %v13889_v21, %v6406_v14  ;;  %v6409_v61 = vmax.f32 %v6251_v63, 0.0  ;;  %v6408_v5 = vmax.f32 %v6060_v57, 0.0  ;;  %v9517_v17 = vcombine.low %v7815_v58, %v7817_v3  ;;  %v7818_v38 = vld [vmem:[#allocation7 + $0x2f8] sm:$0xff]  ;;  %v13969_v40 = vpop.f32.mrf.mxu0  ;;  %v13971_v11 = vpop.f32.mrf.mxu1 }
 0x4da   : > { %v13967_v46 = vadd.f32 %v6706_v51, %v6552_v25  ;;  %v6675_v26 = vadd.f32 %v6554_v37, %v6553_v62  ;;  %v6410_v23 = vmax.f32 %v6253_v48, 0.0  ;;  %v9518_v42 = vcombine.high %v7815_v58, %v7817_v3 }
 0x4db   : > { %v6557_v27 = vmul.f32 %v13855_v56, %v6407_v7  ;;  %v6558_v18 = vmul.f32 %v13874_v4, %v6408_v5  ;;  %v6064_v14 = vadd.f32 %v13833_v29, %v13852_v36  ;;  %v6257_v25 = vadd.f32 %v13857_v34, %v13863_v0  ;;  %v13984_v57 = vpop.f32.mrf.mxu0  ;;  %v13986_v7 = vpop.f32.mrf.mxu1 }
 0x4dc   : > { %16089 = vst [vmem:[#allocation74_spill] sm:$0xff] %v13967_v46  ;;  %v6707_v63 = vadd.f32 %v6675_v26, %v6555_v6  ;;  %v6559_v62 = vmul.f32 %v13866_v59, %v6409_v61  ;;  %8031 = vmatprep.subr.bf16.mxu1 %v9518_v42  ;;  %v6066_v58 = vadd.f32 %v13844_v32, %v13871_v45  ;;  %v16091_v26 = vld [vmem:[#allocation23_spill] sm:$0xff] }
 0x4dd   : > { %v6259_v3 = vadd.f32 %v13876_v47, %v13886_v2  ;;  %v6676_v51 = vadd.f32 %v6558_v18, %v6557_v27  ;;  %v6411_v37 = vmax.f32 %v6064_v14, 0.0  ;;  %v6413_v29 = vmax.f32 %v6257_v25, 0.0  ;;  %8032 = vmatpush1.bf16.msra.mxu1 %v9517_v17  ;;  %v13992_v32 = vpop.f32.mrf.mxu0  ;;  %v13994_v47 = vpop.f32.mrf.mxu1 }
 0x4de   : > { %v9519_v48 = vcombine.low %v7816_v50, %v7818_v38  ;;  %v13988_v34 = vadd.f32 %v6707_v63, %v6556_v31  ;;  %v6560_v6 = vmul.f32 %v13889_v21, %v6410_v23  ;;  %v6412_v61 = vmax.f32 %v6066_v58, 0.0 }
 0x4df   : > { %v9520_v5 = vcombine.high %v7816_v50, %v7818_v38  ;;  %7168 = vmatmul.mubr.bf16.gmra.mxu1 %v16091_v26  ;;  %v6708_v42 = vadd.f32 %v6676_v51, %v6559_v62  ;;  %v6561_v46 = vmul.f32 %v13855_v56, %v6411_v37  ;;  %v6414_v18 = vmax.f32 %v6259_v3, 0.0  ;;  %7361 = vmatmul.mubr.bf16.gmra.mxu0 %v16091_v26  ;;  %v14006_v50 = vpop.f32.mrf.mxu0  ;;  %v14008_v14 = vpop.f32.mrf.mxu1 }
 0x4e0   : > { %16090 = vst [vmem:[#allocation75_spill] sm:$0xff] %v13988_v34  ;;  %v6068_v27 = vadd.f32 %v13859_v12, %v13852_v36  ;;  %v6563_v31 = vmul.f32 %v13866_v59, %v6413_v29  ;;  %v6562_v17 = vmul.f32 %v13874_v4, %v6412_v61  ;;  %v6261_v38 = vadd.f32 %v13893_v30, %v13863_v0 }
 0x4e1   : > { %8224 = vmatprep.subr.bf16.mxu0 %v9520_v5  ;;  %v6070_v23 = vadd.f32 %v13878_v16, %v13871_v45  ;;  %v14010_v25 = vadd.f32 %v6708_v42, %v6560_v6  ;;  %v6263_v63 = vadd.f32 %v13907_v54, %v13886_v2  ;;  %v6074_v62 = vadd.f32 %v13895_v1, %v13852_v36  ;;  %v14020_v51 = vpop.f32.mrf.mxu1  ;;  %v14025_v1 = vpop.f32.mrf.mxu0 }
 0x4e2   : > { %v6415_v12 = vmax.f32 %v6068_v27, 0.0  ;;  %8225 = vmatpush1.bf16.msra.mxu0 %v9519_v48  ;;  %7177 = vmatprep.mubr.bf16.mxu1 %v15759_v24  ;;  %v6677_v30 = vadd.f32 %v6562_v17, %v6561_v46  ;;  %v6417_v58 = vmax.f32 %v6261_v38, 0.0  ;;  %v6267_v16 = vadd.f32 %v13927_v28, %v13863_v0 }
 0x4e3   : > { %16092 = vst [vmem:[#allocation23_spill] sm:$0xff] %v14010_v25  ;;  %v6416_v3 = vmax.f32 %v6070_v23, 0.0  ;;  %7370 = vmatprep.mubr.bf16.mxu0 %v15759_v24  ;;  %v6564_v37 = vmul.f32 %v13889_v21, %v6414_v18  ;;  %v6418_v29 = vmax.f32 %v6263_v63, 0.0  ;;  %v6419_v48 = vmax.f32 %v6074_v62, 0.0  ;;  %v14029_v28 = vpop.f32.mrf.mxu1  ;;  %v14035_v38 = vpop.f32.mrf.mxu0  ;;  %v7811_v63 = vld [vmem:[#allocation7 + $0x170] sm:$0xff]  ;;  %v7814_v25 = vld [vmem:[#allocation7 + $0x1f8] sm:$0xff] }
 0x4e4   : > { %v6076_v54 = vadd.f32 %v13910_v10, %v13871_v45  ;;  %v6709_v6 = vadd.f32 %v6677_v30, %v6563_v31  ;;  %v6565_v46 = vmul.f32 %v13855_v56, %v6415_v12  ;;  %v6421_v5 = vmax.f32 %v6267_v16, 0.0  ;;  %v7813_v62 = vld [vmem:[#allocation7 + $0x1f0] sm:$0xff] }
 0x4e5   : > { %v6566_v61 = vmul.f32 %v13874_v4, %v6416_v3  ;;  %v6567_v42 = vmul.f32 %v13866_v59, %v6417_v58  ;;  %v6568_v27 = vmul.f32 %v13889_v21, %v6418_v29  ;;  %v6269_v17 = vadd.f32 %v13937_v60, %v13886_v2  ;;  %v16094_v30 = vld [vmem:[#allocation24_spill] sm:$0xff] }
 0x4e6   : > { %v6420_v18 = vmax.f32 %v6076_v54, 0.0  ;;  %v14037_v10 = vadd.f32 %v6709_v6, %v6564_v37  ;;  %v6569_v23 = vmul.f32 %v13855_v56, %v6419_v48  ;;  %v6078_v12 = vadd.f32 %v13921_v39, %v13852_v36  ;;  %v14049_v37 = vpop.f32.mrf.mxu0  ;;  %v14052_v39 = vpop.f32.mrf.mxu1 }
 0x4e7   : > { %v6678_v31 = vadd.f32 %v6566_v61, %v6565_v46  ;;  %7178 = vmatmul.mubr.bf16.gmra.mxu1 %v16094_v30  ;;  %v6422_v3 = vmax.f32 %v6269_v17, 0.0  ;;  %v6271_v60 = vadd.f32 %v13945_v53, %v13863_v0  ;;  %v6080_v16 = vadd.f32 %v13930_v41, %v13871_v45  ;;  %7371 = vmatmul.mubr.bf16.gmra.mxu0 %v16094_v30 }
 0x4e8   : > { %16093 = vst [vmem:[#allocation76_spill] sm:$0xff] %v14037_v10  ;;  %v6570_v58 = vmul.f32 %v13874_v4, %v6420_v18  ;;  %7187 = vmatprep.mubr.bf16.mxu1 %v15759_v24  ;;  %v6571_v48 = vmul.f32 %v13866_v59, %v6421_v5  ;;  %v6423_v54 = vmax.f32 %v6078_v12, 0.0  ;;  %v6273_v6 = vadd.f32 %v13961_v55, %v13886_v2  ;;  %v14058_v18 = vpop.f32.mrf.mxu0  ;;  %v14060_v17 = vpop.f32.mrf.mxu1  ;;  %v7812_v12 = vld [vmem:[#allocation7 + $0x178] sm:$0xff] }
 0x4e9   : > { %v6710_v29 = vadd.f32 %v6678_v31, %v6567_v42  ;;  %7380 = vmatprep.mubr.bf16.mxu0 %v15759_v24  ;;  %v6425_v46 = vmax.f32 %v6271_v60, 0.0  ;;  %v6424_v41 = vmax.f32 %v6080_v16, 0.0  ;;  %v9513_v61 = vcombine.low %v7811_v63, %v7813_v62 }
 0x4ea   : > { %v6679_v53 = vadd.f32 %v6570_v58, %v6569_v23  ;;  %v6572_v42 = vmul.f32 %v13889_v21, %v6422_v3  ;;  %v6426_v31 = vmax.f32 %v6273_v6, 0.0  ;;  %v9514_v5 = vcombine.high %v7811_v63, %v7813_v62  ;;  %v14069_v60 = vpop.f32.mrf.mxu0  ;;  %v14071_v16 = vpop.f32.mrf.mxu1 }
 0x4eb   : > { %v14062_v10 = vadd.f32 %v6710_v29, %v6568_v27  ;;  %v6573_v55 = vmul.f32 %v13855_v56, %v6423_v54  ;;  %v6574_v23 = vmul.f32 %v13874_v4, %v6424_v41  ;;  %v6084_v58 = vadd.f32 %v13947_v44, %v13852_v36 }
 0x4ec   : > { %v6711_v34 = vadd.f32 %v6679_v53, %v6571_v48  ;;  %v6575_v27 = vmul.f32 %v13866_v59, %v6425_v46  ;;  %8033 = vmatprep.subr.bf16.mxu1 %v9514_v5  ;;  %v6277_v63 = vadd.f32 %v13969_v40, %v13863_v0  ;;  %v6086_v62 = vadd.f32 %v13964_v8, %v13871_v45  ;;  %v14082_v6 = vpop.f32.mrf.mxu0  ;;  %v14084_v53 = vpop.f32.mrf.mxu1 }
 0x4ed   : > { %16095 = vst [vmem:[#allocation77_spill] sm:$0xff] %v14062_v10  ;;  %v6279_v3 = vadd.f32 %v13984_v57, %v13886_v2  ;;  %v6680_v48 = vadd.f32 %v6574_v23, %v6573_v55  ;;  %v6427_v44 = vmax.f32 %v6084_v58, 0.0  ;;  %8034 = vmatpush1.bf16.msra.mxu1 %v9513_v61  ;;  %v9515_v54 = vcombine.low %v7812_v12, %v7814_v25  ;;  %v16097_v10 = vld [vmem:[#allocation25_spill] sm:$0xff] }
 0x4ee   : > { %v14080_v29 = vadd.f32 %v6711_v34, %v6572_v42  ;;  %v6576_v46 = vmul.f32 %v13889_v21, %v6426_v31  ;;  %v6429_v41 = vmax.f32 %v6277_v63, 0.0  ;;  %v6428_v40 = vmax.f32 %v6086_v62, 0.0  ;;  %v14093_v61 = vpop.f32.mrf.mxu0  ;;  %v14095_v42 = vpop.f32.mrf.mxu1 }
 0x4ef   : > { %v9516_v5 = vcombine.high %v7812_v12, %v7814_v25  ;;  %7188 = vmatmul.mubr.bf16.gmra.mxu1 %v16097_v10  ;;  %v6712_v8 = vadd.f32 %v6680_v48, %v6575_v27  ;;  %v6430_v30 = vmax.f32 %v6279_v3, 0.0  ;;  %v6088_v57 = vadd.f32 %v13971_v11, %v13852_v36  ;;  %7381 = vmatmul.mubr.bf16.gmra.mxu0 %v16097_v10 }
 0x4f0   : > { %16096 = vst [vmem:[#allocation78_spill] sm:$0xff] %v14080_v29  ;;  %v6281_v34 = vadd.f32 %v13992_v32, %v13863_v0  ;;  %v6577_v31 = vmul.f32 %v13855_v56, %v6427_v44  ;;  %v6579_v25 = vmul.f32 %v13866_v59, %v6429_v41  ;;  %v6578_v12 = vmul.f32 %v13874_v4, %v6428_v40  ;;  %v14106_v27 = vpop.f32.mrf.mxu0  ;;  %v14109_v63 = vpop.f32.mrf.mxu1 }
 0x4f1   : > { %8226 = vmatprep.subr.bf16.mxu0 %v9516_v5  ;;  %v6090_v55 = vadd.f32 %v13986_v7, %v13871_v45  ;;  %v14102_v11 = vadd.f32 %v6712_v8, %v6576_v46  ;;  %v6431_v23 = vmax.f32 %v6088_v57, 0.0  ;;  %v6283_v58 = vadd.f32 %v14006_v50, %v13886_v2  ;;  %7197 = vmatprep.mubr.bf16.mxu1 %v15759_v24 }
 0x4f2   : > { %v6433_v32 = vmax.f32 %v6281_v34, 0.0  ;;  %8227 = vmatpush1.bf16.msra.mxu0 %v9515_v54  ;;  %v6681_v62 = vadd.f32 %v6578_v12, %v6577_v31  ;;  %v6094_v48 = vadd.f32 %v13994_v47, %v13852_v36  ;;  %v6287_v7 = vadd.f32 %v14025_v1, %v13863_v0  ;;  %7390 = vmatprep.mubr.bf16.mxu0 %v15759_v24  ;;  %v14120_v41 = vpop.f32.mrf.mxu1  ;;  %v14123_v57 = vpop.f32.mrf.mxu0 }
 0x4f3   : > { %16098 = vst [vmem:[#allocation25_spill] sm:$0xff] %v14102_v11  ;;  %v6432_v3 = vmax.f32 %v6090_v55, 0.0  ;;  %v6580_v44 = vmul.f32 %v13889_v21, %v6430_v30  ;;  %v6581_v50 = vmul.f32 %v13855_v56, %v6431_v23  ;;  %v6434_v54 = vmax.f32 %v6283_v58, 0.0  ;;  %v7807_v58 = vld [vmem:[#allocation7 + $0x70] sm:$0xff] }
 0x4f4   : > { %v6096_v46 = vadd.f32 %v14008_v14, %v13871_v45  ;;  %v6713_v40 = vadd.f32 %v6681_v62, %v6579_v25  ;;  %v6435_v8 = vmax.f32 %v6094_v48, 0.0  ;;  %v6437_v47 = vmax.f32 %v6287_v7, 0.0  ;;  %v14130_v12 = vpop.f32.mrf.mxu1  ;;  %v7809_v62 = vld [vmem:[#allocation7 + $0xf0] sm:$0xff] }
 0x4f5   : > { %v6582_v5 = vmul.f32 %v13874_v4, %v6432_v3  ;;  %v6583_v1 = vmul.f32 %v13866_v59, %v6433_v32  ;;  %v6289_v30 = vadd.f32 %v14035_v38, %v13886_v2  ;;  %v6098_v31 = vadd.f32 %v14020_v51, %v13852_v36  ;;  %v14137_v32 = vpop.f32.mrf.mxu0 }
 0x4f6   : > { %v6436_v34 = vmax.f32 %v6096_v46, 0.0  ;;  %v14132_v14 = vadd.f32 %v6713_v40, %v6580_v44  ;;  %v6584_v55 = vmul.f32 %v13889_v21, %v6434_v54  ;;  %v6585_v23 = vmul.f32 %v13855_v56, %v6435_v8  ;;  %v14152_v40 = vpop.f32.mrf.mxu1 }
 0x4f7   : > { %v6682_v25 = vadd.f32 %v6582_v5, %v6581_v50  ;;  %7198 = vmatmul.mubr.bf16.gmra.mxu1 %v15926_v20  ;;  %v6438_v3 = vmax.f32 %v6289_v30, 0.0  ;;  %v6439_v48 = vmax.f32 %v6098_v31, 0.0  ;;  %v6291_v51 = vadd.f32 %v14049_v37, %v13863_v0  ;;  %7391 = vmatmul.mubr.bf16.gmra.mxu0 %v15926_v20  ;;  %v14149_v46 = vpop.f32.mrf.mxu0 }
 0x4f8   : > { %16099 = vst [vmem:[#allocation79_spill] sm:$0xff] %v14132_v14  ;;  %v6586_v38 = vmul.f32 %v13874_v4, %v6436_v34  ;;  %8053 = vmatprep.mubr.bf16.mxu1 %v15759_v24  ;;  %v6587_v44 = vmul.f32 %v13866_v59, %v6437_v47  ;;  %v6100_v50 = vadd.f32 %v14029_v28, %v13871_v45  ;;  %v7808_v28 = vld [vmem:[#allocation7 + $0x78] sm:$0xff] }
 0x4f9   : > { %v6714_v7 = vadd.f32 %v6682_v25, %v6583_v1  ;;  %v6293_v54 = vadd.f32 %v14058_v18, %v13886_v2  ;;  %8246 = vmatprep.mubr.bf16.mxu0 %v15759_v24  ;;  %v6588_v5 = vmul.f32 %v13889_v21, %v6438_v3  ;;  %v6441_v8 = vmax.f32 %v6291_v51, 0.0  ;;  %v7810_v25 = vld [vmem:[#allocation7 + $0xf8] sm:$0xff]  ;;  %v14157_v14 = vpop.f32.mrf.mxu0  ;;  %v14159_v18 = vpop.f32.mrf.mxu1 }
 0x4fa   : > { %v6683_v37 = vadd.f32 %v6586_v38, %v6585_v23  ;;  %v9509_v34 = vcombine.low %v7807_v58, %v7809_v62  ;;  %v6440_v47 = vmax.f32 %v6100_v50, 0.0  ;;  %v9510_v31 = vcombine.high %v7807_v58, %v7809_v62 }
 0x4fb   : > { %v14155_v1 = vadd.f32 %v6714_v7, %v6584_v55  ;;  %v6442_v30 = vmax.f32 %v6293_v54, 0.0  ;;  %v6589_v29 = vmul.f32 %v13855_v56, %v6439_v48  ;;  %v6104_v23 = vadd.f32 %v14052_v39, %v13852_v36  ;;  %v14172_v51 = vpop.f32.mrf.mxu0  ;;  %v14174_v48 = vpop.f32.mrf.mxu1 }
 0x4fc   : > { %v6715_v11 = vadd.f32 %v6683_v37, %v6587_v44  ;;  %v6297_v38 = vadd.f32 %v14069_v60, %v13863_v0  ;;  %v6591_v55 = vmul.f32 %v13866_v59, %v6441_v8  ;;  %v6590_v3 = vmul.f32 %v13874_v4, %v6440_v47  ;;  %8035 = vmatprep.subr.bf16.mxu1 %v9510_v31 }
 0x4fd   : > { %16100 = vst [vmem:[#allocation80_spill] sm:$0xff] %v14155_v1  ;;  %v6106_v58 = vadd.f32 %v14060_v17, %v13871_v45  ;;  %v6299_v62 = vadd.f32 %v14082_v6, %v13886_v2  ;;  %v6443_v39 = vmax.f32 %v6104_v23, 0.0  ;;  %8036 = vmatpush1.bf16.msra.mxu1 %v9509_v34  ;;  %v9511_v60 = vcombine.low %v7808_v28, %v7810_v25  ;;  %v14179_v47 = vpop.f32.mrf.mxu0  ;;  %v14181_v17 = vpop.f32.mrf.mxu1 }
 0x4fe   : > { %v14176_v7 = vadd.f32 %v6715_v11, %v6588_v5  ;;  %v6445_v44 = vmax.f32 %v6297_v38, 0.0  ;;  %v6684_v50 = vadd.f32 %v6590_v3, %v6589_v29  ;;  %v6592_v54 = vmul.f32 %v13889_v21, %v6442_v30 }
 0x4ff   : > { %v6444_v37 = vmax.f32 %v6106_v58, 0.0  ;;  %v9512_v8 = vcombine.high %v7808_v28, %v7810_v25  ;;  %v6593_v6 = vmul.f32 %v13855_v56, %v6443_v39  ;;  %v6446_v31 = vmax.f32 %v6299_v62, 0.0  ;;  %v14192_v25 = vpop.f32.mrf.mxu0  ;;  %v14194_v23 = vpop.f32.mrf.mxu1 }
 0x500   : > { %16101 = vst [vmem:[#allocation81_spill] sm:$0xff] %v14176_v7  ;;  %v6108_v11 = vadd.f32 %v14071_v16, %v13852_v36  ;;  %v6301_v5 = vadd.f32 %v14093_v61, %v13863_v0  ;;  %v6716_v34 = vadd.f32 %v6684_v50, %v6591_v55  ;;  %v6595_v29 = vmul.f32 %v13866_v59, %v6445_v44 }
 0x501   : > { %v6594_v30 = vmul.f32 %v13874_v4, %v6444_v37  ;;  %8228 = vmatprep.subr.bf16.mxu0 %v9512_v8  ;;  %v6110_v28 = vadd.f32 %v14084_v53, %v13871_v45  ;;  %v6303_v16 = vadd.f32 %v14106_v27, %v13886_v2  ;;  %v6114_v61 = vadd.f32 %v14095_v42, %v13852_v36  ;;  %v14205_v39 = vpop.f32.mrf.mxu0  ;;  %v14208_v44 = vpop.f32.mrf.mxu1 }
 0x502   : > { %v6447_v38 = vmax.f32 %v6108_v11, 0.0  ;;  %v6449_v3 = vmax.f32 %v6301_v5, 0.0  ;;  %8229 = vmatpush1.bf16.msra.mxu0 %v9511_v60  ;;  %8054 = vmatmul.mubr.bf16.vlgmr.msra.gmra.mxu1 %v10314_v52  ;;  %v14201_v55 = vadd.f32 %v6716_v34, %v6592_v54  ;;  %v6307_v53 = vadd.f32 %v14123_v57, %v13863_v0 }
 0x503   : > { %v6685_v58 = vadd.f32 %v6594_v30, %v6593_v6  ;;  %v6448_v62 = vmax.f32 %v6110_v28, 0.0  ;;  %8063 = vmatprep.mubr.bf16.mxu1 %v15759_v24  ;;  %v6596_v27 = vmul.f32 %v13889_v21, %v6446_v31  ;;  %v6450_v42 = vmax.f32 %v6303_v16, 0.0  ;;  %v14217_v6 = vpop.f32.mrf.mxu1 }
 0x504   : > { %16102 = vst [vmem:[#allocation82_spill] sm:$0xff] %v14201_v55  ;;  %v6597_v60 = vmul.f32 %v13855_v56, %v6447_v38  ;;  %v6451_v50 = vmax.f32 %v6114_v61, 0.0  ;;  %v6599_v54 = vmul.f32 %v13866_v59, %v6449_v3  ;;  %v6116_v57 = vadd.f32 %v14109_v63, %v13871_v45 }
 0x505   : > { %v6717_v37 = vadd.f32 %v6685_v58, %v6595_v29  ;;  %v6598_v8 = vmul.f32 %v13874_v4, %v6448_v62  ;;  %8247 = vmatmul.mubr.bf16.vlgmr.msra.gmra.mxu0 %v10314_v52  ;;  %v6600_v11 = vmul.f32 %v13889_v21, %v6450_v42  ;;  %v6453_v5 = vmax.f32 %v6307_v53, 0.0  ;;  %v14228_v52 = vpop.f32.mrf.mxu0  ;;  %v14230_v38 = vpop.f32.mrf.mxu1 }
 0x506   : > { %v6309_v31 = vadd.f32 %v14137_v32, %v13886_v2  ;;  %v6118_v34 = vadd.f32 %v14120_v41, %v13852_v36  ;;  %8256 = vmatprep.mubr.bf16.mxu0 %v15759_v24  ;;  %v6601_v63 = vmul.f32 %v13855_v56, %v6451_v50  ;;  %v6452_v28 = vmax.f32 %v6116_v57, 0.0 }
 0x507   : > { %v14225_v29 = vadd.f32 %v6717_v37, %v6596_v27  ;;  %v6686_v30 = vadd.f32 %v6598_v8, %v6597_v60  ;;  %v6311_v32 = vadd.f32 %v14149_v46, %v13863_v0  ;;  %v6120_v41 = vadd.f32 %v14130_v12, %v13871_v45  ;;  %v6328_v27 = vpop.f32.mrf.mxu0  ;;  %v14241_v60 = vpop.f32.mrf.mxu1 }
 0x508   : > { %v6454_v3 = vmax.f32 %v6309_v31, 0.0  ;;  %v6455_v16 = vmax.f32 %v6118_v34, 0.0  ;;  %v6602_v58 = vmul.f32 %v13874_v4, %v6452_v28  ;;  %v6313_v62 = vadd.f32 %v14157_v14, %v13886_v2 }
 0x509   : > { %16103 = vst [vmem:[#allocation83_spill] sm:$0xff] %v14225_v29  ;;  %v6718_v61 = vadd.f32 %v6686_v30, %v6599_v54  ;;  %v6124_v53 = vadd.f32 %v14152_v40, %v13852_v36  ;;  %v6603_v42 = vmul.f32 %v13866_v59, %v6453_v5  ;;  %v6457_v46 = vmax.f32 %v6311_v32, 0.0  ;;  %v14249_v57 = vpop.f32.mrf.mxu0  ;;  %v14252_v40 = vpop.f32.mrf.mxu1 }
 0x50a   : > { %v6604_v50 = vmul.f32 %v13889_v21, %v6454_v3  ;;  %v6456_v37 = vmax.f32 %v6120_v41, 0.0  ;;  %8064 = vmatmul.mubr.bf16.gmra.mxu1 %v10329_v13  ;;  %v6687_v54 = vadd.f32 %v6602_v58, %v6601_v63  ;;  %v6605_v8 = vmul.f32 %v13855_v56, %v6455_v16 }
 0x50b   : > { %v14246_v12 = vadd.f32 %v6718_v61, %v6600_v11  ;;  %v6458_v14 = vmax.f32 %v6313_v62, 0.0  ;;  %8073 = vmatprep.mubr.bf16.mxu1 %v15759_v24  ;;  %v6459_v31 = vmax.f32 %v6124_v53, 0.0  ;;  %v6317_v34 = vadd.f32 %v14172_v51, %v13863_v0  ;;  %v6332_v16 = vpop.f32.mrf.mxu0  ;;  %v14264_v32 = vpop.f32.mrf.mxu1 }
 0x50c   : > { %v6606_v5 = vmul.f32 %v13874_v4, %v6456_v37  ;;  %v6126_v11 = vadd.f32 %v14159_v18, %v13871_v45  ;;  %v6719_v30 = vadd.f32 %v6687_v54, %v6603_v42  ;;  %v6607_v63 = vmul.f32 %v13866_v59, %v6457_v46 }
 0x50d   : > { %16104 = vst [vmem:[#allocation84_spill] sm:$0xff] %v14246_v12  ;;  %v6608_v28 = vmul.f32 %v13889_v21, %v6458_v14  ;;  %v6319_v3 = vadd.f32 %v14179_v47, %v13886_v2  ;;  %8257 = vmatmul.mubr.bf16.gmra.mxu0 %v10329_v13  ;;  %v6461_v61 = vmax.f32 %v6317_v34, 0.0  ;;  %v6128_v51 = vadd.f32 %v14174_v48, %v13852_v36  ;;  %v6336_v47 = vpop.f32.mrf.mxu0  ;;  %v14275_v42 = vpop.f32.mrf.mxu1 }
 0x50e   : > { %v6688_v41 = vadd.f32 %v6606_v5, %v6605_v8  ;;  %v6460_v58 = vmax.f32 %v6126_v11, 0.0  ;;  %8266 = vmatprep.mubr.bf16.mxu0 %v15759_v24  ;;  %v14269_v18 = vadd.f32 %v6719_v30, %v6604_v50  ;;  %v6321_v53 = vadd.f32 %v14192_v25, %v13863_v0 }
 0x50f   : > { %v6462_v62 = vmax.f32 %v6319_v3, 0.0  ;;  %v6130_v13 = vadd.f32 %v14181_v17, %v13871_v45  ;;  %v6609_v37 = vmul.f32 %v13855_v56, %v6459_v31  ;;  %v6463_v48 = vmax.f32 %v6128_v51, 0.0  ;;  %v6338_v25 = vpop.f32.mrf.mxu0  ;;  %v14282_v34 = vpop.f32.mrf.mxu1 }
 0x510   : > { %16105 = vst [vmem:[#allocation85_spill] sm:$0xff] %v14269_v18  ;;  %v6720_v46 = vadd.f32 %v6688_v41, %v6607_v63  ;;  %v6610_v54 = vmul.f32 %v13874_v4, %v6460_v58  ;;  %v6611_v8 = vmul.f32 %v13866_v59, %v6461_v61  ;;  %v6465_v50 = vmax.f32 %v6321_v53, 0.0 }
 0x511   : > { %v6464_v14 = vmax.f32 %v6130_v13, 0.0  ;;  %v6323_v5 = vadd.f32 %v14205_v39, %v13886_v2  ;;  %v6612_v30 = vmul.f32 %v13889_v21, %v6462_v62  ;;  %v6134_v31 = vadd.f32 %v14194_v23, %v13852_v36  ;;  %v6340_v61 = vpop.f32.mrf.mxu0 }
 0x512   : > { %v14284_v17 = vadd.f32 %v6720_v46, %v6608_v28  ;;  %v6689_v11 = vadd.f32 %v6610_v54, %v6609_v37  ;;  %8074 = vmatmul.mubr.bf16.gmra.mxu1 %v10343_v43  ;;  %v6613_v63 = vmul.f32 %v13855_v56, %v6463_v48  ;;  %v6327_v39 = vadd.f32 %v14228_v52, %v13863_v0  ;;  %v14295_v28 = vpop.f32.mrf.mxu1 }
 0x513   : > { %v6614_v3 = vmul.f32 %v13874_v4, %v6464_v14  ;;  %v6466_v41 = vmax.f32 %v6323_v5, 0.0  ;;  %8083 = vmatprep.mubr.bf16.mxu1 %v15759_v24  ;;  %v6467_v51 = vmax.f32 %v6134_v31, 0.0  ;;  %v6136_v23 = vadd.f32 %v14208_v44, %v13871_v45  ;;  %v6342_v52 = vpop.f32.mrf.mxu0 }
 0x514   : > { %16106 = vst [vmem:[#allocation86_spill] sm:$0xff] %v14284_v17  ;;  %v6721_v58 = vadd.f32 %v6689_v11, %v6611_v8  ;;  %v6329_v62 = vadd.f32 %v6328_v27, %v13886_v2  ;;  %v6615_v53 = vmul.f32 %v13866_v59, %v6465_v50  ;;  %v6469_v46 = vmax.f32 %v6327_v39, 0.0  ;;  %v14304_v54 = vpop.f32.mrf.mxu1 }
 0x515   : > { %v6690_v13 = vadd.f32 %v6614_v3, %v6613_v63  ;;  %v6138_v37 = vadd.f32 %v14217_v6, %v13852_v36  ;;  %8267 = vmatmul.mubr.bf16.gmra.mxu0 %v10343_v43  ;;  %v6616_v8 = vmul.f32 %v13889_v21, %v6466_v41  ;;  %v6468_v14 = vmax.f32 %v6136_v23, 0.0  ;;  %v6346_v11 = vpop.f32.mrf.mxu0 }
 0x516   : > { %v14306_v48 = vadd.f32 %v6721_v58, %v6612_v30  ;;  %v6470_v44 = vmax.f32 %v6329_v62, 0.0  ;;  %8276 = vmatprep.mubr.bf16.mxu0 %v15759_v24  ;;  %v6617_v50 = vmul.f32 %v13855_v56, %v6467_v51  ;;  %v6331_v6 = vadd.f32 %v14249_v57, %v13863_v0  ;;  %v14313_v43 = vpop.f32.mrf.mxu1 }
 0x517   : > { %v6722_v27 = vadd.f32 %v6690_v13, %v6615_v53  ;;  %v6471_v5 = vmax.f32 %v6138_v37, 0.0  ;;  %v6619_v31 = vmul.f32 %v13866_v59, %v6469_v46  ;;  %v6618_v30 = vmul.f32 %v13874_v4, %v6468_v14  ;;  %v6348_v51 = vpop.f32.mrf.mxu0 }
 0x518   : > { %16107 = vst [vmem:[#allocation87_spill] sm:$0xff] %v14306_v48  ;;  %v6140_v63 = vadd.f32 %v14230_v38, %v13871_v45  ;;  %v6333_v3 = vadd.f32 %v6332_v16, %v13886_v2  ;;  %v6620_v39 = vmul.f32 %v13889_v21, %v6470_v44  ;;  %v6473_v58 = vmax.f32 %v6331_v6, 0.0  ;;  %v14327_v46 = vpop.f32.mrf.mxu1 }
 0x519   : > { %v14320_v41 = vadd.f32 %v6722_v27, %v6616_v8  ;;  %v6144_v57 = vadd.f32 %v14241_v60, %v13852_v36  ;;  %v6691_v23 = vadd.f32 %v6618_v30, %v6617_v50  ;;  %v6337_v13 = vadd.f32 %v6336_v47, %v13863_v0  ;;  %v6350_v14 = vpop.f32.mrf.mxu0 }
 0x51a   : > { %v6472_v62 = vmax.f32 %v6140_v63, 0.0  ;;  %v6474_v53 = vmax.f32 %v6333_v3, 0.0  ;;  %8084 = vmatmul.mubr.bf16.gmra.mxu1 %v15797_v19  ;;  %v6621_v38 = vmul.f32 %v13855_v56, %v6471_v5  ;;  %v6146_v37 = vadd.f32 %v14252_v40, %v13871_v45  ;;  %v14336_v50 = vpop.f32.mrf.mxu1 }
 0x51b   : > { %16108 = vst [vmem:[#allocation88_spill] sm:$0xff] %v14320_v41  ;;  %v6475_v16 = vmax.f32 %v6144_v57, 0.0  ;;  %v6339_v8 = vadd.f32 %v6338_v25, %v13886_v2  ;;  %8093 = vmatprep.mubr.bf16.mxu1 %v15759_v24  ;;  %v6723_v60 = vadd.f32 %v6691_v23, %v6619_v31  ;;  %v6623_v44 = vmul.f32 %v13866_v59, %v6473_v58  ;;  %v6352_v25 = vpop.f32.mrf.mxu0 }
 0x51c   : > { %v6622_v47 = vmul.f32 %v13874_v4, %v6472_v62  ;;  %v6477_v27 = vmax.f32 %v6337_v13, 0.0  ;;  %v6624_v6 = vmul.f32 %v13889_v21, %v6474_v53  ;;  %v6476_v5 = vmax.f32 %v6146_v37, 0.0  ;;  %v14347_v57 = vpop.f32.mrf.mxu1 }
 0x51d   : > { %v6478_v30 = vmax.f32 %v6339_v8, 0.0  ;;  %v6148_v40 = vadd.f32 %v14264_v32, %v13852_v36  ;;  %8277 = vmatmul.mubr.bf16.gmra.mxu0 %v15797_v19  ;;  %v14342_v63 = vadd.f32 %v6723_v60, %v6620_v39  ;;  %v6625_v3 = vmul.f32 %v13855_v56, %v6475_v16  ;;  %v6356_v32 = vpop.f32.mrf.mxu0 }
 0x51e   : > { %v6692_v31 = vadd.f32 %v6622_v47, %v6621_v38  ;;  %v6341_v58 = vadd.f32 %v6340_v61, %v13863_v0  ;;  %8286 = vmatprep.mubr.bf16.mxu0 %v15759_v24  ;;  %v6627_v23 = vmul.f32 %v13866_v59, %v6477_v27  ;;  %v6626_v62 = vmul.f32 %v13874_v4, %v6476_v5  ;;  %v14356_v16 = vpop.f32.mrf.mxu1 }
 0x51f   : > { %16109 = vst [vmem:[#allocation89_spill] sm:$0xff] %v14342_v63  ;;  %v6479_v53 = vmax.f32 %v6148_v40, 0.0  ;;  %v6150_v19 = vadd.f32 %v14275_v42, %v13871_v45  ;;  %v6343_v38 = vadd.f32 %v6342_v52, %v13886_v2  ;;  %v6154_v61 = vadd.f32 %v14282_v34, %v13852_v36  ;;  %v6358_v27 = vpop.f32.mrf.mxu0 }
 0x520   : > { %v6724_v39 = vadd.f32 %v6692_v31, %v6623_v44  ;;  %v6481_v13 = vmax.f32 %v6341_v58, 0.0  ;;  %v6693_v37 = vadd.f32 %v6626_v62, %v6625_v3  ;;  %v6628_v8 = vmul.f32 %v13889_v21, %v6478_v30  ;;  %v14364_v52 = vpop.f32.mrf.mxu1 }
 0x521   : > { %v6480_v60 = vmax.f32 %v6150_v19, 0.0  ;;  %v6347_v47 = vadd.f32 %v6346_v11, %v13863_v0  ;;  %v6629_v42 = vmul.f32 %v13855_v56, %v6479_v53  ;;  %v6482_v44 = vmax.f32 %v6343_v38, 0.0  ;;  %v6360_v11 = vpop.f32.mrf.mxu0 }
 0x522   : > { %v14360_v5 = vadd.f32 %v6724_v39, %v6624_v6  ;;  %v6483_v40 = vmax.f32 %v6154_v61, 0.0  ;;  %8094 = vmatmul.mubr.bf16.gmra.mxu1 %v16059_v22  ;;  %v6725_v34 = vadd.f32 %v6693_v37, %v6627_v23  ;;  %v6631_v31 = vmul.f32 %v13866_v59, %v6481_v13  ;;  %v14375_v19 = vpop.f32.mrf.mxu1 }
 0x523   : > { %v6630_v3 = vmul.f32 %v13874_v4, %v6480_v60  ;;  %v6156_v30 = vadd.f32 %v14295_v28, %v13871_v45  ;;  %8103 = vmatprep.mubr.bf16.mxu1 %v15759_v24  ;;  %v6632_v6 = vmul.f32 %v13889_v21, %v6482_v44  ;;  %v6485_v58 = vmax.f32 %v6347_v47, 0.0  ;;  %v6362_v28 = vpop.f32.mrf.mxu0 }
 0x524   : > { %16110 = vst [vmem:[#allocation90_spill] sm:$0xff] %v14360_v5  ;;  %v6349_v62 = vadd.f32 %v6348_v51, %v13886_v2  ;;  %v6158_v53 = vadd.f32 %v14304_v54, %v13852_v36  ;;  %v14377_v23 = vadd.f32 %v6725_v34, %v6628_v8  ;;  %v6633_v13 = vmul.f32 %v13855_v56, %v6483_v40  ;;  %v14385_v54 = vpop.f32.mrf.mxu1 }
 0x525   : > { %v6694_v39 = vadd.f32 %v6630_v3, %v6629_v42  ;;  %v6484_v38 = vmax.f32 %v6156_v30, 0.0  ;;  %8287 = vmatmul.mubr.bf16.gmra.mxu0 %v16059_v22  ;;  %v6351_v60 = vadd.f32 %v6350_v14, %v13863_v0  ;;  %v6160_v51 = vadd.f32 %v14313_v43, %v13871_v45  ;;  %v6366_v44 = vpop.f32.mrf.mxu0 }
 0x526   : > { %16111 = vst [vmem:[#allocation91_spill] sm:$0xff] %v14377_v23  ;;  %v6486_v61 = vmax.f32 %v6349_v62, 0.0  ;;  %v6487_v37 = vmax.f32 %v6158_v53, 0.0  ;;  %8296 = vmatprep.mubr.bf16.mxu0 %v15759_v24  ;;  %v6353_v42 = vadd.f32 %v6352_v25, %v13886_v2  ;;  %v6164_v22 = vadd.f32 %v14327_v46, %v13852_v36  ;;  %v14393_v43 = vpop.f32.mrf.mxu1 }
 0x527   : > { %v6726_v8 = vadd.f32 %v6694_v39, %v6631_v31  ;;  %v6634_v47 = vmul.f32 %v13874_v4, %v6484_v38  ;;  %v6635_v40 = vmul.f32 %v13866_v59, %v6485_v58  ;;  %v6489_v34 = vmax.f32 %v6351_v60, 0.0  ;;  %v6368_v39 = vpop.f32.mrf.mxu0 }
 0x528   : > { %v6636_v14 = vmul.f32 %v13889_v21, %v6486_v61  ;;  %v6488_v3 = vmax.f32 %v6160_v51, 0.0  ;;  %v6637_v31 = vmul.f32 %v13855_v56, %v6487_v37  ;;  %v6490_v53 = vmax.f32 %v6353_v42, 0.0  ;;  %v14403_v61 = vpop.f32.mrf.mxu1 }
 0x529   : > { %v14395_v30 = vadd.f32 %v6726_v8, %v6632_v6  ;;  %v6695_v62 = vadd.f32 %v6634_v47, %v6633_v13  ;;  %v6491_v38 = vmax.f32 %v6164_v22, 0.0  ;;  %v6357_v46 = vadd.f32 %v6356_v32, %v13863_v0  ;;  %v6370_v51 = vpop.f32.mrf.mxu0 }
 0x52a   : > { %v6638_v25 = vmul.f32 %v13874_v4, %v6488_v3  ;;  %v6166_v58 = vadd.f32 %v14336_v50, %v13871_v45  ;;  %8104 = vmatmul.mubr.bf16.gmra.mxu1 %v16062_v33  ;;  %v6639_v6 = vmul.f32 %v13866_v59, %v6489_v34  ;;  %v6640_v13 = vmul.f32 %v13889_v21, %v6490_v53  ;;  %v14411_v42 = vpop.f32.mrf.mxu1 }
 0x52b   : > { %16112 = vst [vmem:[#allocation92_spill] sm:$0xff] %v14395_v30  ;;  %v6727_v60 = vadd.f32 %v6695_v62, %v6635_v40  ;;  %v6359_v37 = vadd.f32 %v6358_v27, %v13886_v2  ;;  %8113 = vmatprep.mubr.bf16.mxu1 %v15759_v24  ;;  %v6493_v47 = vmax.f32 %v6357_v46, 0.0  ;;  %v6168_v50 = vadd.f32 %v14347_v57, %v13852_v36  ;;  %v6372_v27 = vpop.f32.mrf.mxu0 }
 0x52c   : > { %v6696_v8 = vadd.f32 %v6638_v25, %v6637_v31  ;;  %v6492_v32 = vmax.f32 %v6166_v58, 0.0  ;;  %v6361_v34 = vadd.f32 %v6360_v11, %v13863_v0  ;;  %v6170_v3 = vadd.f32 %v14356_v16, %v13871_v45  ;;  %v14422_v57 = vpop.f32.mrf.mxu1 }
 0x52d   : > { %v14413_v22 = vadd.f32 %v6727_v60, %v6636_v14  ;;  %v6494_v40 = vmax.f32 %v6359_v37, 0.0  ;;  %8297 = vmatmul.mubr.bf16.gmra.mxu0 %v16062_v33  ;;  %v6641_v31 = vmul.f32 %v13855_v56, %v6491_v38  ;;  %v6495_v25 = vmax.f32 %v6168_v50, 0.0  ;;  %v6376_v16 = vpop.f32.mrf.mxu0 }
 0x52e   : > { %v6728_v62 = vadd.f32 %v6696_v8, %v6639_v6  ;;  %v6642_v53 = vmul.f32 %v13874_v4, %v6492_v32  ;;  %8306 = vmatprep.mubr.bf16.mxu0 %v15759_v24  ;;  %v6643_v14 = vmul.f32 %v13866_v59, %v6493_v47  ;;  %v6497_v46 = vmax.f32 %v6361_v34, 0.0  ;;  %v14431_v37 = vpop.f32.mrf.mxu1 }
 0x52f   : > { %16113 = vst [vmem:[#allocation93_spill] sm:$0xff] %v14413_v22  ;;  %v6496_v11 = vmax.f32 %v6170_v3, 0.0  ;;  %v6363_v58 = vadd.f32 %v6362_v28, %v13886_v2  ;;  %v6644_v6 = vmul.f32 %v13889_v21, %v6494_v40  ;;  %v6174_v38 = vadd.f32 %v14364_v52, %v13852_v36  ;;  %v6378_v34 = vpop.f32.mrf.mxu0 }
 0x530   : > { %v14426_v60 = vadd.f32 %v6728_v62, %v6640_v13  ;;  %v6697_v33 = vadd.f32 %v6642_v53, %v6641_v31  ;;  %v6645_v8 = vmul.f32 %v13855_v56, %v6495_v25  ;;  %v6367_v50 = vadd.f32 %v6366_v44, %v13863_v0  ;;  %v14440_v52 = vpop.f32.mrf.mxu1 }
 0x531   : > { %v6646_v32 = vmul.f32 %v13874_v4, %v6496_v11  ;;  %v6498_v47 = vmax.f32 %v6363_v58, 0.0  ;;  %v6499_v3 = vmax.f32 %v6174_v38, 0.0  ;;  %v6176_v13 = vadd.f32 %v14375_v19, %v13871_v45  ;;  %v6380_v44 = vpop.f32.mrf.mxu0 }
 0x532   : > { %16114 = vst [vmem:[#allocation94_spill] sm:$0xff] %v14426_v60  ;;  %v6729_v28 = vadd.f32 %v6697_v33, %v6643_v14  ;;  %v6369_v40 = vadd.f32 %v6368_v39, %v13886_v2  ;;  %8114 = vmatmul.mubr.bf16.gmra.mxu1 %v16067_v35  ;;  %v6647_v62 = vmul.f32 %v13866_v59, %v6497_v46  ;;  %v6501_v53 = vmax.f32 %v6367_v50, 0.0  ;;  %v14449_v58 = vpop.f32.mrf.mxu1 }
 0x533   : > { %v6698_v31 = vadd.f32 %v6646_v32, %v6645_v8  ;;  %v6178_v25 = vadd.f32 %v14385_v54, %v13852_v36  ;;  %8123 = vmatprep.mubr.bf16.mxu1 %v15759_v24  ;;  %v6648_v19 = vmul.f32 %v13889_v21, %v6498_v47  ;;  %v6500_v11 = vmax.f32 %v6176_v13, 0.0  ;;  %v6382_v54 = vpop.f32.mrf.mxu0 }
 0x534   : > { %v14446_v14 = vadd.f32 %v6729_v28, %v6644_v6  ;;  %v6502_v39 = vmax.f32 %v6369_v40, 0.0  ;;  %v6649_v38 = vmul.f32 %v13855_v56, %v6499_v3  ;;  %v6371_v8 = vadd.f32 %v6370_v51, %v13863_v0  ;;  %v6197_v28 = vpop.f32.mrf.mxu1 }
 0x535   : > { %v6730_v33 = vadd.f32 %v6698_v31, %v6647_v62  ;;  %v6503_v46 = vmax.f32 %v6178_v25, 0.0  ;;  %8307 = vmatmul.mubr.bf16.gmra.mxu0 %v16067_v35  ;;  %v6651_v32 = vmul.f32 %v13866_v59, %v6501_v53  ;;  %v6650_v6 = vmul.f32 %v13874_v4, %v6500_v11  ;;  %v6386_v40 = vpop.f32.mrf.mxu0 }
 0x536   : > { %16115 = vst [vmem:[#allocation95_spill] sm:$0xff] %v14446_v14  ;;  %v6180_v47 = vadd.f32 %v14393_v43, %v13871_v45  ;;  %v6373_v50 = vadd.f32 %v6372_v27, %v13886_v2  ;;  %8316 = vmatprep.mubr.bf16.mxu0 %v15759_v24  ;;  %v6652_v3 = vmul.f32 %v13889_v21, %v6502_v39  ;;  %v6505_v51 = vmax.f32 %v6371_v8, 0.0  ;;  %v6199_v39 = vpop.f32.mrf.mxu1 }
 0x537   : > { %v14460_v13 = vadd.f32 %v6730_v33, %v6648_v19  ;;  %v6184_v35 = vadd.f32 %v14403_v61, %v13852_v36  ;;  %v6699_v62 = vadd.f32 %v6650_v6, %v6649_v38  ;;  %v6377_v25 = vadd.f32 %v6376_v16, %v13863_v0  ;;  %v6388_v33 = vpop.f32.mrf.mxu0 }
 0x538   : > { %v6504_v31 = vmax.f32 %v6180_v47, 0.0  ;;  %v6506_v53 = vmax.f32 %v6373_v50, 0.0  ;;  %v6653_v43 = vmul.f32 %v13855_v56, %v6503_v46  ;;  %v6186_v11 = vadd.f32 %v14411_v42, %v13871_v45 }
 0x539   : > { %16116 = vst [vmem:[#allocation96_spill] sm:$0xff] %v14460_v13  ;;  %v6507_v27 = vmax.f32 %v6184_v35, 0.0  ;;  %v6379_v19 = vadd.f32 %v6378_v34, %v13886_v2  ;;  %v6731_v8 = vadd.f32 %v6699_v62, %v6651_v32  ;;  %v6655_v13 = vmul.f32 %v13866_v59, %v6505_v51  ;;  %v6390_v42 = vpop.f32.mrf.mxu0 }
 0x53a   : > { %v6654_v61 = vmul.f32 %v13874_v4, %v6504_v31  ;;  %v6509_v38 = vmax.f32 %v6377_v25, 0.0  ;;  %8124 = vmatmul.mubr.bf16.gmra.mxu1 %v16070_v49  ;;  %v6656_v16 = vmul.f32 %v13889_v21, %v6506_v53  ;;  %v6508_v6 = vmax.f32 %v6186_v11, 0.0  ;;  %v7049_v25 = vpop.f32.mrf.mxu1 }
 0x53b   : > { %v6510_v46 = vmax.f32 %v6379_v19, 0.0  ;;  %v6188_v47 = vadd.f32 %v14422_v57, %v13852_v36  ;;  %8133 = vmatprep.mubr.bf16.mxu1 %v15759_v24  ;;  %v14477_v34 = vadd.f32 %v6731_v8, %v6652_v3  ;;  %v6657_v50 = vmul.f32 %v13855_v56, %v6507_v27  ;;  %v6392_v57 = vpop.f32.mrf.mxu0 }
 0x53c   : > { %v6700_v32 = vadd.f32 %v6654_v61, %v6653_v43  ;;  %v6381_v51 = vadd.f32 %v6380_v44, %v13863_v0  ;;  %v6659_v35 = vmul.f32 %v13866_v59, %v6509_v38  ;;  %v6658_v62 = vmul.f32 %v13874_v4, %v6508_v6 }
 0x53d   : > { %16117 = vst [vmem:[#allocation97_spill] sm:$0xff] %v14477_v34  ;;  %v6511_v31 = vmax.f32 %v6188_v47, 0.0  ;;  %v6190_v53 = vadd.f32 %v14431_v37, %v13871_v45  ;;  %8317 = vmatmul.mubr.bf16.gmra.mxu0 %v16070_v49  ;;  %v6383_v43 = vadd.f32 %v6382_v54, %v13886_v2  ;;  %v6194_v27 = vadd.f32 %v14440_v52, %v13852_v36  ;;  %v14492_v37 = vpop.f32.mrf.mxu1  ;;  %v7242_v54 = vpop.f32.mrf.mxu0 }
 0x53e   : > { %v6732_v11 = vadd.f32 %v6700_v32, %v6655_v13  ;;  %v6513_v3 = vmax.f32 %v6381_v51, 0.0  ;;  %8326 = vmatprep.mubr.bf16.mxu0 %v15759_v24  ;;  %v6701_v44 = vadd.f32 %v6658_v62, %v6657_v50  ;;  %v6660_v19 = vmul.f32 %v13889_v21, %v6510_v46 }
 0x53f   : > { %v6512_v8 = vmax.f32 %v6190_v53, 0.0  ;;  %v6387_v61 = vadd.f32 %v6386_v40, %v13863_v0  ;;  %v6661_v13 = vmul.f32 %v13855_v56, %v6511_v31  ;;  %v6514_v38 = vmax.f32 %v6383_v43, 0.0  ;;  %v7053_v50 = vpop.f32.mrf.mxu1  ;;  %v6833_v31 = vld [vmem:[#allocation8 + $0x18] sm:$0xf]  ;;  %v7244_v53 = vpop.f32.mrf.mxu0 }
 0x540   : > { %v14494_v49 = vadd.f32 %v6732_v11, %v6656_v16  ;;  %v6515_v6 = vmax.f32 %v6194_v27, 0.0  ;;  %v6733_v47 = vadd.f32 %v6701_v44, %v6659_v35  ;;  %v6663_v52 = vmul.f32 %v13866_v59, %v6513_v3 }
 0x541   : > { %v6662_v32 = vmul.f32 %v13874_v4, %v6512_v8  ;;  %v6196_v46 = vadd.f32 %v14449_v58, %v13871_v45  ;;  %v6664_v40 = vmul.f32 %v13889_v21, %v6514_v38  ;;  %v6517_v51 = vmax.f32 %v6387_v61, 0.0  ;;  %v7055_v27 = vpop.f32.mrf.mxu1 }
 0x542   : > { %16118 = vst [vmem:[#allocation98_spill] sm:$0xff] %v14494_v49  ;;  %v6389_v16 = vadd.f32 %v6388_v33, %v13886_v2  ;;  %v6198_v62 = vadd.f32 %v6197_v28, %v13852_v36  ;;  %8134 = vmatmul.mubr.bf16.gmra.mxu1 %v16075_v15  ;;  %v14505_v35 = vadd.f32 %v6733_v47, %v6660_v19  ;;  %v7246_v36 = vpop.f32.mrf.mxu0 }
 0x543   : > { %v6702_v11 = vadd.f32 %v6662_v32, %v6661_v13  ;;  %v6665_v3 = vmul.f32 %v13855_v56, %v6515_v6  ;;  %v6516_v43 = vmax.f32 %v6196_v46, 0.0  ;;  %8143 = vmatprep.mubr.bf16.mxu1 %v15759_v24  ;;  %v6391_v8 = vadd.f32 %v6390_v42, %v13863_v0  ;;  %v7059_v38 = vpop.f32.mrf.mxu1  ;;  %v7529_v42 = vld [vmem:[#allocation10 + $0x18] sm:$0xf] }
 0x544   : > { %16119 = vst [vmem:[#allocation99_spill] sm:$0xff] %v14505_v35  ;;  %v6518_v58 = vmax.f32 %v6389_v16, 0.0  ;;  %v6519_v44 = vmax.f32 %v6198_v62, 0.0  ;;  %v6200_v33 = vadd.f32 %v6199_v39, %v13871_v45  ;;  %v6393_v19 = vadd.f32 %v6392_v57, %v13886_v2  ;;  %v7248_v45 = vpop.f32.mrf.mxu0  ;;  %v16121_v62 = vld [vmem:[#allocation28_spill] sm:$0xff] }
 0x545   : > { %v6734_v28 = vadd.f32 %v6702_v11, %v6663_v52  ;;  %v6666_v61 = vmul.f32 %v13874_v4, %v6516_v43  ;;  %v14514_v13 = vrot.slane %v6833_v31, %v16080_v9  ;;  %8327 = vmatmul.mubr.bf16.gmra.mxu0 %v16075_v15  ;;  %v6667_v6 = vmul.f32 %v13866_v59, %v6517_v51  ;;  %v7061_v46 = vpop.f32.mrf.mxu1 }
 0x546   : > { %v6668_v47 = vmul.f32 %v13889_v21, %v6518_v58  ;;  %v6521_v32 = vmax.f32 %v6391_v8, 0.0  ;;  %v6520_v0 = vmax.f32 %v6200_v33, 0.0  ;;  %8336 = vmatprep.mubr.bf16.mxu0 %v15759_v24  ;;  %v6522_v2 = vmax.f32 %v6393_v19, 0.0  ;;  %v7252_v43 = vpop.f32.mrf.mxu0 }
 0x547   : > { %v14520_v39 = vadd.f32 %v6734_v28, %v6664_v40  ;;  %v6703_v52 = vadd.f32 %v6666_v61, %v6665_v3  ;;  %v7050_v57 = vadd.f32 %v7049_v25, %v14514_v13  ;;  %v6669_v15 = vmul.f32 %v13855_v56, %v6519_v44  ;;  %v7063_v33 = vpop.f32.mrf.mxu1  ;;  %v16123_v44 = vld [vmem:[#allocation20_spill] sm:$0xff] }
 0x548   : > { %v6671_v16 = vmul.f32 %v13866_v59, %v6521_v32  ;;  %v6670_v51 = vmul.f32 %v13874_v4, %v6520_v0  ;;  %v14527_v11 = vrot.slane %v6833_v31, %v16121_v62  ;;  %v6672_v8 = vmul.f32 %v13889_v21, %v6522_v2  ;;  %v16122_v59 = vld [vmem:[#allocation29_spill] sm:$0xff]  ;;  %v7254_v61 = vpop.f32.mrf.mxu0 }
 0x549   : > { %16120 = vst [vmem:[#allocation100_spill] sm:$0xff] %v14520_v39  ;;  %v6735_v58 = vadd.f32 %v6703_v52, %v6667_v6  ;;  %v7401_v40 = vmax.f32 %v7050_v57, 0.0  ;;  %v14531_v3 = vrot.slane %v7529_v42, %v16080_v9  ;;  %v14535_v56 = vrot.slane %v7529_v42, %v16121_v62  ;;  %v16125_v6 = vld [vmem:[#allocation30_spill] sm:$0xff] }
 0x54a   : > { %v6704_v25 = vadd.f32 %v6670_v51, %v6669_v15  ;;  %v7243_v28 = vadd.f32 %v7242_v54, %v14527_v11  ;;  %v14538_v4 = vrot.slane %v6833_v31, %v16122_v59  ;;  %8144 = vmatmul.mubr.bf16.gmra.mxu1 %v16123_v44  ;;  %v14544_v21 = vrot.slane %v7529_v42, %v16122_v59  ;;  %v7065_v54 = vpop.f32.mrf.mxu1  ;;  %v7256_v15 = vpop.f32.mrf.mxu0 }
 0x54b   : > { %v14541_v19 = vadd.f32 %v6735_v58, %v6668_v47  ;;  %v14547_v32 = vrot.slane %v6833_v31, %v16125_v6  ;;  %v14550_v0 = vrot.slane %v7529_v42, %v16125_v6  ;;  %8153 = vmatprep.mubr.bf16.mxu1 %v15759_v24  ;;  %v7054_v47 = vadd.f32 %v7053_v50, %v14514_v13 }
 0x54c   : > { %v6736_v52 = vadd.f32 %v6704_v25, %v6671_v16  ;;  %v7403_v2 = vmax.f32 %v7243_v28, 0.0  ;;  %v7052_v57 = vadd.f32 %v14492_v37, %v14538_v4  ;;  %v7247_v58 = vadd.f32 %v7246_v36, %v14527_v11  ;;  %v7258_v28 = vpop.f32.mrf.mxu0  ;;  %v7069_v37 = vpop.f32.mrf.mxu1 }
 0x54d   : > { %16124 = vst [vmem:[#allocation28_spill] sm:$0xff] %v14541_v19  ;;  %v7245_v51 = vadd.f32 %v7244_v53, %v14547_v32  ;;  %v7056_v31 = vadd.f32 %v7055_v27, %v14538_v4  ;;  %v7249_v42 = vadd.f32 %v7248_v45, %v14547_v32  ;;  %8337 = vmatmul.mubr.bf16.gmra.mxu0 %v16123_v44  ;;  %v7405_v25 = vmax.f32 %v7054_v47, 0.0 }
 0x54e   : > { %v14561_v39 = vadd.f32 %v6736_v52, %v6672_v8  ;;  %v7402_v16 = vmax.f32 %v7052_v57, 0.0  ;;  %8346 = vmatprep.mubr.bf16.mxu0 %v15759_v24  ;;  %v7551_v50 = vmul.f32 %v14531_v3, %v7401_v40  ;;  %v14566_v53 = vmul.f32 %v14535_v56, %v7403_v2  ;;  %v7262_v52 = vpop.f32.mrf.mxu0  ;;  %v7071_v57 = vpop.f32.mrf.mxu1 }
 0x54f   : > { %v7404_v36 = vmax.f32 %v7245_v51, 0.0  ;;  %v7406_v19 = vmax.f32 %v7056_v31, 0.0  ;;  %v7407_v45 = vmax.f32 %v7247_v58, 0.0  ;;  %v7060_v44 = vadd.f32 %v7059_v38, %v14514_v13 }
 0x550   : > { %16126 = vst [vmem:[#allocation29_spill] sm:$0xff] %v14561_v39  ;;  %v7552_v27 = vmul.f32 %v14544_v21, %v7402_v16  ;;  %v7253_v8 = vadd.f32 %v7252_v43, %v14527_v11  ;;  %v7555_v39 = vmul.f32 %v14531_v3, %v7405_v25  ;;  %v7408_v2 = vmax.f32 %v7249_v42, 0.0  ;;  %v16127_v16 = vld [vmem:[#allocation21_spill] sm:$0xff]  ;;  %v7264_v38 = vpop.f32.mrf.mxu0  ;;  %v7073_v43 = vpop.f32.mrf.mxu1 }
 0x551   : > { %v14572_v47 = vmul.f32 %v14550_v0, %v7404_v36  ;;  %v7556_v40 = vmul.f32 %v14544_v21, %v7406_v19  ;;  %v7409_v51 = vmax.f32 %v7060_v44, 0.0  ;;  %v7062_v58 = vadd.f32 %v7061_v46, %v14538_v4 }
 0x552   : > { %v14576_v35 = vadd.f32 %v7552_v27, %v7551_v50  ;;  %v7411_v31 = vmax.f32 %v7253_v8, 0.0  ;;  %8154 = vmatmul.mubr.bf16.gmra.mxu1 %v16127_v16  ;;  %v7255_v36 = vadd.f32 %v7254_v61, %v14547_v32  ;;  %v7064_v34 = vadd.f32 %v7063_v33, %v14514_v13  ;;  %v7266_v27 = vpop.f32.mrf.mxu0  ;;  %v7075_v44 = vpop.f32.mrf.mxu1 }
 0x553   : > { %v14580_v49 = vadd.f32 %v7556_v40, %v7555_v39  ;;  %v7257_v25 = vadd.f32 %v7256_v15, %v14527_v11  ;;  %8163 = vmatprep.mubr.bf16.mxu1 %v15759_v24  ;;  %v14587_v19 = vmul.f32 %v14535_v56, %v7407_v45  ;;  %v7559_v42 = vmul.f32 %v14531_v3, %v7409_v51 }
 0x554   : > { %v7410_v46 = vmax.f32 %v7062_v58, 0.0  ;;  %v7066_v50 = vadd.f32 %v7065_v54, %v14538_v4  ;;  %v7412_v39 = vmax.f32 %v7255_v36, 0.0  ;;  %v7413_v8 = vmax.f32 %v7064_v34, 0.0  ;;  %v7268_v51 = vpop.f32.mrf.mxu0  ;;  %v7079_v54 = vpop.f32.mrf.mxu1 }
 0x555   : > { %v7415_v40 = vmax.f32 %v7257_v25, 0.0  ;;  %v7259_v61 = vadd.f32 %v7258_v28, %v14547_v32  ;;  %8347 = vmatmul.mubr.bf16.gmra.mxu0 %v16127_v16  ;;  %v7070_v45 = vadd.f32 %v7069_v37, %v14514_v13  ;;  %v7263_v14 = vadd.f32 %v7262_v52, %v14527_v11 }
 0x556   : > { %v7560_v33 = vmul.f32 %v14544_v21, %v7410_v46  ;;  %v7414_v15 = vmax.f32 %v7066_v50, 0.0  ;;  %8356 = vmatprep.mubr.bf16.mxu0 %v15759_v24  ;;  %v14598_v58 = vmul.f32 %v14550_v0, %v7408_v2  ;;  %v14601_v34 = vmul.f32 %v14535_v56, %v7411_v31  ;;  %v7272_v46 = vpop.f32.mrf.mxu0  ;;  %v7081_v50 = vpop.f32.mrf.mxu1 }
 0x557   : > { %v14604_v28 = vmul.f32 %v14550_v0, %v7412_v39  ;;  %v7416_v16 = vmax.f32 %v7259_v61, 0.0  ;;  %v7563_v37 = vmul.f32 %v14531_v3, %v7413_v8  ;;  %v7417_v25 = vmax.f32 %v7070_v45, 0.0 }
 0x558   : > { %v14606_v36 = vadd.f32 %v7560_v33, %v7559_v42  ;;  %v7564_v52 = vmul.f32 %v14544_v21, %v7414_v15  ;;  %v7419_v60 = vmax.f32 %v7263_v14, 0.0  ;;  %v7072_v2 = vadd.f32 %v7071_v57, %v14538_v4  ;;  %v16128_v33 = vld [vmem:[#allocation22_spill] sm:$0xff]  ;;  %v7274_v15 = vpop.f32.mrf.mxu0  ;;  %v7083_v14 = vpop.f32.mrf.mxu1 }
 0x559   : > { %v7265_v22 = vadd.f32 %v7264_v38, %v14547_v32  ;;  %v7074_v31 = vadd.f32 %v7073_v43, %v14514_v13  ;;  %v14614_v39 = vmul.f32 %v14535_v56, %v7415_v40  ;;  %v14619_v42 = vmul.f32 %v14550_v0, %v7416_v16 }
 0x55a   : > { %v14616_v61 = vadd.f32 %v7564_v52, %v7563_v37  ;;  %v7267_v8 = vadd.f32 %v7266_v27, %v14527_v11  ;;  %8164 = vmatmul.mubr.bf16.gmra.mxu1 %v16128_v33  ;;  %v7418_v45 = vmax.f32 %v7072_v2, 0.0  ;;  %v7076_v38 = vadd.f32 %v7075_v44, %v14538_v4  ;;  %v7276_v52 = vpop.f32.mrf.mxu0  ;;  %v7085_v27 = vpop.f32.mrf.mxu1 }
 0x55b   : > { %v7420_v57 = vmax.f32 %v7265_v22, 0.0  ;;  %v7421_v30 = vmax.f32 %v7074_v31, 0.0  ;;  %8173 = vmatprep.mubr.bf16.mxu1 %v15759_v24  ;;  %v7269_v40 = vadd.f32 %v7268_v51, %v14547_v32  ;;  %v7080_v37 = vadd.f32 %v7079_v54, %v14514_v13 }
 0x55c   : > { %v7423_v43 = vmax.f32 %v7267_v8, 0.0  ;;  %v7273_v16 = vadd.f32 %v7272_v46, %v14527_v11  ;;  %v7567_v23 = vmul.f32 %v14531_v3, %v7417_v25  ;;  %v7569_v5 = vmul.f32 %v14535_v56, %v7419_v60  ;;  %v7278_v54 = vpop.f32.mrf.mxu0  ;;  %v7089_v46 = vpop.f32.mrf.mxu1 }
 0x55d   : > { %v7568_v22 = vmul.f32 %v14544_v21, %v7418_v45  ;;  %v7422_v2 = vmax.f32 %v7076_v38, 0.0  ;;  %8357 = vmatmul.mubr.bf16.gmra.mxu0 %v16128_v33  ;;  %v7570_v44 = vmul.f32 %v14550_v0, %v7420_v57  ;;  %v7571_v31 = vmul.f32 %v14531_v3, %v7421_v30 }
 0x55e   : > { %v7424_v51 = vmax.f32 %v7269_v40, 0.0  ;;  %v7425_v8 = vmax.f32 %v7080_v37, 0.0  ;;  %8366 = vmatprep.mubr.bf16.mxu0 %v15759_v24  ;;  %v7082_v60 = vadd.f32 %v7081_v50, %v14538_v4  ;;  %v7275_v45 = vadd.f32 %v7274_v15, %v14547_v32  ;;  %v7282_v40 = vpop.f32.mrf.mxu0  ;;  %v7091_v37 = vpop.f32.mrf.mxu1 }
 0x55f   : > { %v7683_v63 = vadd.f32 %v7568_v22, %v7567_v23  ;;  %v7572_v25 = vmul.f32 %v14544_v21, %v7422_v2  ;;  %v14639_v38 = vmul.f32 %v14535_v56, %v7423_v43  ;;  %v7427_v30 = vmax.f32 %v7273_v16, 0.0 }
 0x560   : > { %v14642_v33 = vmul.f32 %v14550_v0, %v7424_v51  ;;  %v7084_v57 = vadd.f32 %v7083_v14, %v14514_v13  ;;  %v7426_v23 = vmax.f32 %v7082_v60, 0.0  ;;  %v7428_v22 = vmax.f32 %v7275_v45, 0.0  ;;  %v7284_v16 = vpop.f32.mrf.mxu0  ;;  %v7093_v51 = vpop.f32.mrf.mxu1 }
 0x561   : > { %v7715_v41 = vadd.f32 %v7683_v63, %v7569_v5  ;;  %v14645_v48 = vadd.f32 %v7572_v25, %v7571_v31  ;;  %v7277_v50 = vadd.f32 %v7276_v52, %v14527_v11  ;;  %v7086_v15 = vadd.f32 %v7085_v27, %v14538_v4 }
 0x562   : > { %v7429_v2 = vmax.f32 %v7084_v57, 0.0  ;;  %v14650_v43 = vadd.f32 %v7278_v54, %v14547_v32  ;;  %8174 = vmatmul.mubr.bf16.gmra.mxu1 %v16091_v26  ;;  %v7575_v63 = vmul.f32 %v14531_v3, %v7425_v8  ;;  %v7576_v5 = vmul.f32 %v14544_v21, %v7426_v23  ;;  %v7286_v60 = vpop.f32.mrf.mxu0  ;;  %v7095_v45 = vpop.f32.mrf.mxu1 }
 0x563   : > { %v14653_v14 = vadd.f32 %v7715_v41, %v7570_v44  ;;  %v7090_v31 = vadd.f32 %v7089_v46, %v14514_v13  ;;  %8183 = vmatprep.mubr.bf16.mxu1 %v15759_v24  ;;  %v7577_v52 = vmul.f32 %v14535_v56, %v7427_v30  ;;  %v7578_v27 = vmul.f32 %v14550_v0, %v7428_v22 }
 0x564   : > { %v7431_v54 = vmax.f32 %v7277_v50, 0.0  ;;  %v7430_v25 = vmax.f32 %v7086_v15, 0.0  ;;  %v7685_v57 = vadd.f32 %v7576_v5, %v7575_v63  ;;  %v7283_v41 = vadd.f32 %v7282_v40, %v14527_v11  ;;  %v7288_v22 = vpop.f32.mrf.mxu0  ;;  %v7099_v50 = vpop.f32.mrf.mxu1 }
 0x565   : > { %v7433_v17 = vmax.f32 %v7090_v31, 0.0  ;;  %8367 = vmatmul.mubr.bf16.gmra.mxu0 %v16091_v26  ;;  %v7092_v44 = vadd.f32 %v7091_v37, %v14538_v4  ;;  %v7579_v8 = vmul.f32 %v14531_v3, %v7429_v2  ;;  %v7285_v23 = vadd.f32 %v7284_v16, %v14547_v32 }
 0x566   : > { %v7580_v46 = vmul.f32 %v14544_v21, %v7430_v25  ;;  %8376 = vmatprep.mubr.bf16.mxu0 %v15759_v24  ;;  %v7717_v15 = vadd.f32 %v7685_v57, %v7577_v52  ;;  %v14670_v63 = vmul.f32 %v14535_v56, %v7431_v54  ;;  %v7435_v40 = vmax.f32 %v7283_v41, 0.0  ;;  %v7292_v25 = vpop.f32.mrf.mxu0  ;;  %v7101_v30 = vpop.f32.mrf.mxu1 }
 0x567   : > { %v7434_v26 = vmax.f32 %v7092_v44, 0.0  ;;  %v7436_v37 = vmax.f32 %v7285_v23, 0.0  ;;  %v7094_v2 = vadd.f32 %v7093_v51, %v14514_v13  ;;  %v7287_v31 = vadd.f32 %v7286_v60, %v14527_v11 }
 0x568   : > { %v14672_v5 = vadd.f32 %v7580_v46, %v7579_v8  ;;  %v14676_v16 = vadd.f32 %v7717_v15, %v7578_v27  ;;  %v7583_v18 = vmul.f32 %v14531_v3, %v7433_v17  ;;  %v7096_v54 = vadd.f32 %v7095_v45, %v14538_v4  ;;  %v16129_v46 = vld [vmem:[#allocation24_spill] sm:$0xff]  ;;  %v7294_v51 = vpop.f32.mrf.mxu0  ;;  %v7103_v60 = vpop.f32.mrf.mxu1 }
 0x569   : > { %v7584_v52 = vmul.f32 %v14544_v21, %v7434_v26  ;;  %v7585_v57 = vmul.f32 %v14535_v56, %v7435_v40  ;;  %v7437_v41 = vmax.f32 %v7094_v2, 0.0  ;;  %v7439_v44 = vmax.f32 %v7287_v31, 0.0 }
 0x56a   : > { %v7289_v8 = vadd.f32 %v7288_v22, %v14547_v32  ;;  %8184 = vmatmul.mubr.bf16.gmra.mxu1 %v16129_v46  ;;  %v7438_v12 = vmax.f32 %v7096_v54, 0.0  ;;  %v7100_v27 = vadd.f32 %v7099_v50, %v14514_v13  ;;  %v7293_v17 = vadd.f32 %v7292_v25, %v14527_v11  ;;  %v7296_v22 = vpop.f32.mrf.mxu0  ;;  %v7105_v2 = vpop.f32.mrf.mxu1 }
 0x56b   : > { %v7687_v23 = vadd.f32 %v7584_v52, %v7583_v18  ;;  %8193 = vmatprep.mubr.bf16.mxu1 %v15759_v24  ;;  %v7586_v45 = vmul.f32 %v14550_v0, %v7436_v37  ;;  %v7587_v15 = vmul.f32 %v14531_v3, %v7437_v41  ;;  %v7102_v26 = vadd.f32 %v7101_v30, %v14538_v4 }
 0x56c   : > { %v7440_v40 = vmax.f32 %v7289_v8, 0.0  ;;  %v7589_v29 = vmul.f32 %v14535_v56, %v7439_v44  ;;  %v7588_v18 = vmul.f32 %v14544_v21, %v7438_v12  ;;  %v7441_v52 = vmax.f32 %v7100_v27, 0.0  ;;  %v7298_v41 = vpop.f32.mrf.mxu0 }
 0x56d   : > { %v7719_v31 = vadd.f32 %v7687_v23, %v7585_v57  ;;  %8377 = vmatmul.mubr.bf16.gmra.mxu0 %v16129_v46  ;;  %v7443_v50 = vmax.f32 %v7293_v17, 0.0  ;;  %v7442_v25 = vmax.f32 %v7102_v26, 0.0  ;;  %v7295_v54 = vadd.f32 %v7294_v51, %v14547_v32  ;;  %v7109_v12 = vpop.f32.mrf.mxu1 }
 0x56e   : > { %v7104_v37 = vadd.f32 %v7103_v60, %v14514_v13  ;;  %8386 = vmatprep.mubr.bf16.mxu0 %v15759_v24  ;;  %v7688_v8 = vadd.f32 %v7588_v18, %v7587_v15  ;;  %v7590_v57 = vmul.f32 %v14550_v0, %v7440_v40  ;;  %v7591_v44 = vmul.f32 %v14531_v3, %v7441_v52  ;;  %v7302_v51 = vpop.f32.mrf.mxu0 }
 0x56f   : > { %v14696_v30 = vadd.f32 %v7719_v31, %v7586_v45  ;;  %v7592_v23 = vmul.f32 %v14544_v21, %v7442_v25  ;;  %v7444_v46 = vmax.f32 %v7295_v54, 0.0  ;;  %v7297_v17 = vadd.f32 %v7296_v22, %v14527_v11  ;;  %v7111_v15 = vpop.f32.mrf.mxu1 }
 0x570   : > { %v7445_v27 = vmax.f32 %v7104_v37, 0.0  ;;  %v7720_v26 = vadd.f32 %v7688_v8, %v7589_v29  ;;  %v7106_v60 = vadd.f32 %v7105_v2, %v14538_v4  ;;  %v7299_v55 = vadd.f32 %v7298_v41, %v14547_v32  ;;  %v7304_v25 = vpop.f32.mrf.mxu0 }
 0x571   : > { %v7110_v45 = vadd.f32 %v7109_v12, %v14514_v13  ;;  %v7593_v40 = vmul.f32 %v14535_v56, %v7443_v50  ;;  %v7689_v31 = vadd.f32 %v7592_v23, %v7591_v44  ;;  %v7594_v18 = vmul.f32 %v14550_v0, %v7444_v46  ;;  %v7113_v37 = vpop.f32.mrf.mxu1 }
 0x572   : > { %v7447_v52 = vmax.f32 %v7297_v17, 0.0  ;;  %8194 = vmatmul.mubr.bf16.gmra.mxu1 %v16097_v10  ;;  %v14708_v54 = vadd.f32 %v7720_v26, %v7590_v57  ;;  %v7595_v29 = vmul.f32 %v14531_v3, %v7445_v27  ;;  %v7446_v22 = vmax.f32 %v7106_v60, 0.0  ;;  %v7306_v12 = vpop.f32.mrf.mxu0 }
 0x573   : > { %v7448_v2 = vmax.f32 %v7299_v55, 0.0  ;;  %8203 = vmatprep.mubr.bf16.mxu1 %v15759_v24  ;;  %v7721_v41 = vadd.f32 %v7689_v31, %v7593_v40  ;;  %v7449_v8 = vmax.f32 %v7110_v45, 0.0  ;;  %v7303_v50 = vadd.f32 %v7302_v51, %v14527_v11  ;;  %v7115_v27 = vpop.f32.mrf.mxu1 }
 0x574   : > { %16130 = vst [vmem:[#allocation20_spill] sm:$0xff] %v14708_v54  ;;  %v7112_v44 = vadd.f32 %v7111_v15, %v14538_v4  ;;  %v7597_v23 = vmul.f32 %v14535_v56, %v7447_v52  ;;  %v7596_v46 = vmul.f32 %v14544_v21, %v7446_v22  ;;  %v7305_v55 = vadd.f32 %v7304_v25, %v14547_v32  ;;  %v7308_v45 = vpop.f32.mrf.mxu0 }
 0x575   : > { %v7598_v57 = vmul.f32 %v14550_v0, %v7448_v2  ;;  %8387 = vmatmul.mubr.bf16.gmra.mxu0 %v16097_v10  ;;  %v14719_v17 = vadd.f32 %v7721_v41, %v7594_v18  ;;  %v7451_v26 = vmax.f32 %v7303_v50, 0.0  ;;  %v7114_v51 = vadd.f32 %v7113_v37, %v14514_v13  ;;  %v7119_v22 = vpop.f32.mrf.mxu1 }
 0x576   : > { %v7450_v60 = vmax.f32 %v7112_v44, 0.0  ;;  %8396 = vmatprep.mubr.bf16.mxu0 %v15759_v24  ;;  %v7690_v15 = vadd.f32 %v7596_v46, %v7595_v29  ;;  %v7452_v40 = vmax.f32 %v7305_v55, 0.0  ;;  %v7307_v31 = vadd.f32 %v7306_v12, %v14527_v11  ;;  %v7312_v41 = vpop.f32.mrf.mxu0 }
 0x577   : > { %16131 = vst [vmem:[#allocation30_spill] sm:$0xff] %v14719_v17  ;;  %v7116_v52 = vadd.f32 %v7115_v27, %v14538_v4  ;;  %v7599_v10 = vmul.f32 %v14531_v3, %v7449_v8  ;;  %v7453_v18 = vmax.f32 %v7114_v51, 0.0  ;;  %v7309_v2 = vadd.f32 %v7308_v45, %v14547_v32  ;;  %v7121_v29 = vpop.f32.mrf.mxu1 }
 0x578   : > { %v7600_v25 = vmul.f32 %v14544_v21, %v7450_v60  ;;  %v7722_v50 = vadd.f32 %v7690_v15, %v7597_v23  ;;  %v7601_v37 = vmul.f32 %v14535_v56, %v7451_v26  ;;  %v7455_v44 = vmax.f32 %v7307_v31, 0.0  ;;  %v7314_v8 = vpop.f32.mrf.mxu0 }
 0x579   : > { %v7454_v24 = vmax.f32 %v7116_v52, 0.0  ;;  %v7602_v12 = vmul.f32 %v14550_v0, %v7452_v40  ;;  %v7456_v55 = vmax.f32 %v7309_v2, 0.0  ;;  %v7120_v27 = vadd.f32 %v7119_v22, %v14514_v13  ;;  %v7123_v45 = vpop.f32.mrf.mxu1 }
 0x57a   : > { %v7691_v46 = vadd.f32 %v7600_v25, %v7599_v10  ;;  %8204 = vmatmul.mubr.bf16.gmra.mxu1 %v15926_v20  ;;  %v14732_v60 = vadd.f32 %v7722_v50, %v7598_v57  ;;  %v7603_v51 = vmul.f32 %v14531_v3, %v7453_v18  ;;  %v7313_v26 = vadd.f32 %v7312_v41, %v14527_v11  ;;  %v7316_v10 = vpop.f32.mrf.mxu0 }
 0x57b   : > { %v7604_v23 = vmul.f32 %v14544_v21, %v7454_v24  ;;  %v7605_v31 = vmul.f32 %v14535_v56, %v7455_v44  ;;  %v7457_v52 = vmax.f32 %v7120_v27, 0.0  ;;  %v7122_v40 = vadd.f32 %v7121_v29, %v14538_v4  ;;  %v7125_v2 = vpop.f32.mrf.mxu1 }
 0x57c   : > { %16132 = vst [vmem:[#allocation21_spill] sm:$0xff] %v14732_v60  ;;  %v7723_v15 = vadd.f32 %v7691_v46, %v7601_v37  ;;  %v7459_v25 = vmax.f32 %v7313_v26, 0.0  ;;  %v7315_v57 = vadd.f32 %v7314_v8, %v14547_v32  ;;  %v7124_v18 = vadd.f32 %v7123_v45, %v14514_v13  ;;  %v7318_v24 = vpop.f32.mrf.mxu0 }
 0x57d   : > { %v7692_v22 = vadd.f32 %v7604_v23, %v7603_v51  ;;  %8397 = vmatmul.mubr.bf16.gmra.mxu0 %v15926_v20  ;;  %v7606_v41 = vmul.f32 %v14550_v0, %v7456_v55  ;;  %v7458_v37 = vmax.f32 %v7122_v40, 0.0  ;;  %v7317_v44 = vadd.f32 %v7316_v10, %v14527_v11 }
 0x57e   : > { %v14742_v50 = vadd.f32 %v7723_v15, %v7602_v12  ;;  %v7607_v29 = vmul.f32 %v14531_v3, %v7457_v52  ;;  %v7460_v27 = vmax.f32 %v7315_v57, 0.0  ;;  %v7461_v51 = vmax.f32 %v7124_v18, 0.0  ;;  %v7129_v23 = vpop.f32.mrf.mxu1 }
 0x57f   : > { %v7724_v46 = vadd.f32 %v7692_v22, %v7605_v31  ;;  %v7608_v20 = vmul.f32 %v14544_v21, %v7458_v37  ;;  %v7463_v8 = vmax.f32 %v7317_v44, 0.0  ;;  %v7126_v26 = vadd.f32 %v7125_v2, %v14538_v4  ;;  %v7322_v45 = vpop.f32.mrf.mxu0 }
 0x580   : > { %16133 = vst [vmem:[#allocation22_spill] sm:$0xff] %v14742_v50  ;;  %v7319_v12 = vadd.f32 %v7318_v24, %v14547_v32  ;;  %v7609_v55 = vmul.f32 %v14535_v56, %v7459_v25  ;;  %v7610_v40 = vmul.f32 %v14550_v0, %v7460_v27  ;;  %v7130_v31 = vadd.f32 %v7129_v23, %v14514_v13  ;;  %v7131_v52 = vpop.f32.mrf.mxu1 }
 0x581   : > { %v14750_v15 = vadd.f32 %v7724_v46, %v7606_v41  ;;  %v7693_v10 = vadd.f32 %v7608_v20, %v7607_v29  ;;  %v7611_v22 = vmul.f32 %v14531_v3, %v7461_v51  ;;  %v7462_v57 = vmax.f32 %v7126_v26, 0.0  ;;  %v7324_v37 = vpop.f32.mrf.mxu0 }
 0x582   : > { %v7464_v18 = vmax.f32 %v7319_v12, 0.0  ;;  %v7465_v44 = vmax.f32 %v7130_v31, 0.0  ;;  %v7323_v2 = vadd.f32 %v7322_v45, %v14527_v11  ;;  %v7132_v24 = vadd.f32 %v7131_v52, %v14538_v4  ;;  %v7133_v46 = vpop.f32.mrf.mxu1 }
 0x583   : > { %16134 = vst [vmem:[#allocation24_spill] sm:$0xff] %v14750_v15  ;;  %v7325_v41 = vadd.f32 %v7324_v37, %v14547_v32  ;;  %v7725_v25 = vadd.f32 %v7693_v10, %v7609_v55  ;;  %v7613_v27 = vmul.f32 %v14535_v56, %v7463_v8  ;;  %v7612_v23 = vmul.f32 %v14544_v21, %v7462_v57  ;;  %v7326_v20 = vpop.f32.mrf.mxu0 }
 0x584   : > { %v7134_v29 = vadd.f32 %v7133_v46, %v14514_v13  ;;  %v7614_v51 = vmul.f32 %v14550_v0, %v7464_v18  ;;  %v7467_v26 = vmax.f32 %v7323_v2, 0.0  ;;  %v7466_v12 = vmax.f32 %v7132_v24, 0.0  ;;  %v7135_v15 = vpop.f32.mrf.mxu1 }
 0x585   : > { %v7468_v31 = vmax.f32 %v7325_v41, 0.0  ;;  %v14763_v45 = vadd.f32 %v7725_v25, %v7610_v40  ;;  %v7694_v52 = vadd.f32 %v7612_v23, %v7611_v22  ;;  %v7327_v37 = vadd.f32 %v7326_v20, %v14527_v11  ;;  %v7328_v55 = vpop.f32.mrf.mxu0 }
 0x586   : > { %v7469_v50 = vmax.f32 %v7134_v29, 0.0  ;;  %v7615_v8 = vmul.f32 %v14531_v3, %v7465_v44  ;;  %v7617_v10 = vmul.f32 %v14535_v56, %v7467_v26  ;;  %v7616_v57 = vmul.f32 %v14544_v21, %v7466_v12 }
 0x587   : > { %16135 = vst [vmem:[#allocation101_spill] sm:$0xff] %v14763_v45  ;;  %v7136_v46 = vadd.f32 %v7135_v15, %v14538_v4  ;;  %v7139_v18 = vpop.f32.mrf.mxu1  ;;  %v7726_v2 = vadd.f32 %v7694_v52, %v7613_v27  ;;  %v7618_v24 = vmul.f32 %v14550_v0, %v7468_v31  ;;  %v7471_v41 = vmax.f32 %v7327_v37, 0.0  ;;  %v7332_v22 = vpop.f32.mrf.mxu0 }
 0x588   : > { %v7329_v40 = vadd.f32 %v7328_v55, %v14547_v32  ;;  %v7695_v25 = vadd.f32 %v7616_v57, %v7615_v8  ;;  %v7140_v29 = vadd.f32 %v7139_v18, %v14514_v13  ;;  %v7333_v44 = vadd.f32 %v7332_v22, %v14527_v11 }
 0x589   : > { %v7470_v23 = vmax.f32 %v7136_v46, 0.0  ;;  %v7141_v20 = vpop.f32.mrf.mxu1  ;;  %v14774_v26 = vadd.f32 %v7726_v2, %v7614_v51  ;;  %v7619_v12 = vmul.f32 %v14531_v3, %v7469_v50  ;;  %v7334_v52 = vpop.f32.mrf.mxu0  ;;  %v7621_v57 = vmul.f32 %v14535_v56, %v7471_v41 }
 0x58a   : > { %v7472_v15 = vmax.f32 %v7329_v40, 0.0  ;;  %v7142_v27 = vadd.f32 %v7141_v20, %v14538_v4  ;;  %v7727_v31 = vadd.f32 %v7695_v25, %v7617_v10  ;;  %v7473_v55 = vmax.f32 %v7140_v29, 0.0 }
 0x58b   : > { %16136 = vst [vmem:[#allocation102_spill] sm:$0xff] %v14774_v26  ;;  %v7620_v37 = vmul.f32 %v14544_v21, %v7470_v23  ;;  %v7475_v45 = vmax.f32 %v7333_v44, 0.0  ;;  %v7143_v8 = vpop.f32.mrf.mxu1  ;;  %v7335_v18 = vadd.f32 %v7334_v52, %v14547_v32  ;;  %v7336_v2 = vpop.f32.mrf.mxu0  ;;  %v14786_v23 = vld [vmem:[#allocation8 + $0x1c] sm:$0xf] }
 0x58c   : > { %v7474_v46 = vmax.f32 %v7142_v27, 0.0  ;;  %v7144_v51 = vadd.f32 %v7143_v8, %v14514_v13  ;;  %v14782_v22 = vadd.f32 %v7727_v31, %v7618_v24  ;;  %v7622_v40 = vmul.f32 %v14550_v0, %v7472_v15 }
 0x58d   : > { %v7696_v50 = vadd.f32 %v7620_v37, %v7619_v12  ;;  %v7623_v10 = vmul.f32 %v14531_v3, %v7473_v55  ;;  %v7145_v25 = vpop.f32.mrf.mxu1  ;;  %v7476_v44 = vmax.f32 %v7335_v18, 0.0  ;;  %v7337_v20 = vadd.f32 %v7336_v2, %v14527_v11  ;;  %v7338_v27 = vpop.f32.mrf.mxu0 }
 0x58e   : > { %16137 = vst [vmem:[#allocation103_spill] sm:$0xff] %v14782_v22  ;;  %v7624_v29 = vmul.f32 %v14544_v21, %v7474_v46  ;;  %v7477_v41 = vmax.f32 %v7144_v51, 0.0  ;;  %v7625_v8 = vmul.f32 %v14535_v56, %v7475_v45  ;;  %v7146_v24 = vadd.f32 %v7145_v25, %v14538_v4 }
 0x58f   : > { %v7728_v52 = vadd.f32 %v7696_v50, %v7621_v57  ;;  %v7339_v12 = vadd.f32 %v7338_v27, %v14547_v32  ;;  %v7149_v15 = vpop.f32.mrf.mxu1  ;;  %v7626_v37 = vmul.f32 %v14550_v0, %v7476_v44  ;;  %v7479_v55 = vmax.f32 %v7337_v20, 0.0  ;;  %v7342_v22 = vpop.f32.mrf.mxu0 }
 0x590   : > { %v7697_v31 = vadd.f32 %v7624_v29, %v7623_v10  ;;  %v14796_v46 = vrot.slane %v14786_v23, %v16080_v9  ;;  %v7478_v51 = vmax.f32 %v7146_v24, 0.0  ;;  %v7150_v45 = vadd.f32 %v7149_v15, %v14514_v13 }
 0x591   : > { %v14798_v18 = vadd.f32 %v7728_v52, %v7622_v40  ;;  %v7480_v57 = vmax.f32 %v7339_v12, 0.0  ;;  %v7151_v2 = vpop.f32.mrf.mxu1  ;;  %v7627_v25 = vmul.f32 %v14531_v3, %v7477_v41  ;;  %v7343_v10 = vadd.f32 %v7342_v22, %v14527_v11  ;;  %v7344_v44 = vpop.f32.mrf.mxu0 }
 0x592   : > { %v7729_v50 = vadd.f32 %v7697_v31, %v7625_v8  ;;  %v7152_v29 = vadd.f32 %v7151_v2, %v14538_v4  ;;  %v7629_v20 = vmul.f32 %v14535_v56, %v7479_v55  ;;  %v7628_v27 = vmul.f32 %v14544_v21, %v7478_v51 }
 0x593   : > { %16138 = vst [vmem:[#allocation104_spill] sm:$0xff] %v14798_v18  ;;  %v7481_v26 = vmax.f32 %v7150_v45, 0.0  ;;  %v7345_v40 = vadd.f32 %v7344_v44, %v14547_v32  ;;  %v7153_v52 = vpop.f32.mrf.mxu1  ;;  %v7483_v12 = vmax.f32 %v7343_v10, 0.0  ;;  %v7346_v41 = vpop.f32.mrf.mxu0  ;;  %v7630_v22 = vmul.f32 %v14550_v0, %v7480_v57 }
 0x594   : > { %v14807_v24 = vadd.f32 %v7729_v50, %v7626_v37  ;;  %v7482_v15 = vmax.f32 %v7152_v29, 0.0  ;;  %v7154_v8 = vadd.f32 %v7153_v52, %v14514_v13  ;;  %v7698_v31 = vadd.f32 %v7628_v27, %v7627_v25 }
 0x595   : > { %v7484_v2 = vmax.f32 %v7345_v40, 0.0  ;;  %v7347_v18 = vadd.f32 %v7346_v41, %v14527_v11  ;;  %v7155_v55 = vpop.f32.mrf.mxu1  ;;  %v7631_v51 = vmul.f32 %v14531_v3, %v7481_v26  ;;  %v7348_v50 = vpop.f32.mrf.mxu0  ;;  %v7633_v29 = vmul.f32 %v14535_v56, %v7483_v12  ;;  %v14823_v12 = vld [vmem:[#allocation10 + $0x1c] sm:$0xf] }
 0x596   : > { %16139 = vst [vmem:[#allocation105_spill] sm:$0xff] %v14807_v24  ;;  %v7632_v45 = vmul.f32 %v14544_v21, %v7482_v15  ;;  %v7485_v44 = vmax.f32 %v7154_v8, 0.0  ;;  %v7156_v37 = vadd.f32 %v7155_v55, %v14538_v4  ;;  %v7730_v10 = vadd.f32 %v7698_v31, %v7629_v20 }
 0x597   : > { %v7487_v52 = vmax.f32 %v7347_v18, 0.0  ;;  %v7349_v25 = vadd.f32 %v7348_v50, %v14547_v32  ;;  %v7159_v27 = vpop.f32.mrf.mxu1  ;;  %v7634_v40 = vmul.f32 %v14550_v0, %v7484_v2  ;;  %v7352_v26 = vpop.f32.mrf.mxu0 }
 0x598   : > { %v7699_v57 = vadd.f32 %v7632_v45, %v7631_v51  ;;  %v7486_v41 = vmax.f32 %v7156_v37, 0.0  ;;  %v7160_v24 = vadd.f32 %v7159_v27, %v14514_v13  ;;  %v14819_v60 = vadd.f32 %v7730_v10, %v7630_v22 }
 0x599   : > { %v7635_v15 = vmul.f32 %v14531_v3, %v7485_v44  ;;  %v7488_v8 = vmax.f32 %v7349_v25, 0.0  ;;  %v7353_v20 = vadd.f32 %v7352_v26, %v14527_v11  ;;  %v7161_v31 = vpop.f32.mrf.mxu1  ;;  %v7354_v45 = vpop.f32.mrf.mxu0  ;;  %v7637_v37 = vmul.f32 %v14535_v56, %v7487_v52 }
 0x59a   : > { %16140 = vst [vmem:[#allocation106_spill] sm:$0xff] %v14819_v60  ;;  %v7731_v18 = vadd.f32 %v7699_v57, %v7633_v29  ;;  %v7636_v55 = vmul.f32 %v14544_v21, %v7486_v41  ;;  %v7489_v51 = vmax.f32 %v7160_v24, 0.0  ;;  %v7162_v2 = vadd.f32 %v7161_v31, %v14538_v4 }
 0x59b   : > { %v7638_v22 = vmul.f32 %v14550_v0, %v7488_v8  ;;  %v7491_v50 = vmax.f32 %v7353_v20, 0.0  ;;  %v7355_v44 = vadd.f32 %v7354_v45, %v14547_v32  ;;  %v7163_v10 = vpop.f32.mrf.mxu1  ;;  %v7356_v60 = vpop.f32.mrf.mxu0  ;;  %v14834_v29 = vrot.slane %v14823_v12, %v16080_v9 }
 0x59c   : > { %v14830_v25 = vadd.f32 %v7731_v18, %v7634_v40  ;;  %v7700_v27 = vadd.f32 %v7636_v55, %v7635_v15  ;;  %v7490_v26 = vmax.f32 %v7162_v2, 0.0  ;;  %v7639_v24 = vmul.f32 %v14531_v3, %v7489_v51 }
 0x59d   : > { %v7492_v57 = vmax.f32 %v7355_v44, 0.0  ;;  %v7164_v52 = vadd.f32 %v7163_v10, %v14514_v13  ;;  %v7357_v41 = vadd.f32 %v7356_v60, %v14527_v11  ;;  %v7165_v8 = vpop.f32.mrf.mxu1  ;;  %v7641_v31 = vmul.f32 %v14535_v56, %v7491_v50  ;;  %v7358_v18 = vpop.f32.mrf.mxu0 }
 0x59e   : > { %16141 = vst [vmem:[#allocation107_spill] sm:$0xff] %v14830_v25  ;;  %v7732_v20 = vadd.f32 %v7700_v27, %v7637_v37  ;;  %v7640_v40 = vmul.f32 %v14544_v21, %v7490_v26  ;;  %v7166_v15 = vadd.f32 %v7165_v8, %v14538_v4  ;;  %v7359_v9 = vadd.f32 %v7358_v18, %v14547_v32 }
 0x59f   : > { %v7493_v55 = vmax.f32 %v7164_v52, 0.0  ;;  %v7495_v2 = vmax.f32 %v7357_v41, 0.0  ;;  %v7169_v45 = vpop.f32.mrf.mxu1  ;;  %v14845_v51 = vrot.slane %v14786_v23, %v16121_v62  ;;  %v7362_v10 = vpop.f32.mrf.mxu0  ;;  %v7642_v27 = vmul.f32 %v14550_v0, %v7492_v57 }
 0x5a0   : > { %v14847_v44 = vadd.f32 %v7732_v20, %v7638_v22  ;;  %v7701_v60 = vadd.f32 %v7640_v40, %v7639_v24  ;;  %v7494_v37 = vmax.f32 %v7166_v15, 0.0  ;;  %v7170_v50 = vadd.f32 %v7169_v45, %v14514_v13 }
 0x5a1   : > { %v7643_v26 = vmul.f32 %v14531_v3, %v7493_v55  ;;  %v7496_v52 = vmax.f32 %v7359_v9, 0.0  ;;  %v7363_v41 = vadd.f32 %v7362_v10, %v14527_v11  ;;  %v7171_v8 = vpop.f32.mrf.mxu1  ;;  %v7364_v20 = vpop.f32.mrf.mxu0  ;;  %v7645_v24 = vmul.f32 %v14535_v56, %v7495_v2 }
 0x5a2   : > { %16142 = vst [vmem:[#allocation108_spill] sm:$0xff] %v14847_v44  ;;  %v7733_v18 = vadd.f32 %v7701_v60, %v7641_v31  ;;  %v7644_v25 = vmul.f32 %v14544_v21, %v7494_v37  ;;  %v7497_v17 = vmax.f32 %v7170_v50, 0.0  ;;  %v7172_v22 = vadd.f32 %v7171_v8, %v14538_v4 }
 0x5a3   : > { %v7646_v40 = vmul.f32 %v14550_v0, %v7496_v52  ;;  %v7499_v15 = vmax.f32 %v7363_v41, 0.0  ;;  %v7365_v57 = vadd.f32 %v7364_v20, %v14547_v32  ;;  %v7173_v45 = vpop.f32.mrf.mxu1  ;;  %v7366_v44 = vpop.f32.mrf.mxu0  ;;  %v14862_v31 = vrot.slane %v14823_v12, %v16121_v62 }
 0x5a4   : > { %v14858_v55 = vadd.f32 %v7733_v18, %v7642_v27  ;;  %v7702_v9 = vadd.f32 %v7644_v25, %v7643_v26  ;;  %v7498_v10 = vmax.f32 %v7172_v22, 0.0  ;;  %v7647_v60 = vmul.f32 %v14531_v3, %v7497_v17 }
 0x5a5   : > { %v7500_v37 = vmax.f32 %v7365_v57, 0.0  ;;  %v7174_v2 = vadd.f32 %v7173_v45, %v14514_v13  ;;  %v7367_v50 = vadd.f32 %v7366_v44, %v14527_v11  ;;  %v7175_v52 = vpop.f32.mrf.mxu1  ;;  %v7649_v8 = vmul.f32 %v14535_v56, %v7499_v15  ;;  %v7368_v26 = vpop.f32.mrf.mxu0 }
 0x5a6   : > { %16143 = vst [vmem:[#allocation109_spill] sm:$0xff] %v14858_v55  ;;  %v7734_v41 = vadd.f32 %v7702_v9, %v7645_v24  ;;  %v7648_v27 = vmul.f32 %v14544_v21, %v7498_v10  ;;  %v7176_v25 = vadd.f32 %v7175_v52, %v14538_v4  ;;  %v7369_v62 = vadd.f32 %v7368_v26, %v14547_v32 }
 0x5a7   : > { %v7501_v18 = vmax.f32 %v7174_v2, 0.0  ;;  %v7503_v22 = vmax.f32 %v7367_v50, 0.0  ;;  %v7179_v20 = vpop.f32.mrf.mxu1  ;;  %v14873_v17 = vrot.slane %v14786_v23, %v16122_v59  ;;  %v7372_v45 = vpop.f32.mrf.mxu0  ;;  %v7650_v9 = vmul.f32 %v14550_v0, %v7500_v37 }
 0x5a8   : > { %v14875_v57 = vadd.f32 %v7734_v41, %v7646_v40  ;;  %v7703_v44 = vadd.f32 %v7648_v27, %v7647_v60  ;;  %v7502_v24 = vmax.f32 %v7176_v25, 0.0  ;;  %v7180_v15 = vadd.f32 %v7179_v20, %v14514_v13 }
 0x5a9   : > { %v7651_v10 = vmul.f32 %v14531_v3, %v7501_v18  ;;  %v7504_v2 = vmax.f32 %v7369_v62, 0.0  ;;  %v7373_v50 = vadd.f32 %v7372_v45, %v14527_v11  ;;  %v7181_v52 = vpop.f32.mrf.mxu1  ;;  %v7374_v41 = vpop.f32.mrf.mxu0  ;;  %v7653_v60 = vmul.f32 %v14535_v56, %v7503_v22 }
 0x5aa   : > { %16144 = vst [vmem:[#allocation110_spill] sm:$0xff] %v14875_v57  ;;  %v7735_v26 = vadd.f32 %v7703_v44, %v7649_v8  ;;  %v7652_v55 = vmul.f32 %v14544_v21, %v7502_v24  ;;  %v7505_v7 = vmax.f32 %v7180_v15, 0.0  ;;  %v7182_v40 = vadd.f32 %v7181_v52, %v14538_v4 }
 0x5ab   : > { %v7654_v27 = vmul.f32 %v14550_v0, %v7504_v2  ;;  %v7507_v25 = vmax.f32 %v7373_v50, 0.0  ;;  %v7375_v37 = vadd.f32 %v7374_v41, %v14547_v32  ;;  %v7183_v20 = vpop.f32.mrf.mxu1  ;;  %v7376_v57 = vpop.f32.mrf.mxu0  ;;  %v14890_v8 = vrot.slane %v14823_v12, %v16122_v59 }
 0x5ac   : > { %v14886_v18 = vadd.f32 %v7735_v26, %v7650_v9  ;;  %v7704_v62 = vadd.f32 %v7652_v55, %v7651_v10  ;;  %v7506_v45 = vmax.f32 %v7182_v40, 0.0  ;;  %v7655_v44 = vmul.f32 %v14531_v3, %v7505_v7 }
 0x5ad   : > { %v7508_v24 = vmax.f32 %v7375_v37, 0.0  ;;  %v7184_v22 = vadd.f32 %v7183_v20, %v14514_v13  ;;  %v7377_v15 = vadd.f32 %v7376_v57, %v14527_v11  ;;  %v7185_v2 = vpop.f32.mrf.mxu1  ;;  %v7657_v52 = vmul.f32 %v14535_v56, %v7507_v25  ;;  %v7378_v10 = vpop.f32.mrf.mxu0 }
 0x5ae   : > { %16145 = vst [vmem:[#allocation111_spill] sm:$0xff] %v14886_v18  ;;  %v7736_v50 = vadd.f32 %v7704_v62, %v7653_v60  ;;  %v7656_v9 = vmul.f32 %v14544_v21, %v7506_v45  ;;  %v7186_v55 = vadd.f32 %v7185_v2, %v14538_v4  ;;  %v7379_v59 = vadd.f32 %v7378_v10, %v14547_v32 }
 0x5af   : > { %v7509_v26 = vmax.f32 %v7184_v22, 0.0  ;;  %v7511_v40 = vmax.f32 %v7377_v15, 0.0  ;;  %v7189_v41 = vpop.f32.mrf.mxu1  ;;  %v14901_v7 = vrot.slane %v14786_v23, %v16125_v6  ;;  %v7382_v20 = vpop.f32.mrf.mxu0  ;;  %v7658_v62 = vmul.f32 %v14550_v0, %v7508_v24 }
 0x5b0   : > { %v14903_v37 = vadd.f32 %v7736_v50, %v7654_v27  ;;  %v7705_v57 = vadd.f32 %v7656_v9, %v7655_v44  ;;  %v7510_v60 = vmax.f32 %v7186_v55, 0.0  ;;  %v7190_v25 = vadd.f32 %v7189_v41, %v14514_v13 }
 0x5b1   : > { %v7659_v45 = vmul.f32 %v14531_v3, %v7509_v26  ;;  %v7512_v22 = vmax.f32 %v7379_v59, 0.0  ;;  %v7383_v15 = vadd.f32 %v7382_v20, %v14527_v11  ;;  %v7191_v2 = vpop.f32.mrf.mxu1  ;;  %v7384_v50 = vpop.f32.mrf.mxu0  ;;  %v7661_v44 = vmul.f32 %v14535_v56, %v7511_v40 }
 0x5b2   : > { %16146 = vst [vmem:[#allocation112_spill] sm:$0xff] %v14903_v37  ;;  %v7737_v10 = vadd.f32 %v7705_v57, %v7657_v52  ;;  %v7660_v18 = vmul.f32 %v14544_v21, %v7510_v60  ;;  %v7513_v23 = vmax.f32 %v7190_v25, 0.0  ;;  %v7192_v27 = vadd.f32 %v7191_v2, %v14538_v4 }
 0x5b3   : > { %v7662_v9 = vmul.f32 %v14550_v0, %v7512_v22  ;;  %v7515_v55 = vmax.f32 %v7383_v15, 0.0  ;;  %v7385_v24 = vadd.f32 %v7384_v50, %v14547_v32  ;;  %v7193_v41 = vpop.f32.mrf.mxu1  ;;  %v7386_v57 = vpop.f32.mrf.mxu0 }
 0x5b4   : > { %v14914_v26 = vadd.f32 %v7737_v10, %v7658_v62  ;;  %v7706_v59 = vadd.f32 %v7660_v18, %v7659_v45  ;;  %v7663_v20 = vmul.f32 %v14531_v3, %v7513_v23  ;;  %v7514_v52 = vmax.f32 %v7192_v27, 0.0  ;;  %v16148_v10 = vld [vmem:[#allocation49_spill] sm:$0xff]  ;;  %v16149_v18 = vld [vmem:[#allocation48_spill] sm:$0xff] }
 0x5b5   : > { %v7665_v60 = vmul.f32 %v14535_v56, %v7515_v55  ;;  %v7516_v25 = vmax.f32 %v7385_v24, 0.0  ;;  %v7194_v2 = vadd.f32 %v7193_v41, %v14514_v13  ;;  %v7387_v40 = vadd.f32 %v7386_v57, %v14527_v11  ;;  %v7195_v37 = vpop.f32.mrf.mxu1  ;;  %v7388_v62 = vpop.f32.mrf.mxu0 }
 0x5b6   : > { %16147 = vst [vmem:[#allocation113_spill] sm:$0xff] %v14914_v26  ;;  %v7738_v22 = vadd.f32 %v7706_v59, %v7661_v44  ;;  %v7664_v15 = vmul.f32 %v14544_v21, %v7514_v52  ;;  %v7196_v50 = vadd.f32 %v7195_v37, %v14538_v4  ;;  %v5763_v45 = vadd.f32 %v16149_v18, %v16148_v10 }
 0x5b7   : > { %v7666_v23 = vmul.f32 %v14550_v0, %v7516_v25  ;;  %v7517_v27 = vmax.f32 %v7194_v2, 0.0  ;;  %v7519_v26 = vmax.f32 %v7387_v40, 0.0  ;;  %v7389_v55 = vadd.f32 %v7388_v62, %v14547_v32  ;;  %v7199_v24 = vpop.f32.mrf.mxu1  ;;  %v7392_v59 = vpop.f32.mrf.mxu0 }
 0x5b8   : > { %v14926_v41 = vadd.f32 %v7738_v22, %v7662_v9  ;;  %v7707_v57 = vadd.f32 %v7664_v15, %v7663_v20  ;;  %v7518_v54 = vmax.f32 %v7196_v50, 0.0  ;;  %v7200_v44 = vadd.f32 %v7199_v24, %v14514_v13 }
 0x5b9   : > { %v7667_v37 = vmul.f32 %v14531_v3, %v7517_v27  ;;  %v7669_v52 = vmul.f32 %v14535_v56, %v7519_v26  ;;  %v7520_v1 = vmax.f32 %v7389_v55, 0.0  ;;  %v7393_v10 = vadd.f32 %v7392_v59, %v14527_v11  ;;  %v7201_v25 = vpop.f32.mrf.mxu1  ;;  %v7394_v22 = vpop.f32.mrf.mxu0  ;;  %v16151_v27 = vld [vmem:[#allocation73_spill] sm:$0xff] }
 0x5ba   : > { %16150 = vst [vmem:[#allocation49_spill] sm:$0xff] %v14926_v41  ;;  %v7739_v2 = vadd.f32 %v7707_v57, %v7665_v60  ;;  %v7668_v40 = vmul.f32 %v14544_v21, %v7518_v54  ;;  %v7521_v62 = vmax.f32 %v7200_v44, 0.0  ;;  %v7202_v9 = vadd.f32 %v7201_v25, %v14538_v4 }
 0x5bb   : > { %v7670_v20 = vmul.f32 %v14550_v0, %v7520_v1  ;;  %v7523_v15 = vmax.f32 %v7393_v10, 0.0  ;;  %v7395_v50 = vadd.f32 %v7394_v22, %v14547_v32  ;;  %v7203_v18 = vpop.f32.mrf.mxu1  ;;  %v6769_v24 = vadd.f32 %v16151_v27, %v5763_v45  ;;  %v7396_v57 = vpop.f32.mrf.mxu0  ;;  %v16152_v27 = vld [vmem:[#allocation50_spill] sm:$0xff] }
 0x5bc   : > { %v14937_v26 = vadd.f32 %v7739_v2, %v7666_v23  ;;  %v7708_v55 = vadd.f32 %v7668_v40, %v7667_v37  ;;  %v7671_v59 = vmul.f32 %v14531_v3, %v7521_v62  ;;  %v7522_v60 = vmax.f32 %v7202_v9, 0.0 }
 0x5bd   : > { %v7673_v54 = vmul.f32 %v14535_v56, %v7523_v15  ;;  %v7524_v44 = vmax.f32 %v7395_v50, 0.0  ;;  %v7204_v25 = vadd.f32 %v7203_v18, %v14514_v13  ;;  %v7397_v1 = vadd.f32 %v7396_v57, %v14527_v11  ;;  %v7205_v10 = vpop.f32.mrf.mxu1  ;;  %v7398_v23 = vpop.f32.mrf.mxu0 }
 0x5be   : > { %v7740_v41 = vadd.f32 %v7708_v55, %v7669_v52  ;;  %v7672_v22 = vmul.f32 %v14544_v21, %v7522_v60  ;;  %v7206_v45 = vadd.f32 %v7205_v10, %v14538_v4  ;;  %v7711_v37 = vadd.f32 %v14576_v35, %v14566_v53  ;;  %v16153_v55 = vld [vmem:[#allocation59_spill] sm:$0xff] }
 0x5bf   : > { %v7674_v2 = vmul.f32 %v14550_v0, %v7524_v44  ;;  %v7525_v40 = vmax.f32 %v7204_v25, 0.0  ;;  %v7527_v62 = vmax.f32 %v7397_v1, 0.0  ;;  %v7399_v9 = vadd.f32 %v7398_v23, %v14547_v32 }
 0x5c0   : > { %v14949_v15 = vadd.f32 %v7740_v41, %v7670_v20  ;;  %v7709_v13 = vadd.f32 %v7672_v22, %v7671_v59  ;;  %v7526_v11 = vmax.f32 %v7206_v45, 0.0  ;;  %v7743_v52 = vadd.f32 %v7711_v37, %v14572_v47  ;;  %v16156_v59 = vld [vmem:[#allocation60_spill] sm:$0xff]  ;;  %v16157_v45 = vld [vmem:[#allocation75_spill] sm:$0xff]  ;;  %v16158_v37 = vld [vmem:[#allocation53_spill] sm:$0xff] }
 0x5c1   : > { %v7675_v50 = vmul.f32 %v14531_v3, %v7525_v40  ;;  %v7677_v4 = vmul.f32 %v14535_v56, %v7527_v62  ;;  %v7528_v18 = vmax.f32 %v7399_v9, 0.0  ;;  %v5764_v35 = vadd.f32 %v16153_v55, %v16152_v27  ;;  %v16154_v3 = vld [vmem:[#allocation74_spill] sm:$0xff]  ;;  %v16155_v56 = vld [vmem:[#allocation52_spill] sm:$0xff]  ;;  %v16159_v40 = vld [vmem:[#allocation61_spill] sm:$0xff] }
 0x5c2   : > { %v7741_v53 = vadd.f32 %v7709_v13, %v7673_v54  ;;  %v7676_v60 = vmul.f32 %v14544_v21, %v7526_v11  ;;  %v8055_v57 = vpop.f32.mrf.mxu1  ;;  %v14957_v44 = vadd.f32 %v7743_v52, %v6769_v24  ;;  %v7712_v32 = vadd.f32 %v14580_v49, %v14587_v19 }
 0x5c3   : > { %v7678_v41 = vmul.f32 %v14550_v0, %v7528_v18  ;;  %v8056_v47 = vadd.f32 %v8055_v57, %v14796_v46  ;;  %v6770_v20 = vadd.f32 %v16154_v3, %v5764_v35  ;;  %v5765_v25 = vadd.f32 %v16156_v59, %v16155_v56  ;;  %v16160_v18 = vld [vmem:[#allocation23_spill] sm:$0xff] }
 0x5c4   : > { %v14966_v1 = vadd.f32 %v7741_v53, %v7674_v2  ;;  %v7710_v54 = vadd.f32 %v7676_v60, %v7675_v50  ;;  %v8057_v10 = vpop.f32.mrf.mxu1  ;;  %v7744_v21 = vadd.f32 %v7712_v32, %v14598_v58  ;;  %v7713_v24 = vadd.f32 %v14606_v36, %v14601_v34 }
 0x5c5   : > { %v8407_v22 = vmax.f32 %v8056_v47, 0.0  ;;  %v8248_v49 = vpop.f32.mrf.mxu0  ;;  %v8058_v19 = vadd.f32 %v8057_v10, %v14873_v17  ;;  %v6771_v23 = vadd.f32 %v16157_v45, %v5765_v25  ;;  %v5766_v62 = vadd.f32 %v16159_v40, %v16158_v37  ;;  %v16161_v25 = vld [vmem:[#allocation14_spill] sm:$0xff] }
 0x5c6   : > { %v7742_v9 = vadd.f32 %v7710_v54, %v7677_v4  ;;  %v8249_v2 = vadd.f32 %v8248_v49, %v14845_v51  ;;  %v8059_v13 = vpop.f32.mrf.mxu1  ;;  %v14976_v11 = vadd.f32 %v7744_v21, %v6770_v20  ;;  %v7745_v58 = vadd.f32 %v7713_v24, %v14604_v28  ;;  %v16162_v54 = vld [vmem:[#allocation76_spill] sm:$0xff] }
 0x5c7   : > { %v8557_v52 = vmul.f32 %v14834_v29, %v8407_v22  ;;  %v8408_v34 = vmax.f32 %v8058_v19, 0.0  ;;  %v8250_v36 = vpop.f32.mrf.mxu0  ;;  %v8060_v50 = vadd.f32 %v8059_v13, %v14796_v46  ;;  %v6772_v27 = vadd.f32 %v16160_v18, %v5766_v62 }
 0x5c8   : > { %v14982_v55 = vadd.f32 %v7742_v9, %v7678_v41  ;;  %v8409_v35 = vmax.f32 %v8249_v2, 0.0  ;;  %v8251_v4 = vadd.f32 %v8250_v36, %v14901_v7  ;;  %v8061_v53 = vpop.f32.mrf.mxu1  ;;  %v14985_v60 = vadd.f32 %v7745_v58, %v6771_v23 }
 0x5c9   : > { %v8558_v57 = vmul.f32 %v14890_v8, %v8408_v34  ;;  %v8411_v32 = vmax.f32 %v8060_v50, 0.0  ;;  %v8252_v28 = vpop.f32.mrf.mxu0  ;;  %v8062_v47 = vadd.f32 %v8061_v53, %v14873_v17  ;;  %v7714_v3 = vadd.f32 %v14616_v61, %v14614_v39 }
 0x5ca   : > { %v8410_v20 = vmax.f32 %v8251_v4, 0.0  ;;  %v14993_v41 = vrot.slane %v14823_v12, %v16125_v6  ;;  %v8253_v56 = vadd.f32 %v8252_v28, %v14845_v51  ;;  %v8065_v59 = vpop.f32.mrf.mxu1  ;;  %v14998_v10 = vadd.f32 %v16162_v54, %v16161_v25 }
 0x5cb   : > { %v8559_v21 = vmul.f32 %v14862_v31, %v8409_v35  ;;  %v8685_v24 = vadd.f32 %v8558_v57, %v8557_v52  ;;  %v8412_v22 = vmax.f32 %v8062_v47, 0.0  ;;  %v8254_v49 = vpop.f32.mrf.mxu0  ;;  %v8066_v19 = vadd.f32 %v8065_v59, %v14796_v46 }
 0x5cc   : > { %v8561_v39 = vmul.f32 %v14834_v29, %v8411_v32  ;;  %v8413_v61 = vmax.f32 %v8253_v56, 0.0  ;;  %v8255_v6 = vadd.f32 %v8254_v49, %v14901_v7  ;;  %v8067_v12 = vpop.f32.mrf.mxu1  ;;  %v7746_v45 = vadd.f32 %v7714_v3, %v14619_v42 }
 0x5cd   : > { %v8562_v23 = vmul.f32 %v14890_v8, %v8412_v22  ;;  %v8415_v37 = vmax.f32 %v8066_v19, 0.0  ;;  %v8258_v40 = vpop.f32.mrf.mxu0  ;;  %v8068_v62 = vadd.f32 %v8067_v12, %v14873_v17  ;;  %v8717_v9 = vadd.f32 %v8685_v24, %v8559_v21 }
 0x5ce   : > { %v8560_v2 = vmul.f32 %v14993_v41, %v8410_v20  ;;  %v8414_v13 = vmax.f32 %v8255_v6, 0.0  ;;  %v8259_v58 = vadd.f32 %v8258_v40, %v14845_v51  ;;  %v8069_v52 = vpop.f32.mrf.mxu1  ;;  %v15009_v34 = vadd.f32 %v7746_v45, %v6772_v27 }
 0x5cf   : > { %v8563_v36 = vmul.f32 %v14862_v31, %v8413_v61  ;;  %v8686_v50 = vadd.f32 %v8562_v23, %v8561_v39  ;;  %v8416_v18 = vmax.f32 %v8068_v62, 0.0  ;;  %v8260_v42 = vpop.f32.mrf.mxu0  ;;  %v8070_v35 = vadd.f32 %v8069_v52, %v14796_v46 }
 0x5d0   : > { %v8565_v4 = vmul.f32 %v14834_v29, %v8415_v37  ;;  %v8417_v53 = vmax.f32 %v8259_v58, 0.0  ;;  %v8261_v57 = vadd.f32 %v8260_v42, %v14901_v7  ;;  %v8071_v32 = vpop.f32.mrf.mxu1  ;;  %v8749_v28 = vadd.f32 %v8717_v9, %v8560_v2 }
 0x5d1   : > { %v8566_v47 = vmul.f32 %v14890_v8, %v8416_v18  ;;  %v8419_v3 = vmax.f32 %v8070_v35, 0.0  ;;  %v8262_v20 = vpop.f32.mrf.mxu0  ;;  %v8072_v27 = vadd.f32 %v8071_v32, %v14873_v17  ;;  %v8718_v56 = vadd.f32 %v8686_v50, %v8563_v36 }
 0x5d2   : > { %v8564_v59 = vmul.f32 %v14993_v41, %v8414_v13  ;;  %v8418_v25 = vmax.f32 %v8261_v57, 0.0  ;;  %v8263_v54 = vadd.f32 %v8262_v20, %v14845_v51  ;;  %v8075_v21 = vpop.f32.mrf.mxu1  ;;  %v8781_v24 = vadd.f32 %v8749_v28, %v14957_v44 }
 0x5d3   : > { %v8567_v22 = vmul.f32 %v14862_v31, %v8417_v53  ;;  %v8687_v49 = vadd.f32 %v8566_v47, %v8565_v4  ;;  %v8420_v19 = vmax.f32 %v8072_v27, 0.0  ;;  %v8264_v39 = vpop.f32.mrf.mxu0  ;;  %v8076_v61 = vadd.f32 %v8075_v21, %v14796_v46 }
 0x5d4   : > { %v8569_v6 = vmul.f32 %v14834_v29, %v8419_v3  ;;  %v8421_v12 = vmax.f32 %v8263_v54, 0.0  ;;  %v8265_v45 = vadd.f32 %v8264_v39, %v14901_v7  ;;  %8813 = vadd.xlane.f32.xlu0 %v8781_v24  ;;  %v8077_v23 = vpop.f32.mrf.mxu1  ;;  %v8750_v37 = vadd.f32 %v8718_v56, %v8564_v59 }
 0x5d5   : > { %v8570_v40 = vmul.f32 %v14890_v8, %v8420_v19  ;;  %v8423_v62 = vmax.f32 %v8076_v61, 0.0  ;;  %v8268_v9 = vpop.f32.mrf.mxu0  ;;  %v8078_v44 = vadd.f32 %v8077_v23, %v14873_v17  ;;  %v8719_v2 = vadd.f32 %v8687_v49, %v8567_v22 }
 0x5d6   : > { %v8568_v13 = vmul.f32 %v14993_v41, %v8418_v25  ;;  %v8422_v58 = vmax.f32 %v8265_v45, 0.0  ;;  %v8269_v52 = vadd.f32 %v8268_v9, %v14845_v51  ;;  %v8079_v36 = vpop.f32.mrf.mxu1  ;;  %v8782_v50 = vadd.f32 %v8750_v37, %v14976_v11 }
 0x5d7   : > { %v8571_v18 = vmul.f32 %v14862_v31, %v8421_v12  ;;  %v8688_v42 = vadd.f32 %v8570_v40, %v8569_v6  ;;  %v8424_v35 = vmax.f32 %v8078_v44, 0.0  ;;  %v8270_v4 = vpop.f32.mrf.mxu0  ;;  %v8080_v53 = vadd.f32 %v8079_v36, %v14796_v46 }
 0x5d8   : > { %v8573_v57 = vmul.f32 %v14834_v29, %v8423_v62  ;;  %v8425_v32 = vmax.f32 %v8269_v52, 0.0  ;;  %v8271_v28 = vadd.f32 %v8270_v4, %v14901_v7  ;;  %8815 = vadd.xlane.f32.xlu0 %v8782_v50  ;;  %v8081_v47 = vpop.f32.mrf.mxu1  ;;  %v8751_v3 = vadd.f32 %v8719_v2, %v8568_v13 }
 0x5d9   : > { %v8572_v20 = vmul.f32 %v14993_v41, %v8422_v58  ;;  %v8574_v27 = vmul.f32 %v14890_v8, %v8424_v35  ;;  %v8272_v11 = vpop.f32.mrf.mxu0  ;;  %v8082_v56 = vadd.f32 %v8081_v47, %v14873_v17  ;;  %v8720_v59 = vadd.f32 %v8688_v42, %v8571_v18 }
 0x5da   : > { %v8426_v25 = vmax.f32 %v8271_v28, 0.0  ;;  %v8427_v54 = vmax.f32 %v8080_v53, 0.0  ;;  %v8273_v21 = vadd.f32 %v8272_v11, %v14845_v51  ;;  %v8085_v24 = vpop.f32.mrf.mxu1  ;;  %v8783_v22 = vadd.f32 %v8751_v3, %v14985_v60 }
 0x5db   : > { %v16163_v49 = vmax.f32 %v14650_v43, 0.0  ;;  %v8575_v39 = vmul.f32 %v14862_v31, %v8425_v32  ;;  %v8428_v61 = vmax.f32 %v8082_v56, 0.0  ;;  %v8274_v6 = vpop.f32.mrf.mxu0  ;;  %v8086_v12 = vadd.f32 %v8085_v24, %v14796_v46 }
 0x5dc   : > { %v8689_v45 = vadd.f32 %v8574_v27, %v8573_v57  ;;  %v8429_v23 = vmax.f32 %v8273_v21, 0.0  ;;  %v8275_v37 = vadd.f32 %v8274_v6, %v14901_v7  ;;  %8817 = vadd.xlane.f32.xlu1 %v8783_v22  ;;  %v8087_v40 = vpop.f32.mrf.mxu1  ;;  %v8752_v62 = vadd.f32 %v8720_v59, %v8572_v20  ;;  %v16164_v20 = vld [vmem:[#allocation47_spill] sm:$0xff]  ;;  %v16165_v27 = vld [vmem:[#allocation62_spill] sm:$0xff] }
 0x5dd   : > { %v15041_v19 = vmul.f32 %v14550_v0, %v16163_v49  ;;  %v8578_v60 = vmul.f32 %v14890_v8, %v8428_v61  ;;  %v8431_v9 = vmax.f32 %v8086_v12, 0.0  ;;  %v8278_v43 = vpop.f32.mrf.mxu0  ;;  %v8088_v0 = vadd.f32 %v8087_v40, %v14873_v17 }
 0x5de   : > { %v7779_v44 = vadd.f32 %v14653_v14, %v14998_v10  ;;  %v8576_v2 = vmul.f32 %v14993_v41, %v8426_v25  ;;  %v8577_v13 = vmul.f32 %v14834_v29, %v8427_v54  ;;  %v8279_v58 = vadd.f32 %v8278_v43, %v14845_v51  ;;  %v8089_v52 = vpop.f32.mrf.mxu1  ;;  %v16166_v43 = vld [vmem:[#allocation77_spill] sm:$0xff] }
 0x5df   : > { %v8784_v36 = vadd.f32 %v8752_v62, %v15009_v34  ;;  %v8579_v50 = vmul.f32 %v14862_v31, %v8429_v23  ;;  %v8430_v18 = vmax.f32 %v8275_v37, 0.0  ;;  %v8432_v42 = vmax.f32 %v8088_v0, 0.0  ;;  %v8280_v35 = vpop.f32.mrf.mxu0 }
 0x5e0   : > { %v8090_v4 = vadd.f32 %v8089_v52, %v14796_v46  ;;  %v8690_v53 = vadd.f32 %v8578_v60, %v8577_v13  ;;  %v8433_v57 = vmax.f32 %v8279_v58, 0.0  ;;  %v8281_v14 = vadd.f32 %v8280_v35, %v14901_v7  ;;  %v8091_v10 = vpop.f32.mrf.mxu1 }
 0x5e1   : > { %8819 = vadd.xlane.f32.xlu1 %v8784_v36  ;;  %v8721_v32 = vadd.f32 %v8689_v45, %v8575_v39  ;;  %v8581_v28 = vmul.f32 %v14834_v29, %v8431_v9  ;;  %v8582_v47 = vmul.f32 %v14890_v8, %v8432_v42  ;;  %v8282_v3 = vpop.f32.mrf.mxu0  ;;  %v8092_v34 = vadd.f32 %v8091_v10, %v14873_v17 }
 0x5e2   : > { %v5768_v11 = vadd.f32 %v16165_v27, %v16164_v20  ;;  %v8434_v56 = vmax.f32 %v8281_v14, 0.0  ;;  %v8435_v59 = vmax.f32 %v8090_v4, 0.0  ;;  %v8283_v25 = vadd.f32 %v8282_v3, %v14845_v51  ;;  %v8095_v54 = vpop.f32.mrf.mxu1 }
 0x5e3   : > { %v8753_v21 = vadd.f32 %v8721_v32, %v8576_v2  ;;  %v8580_v24 = vmul.f32 %v14993_v41, %v8430_v18  ;;  %v8583_v22 = vmul.f32 %v14862_v31, %v8433_v57  ;;  %v8436_v49 = vmax.f32 %v8092_v34, 0.0  ;;  %v8284_v39 = vpop.f32.mrf.mxu0 }
 0x5e4   : > { %v8096_v61 = vadd.f32 %v8095_v54, %v14796_v46  ;;  %v8691_v6 = vadd.f32 %v8582_v47, %v8581_v28  ;;  %v8437_v12 = vmax.f32 %v8283_v25, 0.0  ;;  %v8285_v45 = vadd.f32 %v8284_v39, %v14901_v7  ;;  %v8097_v37 = vpop.f32.mrf.mxu1 }
 0x5e5   : > { %v8785_v23 = vadd.f32 %v8753_v21, %v7779_v44  ;;  %v8586_v40 = vmul.f32 %v14890_v8, %v8436_v49  ;;  %v8288_v60 = vpop.f32.mrf.mxu0  ;;  %v8098_v9 = vadd.f32 %v8097_v37, %v14873_v17  ;;  %v6774_v0 = vadd.f32 %v16166_v43, %v5768_v11 }
 0x5e6   : > { %v8439_v62 = vmax.f32 %v8096_v61, 0.0  ;;  %v8584_v2 = vmul.f32 %v14993_v41, %v8434_v56  ;;  %v8585_v13 = vmul.f32 %v14834_v29, %v8435_v59  ;;  %v8289_v58 = vadd.f32 %v8288_v60, %v14845_v51  ;;  %v8099_v52 = vpop.f32.mrf.mxu1 }
 0x5e7   : > { %8821 = vadd.xlane.f32.xlu0 %v8785_v23  ;;  %v7716_v44 = vadd.f32 %v14645_v48, %v14639_v38  ;;  %v15076_v36 = vmul.f32 %v14862_v31, %v8437_v12  ;;  %v8438_v18 = vmax.f32 %v8285_v45, 0.0  ;;  %v8440_v42 = vmax.f32 %v8098_v9, 0.0  ;;  %v8290_v35 = vpop.f32.mrf.mxu0 }
 0x5e8   : > { %v8100_v4 = vadd.f32 %v8099_v52, %v14796_v46  ;;  %v8692_v57 = vadd.f32 %v8586_v40, %v8585_v13  ;;  %v8441_v14 = vmax.f32 %v8289_v58, 0.0  ;;  %v8291_v10 = vadd.f32 %v8290_v35, %v14901_v7  ;;  %v8101_v28 = vpop.f32.mrf.mxu1  ;;  %v16167_v40 = vld [vmem:[#allocation51_spill] sm:$0xff] }
 0x5e9   : > { %v7748_v32 = vadd.f32 %v7716_v44, %v14642_v33  ;;  %v8589_v47 = vmul.f32 %v14834_v29, %v8439_v62  ;;  %v8590_v3 = vmul.f32 %v14890_v8, %v8440_v42  ;;  %v8292_v48 = vpop.f32.mrf.mxu0  ;;  %v8722_v38 = vadd.f32 %v8690_v53, %v8579_v50  ;;  %v16168_v62 = vld [vmem:[#allocation78_spill] sm:$0xff] }
 0x5ea   : > { %v8102_v34 = vadd.f32 %v8101_v28, %v14873_v17  ;;  %v8442_v20 = vmax.f32 %v8291_v10, 0.0  ;;  %v8443_v27 = vmax.f32 %v8100_v4, 0.0  ;;  %v8293_v11 = vadd.f32 %v8292_v48, %v14845_v51  ;;  %v8105_v59 = vpop.f32.mrf.mxu1  ;;  %v16169_v48 = vld [vmem:[#allocation54_spill] sm:$0xff] }
 0x5eb   : > { %v7780_v56 = vadd.f32 %v7748_v32, %v6774_v0  ;;  %v8588_v25 = vmul.f32 %v14993_v41, %v8438_v18  ;;  %v15087_v54 = vmul.f32 %v14862_v31, %v8441_v14  ;;  %v8754_v33 = vadd.f32 %v8722_v38, %v8580_v24  ;;  %v8294_v49 = vpop.f32.mrf.mxu0 }
 0x5ec   : > { %v8444_v21 = vmax.f32 %v8102_v34, 0.0  ;;  %v8693_v39 = vadd.f32 %v8590_v3, %v8589_v47  ;;  %v8445_v61 = vmax.f32 %v8293_v11, 0.0  ;;  %v8295_v50 = vadd.f32 %v8294_v49, %v14901_v7  ;;  %v8107_v12 = vpop.f32.mrf.mxu1 }
 0x5ed   : > { %v8106_v53 = vadd.f32 %v8105_v59, %v14796_v46  ;;  %v8786_v45 = vadd.f32 %v8754_v33, %v7780_v56  ;;  %v8298_v37 = vpop.f32.mrf.mxu0  ;;  %v6775_v60 = vadd.f32 %v16168_v62, %v16167_v40  ;;  %v8723_v9 = vadd.f32 %v8691_v6, %v8583_v22  ;;  %v16171_v33 = vld [vmem:[#allocation25_spill] sm:$0xff] }
 0x5ee   : > { %v8594_v23 = vmul.f32 %v14890_v8, %v8444_v21  ;;  %v8592_v43 = vmul.f32 %v14993_v41, %v8442_v20  ;;  %v8593_v24 = vmul.f32 %v14834_v29, %v8443_v27  ;;  %v8446_v0 = vmax.f32 %v8295_v50, 0.0  ;;  %v8109_v58 = vpop.f32.mrf.mxu1 }
 0x5ef   : > { %v8299_v13 = vadd.f32 %v8298_v37, %v14845_v51  ;;  %8823 = vadd.xlane.f32.xlu1 %v8786_v45  ;;  %v8447_v52 = vmax.f32 %v8106_v53, 0.0  ;;  %v7781_v44 = vadd.f32 %v14676_v16, %v6775_v60  ;;  %v8755_v18 = vadd.f32 %v8723_v9, %v8584_v2  ;;  %v8300_v35 = vpop.f32.mrf.mxu0  ;;  %v16170_v16 = vld [vmem:[#allocation63_spill] sm:$0xff] }
 0x5f0   : > { %v8108_v42 = vadd.f32 %v8107_v12, %v14873_v17  ;;  %v15100_v4 = vmul.f32 %v14862_v31, %v8445_v61  ;;  %v15102_v22 = vadd.f32 %v8594_v23, %v8593_v24  ;;  %v8301_v14 = vadd.f32 %v8300_v35, %v14901_v7  ;;  %v8111_v10 = vpop.f32.mrf.mxu1 }
 0x5f1   : > { %v8449_v6 = vmax.f32 %v8299_v13, 0.0  ;;  %v8787_v32 = vadd.f32 %v8755_v18, %v7781_v44  ;;  %v8110_v47 = vadd.f32 %v8109_v58, %v14796_v46  ;;  %v8302_v3 = vpop.f32.mrf.mxu0  ;;  %v5770_v2 = vadd.f32 %v16170_v16, %v16169_v48  ;;  %v16172_v13 = vld [vmem:[#allocation55_spill] sm:$0xff] }
 0x5f2   : > { %v8448_v28 = vmax.f32 %v8108_v42, 0.0  ;;  %v15109_v38 = vmul.f32 %v14993_v41, %v8446_v0  ;;  %v8450_v34 = vmax.f32 %v8301_v14, 0.0  ;;  %v8303_v20 = vadd.f32 %v8302_v3, %v14845_v51  ;;  %v8115_v11 = vpop.f32.mrf.mxu1  ;;  %v16173_v58 = vld [vmem:[#allocation79_spill] sm:$0xff] }
 0x5f3   : > { %v7718_v27 = vadd.f32 %v14672_v5, %v14670_v63  ;;  %v8597_v56 = vmul.f32 %v14834_v29, %v8447_v52  ;;  %8825 = vadd.xlane.f32.xlu0 %v8787_v32  ;;  %v6776_v21 = vadd.f32 %v16171_v33, %v5770_v2  ;;  %v8724_v49 = vadd.f32 %v8692_v57, %v15076_v36  ;;  %v8304_v61 = vpop.f32.mrf.mxu0  ;;  %v16175_v33 = vld [vmem:[#allocation64_spill] sm:$0xff] }
 0x5f4   : > { %v8598_v59 = vmul.f32 %v14890_v8, %v8448_v28  ;;  %v15119_v50 = vmul.f32 %v14862_v31, %v8449_v6  ;;  %v8451_v53 = vmax.f32 %v8110_v47, 0.0  ;;  %v8112_v45 = vadd.f32 %v8111_v10, %v14873_v17  ;;  %v8117_v63 = vpop.f32.mrf.mxu1 }
 0x5f5   : > { %v7750_v12 = vadd.f32 %v7718_v27, %v15041_v19  ;;  %v15124_v5 = vmul.f32 %v14993_v41, %v8450_v34  ;;  %v8453_v23 = vmax.f32 %v8303_v20, 0.0  ;;  %v8756_v37 = vadd.f32 %v8724_v49, %v8588_v25  ;;  %v8308_v62 = vpop.f32.mrf.mxu0 }
 0x5f6   : > { %v8305_v40 = vadd.f32 %v8304_v61, %v14901_v7  ;;  %v8695_v60 = vadd.f32 %v8598_v59, %v8597_v56  ;;  %v8452_v57 = vmax.f32 %v8112_v45, 0.0  ;;  %v8116_v9 = vadd.f32 %v8115_v11, %v14796_v46  ;;  %v8119_v24 = vpop.f32.mrf.mxu1  ;;  %v16174_v59 = vld [vmem:[#allocation56_spill] sm:$0xff] }
 0x5f7   : > { %v7782_v36 = vadd.f32 %v7750_v12, %v6776_v21  ;;  %v8309_v19 = vadd.f32 %v8308_v62, %v14845_v51  ;;  %v6777_v52 = vadd.f32 %v16173_v58, %v16172_v13  ;;  %v8725_v44 = vadd.f32 %v8693_v39, %v15087_v54  ;;  %v8310_v18 = vpop.f32.mrf.mxu0  ;;  %v16176_v62 = vld [vmem:[#allocation80_spill] sm:$0xff] }
 0x5f8   : > { %v8454_v0 = vmax.f32 %v8305_v40, 0.0  ;;  %v8601_v25 = vmul.f32 %v14834_v29, %v8451_v53  ;;  %v8602_v35 = vmul.f32 %v14890_v8, %v8452_v57  ;;  %v8118_v6 = vadd.f32 %v8117_v63, %v14873_v17  ;;  %v8121_v14 = vpop.f32.mrf.mxu1  ;;  %v16177_v13 = vld [vmem:[#allocation20_spill] sm:$0xff] }
 0x5f9   : > { %v8788_v42 = vadd.f32 %v8756_v37, %v7782_v36  ;;  %v15136_v10 = vmul.f32 %v14862_v31, %v8453_v23  ;;  %v8455_v32 = vmax.f32 %v8116_v9, 0.0  ;;  %v7783_v28 = vadd.f32 %v14696_v30, %v6777_v52  ;;  %v8312_v3 = vpop.f32.mrf.mxu0 }
 0x5fa   : > { %v8757_v47 = vadd.f32 %v8725_v44, %v8592_v43  ;;  %v15140_v54 = vmul.f32 %v14993_v41, %v8454_v0  ;;  %v8457_v39 = vmax.f32 %v8309_v19, 0.0  ;;  %v8456_v48 = vmax.f32 %v8118_v6, 0.0  ;;  %v8125_v2 = vpop.f32.mrf.mxu1 }
 0x5fb   : > { %8827 = vadd.xlane.f32.xlu1 %v8788_v42  ;;  %v8311_v16 = vadd.f32 %v8310_v18, %v14901_v7  ;;  %v8696_v34 = vadd.f32 %v8602_v35, %v8601_v25  ;;  %v8120_v27 = vadd.f32 %v8119_v24, %v14796_v46  ;;  %v8313_v11 = vadd.f32 %v8312_v3, %v14845_v51  ;;  %v8314_v56 = vpop.f32.mrf.mxu0  ;;  %v16178_v18 = vld [vmem:[#allocation65_spill] sm:$0xff] }
 0x5fc   : > { %v8789_v20 = vadd.f32 %v8757_v47, %v7783_v28  ;;  %v8606_v30 = vmul.f32 %v14890_v8, %v8456_v48  ;;  %v5772_v21 = vadd.f32 %v16175_v33, %v16174_v59  ;;  %v8726_v49 = vadd.f32 %v15102_v22, %v15100_v4  ;;  %v8127_v61 = vpop.f32.mrf.mxu1  ;;  %v16179_v25 = vld [vmem:[#allocation81_spill] sm:$0xff]  ;;  %v16180_v48 = vld [vmem:[#allocation30_spill] sm:$0xff] }
 0x5fd   : > { %v8458_v43 = vmax.f32 %v8311_v16, 0.0  ;;  %v8605_v53 = vmul.f32 %v14834_v29, %v8455_v32  ;;  %v8459_v12 = vmax.f32 %v8120_v27, 0.0  ;;  %v8122_v45 = vadd.f32 %v8121_v14, %v14873_v17  ;;  %v8318_v23 = vpop.f32.mrf.mxu0 }
 0x5fe   : > { %8829 = vadd.xlane.f32.xlu0 %v8789_v20  ;;  %v8315_v63 = vadd.f32 %v8314_v56, %v14901_v7  ;;  %v15154_v37 = vmul.f32 %v14862_v31, %v8457_v39  ;;  %v8461_v40 = vmax.f32 %v8313_v11, 0.0  ;;  %v6778_v36 = vadd.f32 %v16176_v62, %v5772_v21  ;;  %v8129_v9 = vpop.f32.mrf.mxu1 }
 0x5ff   : > { %v8758_v57 = vadd.f32 %v8726_v49, %v15109_v38  ;;  %v8697_v4 = vadd.f32 %v8606_v30, %v8605_v53  ;;  %v15159_v22 = vmul.f32 %v14993_v41, %v8458_v43  ;;  %v8460_v24 = vmax.f32 %v8122_v45, 0.0  ;;  %v8320_v19 = vpop.f32.mrf.mxu0  ;;  %v16181_v53 = vld [vmem:[#allocation57_spill] sm:$0xff] }
 0x600   : > { %v8462_v0 = vmax.f32 %v8315_v63, 0.0  ;;  %v7784_v58 = vadd.f32 %v16177_v13, %v6778_v36  ;;  %v8126_v52 = vadd.f32 %v8125_v2, %v14796_v46  ;;  %v8319_v44 = vadd.f32 %v8318_v23, %v14845_v51  ;;  %v8131_v35 = vpop.f32.mrf.mxu1 }
 0x601   : > { %v6779_v42 = vadd.f32 %v16179_v25, %v16178_v18  ;;  %v8609_v38 = vmul.f32 %v14834_v29, %v8459_v12  ;;  %v8610_v6 = vmul.f32 %v14890_v8, %v8460_v24  ;;  %v8727_v14 = vadd.f32 %v8695_v60, %v15119_v50  ;;  %v8322_v28 = vpop.f32.mrf.mxu0  ;;  %v16183_v24 = vld [vmem:[#allocation82_spill] sm:$0xff] }
 0x602   : > { %v8128_v32 = vadd.f32 %v8127_v61, %v14873_v17  ;;  %v8790_v47 = vadd.f32 %v8758_v57, %v7784_v58  ;;  %v8463_v3 = vmax.f32 %v8126_v52, 0.0  ;;  %v8465_v39 = vmax.f32 %v8319_v44, 0.0  ;;  %v8135_v2 = vpop.f32.mrf.mxu1 }
 0x603   : > { %v7785_v16 = vadd.f32 %v16180_v48, %v6779_v42  ;;  %v15172_v20 = vmul.f32 %v14862_v31, %v8461_v40  ;;  %v8759_v27 = vadd.f32 %v8727_v14, %v15124_v5  ;;  %v8321_v56 = vadd.f32 %v8320_v19, %v14901_v7  ;;  %v8324_v30 = vpop.f32.mrf.mxu0  ;;  %v16182_v5 = vld [vmem:[#allocation66_spill] sm:$0xff] }
 0x604   : > { %v8464_v11 = vmax.f32 %v8128_v32, 0.0  ;;  %8831 = vadd.xlane.f32.xlu1 %v8790_v47  ;;  %v8698_v50 = vadd.f32 %v8610_v6, %v8609_v38  ;;  %v15177_v60 = vmul.f32 %v14993_v41, %v8462_v0  ;;  %v8130_v43 = vadd.f32 %v8129_v9, %v14796_v46  ;;  %v8137_v33 = vpop.f32.mrf.mxu1  ;;  %v16185_v32 = vld [vmem:[#allocation58_spill] sm:$0xff] }
 0x605   : > { %v8323_v59 = vadd.f32 %v8322_v28, %v14845_v51  ;;  %v8791_v21 = vadd.f32 %v8759_v27, %v7785_v16  ;;  %v8466_v61 = vmax.f32 %v8321_v56, 0.0  ;;  %v5774_v12 = vadd.f32 %v16182_v5, %v16181_v53  ;;  %v8328_v45 = vpop.f32.mrf.mxu0  ;;  %v16186_v28 = vld [vmem:[#allocation83_spill] sm:$0xff] }
 0x606   : > { %v8614_v49 = vmul.f32 %v14890_v8, %v8464_v11  ;;  %v8613_v63 = vmul.f32 %v14834_v29, %v8463_v3  ;;  %v15186_v23 = vmul.f32 %v14862_v31, %v8465_v39  ;;  %v8728_v40 = vadd.f32 %v8696_v34, %v15136_v10  ;;  %v8139_v36 = vpop.f32.mrf.mxu1  ;;  %v16184_v10 = vld [vmem:[#allocation21_spill] sm:$0xff] }
 0x607   : > { %v8132_v62 = vadd.f32 %v8131_v35, %v14873_v17  ;;  %8833 = vadd.xlane.f32.xlu0 %v8791_v21  ;;  %v8467_v57 = vmax.f32 %v8130_v43, 0.0  ;;  %v8469_v9 = vmax.f32 %v8323_v59, 0.0  ;;  %v6780_v0 = vadd.f32 %v16183_v24, %v5774_v12  ;;  %v8330_v13 = vpop.f32.mrf.mxu0 }
 0x608   : > { %v8325_v19 = vadd.f32 %v8324_v30, %v14901_v7  ;;  %v8699_v58 = vadd.f32 %v8614_v49, %v8613_v63  ;;  %v15193_v52 = vmul.f32 %v14993_v41, %v8466_v61  ;;  %v8760_v44 = vadd.f32 %v8728_v40, %v15140_v54  ;;  %v8141_v25 = vpop.f32.mrf.mxu1  ;;  %v16187_v30 = vld [vmem:[#allocation22_spill] sm:$0xff]  ;;  %v16188_v63 = vld [vmem:[#allocation31_spill] sm:$0xff] }
 0x609   : > { %v8468_v18 = vmax.f32 %v8132_v62, 0.0  ;;  %v7786_v34 = vadd.f32 %v16184_v10, %v6780_v0  ;;  %v8136_v35 = vadd.f32 %v8135_v2, %v14796_v46  ;;  %v8329_v38 = vadd.f32 %v8328_v45, %v14845_v51  ;;  %v8332_v6 = vpop.f32.mrf.mxu0  ;;  %v16189_v40 = vld [vmem:[#allocation67_spill] sm:$0xff] }
 0x60a   : > { %v8470_v42 = vmax.f32 %v8325_v19, 0.0  ;;  %v6781_v47 = vadd.f32 %v16186_v28, %v16185_v32  ;;  %v8729_v3 = vadd.f32 %v8697_v4, %v15154_v37  ;;  %v8138_v39 = vadd.f32 %v8137_v33, %v14873_v17  ;;  %v8145_v54 = vpop.f32.mrf.mxu1 }
 0x60b   : > { %v8618_v14 = vmul.f32 %v14890_v8, %v8468_v18  ;;  %v8617_v48 = vmul.f32 %v14834_v29, %v8467_v57  ;;  %v15206_v16 = vmul.f32 %v14862_v31, %v8469_v9  ;;  %v8792_v27 = vadd.f32 %v8760_v44, %v7786_v34  ;;  %v8334_v11 = vpop.f32.mrf.mxu0  ;;  %v16190_v44 = vld [vmem:[#allocation84_spill] sm:$0xff] }
 0x60c   : > { %v8471_v2 = vmax.f32 %v8136_v35, 0.0  ;;  %v8473_v56 = vmax.f32 %v8329_v38, 0.0  ;;  %v7787_v43 = vadd.f32 %v16187_v30, %v6781_v47  ;;  %v8761_v59 = vadd.f32 %v8729_v3, %v15159_v22  ;;  %v8147_v49 = vpop.f32.mrf.mxu1 }
 0x60d   : > { %v8472_v21 = vmax.f32 %v8138_v39, 0.0  ;;  %8835 = vadd.xlane.f32.xlu1 %v8792_v27  ;;  %v8700_v37 = vadd.f32 %v8618_v14, %v8617_v48  ;;  %v15211_v4 = vmul.f32 %v14993_v41, %v8470_v42  ;;  %v8331_v33 = vadd.f32 %v8330_v13, %v14901_v7  ;;  %v8338_v53 = vpop.f32.mrf.mxu0  ;;  %v16192_v48 = vld [vmem:[#allocation68_spill] sm:$0xff]  ;;  %v16193_v27 = vld [vmem:[#allocation85_spill] sm:$0xff] }
 0x60e   : > { %v8140_v61 = vadd.f32 %v8139_v36, %v14796_v46  ;;  %v8793_v5 = vadd.f32 %v8761_v59, %v7787_v43  ;;  %v8333_v45 = vadd.f32 %v8332_v6, %v14845_v51  ;;  %v5776_v22 = vadd.f32 %v16189_v40, %v16188_v63  ;;  %v8149_v62 = vpop.f32.mrf.mxu1 }
 0x60f   : > { %v8622_v12 = vmul.f32 %v14890_v8, %v8472_v21  ;;  %v8621_v57 = vmul.f32 %v14834_v29, %v8471_v2  ;;  %v8474_v9 = vmax.f32 %v8331_v33, 0.0  ;;  %v8730_v24 = vadd.f32 %v8698_v50, %v15172_v20  ;;  %v8340_v19 = vpop.f32.mrf.mxu0  ;;  %v16191_v50 = vld [vmem:[#allocation24_spill] sm:$0xff] }
 0x610   : > { %v8142_v0 = vadd.f32 %v8141_v25, %v14873_v17  ;;  %v15223_v36 = vmul.f32 %v14862_v31, %v8473_v56  ;;  %8837 = vadd.xlane.f32.xlu0 %v8793_v5  ;;  %v8475_v13 = vmax.f32 %v8140_v61, 0.0  ;;  %v6782_v18 = vadd.f32 %v16190_v44, %v5776_v22  ;;  %v8151_v34 = vpop.f32.mrf.mxu1  ;;  %v16194_v61 = vld [vmem:[#allocation101_spill] sm:$0xff] }
 0x611   : > { %v8335_v10 = vadd.f32 %v8334_v11, %v14901_v7  ;;  %v8701_v42 = vadd.f32 %v8622_v12, %v8621_v57  ;;  %v8477_v35 = vmax.f32 %v8333_v45, 0.0  ;;  %v8762_v38 = vadd.f32 %v8730_v24, %v15177_v60  ;;  %v8342_v14 = vpop.f32.mrf.mxu0  ;;  %v16196_v24 = vld [vmem:[#allocation69_spill] sm:$0xff] }
 0x612   : > { %v8476_v6 = vmax.f32 %v8142_v0, 0.0  ;;  %v15229_v20 = vmul.f32 %v14993_v41, %v8474_v9  ;;  %v7788_v25 = vadd.f32 %v16191_v50, %v6782_v18  ;;  %v8146_v28 = vadd.f32 %v8145_v54, %v14796_v46  ;;  %v8155_v47 = vpop.f32.mrf.mxu1  ;;  %v16195_v9 = vld [vmem:[#allocation32_spill] sm:$0xff] }
 0x613   : > { %v8478_v32 = vmax.f32 %v8335_v10, 0.0  ;;  %v8339_v39 = vadd.f32 %v8338_v53, %v14845_v51  ;;  %v6783_v2 = vadd.f32 %v16193_v27, %v16192_v48  ;;  %v8731_v60 = vadd.f32 %v8699_v58, %v15186_v23  ;;  %v8344_v11 = vpop.f32.mrf.mxu0 }
 0x614   : > { %v8626_v3 = vmul.f32 %v14890_v8, %v8476_v6  ;;  %v8625_v56 = vmul.f32 %v14834_v29, %v8475_v13  ;;  %v8794_v30 = vadd.f32 %v8762_v38, %v7788_v25  ;;  %v8479_v43 = vmax.f32 %v8146_v28, 0.0  ;;  %v8157_v21 = vpop.f32.mrf.mxu1 }
 0x615   : > { %v8148_v59 = vadd.f32 %v8147_v49, %v14873_v17  ;;  %v15241_v54 = vmul.f32 %v14862_v31, %v8477_v35  ;;  %v15244_v33 = vmul.f32 %v14993_v41, %v8478_v32  ;;  %v7789_v53 = vadd.f32 %v16194_v61, %v6783_v2  ;;  %v8348_v12 = vpop.f32.mrf.mxu0 }
 0x616   : > { %v8763_v5 = vadd.f32 %v8731_v60, %v15193_v52  ;;  %8839 = vadd.xlane.f32.xlu1 %v8794_v30  ;;  %v8481_v23 = vmax.f32 %v8339_v39, 0.0  ;;  %v8341_v45 = vadd.f32 %v8340_v19, %v14901_v7  ;;  %v8150_v63 = vadd.f32 %v8149_v62, %v14796_v46  ;;  %v8159_v49 = vpop.f32.mrf.mxu1  ;;  %v16197_v62 = vld [vmem:[#allocation86_spill] sm:$0xff]  ;;  %v16200_v30 = vld [vmem:[#allocation87_spill] sm:$0xff] }
 0x617   : > { %v8480_v58 = vmax.f32 %v8148_v59, 0.0  ;;  %v8702_v40 = vadd.f32 %v8626_v3, %v8625_v56  ;;  %v8343_v57 = vadd.f32 %v8342_v14, %v14845_v51  ;;  %v5778_v0 = vadd.f32 %v16196_v24, %v16195_v9  ;;  %v8350_v13 = vpop.f32.mrf.mxu0  ;;  %v16199_v56 = vld [vmem:[#allocation34_spill] sm:$0xff] }
 0x618   : > { %v8795_v22 = vadd.f32 %v8763_v5, %v7789_v53  ;;  %v8629_v44 = vmul.f32 %v14834_v29, %v8479_v43  ;;  %v8482_v18 = vmax.f32 %v8341_v45, 0.0  ;;  %v8732_v10 = vadd.f32 %v8700_v37, %v15206_v16  ;;  %v8161_v35 = vpop.f32.mrf.mxu1  ;;  %v16198_v37 = vld [vmem:[#allocation102_spill] sm:$0xff] }
 0x619   : > { %v8630_v52 = vmul.f32 %v14890_v8, %v8480_v58  ;;  %v8483_v19 = vmax.f32 %v8150_v63, 0.0  ;;  %v6784_v38 = vadd.f32 %v16197_v62, %v5778_v0  ;;  %v8152_v6 = vadd.f32 %v8151_v34, %v14873_v17  ;;  %v8352_v50 = vpop.f32.mrf.mxu0  ;;  %v16201_v63 = vld [vmem:[#allocation103_spill] sm:$0xff] }
 0x61a   : > { %8841 = vadd.xlane.f32.xlu0 %v8795_v22  ;;  %v8345_v14 = vadd.f32 %v8344_v11, %v14901_v7  ;;  %v15260_v25 = vmul.f32 %v14862_v31, %v8481_v23  ;;  %v8485_v28 = vmax.f32 %v8343_v57, 0.0  ;;  %v8764_v3 = vadd.f32 %v8732_v10, %v15211_v4  ;;  %v8165_v39 = vpop.f32.mrf.mxu1 }
 0x61b   : > { %v15262_v32 = vadd.f32 %v8630_v52, %v8629_v44  ;;  %v15266_v16 = vmul.f32 %v14993_v41, %v8482_v18  ;;  %v7790_v48 = vadd.f32 %v16198_v37, %v6784_v38  ;;  %v8484_v27 = vmax.f32 %v8152_v6, 0.0  ;;  %v8354_v34 = vpop.f32.mrf.mxu0  ;;  %v16202_v38 = vld [vmem:[#allocation35_spill] sm:$0xff]  ;;  %v16203_v6 = vld [vmem:[#allocation70_spill] sm:$0xff] }
 0x61c   : > { %v8486_v2 = vmax.f32 %v8345_v14, 0.0  ;;  %v8156_v60 = vadd.f32 %v8155_v47, %v14796_v46  ;;  %v8349_v11 = vadd.f32 %v8348_v12, %v14845_v51  ;;  %v6785_v43 = vadd.f32 %v16200_v30, %v16199_v56  ;;  %v8167_v61 = vpop.f32.mrf.mxu1 }
 0x61d   : > { %v8733_v59 = vadd.f32 %v8701_v42, %v15223_v36  ;;  %v8633_v4 = vmul.f32 %v14834_v29, %v8483_v19  ;;  %v8796_v53 = vadd.f32 %v8764_v3, %v7790_v48  ;;  %v8634_v5 = vmul.f32 %v14890_v8, %v8484_v27  ;;  %v8358_v58 = vpop.f32.mrf.mxu0 }
 0x61e   : > { %v8158_v23 = vadd.f32 %v8157_v21, %v14873_v17  ;;  %v15278_v45 = vmul.f32 %v14862_v31, %v8485_v28  ;;  %v8487_v47 = vmax.f32 %v8156_v60, 0.0  ;;  %v7791_v12 = vadd.f32 %v16201_v63, %v6785_v43  ;;  %v8169_v57 = vpop.f32.mrf.mxu1  ;;  %v16204_v60 = vld [vmem:[#allocation88_spill] sm:$0xff] }
 0x61f   : > { %v8765_v22 = vadd.f32 %v8733_v59, %v15229_v20  ;;  %8843 = vadd.xlane.f32.xlu1 %v8796_v53  ;;  %v8489_v36 = vmax.f32 %v8349_v11, 0.0  ;;  %v8351_v9 = vadd.f32 %v8350_v13, %v14901_v7  ;;  %v8160_v24 = vadd.f32 %v8159_v49, %v14796_v46  ;;  %v8360_v0 = vpop.f32.mrf.mxu0  ;;  %v16205_v59 = vld [vmem:[#allocation104_spill] sm:$0xff] }
 0x620   : > { %v8488_v42 = vmax.f32 %v8158_v23, 0.0  ;;  %v8704_v44 = vadd.f32 %v8634_v5, %v8633_v4  ;;  %v15285_v21 = vmul.f32 %v14993_v41, %v8486_v2  ;;  %v8353_v18 = vadd.f32 %v8352_v50, %v14845_v51  ;;  %v8171_v10 = vpop.f32.mrf.mxu1  ;;  %v16206_v5 = vld [vmem:[#allocation71_spill] sm:$0xff]  ;;  %v16207_v23 = vld [vmem:[#allocation89_spill] sm:$0xff] }
 0x621   : > { %v8797_v52 = vadd.f32 %v8765_v22, %v7791_v12  ;;  %v8637_v19 = vmul.f32 %v14834_v29, %v8487_v47  ;;  %v8490_v62 = vmax.f32 %v8351_v9, 0.0  ;;  %v5780_v14 = vadd.f32 %v16203_v6, %v16202_v38  ;;  %v8362_v13 = vpop.f32.mrf.mxu0 }
 0x622   : > { %v8638_v20 = vmul.f32 %v14890_v8, %v8488_v42  ;;  %v8491_v49 = vmax.f32 %v8160_v24, 0.0  ;;  %v8734_v28 = vadd.f32 %v8702_v40, %v15241_v54  ;;  %v8162_v3 = vadd.f32 %v8161_v35, %v14873_v17  ;;  %v8175_v48 = vpop.f32.mrf.mxu1 }
 0x623   : > { %8845 = vadd.xlane.f32.xlu0 %v8797_v52  ;;  %v8355_v37 = vadd.f32 %v8354_v34, %v14901_v7  ;;  %v15296_v50 = vmul.f32 %v14862_v31, %v8489_v36  ;;  %v8493_v2 = vmax.f32 %v8353_v18, 0.0  ;;  %v6786_v11 = vadd.f32 %v16204_v60, %v5780_v14  ;;  %v8364_v56 = vpop.f32.mrf.mxu0 }
 0x624   : > { %v15298_v27 = vadd.f32 %v8638_v20, %v8637_v19  ;;  %v15302_v30 = vmul.f32 %v14993_v41, %v8490_v62  ;;  %v8766_v43 = vadd.f32 %v8734_v28, %v15244_v33  ;;  %v8492_v54 = vmax.f32 %v8162_v3, 0.0  ;;  %v8177_v35 = vpop.f32.mrf.mxu1 }
 0x625   : > { %v8494_v40 = vmax.f32 %v8355_v37, 0.0  ;;  %v7792_v34 = vadd.f32 %v16205_v59, %v6786_v11  ;;  %v8166_v4 = vadd.f32 %v8165_v39, %v14796_v46  ;;  %v8359_v53 = vadd.f32 %v8358_v58, %v14845_v51  ;;  %v8368_v63 = vpop.f32.mrf.mxu0  ;;  %v16208_v39 = vld [vmem:[#allocation105_spill] sm:$0xff] }
 0x626   : > { %v6787_v47 = vadd.f32 %v16207_v23, %v16206_v5  ;;  %v8641_v12 = vmul.f32 %v14834_v29, %v8491_v49  ;;  %v8642_v22 = vmul.f32 %v14890_v8, %v8492_v54  ;;  %v8735_v33 = vadd.f32 %v15262_v32, %v15260_v25  ;;  %v8179_v42 = vpop.f32.mrf.mxu1 }
 0x627   : > { %v8168_v36 = vadd.f32 %v8167_v61, %v14873_v17  ;;  %v8798_v9 = vadd.f32 %v8766_v43, %v7792_v34  ;;  %v8495_v24 = vmax.f32 %v8166_v4, 0.0  ;;  %v8497_v52 = vmax.f32 %v8359_v53, 0.0  ;;  %v8370_v58 = vpop.f32.mrf.mxu0  ;;  %v16211_v34 = vld [vmem:[#allocation90_spill] sm:$0xff] }
 0x628   : > { %v7793_v18 = vadd.f32 %v16208_v39, %v6787_v47  ;;  %v15317_v19 = vmul.f32 %v14862_v31, %v8493_v2  ;;  %v8767_v20 = vadd.f32 %v8735_v33, %v15266_v16  ;;  %v8361_v38 = vadd.f32 %v8360_v0, %v14901_v7  ;;  %v8181_v6 = vpop.f32.mrf.mxu1  ;;  %v16209_v2 = vld [vmem:[#allocation33_spill] sm:$0xff]  ;;  %v16210_v16 = vld [vmem:[#allocation72_spill] sm:$0xff]  ;;  %v16214_v39 = vld [vmem:[#allocation91_spill] sm:$0xff] }
 0x629   : > { %v8496_v62 = vmax.f32 %v8168_v36, 0.0  ;;  %8847 = vadd.xlane.f32.xlu1 %v8798_v9  ;;  %v8706_v25 = vadd.f32 %v8642_v22, %v8641_v12  ;;  %v15322_v32 = vmul.f32 %v14993_v41, %v8494_v40  ;;  %v8170_v61 = vadd.f32 %v8169_v57, %v14796_v46  ;;  %v8372_v49 = vpop.f32.mrf.mxu0 }
 0x62a   : > { %v8363_v14 = vadd.f32 %v8362_v13, %v14845_v51  ;;  %v8799_v28 = vadd.f32 %v8767_v20, %v7793_v18  ;;  %v8498_v37 = vmax.f32 %v8361_v38, 0.0  ;;  %v5782_v60 = vadd.f32 %v16210_v16, %v16209_v2  ;;  %v15329_v11 = vpop.f32.mrf.mxu1 }
 0x62b   : > { %v8646_v3 = vmul.f32 %v14890_v8, %v8496_v62  ;;  %v8645_v0 = vmul.f32 %v14834_v29, %v8495_v24  ;;  %v15333_v43 = vmul.f32 %v14862_v31, %v8497_v52  ;;  %v8736_v54 = vadd.f32 %v8704_v44, %v15278_v45  ;;  %v8374_v13 = vpop.f32.mrf.mxu0  ;;  %v16212_v44 = vld [vmem:[#allocation106_spill] sm:$0xff]  ;;  %v16213_v52 = vld [vmem:[#allocation15_spill] sm:$0xff] }
 0x62c   : > { %v8172_v57 = vadd.f32 %v8171_v10, %v14873_v17  ;;  %8849 = vadd.xlane.f32.xlu0 %v8799_v28  ;;  %v8499_v40 = vmax.f32 %v8170_v61, 0.0  ;;  %v8501_v59 = vmax.f32 %v8363_v14, 0.0  ;;  %v6788_v4 = vadd.f32 %v16211_v34, %v5782_v60  ;;  %v15339_v5 = vpop.f32.mrf.mxu1  ;;  %v16216_v34 = vld [vmem:[#allocation37_spill] sm:$0xff] }
 0x62d   : > { %v8365_v53 = vadd.f32 %v8364_v56, %v14901_v7  ;;  %v8707_v23 = vadd.f32 %v8646_v3, %v8645_v0  ;;  %v15342_v47 = vmul.f32 %v14993_v41, %v8498_v37  ;;  %v8768_v12 = vadd.f32 %v8736_v54, %v15285_v21  ;;  %v8378_v45 = vpop.f32.mrf.mxu0  ;;  %v16215_v3 = vld [vmem:[#allocation107_spill] sm:$0xff] }
 0x62e   : > { %v8500_v22 = vmax.f32 %v8172_v57, 0.0  ;;  %v7794_v10 = vadd.f32 %v16212_v44, %v6788_v4  ;;  %v8176_v36 = vadd.f32 %v8175_v48, %v14796_v46  ;;  %v8369_v9 = vadd.f32 %v8368_v63, %v14845_v51  ;;  %v15348_v24 = vpop.f32.mrf.mxu1 }
 0x62f   : > { %v8502_v33 = vmax.f32 %v8365_v53, 0.0  ;;  %v6789_v18 = vadd.f32 %v16214_v39, %v16213_v52  ;;  %v8737_v20 = vadd.f32 %v15298_v27, %v15296_v50  ;;  %v8178_v21 = vadd.f32 %v8177_v35, %v14873_v17  ;;  %v8380_v62 = vpop.f32.mrf.mxu0 }
 0x630   : > { %v8650_v56 = vmul.f32 %v14890_v8, %v8500_v22  ;;  %v8649_v38 = vmul.f32 %v14834_v29, %v8499_v40  ;;  %v15358_v61 = vmul.f32 %v14862_v31, %v8501_v59  ;;  %v8800_v48 = vadd.f32 %v8768_v12, %v7794_v10  ;;  %v15360_v14 = vpop.f32.mrf.mxu1 }
 0x631   : > { %v8503_v63 = vmax.f32 %v8176_v36, 0.0  ;;  %v8505_v28 = vmax.f32 %v8369_v9, 0.0  ;;  %v7795_v37 = vadd.f32 %v16215_v3, %v6789_v18  ;;  %v8769_v2 = vadd.f32 %v8737_v20, %v15302_v30  ;;  %v8382_v60 = vpop.f32.mrf.mxu0  ;;  %v16217_v30 = vld [vmem:[#allocation36_spill] sm:$0xff]  ;;  %v16221_v3 = vld [vmem:[#allocation93_spill] sm:$0xff] }
 0x632   : > { %v8504_v16 = vmax.f32 %v8178_v21, 0.0  ;;  %8851 = vadd.xlane.f32.xlu1 %v8800_v48  ;;  %v8708_v50 = vadd.f32 %v8650_v56, %v8649_v38  ;;  %v15365_v27 = vmul.f32 %v14993_v41, %v8502_v33  ;;  %v8371_v35 = vadd.f32 %v8370_v58, %v14901_v7  ;;  %v15369_v54 = vpop.f32.mrf.mxu1  ;;  %v16218_v33 = vld [vmem:[#allocation92_spill] sm:$0xff] }
 0x633   : > { %v8180_v0 = vadd.f32 %v8179_v42, %v14796_v46  ;;  %v8801_v57 = vadd.f32 %v8769_v2, %v7795_v37  ;;  %v8373_v59 = vadd.f32 %v8372_v49, %v14845_v51  ;;  %v5784_v4 = vadd.f32 %v16217_v30, %v16216_v34  ;;  %v8384_v53 = vpop.f32.mrf.mxu0 }
 0x634   : > { %v8654_v40 = vmul.f32 %v14890_v8, %v8504_v16  ;;  %v8653_v12 = vmul.f32 %v14834_v29, %v8503_v63  ;;  %v8506_v22 = vmax.f32 %v8371_v35, 0.0  ;;  %v8738_v44 = vadd.f32 %v8706_v25, %v15317_v19  ;;  %v8197_v56 = vpop.f32.mrf.mxu1  ;;  %v16219_v19 = vld [vmem:[#allocation108_spill] sm:$0xff] }
 0x635   : > { %v8182_v58 = vadd.f32 %v8181_v6, %v14873_v17  ;;  %v8655_v42 = vmul.f32 %v14862_v31, %v8505_v28  ;;  %8853 = vadd.xlane.f32.xlu0 %v8801_v57  ;;  %v8507_v10 = vmax.f32 %v8180_v0, 0.0  ;;  %v6790_v36 = vadd.f32 %v16218_v33, %v5784_v4  ;;  %v8388_v49 = vpop.f32.mrf.mxu0  ;;  %v16220_v28 = vld [vmem:[#allocation16_spill] sm:$0xff] }
 0x636   : > { %v8375_v9 = vadd.f32 %v8374_v13, %v14901_v7  ;;  %v8709_v52 = vadd.f32 %v8654_v40, %v8653_v12  ;;  %v8509_v39 = vmax.f32 %v8373_v59, 0.0  ;;  %v8770_v18 = vadd.f32 %v8738_v44, %v15322_v32  ;;  %v8199_v57 = vpop.f32.mrf.mxu1 }
 0x637   : > { %v8508_v20 = vmax.f32 %v8182_v58, 0.0  ;;  %v8656_v21 = vmul.f32 %v14993_v41, %v8506_v22  ;;  %v7796_v25 = vadd.f32 %v16219_v19, %v6790_v36  ;;  %v8186_v38 = vadd.f32 %v15329_v11, %v14796_v46  ;;  %v8390_v48 = vpop.f32.mrf.mxu0  ;;  %v16223_v58 = vld [vmem:[#allocation39_spill] sm:$0xff] }
 0x638   : > { %v8510_v6 = vmax.f32 %v8375_v9, 0.0  ;;  %v8379_v13 = vadd.f32 %v8378_v45, %v14845_v51  ;;  %v6791_v37 = vadd.f32 %v16221_v3, %v16220_v28  ;;  %v8739_v2 = vadd.f32 %v8707_v23, %v15333_v43  ;;  %v16222_v45 = vld [vmem:[#allocation109_spill] sm:$0xff] }
 0x639   : > { %v8658_v63 = vmul.f32 %v14890_v8, %v8508_v20  ;;  %v8657_v32 = vmul.f32 %v14834_v29, %v8507_v10  ;;  %v8802_v16 = vadd.f32 %v8770_v18, %v7796_v25  ;;  %v8511_v35 = vmax.f32 %v8186_v38, 0.0  ;;  %v8392_v30 = vpop.f32.mrf.mxu0  ;;  %v16224_v10 = vld [vmem:[#allocation38_spill] sm:$0xff]  ;;  %v8201_v18 = vpop.f32.mrf.mxu1 }
 0x63a   : > { %v8188_v0 = vadd.f32 %v15339_v5, %v14873_v17  ;;  %v15395_v11 = vmul.f32 %v14862_v31, %v8509_v39  ;;  %v15398_v40 = vmul.f32 %v14993_v41, %v8510_v6  ;;  %v7797_v59 = vadd.f32 %v16222_v45, %v6791_v37  ;;  %v16225_v20 = vld [vmem:[#allocation94_spill] sm:$0xff] }
 0x63b   : > { %v8771_v34 = vadd.f32 %v8739_v2, %v15342_v47  ;;  %8855 = vadd.xlane.f32.xlu1 %v8802_v16  ;;  %v8513_v43 = vmax.f32 %v8379_v13, 0.0  ;;  %v8381_v4 = vadd.f32 %v8380_v62, %v14901_v7  ;;  %v8190_v5 = vadd.f32 %v15348_v24, %v14796_v46  ;;  %v8394_v25 = vpop.f32.mrf.mxu0 }
 0x63c   : > { %v8512_v23 = vmax.f32 %v8188_v0, 0.0  ;;  %v8710_v12 = vadd.f32 %v8658_v63, %v8657_v32  ;;  %v8383_v44 = vadd.f32 %v8382_v60, %v14845_v51  ;;  %v5786_v33 = vadd.f32 %v16224_v10, %v16223_v58  ;;  %v16227_v32 = vld [vmem:[#allocation17_spill] sm:$0xff]  ;;  %v8205_v0 = vpop.f32.mrf.mxu1 }
 0x63d   : > { %v8803_v22 = vadd.f32 %v8771_v34, %v7797_v59  ;;  %v8661_v36 = vmul.f32 %v14834_v29, %v8511_v35  ;;  %v8514_v9 = vmax.f32 %v8381_v4, 0.0  ;;  %v8740_v39 = vadd.f32 %v8708_v50, %v15358_v61  ;;  %v16226_v61 = vld [vmem:[#allocation110_spill] sm:$0xff] }
 0x63e   : > { %v8662_v47 = vmul.f32 %v14890_v8, %v8512_v23  ;;  %v8515_v62 = vmax.f32 %v8190_v5, 0.0  ;;  %v6792_v19 = vadd.f32 %v16225_v20, %v5786_v33  ;;  %v8192_v24 = vadd.f32 %v15360_v14, %v14873_v17 }
 0x63f   : > { %8857 = vadd.xlane.f32.xlu0 %v8803_v22  ;;  %v8385_v60 = vadd.f32 %v8384_v53, %v14901_v7  ;;  %v8663_v6 = vmul.f32 %v14862_v31, %v8513_v43  ;;  %v8517_v63 = vmax.f32 %v8383_v44, 0.0  ;;  %v8772_v13 = vadd.f32 %v8740_v39, %v15365_v27  ;;  %v16228_v53 = vld [vmem:[#allocation95_spill] sm:$0xff]  ;;  %v8398_v43 = vpop.f32.mrf.mxu0 }
 0x640   : > { %v8711_v38 = vadd.f32 %v8662_v47, %v8661_v36  ;;  %v8664_v28 = vmul.f32 %v14993_v41, %v8514_v9  ;;  %v7798_v50 = vadd.f32 %v16226_v61, %v6792_v19  ;;  %v8516_v3 = vmax.f32 %v8192_v24, 0.0  ;;  %v8207_v36 = vpop.f32.mrf.mxu1  ;;  %v16232_v61 = vld [vmem:[#allocation96_spill] sm:$0xff] }
 0x641   : > { %v8518_v37 = vmax.f32 %v8385_v60, 0.0  ;;  %v8196_v2 = vadd.f32 %v15369_v54, %v14796_v46  ;;  %v8389_v14 = vadd.f32 %v8388_v49, %v14845_v51  ;;  %v6793_v16 = vadd.f32 %v16228_v53, %v16227_v32  ;;  %v16229_v54 = vld [vmem:[#allocation111_spill] sm:$0xff]  ;;  %v8400_v19 = vpop.f32.mrf.mxu0  ;;  %v16233_v53 = vld [vmem:[#allocation112_spill] sm:$0xff] }
 0x642   : > { %v8741_v35 = vadd.f32 %v8709_v52, %v8655_v42  ;;  %v8665_v45 = vmul.f32 %v14834_v29, %v8515_v62  ;;  %v8804_v59 = vadd.f32 %v8772_v13, %v7798_v50  ;;  %v8666_v27 = vmul.f32 %v14890_v8, %v8516_v3  ;;  %v16231_v62 = vld [vmem:[#allocation40_spill] sm:$0xff]  ;;  %v8209_v32 = vpop.f32.mrf.mxu1 }
 0x643   : > { %v8198_v34 = vadd.f32 %v8197_v56, %v14873_v17  ;;  %v15428_v23 = vmul.f32 %v14862_v31, %v8517_v63  ;;  %v8519_v4 = vmax.f32 %v8196_v2, 0.0  ;;  %v7799_v5 = vadd.f32 %v16229_v54, %v6793_v16 }
 0x644   : > { %v8773_v49 = vadd.f32 %v8741_v35, %v8656_v21  ;;  %8859 = vadd.xlane.f32.xlu1 %v8804_v59  ;;  %v8521_v22 = vmax.f32 %v8389_v14, 0.0  ;;  %v8391_v42 = vadd.f32 %v8390_v48, %v14901_v7  ;;  %v8200_v52 = vadd.f32 %v8199_v57, %v14796_v46  ;;  %v16230_v21 = vld [vmem:[#allocation41_spill] sm:$0xff] }
 0x645   : > { %v8520_v44 = vmax.f32 %v8198_v34, 0.0  ;;  %v8712_v58 = vadd.f32 %v8666_v27, %v8665_v45  ;;  %v8668_v10 = vmul.f32 %v14993_v41, %v8518_v37  ;;  %v8393_v56 = vadd.f32 %v8392_v30, %v14845_v51  ;;  %v8402_v45 = vpop.f32.mrf.mxu0 }
 0x646   : > { %v8805_v33 = vadd.f32 %v8773_v49, %v7799_v5  ;;  %v8669_v47 = vmul.f32 %v14834_v29, %v8519_v4  ;;  %v8522_v39 = vmax.f32 %v8391_v42, 0.0  ;;  %v5788_v20 = vadd.f32 %v16231_v62, %v16230_v21  ;;  %v16236_v49 = vld [vmem:[#allocation113_spill] sm:$0xff]  ;;  %v16237_v21 = vld [vmem:[#allocation26_spill] sm:$0xff] }
 0x647   : > { %v8670_v9 = vmul.f32 %v14890_v8, %v8520_v44  ;;  %v8523_v48 = vmax.f32 %v8200_v52, 0.0  ;;  %v8742_v57 = vadd.f32 %v8710_v12, %v15395_v11  ;;  %v8202_v24 = vadd.f32 %v8201_v18, %v14873_v17  ;;  %v16234_v18 = vld [vmem:[#allocation18_spill] sm:$0xff]  ;;  %v8211_v52 = vpop.f32.mrf.mxu1 }
 0x648   : > { %8861 = vadd.xlane.f32.xlu0 %v8805_v33  ;;  %v8395_v60 = vadd.f32 %v8394_v25, %v14901_v7  ;;  %v8671_v30 = vmul.f32 %v14862_v31, %v8521_v22  ;;  %v8525_v13 = vmax.f32 %v8393_v56, 0.0  ;;  %v6794_v50 = vadd.f32 %v16232_v61, %v5788_v20  ;;  %v16235_v25 = vld [vmem:[#allocation97_spill] sm:$0xff] }
 0x649   : > { %v8713_v63 = vadd.f32 %v8670_v9, %v8669_v47  ;;  %v8672_v3 = vmul.f32 %v14993_v41, %v8522_v39  ;;  %v8774_v37 = vadd.f32 %v8742_v57, %v15398_v40  ;;  %v8524_v2 = vmax.f32 %v8202_v24, 0.0 }
 0x64a   : > { %v8526_v14 = vmax.f32 %v8395_v60, 0.0  ;;  %v7800_v16 = vadd.f32 %v16233_v53, %v6794_v50  ;;  %v8206_v11 = vadd.f32 %v8205_v0, %v14796_v46  ;;  %v8399_v12 = vadd.f32 %v8398_v43, %v14845_v51 }
 0x64b   : > { %v6795_v35 = vadd.f32 %v16235_v25, %v16234_v18  ;;  %v8673_v59 = vmul.f32 %v14834_v29, %v8523_v48  ;;  %v8674_v27 = vmul.f32 %v14890_v8, %v8524_v2  ;;  %v8743_v34 = vadd.f32 %v8711_v38, %v8663_v6  ;;  %v16244_v18 = vld [vmem:[#allocation43_spill] sm:$0xff] }
 0x64c   : > { %v8208_v40 = vadd.f32 %v8207_v36, %v14873_v17  ;;  %v8806_v4 = vadd.f32 %v8774_v37, %v7800_v16  ;;  %v8527_v54 = vmax.f32 %v8206_v11, 0.0  ;;  %v8529_v5 = vmax.f32 %v8399_v12, 0.0  ;;  %v8404_v36 = vpop.f32.mrf.mxu0  ;;  %v16241_v16 = vld [vmem:[#allocation19_spill] sm:$0xff]  ;;  %v16243_v12 = vld [vmem:[#allocation44_spill] sm:$0xff] }
 0x64d   : > { %v7801_v22 = vadd.f32 %v16236_v49, %v6795_v35  ;;  %v8675_v0 = vmul.f32 %v14862_v31, %v8525_v13  ;;  %v8775_v44 = vadd.f32 %v8743_v34, %v8664_v28  ;;  %v8401_v42 = vadd.f32 %v8400_v19, %v14901_v7  ;;  %v16238_v28 = vld [vmem:[#allocation42_spill] sm:$0xff]  ;;  %v16242_v11 = vld [vmem:[#allocation99_spill] sm:$0xff] }
 0x64e   : > { %v8528_v43 = vmax.f32 %v8208_v40, 0.0  ;;  %8863 = vadd.xlane.f32.xlu1 %v8806_v4  ;;  %v8714_v33 = vadd.f32 %v8674_v27, %v8673_v59  ;;  %v8676_v56 = vmul.f32 %v14993_v41, %v8526_v14  ;;  %v8210_v6 = vadd.f32 %v8209_v32, %v14796_v46  ;;  %v16240_v14 = vld [vmem:[#allocation49_spill] sm:$0xff]  ;;  %v16247_v4 = vld [vmem:[#allocation100_spill] sm:$0xff] }
 0x64f   : > { %v8403_v38 = vadd.f32 %v8402_v45, %v14845_v51  ;;  %v8677_v47 = vmul.f32 %v14834_v29, %v8527_v54  ;;  %v8807_v9 = vadd.f32 %v8775_v44, %v7801_v22  ;;  %v5790_v62 = vadd.f32 %v16238_v28, %v16237_v21  ;;  %v16239_v51 = vld [vmem:[#allocation98_spill] sm:$0xff]  ;;  %v16246_v45 = vld [vmem:[#allocation28_spill] sm:$0xff] }
 0x650   : > { %v8678_v39 = vmul.f32 %v14890_v8, %v8528_v43  ;;  %v8679_v20 = vmul.f32 %v14862_v31, %v8529_v5  ;;  %v8531_v19 = vmax.f32 %v8210_v6, 0.0  ;;  %v8744_v48 = vadd.f32 %v8712_v58, %v15428_v23  ;;  %v16248_v22 = vld [vmem:[#allocation46_spill] sm:$0xff] }
 0x651   : > { %v8212_v57 = vadd.f32 %v8211_v52, %v14873_v17  ;;  %8865 = vadd.xlane.f32.xlu0 %v8807_v9  ;;  %v8530_v46 = vmax.f32 %v8401_v42, 0.0  ;;  %v8533_v24 = vmax.f32 %v8403_v38, 0.0  ;;  %v6796_v60 = vadd.f32 %v16239_v51, %v5790_v62  ;;  %v16250_v42 = vld [vmem:[#allocation29_spill] sm:$0xff] }
 0x652   : > { %v8405_v13 = vadd.f32 %v8404_v36, %v14901_v7  ;;  %v8715_v61 = vadd.f32 %v8678_v39, %v8677_v47  ;;  %v8681_v50 = vmul.f32 %v14834_v29, %v8531_v19  ;;  %v8776_v37 = vadd.f32 %v8744_v48, %v8668_v10  ;;  %v16245_v7 = vld [vmem:[#allocation27_spill] sm:$0xff] }
 0x653   : > { %v8532_v2 = vmax.f32 %v8212_v57, 0.0  ;;  %v7802_v32 = vadd.f32 %v16240_v14, %v6796_v60  ;;  %v6797_v23 = vadd.f32 %v16242_v11, %v16241_v16  ;;  %v8745_v58 = vadd.f32 %v8713_v63, %v8671_v30 }
 0x654   : > { %v8534_v53 = vmax.f32 %v8405_v13, 0.0  ;;  %v5792_v25 = vadd.f32 %v16244_v18, %v16243_v12  ;;  %v8746_v35 = vadd.f32 %v8714_v33, %v8675_v0  ;;  %v6799_v59 = vadd.f32 %v16246_v45, %v16245_v7  ;;  %v16249_v0 = vld [vmem:[#allocation45_spill] sm:$0xff] }
 0x655   : > { %v8682_v17 = vmul.f32 %v14890_v8, %v8532_v2  ;;  %v8683_v29 = vmul.f32 %v14862_v31, %v8533_v24  ;;  %v8808_v10 = vadd.f32 %v8776_v37, %v7802_v32  ;;  %v7803_v27 = vadd.f32 %v14937_v26, %v6797_v23 }
 0x656   : > { %v8777_v34 = vadd.f32 %v8745_v58, %v8672_v3  ;;  %v6798_v54 = vadd.f32 %v16247_v4, %v5792_v25  ;;  %v8778_v30 = vadd.f32 %v8746_v35, %v8676_v56  ;;  %v7805_v63 = vadd.f32 %v14966_v1, %v6799_v59 }
 0x657   : > { %v8716_v40 = vadd.f32 %v8682_v17, %v8681_v50  ;;  %v8680_v8 = vmul.f32 %v14993_v41, %v8530_v46  ;;  %8867 = vadd.xlane.f32.xlu1 %v8808_v10  ;;  %v8747_v49 = vadd.f32 %v8715_v61, %v8679_v20  ;;  %v5794_v44 = vadd.f32 %v16249_v0, %v16248_v22 }
 0x658   : > { %v8809_v5 = vadd.f32 %v8777_v34, %v7803_v27  ;;  %v8684_v31 = vmul.f32 %v14993_v41, %v8534_v53  ;;  %v7804_v43 = vadd.f32 %v14949_v15, %v6798_v54  ;;  %v15489_v38 = vstv %s8877_s9 }
 0x659   : > { %v8748_v26 = vadd.f32 %v8716_v40, %v8683_v29  ;;  %v8779_v3 = vadd.f32 %v8747_v49, %v8680_v8  ;;  %v6800_v52 = vadd.f32 %v16250_v42, %v5794_v44 }
 0x65a   : > { %8869 = vadd.xlane.f32.xlu0 %v8809_v5  ;;  %v8810_v33 = vadd.f32 %v8778_v30, %v7804_v43 }
 0x65b   : > { %v8780_v56 = vadd.f32 %v8748_v26, %v8684_v31  ;;  %v8811_v1 = vadd.f32 %v8779_v3, %v7805_v63  ;;  %v7806_v6 = vadd.f32 %v14982_v55, %v6800_v52 }
 0x65c   : > { %8871 = vadd.xlane.f32.xlu1 %v8810_v33 }
 0x65d   : > { %v8812_v36 = vadd.f32 %v8780_v56, %v7806_v6  ;;  %v8814_v47 = vpop.xlane.xlu0 %8813 }
 0x65e   : > { %8873 = vadd.xlane.f32.xlu0 %v8811_v1  ;;  %v8879_v41 = vadd.f32 %v15489_v38, %v8814_v47 }
 0x660   : > { %8875 = vadd.xlane.f32.xlu1 %v8812_v36  ;;  %v9541_v15 = vmul.f32 -1.442695, %v8879_v41 }
 0x661   : > { %v8816_v9 = vpop.xlane.xlu0 %8815 }
 0x662   : > { %9773 = vpow2.f32 %v9541_v15  ;;  %v8880_v39 = vadd.f32 %v15489_v38, %v8816_v9 }
 0x664   : > { %v9542_v21 = vmul.f32 -1.442695, %v8880_v39 }
 0x665   : > { %v8818_v28 = vpop.xlane.xlu1 %8817 }
 0x666   : > { %9775 = vpow2.f32 %v9542_v21  ;;  %v8881_v55 = vadd.f32 %v15489_v38, %v8818_v28 }
 0x668   : > { %v9543_v62 = vmul.f32 -1.442695, %v8881_v55 }
 0x66a   : > { %v8820_v20 = vpop.xlane.xlu1 %8819  ;;  %9777 = vpow2.f32 %v9543_v62 }
 0x66b   : > { %v8882_v19 = vadd.f32 %v15489_v38, %v8820_v20 }
 0x66d   : > { %v9544_v48 = vmul.f32 -1.442695, %v8882_v19 }
 0x66f   : > { %9779 = vpow2.f32 %v9544_v48  ;;  %v9774_v57 = vpop.eup %9773 }
 0x670   : > { %v8822_v46 = vpop.xlane.xlu0 %8821  ;;  %v9007_v24 = vadd.f32 1.0, %v9774_v57 }
 0x671   : > { %v8883_v51 = vadd.f32 %v15489_v38, %v8822_v46 }
 0x672   : > { %9781 = vrcp.f32 %v9007_v24 }
 0x673   : > { %v9545_v60 = vmul.f32 -1.442695, %v8883_v51  ;;  %v9776_v13 = vpop.eup %9775 }
 0x674   : > { %v9008_v61 = vadd.f32 1.0, %v9776_v13 }
 0x675   : > { %9783 = vpow2.f32 %v9545_v60 }
 0x676   : > { %9785 = vrcp.f32 %v9008_v61 }
 0x677   : > { %v9778_v50 = vpop.eup %9777 }
 0x678   : > { %v9009_v37 = vadd.f32 1.0, %v9778_v50  ;;  %v8824_v2 = vpop.xlane.xlu1 %8823 }
 0x679   : > { %v8884_v14 = vadd.f32 %v15489_v38, %v8824_v2 }
 0x67a   : > { %9787 = vrcp.f32 %v9009_v37 }
 0x67b   : > { %v9546_v53 = vmul.f32 -1.442695, %v8884_v14 }
 0x67c   : > { %v9780_v32 = vpop.eup %9779  ;;  %v8826_v11 = vpop.xlane.xlu0 %8825 }
 0x67d   : > { %v9010_v16 = vadd.f32 1.0, %v9780_v32  ;;  %9789 = vpow2.f32 %v9546_v53  ;;  %v8885_v23 = vadd.f32 %v15489_v38, %v8826_v11 }
 0x67f   : > { %9791 = vrcp.f32 %v9010_v16  ;;  %v9782_v58 = vpop.eup %9781  ;;  %v9547_v17 = vmul.f32 -1.442695, %v8885_v23 }
 0x680   : > { %9104 = vst.msk [vmem:[%s15502_s13] sm:$0xff] %vm9103_vm0, %v9782_v58 }
 0x681   : > { %9793 = vpow2.f32 %v9547_v17 }
 0x682   : > { %v9784_v12 = vpop.eup %9783 }
 0x683   : > { %v9011_v18 = vadd.f32 1.0, %v9784_v12  ;;  %v9786_v25 = vpop.eup %9785 }
 0x684   : > { %v8828_v35 = vpop.xlane.xlu1 %8827  ;;  %9105 = vst.msk [vmem:[%s15502_s13 + $0x8] sm:$0xff] %vm9103_vm0, %v9786_v25 }
 0x685   : > { %9795 = vrcp.f32 %v9011_v18  ;;  %v8886_v7 = vadd.f32 %v15489_v38, %v8828_v35 }
 0x687   : > { %v9548_v45 = vmul.f32 -1.442695, %v8886_v7  ;;  %v8830_v59 = vpop.xlane.xlu0 %8829  ;;  %v9788_v29 = vpop.eup %9787 }
 0x688   : > { %v8887_v10 = vadd.f32 %v15489_v38, %v8830_v59  ;;  %9106 = vst.msk [vmem:[%s15502_s13 + $0x10] sm:$0xff] %vm9103_vm0, %v9788_v29 }
 0x689   : > { %9797 = vpow2.f32 %v9548_v45 }
 0x68a   : > { %v9549_v27 = vmul.f32 -1.442695, %v8887_v10  ;;  %v9790_v34 = vpop.eup %9789 }
 0x68b   : > { %v9012_v4 = vadd.f32 1.0, %v9790_v34 }
 0x68c   : > { %v9792_v40 = vpop.eup %9791  ;;  %9799 = vpow2.f32 %v9549_v27 }
 0x68d   : > { %9107 = vst.msk [vmem:[%s15502_s13 + $0x18] sm:$0xff] %vm9103_vm0, %v9792_v40  ;;  %9801 = vrcp.f32 %v9012_v4  ;;  %v8832_v54 = vpop.xlane.xlu1 %8831 }
 0x68e   : > { %v9794_v30 = vpop.eup %9793  ;;  %v8888_v63 = vadd.f32 %v15489_v38, %v8832_v54 }
 0x68f   : > { %v9013_v8 = vadd.f32 1.0, %v9794_v30 }
 0x690   : > { %v9550_v5 = vmul.f32 -1.442695, %v8888_v63  ;;  %v8834_v49 = vpop.xlane.xlu0 %8833 }
 0x691   : > { %9803 = vrcp.f32 %v9013_v8  ;;  %v8889_v0 = vadd.f32 %v15489_v38, %v8834_v49 }
 0x692   : > { %v9796_v22 = vpop.eup %9795  ;;  %9805 = vpow2.f32 %v9550_v5 }
 0x693   : > { %9108 = vst.msk [vmem:[%s15502_s13 + $0x20] sm:$0xff] %vm9103_vm0, %v9796_v22  ;;  %v9551_v44 = vmul.f32 -1.442695, %v8889_v0 }
 0x695   : > { %9807 = vpow2.f32 %v9551_v44 }
 0x696   : > { %v9798_v31 = vpop.eup %9797  ;;  %v8836_v26 = vpop.xlane.xlu1 %8835 }
 0x697   : > { %v9014_v43 = vadd.f32 1.0, %v9798_v31  ;;  %v8890_v3 = vadd.f32 %v15489_v38, %v8836_v26 }
 0x699   : > { %v9800_v42 = vpop.eup %9799  ;;  %9809 = vrcp.f32 %v9014_v43  ;;  %v9552_v33 = vmul.f32 -1.442695, %v8890_v3  ;;  %v8838_v56 = vpop.xlane.xlu0 %8837 }
 0x69a   : > { %v9015_v52 = vadd.f32 1.0, %v9800_v42  ;;  %v9802_v1 = vpop.eup %9801  ;;  %v8891_v6 = vadd.f32 %v15489_v38, %v8838_v56 }
 0x69b   : > { %9109 = vst.msk [vmem:[%s15502_s13 + $0x28] sm:$0xff] %vm9103_vm0, %v9802_v1 }
 0x69c   : > { %9811 = vrcp.f32 %v9015_v52  ;;  %v9553_v36 = vmul.f32 -1.442695, %v8891_v6 }
 0x69d   : > { %9813 = vpow2.f32 %v9552_v33 }
 0x69e   : > { %v9804_v47 = vpop.eup %9803  ;;  %9815 = vpow2.f32 %v9553_v36 }
 0x69f   : > { %v9806_v41 = vpop.eup %9805  ;;  %9110 = vst.msk [vmem:[%s15502_s13 + $0x30] sm:$0xff] %vm9103_vm0, %v9804_v47  ;;  %v8840_v15 = vpop.xlane.xlu1 %8839 }
 0x6a0   : > { %v9016_v9 = vadd.f32 1.0, %v9806_v41  ;;  %v8892_v39 = vadd.f32 %v15489_v38, %v8840_v15 }
 0x6a2   : > { %v9808_v21 = vpop.eup %9807  ;;  %9817 = vrcp.f32 %v9016_v9  ;;  %v9554_v28 = vmul.f32 -1.442695, %v8892_v39 }
 0x6a3   : > { %v8842_v55 = vpop.xlane.xlu0 %8841  ;;  %v9017_v62 = vadd.f32 1.0, %v9808_v21 }
 0x6a4   : > { %v8893_v20 = vadd.f32 %v15489_v38, %v8842_v55  ;;  %9819 = vpow2.f32 %v9554_v28 }
 0x6a5   : > { %9821 = vrcp.f32 %v9017_v62 }
 0x6a6   : > { %v9810_v19 = vpop.eup %9809  ;;  %v9555_v48 = vmul.f32 -1.442695, %v8893_v20 }
 0x6a7   : > { %9111 = vst.msk [vmem:[%s15502_s13 + $0x38] sm:$0xff] %vm9103_vm0, %v9810_v19 }
 0x6a8   : > { %9823 = vpow2.f32 %v9555_v48  ;;  %v8844_v46 = vpop.xlane.xlu1 %8843 }
 0x6a9   : > { %v9812_v57 = vpop.eup %9811  ;;  %v8894_v51 = vadd.f32 %v15489_v38, %v8844_v46 }
 0x6aa   : > { %v9814_v24 = vpop.eup %9813  ;;  %9112 = vst.msk [vmem:[%s15502_s13 + $0x40] sm:$0xff] %vm9103_vm0, %v9812_v57 }
 0x6ab   : > { %v9018_v60 = vadd.f32 1.0, %v9814_v24  ;;  %v9816_v13 = vpop.eup %9815  ;;  %v9556_v61 = vmul.f32 -1.442695, %v8894_v51 }
 0x6ac   : > { %v8846_v50 = vpop.xlane.xlu0 %8845  ;;  %v9019_v37 = vadd.f32 1.0, %v9816_v13 }
 0x6ad   : > { %9825 = vrcp.f32 %v9018_v60  ;;  %v8895_v2 = vadd.f32 %v15489_v38, %v8846_v50 }
 0x6ae   : > { %9827 = vpow2.f32 %v9556_v61 }
 0x6af   : > { %9829 = vrcp.f32 %v9019_v37  ;;  %v9557_v14 = vmul.f32 -1.442695, %v8895_v2  ;;  %v9818_v32 = vpop.eup %9817 }
 0x6b0   : > { %9113 = vst.msk [vmem:[%s15502_s13 + $0x48] sm:$0xff] %vm9103_vm0, %v9818_v32 }
 0x6b1   : > { %9831 = vpow2.f32 %v9557_v14  ;;  %v9820_v53 = vpop.eup %9819 }
 0x6b2   : > { %v9822_v16 = vpop.eup %9821  ;;  %v9020_v11 = vadd.f32 1.0, %v9820_v53  ;;  %v8848_v23 = vpop.xlane.xlu1 %8847 }
 0x6b3   : > { %9114 = vst.msk [vmem:[%s15502_s13 + $0x50] sm:$0xff] %vm9103_vm0, %v9822_v16  ;;  %v8896_v58 = vadd.f32 %v15489_v38, %v8848_v23 }
 0x6b4   : > { %9833 = vrcp.f32 %v9020_v11 }
 0x6b5   : > { %v9824_v17 = vpop.eup %9823  ;;  %v9558_v18 = vmul.f32 -1.442695, %v8896_v58  ;;  %v8850_v25 = vpop.xlane.xlu0 %8849 }
 0x6b6   : > { %v9021_v12 = vadd.f32 1.0, %v9824_v17  ;;  %v8897_v35 = vadd.f32 %v15489_v38, %v8850_v25 }
 0x6b8   : > { %9835 = vrcp.f32 %v9021_v12  ;;  %v9559_v7 = vmul.f32 -1.442695, %v8897_v35 }
 0x6b9   : > { %9837 = vpow2.f32 %v9558_v18 }
 0x6ba   : > { %v9826_v45 = vpop.eup %9825  ;;  %9839 = vpow2.f32 %v9559_v7 }
 0x6bb   : > { %v9828_v59 = vpop.eup %9827  ;;  %9115 = vst.msk [vmem:[%s15502_s13 + $0x58] sm:$0xff] %vm9103_vm0, %v9826_v45  ;;  %v8852_v27 = vpop.xlane.xlu1 %8851 }
 0x6bc   : > { %v9830_v29 = vpop.eup %9829  ;;  %v9022_v10 = vadd.f32 1.0, %v9828_v59  ;;  %v8898_v34 = vadd.f32 %v15489_v38, %v8852_v27 }
 0x6bd   : > { %9116 = vst.msk [vmem:[%s15502_s13 + $0x60] sm:$0xff] %vm9103_vm0, %v9830_v29 }
 0x6be   : > { %v9832_v40 = vpop.eup %9831  ;;  %9841 = vrcp.f32 %v9022_v10  ;;  %v9560_v54 = vmul.f32 -1.442695, %v8898_v34  ;;  %v8854_v30 = vpop.xlane.xlu0 %8853 }
 0x6bf   : > { %v9023_v4 = vadd.f32 1.0, %v9832_v40  ;;  %v8899_v63 = vadd.f32 %v15489_v38, %v8854_v30 }
 0x6c1   : > { %9843 = vrcp.f32 %v9023_v4  ;;  %v9834_v8 = vpop.eup %9833  ;;  %v9561_v5 = vmul.f32 -1.442695, %v8899_v63 }
 0x6c2   : > { %9845 = vpow2.f32 %v9560_v54  ;;  %9117 = vst.msk [vmem:[%s15502_s13 + $0x68] sm:$0xff] %vm9103_vm0, %v9834_v8 }
 0x6c3   : > { %9847 = vpow2.f32 %v9561_v5 }
 0x6c4   : > { %v8856_v22 = vpop.xlane.xlu1 %8855 }
 0x6c5   : > { %v9836_v49 = vpop.eup %9835  ;;  %v8900_v44 = vadd.f32 %v15489_v38, %v8856_v22 }
 0x6c6   : > { %v9838_v0 = vpop.eup %9837  ;;  %9118 = vst.msk [vmem:[%s15502_s13 + $0x70] sm:$0xff] %vm9103_vm0, %v9836_v49 }
 0x6c7   : > { %v9024_v31 = vadd.f32 1.0, %v9838_v0  ;;  %v9840_v43 = vpop.eup %9839  ;;  %v9562_v26 = vmul.f32 -1.442695, %v8900_v44 }
 0x6c8   : > { %v8858_v3 = vpop.xlane.xlu0 %8857  ;;  %v9025_v42 = vadd.f32 1.0, %v9840_v43 }
 0x6c9   : > { %9849 = vrcp.f32 %v9024_v31  ;;  %v8901_v52 = vadd.f32 %v15489_v38, %v8858_v3 }
 0x6ca   : > { %9851 = vpow2.f32 %v9562_v26 }
 0x6cb   : > { %v9842_v33 = vpop.eup %9841  ;;  %9853 = vrcp.f32 %v9025_v42  ;;  %v9563_v56 = vmul.f32 -1.442695, %v8901_v52 }
 0x6cc   : > { %9119 = vst.msk [vmem:[%s15502_s13 + $0x78] sm:$0xff] %vm9103_vm0, %v9842_v33 }
 0x6cd   : > { %9855 = vpow2.f32 %v9563_v56  ;;  %v8860_v6 = vpop.xlane.xlu1 %8859 }
 0x6ce   : > { %v9844_v1 = vpop.eup %9843  ;;  %v8902_v47 = vadd.f32 %v15489_v38, %v8860_v6 }
 0x6cf   : > { %v9846_v36 = vpop.eup %9845  ;;  %9120 = vst.msk [vmem:[%s15502_s13 + $0x80] sm:$0xff] %vm9103_vm0, %v9844_v1 }
 0x6d0   : > { %v9026_v41 = vadd.f32 1.0, %v9846_v36  ;;  %v9848_v15 = vpop.eup %9847  ;;  %v9564_v9 = vmul.f32 -1.442695, %v8902_v47 }
 0x6d1   : > { %v8862_v39 = vpop.xlane.xlu0 %8861  ;;  %v9027_v21 = vadd.f32 1.0, %v9848_v15 }
 0x6d2   : > { %9857 = vrcp.f32 %v9026_v41  ;;  %v8903_v28 = vadd.f32 %v15489_v38, %v8862_v39 }
 0x6d3   : > { %9859 = vpow2.f32 %v9564_v9 }
 0x6d4   : > { %9861 = vrcp.f32 %v9027_v21  ;;  %v9565_v55 = vmul.f32 -1.442695, %v8903_v28 }
 0x6d6   : > { %v9850_v62 = vpop.eup %9849  ;;  %9863 = vpow2.f32 %v9565_v55 }
 0x6d7   : > { %v9852_v20 = vpop.eup %9851  ;;  %9121 = vst.msk [vmem:[%s15502_s13 + $0x88] sm:$0xff] %vm9103_vm0, %v9850_v62  ;;  %v8864_v57 = vpop.xlane.xlu1 %8863 }
 0x6d8   : > { %v9854_v19 = vpop.eup %9853  ;;  %v9028_v48 = vadd.f32 1.0, %v9852_v20  ;;  %v8904_v46 = vadd.f32 %v15489_v38, %v8864_v57 }
 0x6d9   : > { %9122 = vst.msk [vmem:[%s15502_s13 + $0x90] sm:$0xff] %vm9103_vm0, %v9854_v19 }
 0x6da   : > { %v9856_v24 = vpop.eup %9855  ;;  %9865 = vrcp.f32 %v9028_v48  ;;  %v9566_v60 = vmul.f32 -1.442695, %v8904_v46  ;;  %v8866_v13 = vpop.xlane.xlu0 %8865 }
 0x6db   : > { %v9029_v51 = vadd.f32 1.0, %v9856_v24  ;;  %v8905_v61 = vadd.f32 %v15489_v38, %v8866_v13 }
 0x6dd   : > { %9867 = vrcp.f32 %v9029_v51  ;;  %v9567_v50 = vmul.f32 -1.442695, %v8905_v61 }
 0x6de   : > { %9869 = vpow2.f32 %v9566_v60 }
 0x6df   : > { %v9858_v37 = vpop.eup %9857  ;;  %9871 = vpow2.f32 %v9567_v50 }
 0x6e0   : > { %v9860_v2 = vpop.eup %9859  ;;  %9123 = vst.msk [vmem:[%s15502_s13 + $0x98] sm:$0xff] %vm9103_vm0, %v9858_v37  ;;  %v8868_v53 = vpop.xlane.xlu1 %8867 }
 0x6e1   : > { %v9862_v14 = vpop.eup %9861  ;;  %v9030_v32 = vadd.f32 1.0, %v9860_v2  ;;  %v8906_v16 = vadd.f32 %v15489_v38, %v8868_v53 }
 0x6e2   : > { %9124 = vst.msk [vmem:[%s15502_s13 + $0xa0] sm:$0xff] %vm9103_vm0, %v9862_v14 }
 0x6e3   : > { %v9864_v11 = vpop.eup %9863  ;;  %9873 = vrcp.f32 %v9030_v32  ;;  %v8870_v23 = vpop.xlane.xlu0 %8869  ;;  %v9568_v17 = vmul.f32 -1.442695, %v8906_v16 }
 0x6e4   : > { %v9031_v58 = vadd.f32 1.0, %v9864_v11  ;;  %v8907_v12 = vadd.f32 %v15489_v38, %v8870_v23 }
 0x6e5   : > { %v8872_v25 = vpop.xlane.xlu1 %8871 }
 0x6e6   : > { %9875 = vrcp.f32 %v9031_v58  ;;  %v9569_v18 = vmul.f32 -1.442695, %v8907_v12  ;;  %v8908_v7 = vadd.f32 %v15489_v38, %v8872_v25 }
 0x6e7   : > { %v9866_v35 = vpop.eup %9865  ;;  %9877 = vpow2.f32 %v9568_v17  ;;  %v8874_v45 = vpop.xlane.xlu0 %8873 }
 0x6e8   : > { %9125 = vst.msk [vmem:[%s15502_s13 + $0xa8] sm:$0xff] %vm9103_vm0, %v9866_v35  ;;  %9879 = vpow2.f32 %v9569_v18  ;;  %v8909_v59 = vadd.f32 %v15489_v38, %v8874_v45  ;;  %v9570_v29 = vmul.f32 -1.442695, %v8908_v7 }
 0x6e9   : > { %v8876_v34 = vpop.xlane.xlu1 %8875 }
 0x6ea   : > { %v9868_v10 = vpop.eup %9867  ;;  %v9571_v27 = vmul.f32 -1.442695, %v8909_v59  ;;  %9881 = vpow2.f32 %v9570_v29  ;;  %v8910_v4 = vadd.f32 %v15489_v38, %v8876_v34 }
 0x6eb   : > { %v9870_v40 = vpop.eup %9869  ;;  %9126 = vst.msk [vmem:[%s15502_s13 + $0xb0] sm:$0xff] %vm9103_vm0, %v9868_v10 }
 0x6ec   : > { %v9032_v54 = vadd.f32 1.0, %v9870_v40  ;;  %9883 = vpow2.f32 %v9571_v27  ;;  %v9872_v30 = vpop.eup %9871  ;;  %v9572_v63 = vmul.f32 -1.442695, %v8910_v4 }
 0x6ed   : > { %v9033_v8 = vadd.f32 1.0, %v9872_v30 }
 0x6ee   : > { %9885 = vrcp.f32 %v9032_v54 }
 0x6ef   : > { %9887 = vpow2.f32 %v9572_v63 }
 0x6f0   : > { %v9874_v5 = vpop.eup %9873  ;;  %9889 = vrcp.f32 %v9033_v8 }
 0x6f1   : > { %9127 = vst.msk [vmem:[%s15502_s13 + $0xb8] sm:$0xff] %vm9103_vm0, %v9874_v5 }
 0x6f3   : > { %v9876_v49 = vpop.eup %9875 }
 0x6f4   : > { %v9878_v22 = vpop.eup %9877  ;;  %9128 = vst.msk [vmem:[%s15502_s13 + $0xc0] sm:$0xff] %vm9103_vm0, %v9876_v49 }
 0x6f5   : > { %v9880_v0 = vpop.eup %9879  ;;  %v9034_v44 = vadd.f32 1.0, %v9878_v22 }
 0x6f6   : > { %v9035_v38 = vadd.f32 1.0, %v9880_v0 }
 0x6f7   : > { %9891 = vrcp.f32 %v9034_v44  ;;  %v9882_v31 = vpop.eup %9881 }
 0x6f8   : > { %9893 = vrcp.f32 %v9035_v38  ;;  %v9036_v26 = vadd.f32 1.0, %v9882_v31 }
 0x6f9   : > { %v9884_v43 = vpop.eup %9883 }
 0x6fa   : > { %v9037_v3 = vadd.f32 1.0, %v9884_v43  ;;  %9895 = vrcp.f32 %v9036_v26 }
 0x6fb   : > { %v9886_v42 = vpop.eup %9885 }
 0x6fc   : > { %v9888_v52 = vpop.eup %9887  ;;  %9129 = vst.msk [vmem:[%s15502_s13 + $0xc8] sm:$0xff] %vm9103_vm0, %v9886_v42  ;;  %9897 = vrcp.f32 %v9037_v3 }
 0x6fd   : > { %v9890_v33 = vpop.eup %9889  ;;  %v9038_v56 = vadd.f32 1.0, %v9888_v52 }
 0x6fe   : > { %9130 = vst.msk [vmem:[%s15502_s13 + $0xd0] sm:$0xff] %vm9103_vm0, %v9890_v33 }
 0x6ff   : > { %9899 = vrcp.f32 %v9038_v56 }
 0x704   : > { %v9892_v1 = vpop.eup %9891 }
 0x705   : > { %v9894_v6 = vpop.eup %9893  ;;  %9131 = vst.msk [vmem:[%s15502_s13 + $0xd8] sm:$0xff] %vm9103_vm0, %v9892_v1 }
 0x706   : > { %9132 = vst.msk [vmem:[%s15502_s13 + $0xe0] sm:$0xff] %vm9103_vm0, %v9894_v6 }
 0x707   : > { %v9896_v36 = vpop.eup %9895 }
 0x708   : > { %9133 = vst.msk [vmem:[%s15502_s13 + $0xe8] sm:$0xff] %vm9103_vm0, %v9896_v36 }
 0x709   : > { %v9898_v47 = vpop.eup %9897 }
 0x70a   : > { %9134 = vst.msk [vmem:[%s15502_s13 + $0xf0] sm:$0xff] %vm9103_vm0, %v9898_v47 }
 0x70c   : > { %v9900_v41 = vpop.eup %9899 }
 0x70d   : > { %9135 = vst.msk [vmem:[%s15502_s13 + $0xf8] sm:$0xff] %vm9103_vm0, %v9900_v41 }
 0x70e PF: > { %p20_p12 = scmp.ge.s32.totalorder %s10214_s16, 4   ;;  %s16251_s26 = smov %s10067_s27 }
 0x70f   : > { %s16252_s27 = smov %s10071_s28  ;;  %s16253_s28 = smov %s10225_s24 }
 0x710   : > { %s16254_s29 = smov %s10214_s16  ;;  %22 = sbr.rel (!%p20_p12) target bundleno = 7 (0x7), region = 104 }
 0x715   :  { %9158 = vsyncpa [#allocation4], 1 }
 0x716   :  { %9160 = vsyncpa [#allocation4 + $0x1], 1 }
 0x717   :  { %9161 = vsyncpa [#allocation6], 1 }
 0x718   :  { %9162 = vsyncpa [#allocation9], 1 }

</bundles_post_ra>
